<compile_context>
chip_gen: v5e
topology: v5e:2x2
jax: 0.10.0
libtpu: 0.0.40
codegen_flags: <defaults>
</compile_context>

<pallas_src>
import functools

import jax
import jax.numpy as jnp
from jax.experimental import pallas as pl
from jax.experimental.pallas import tpu as pltpu

BETA = 0.95
THRESHOLD = 1.0
CHUNK = 8  # fc2 batching granularity == native sublane tile -> aligned slab stores


def _leaky_step(mem, cur, spk_prev):
    """One snntorch Leaky update (subtract reset). reset_t == spk_{t-1} exactly."""
    mem = BETA * mem + cur - spk_prev          # THRESHOLD == 1.0, so reset*thr == spk_prev
    spk = (mem > THRESHOLD).astype(jnp.float32)
    return mem, spk


def snn_kernel(x_ref, w1_ref, b1_ref, w2_ref, b2_ref, out_ref, *, chunks):
    f32 = jnp.float32
    BH = w1_ref.shape[1]   # batch * hidden   (batch folded into lanes)
    BO = w2_ref.shape[1]   # batch * output

    # fc1 is time-invariant: compute once for the whole run.
    cur1 = jnp.dot(x_ref[...], w1_ref[...], preferred_element_type=f32) + b1_ref[...]
    w2 = w2_ref[...]
    b2 = b2_ref[...]

    # Row-selection masks used to scatter a (1, X) step-row into an (8, X) register tile
    # (keeps per-step spikes in vregs -- no per-step VMEM stores).
    row_h = jax.lax.broadcasted_iota(jnp.int32, (CHUNK, BH), 0)
    row_o = jax.lax.broadcasted_iota(jnp.int32, (CHUNK, BO), 0)

    mem1 = jnp.zeros((1, BH), f32)   # init_leaky(): membranes start at zero
    spk1 = jnp.zeros((1, BH), f32)
    mem2 = jnp.zeros((1, BO), f32)
    spk2 = jnp.zeros((1, BO), f32)

    def l1_chunk(mem1, spk1, nsteps):
        """Run `nsteps` layer-1 steps; pack spikes as rows of an (8, BH) register tile."""
        s_tile = jnp.zeros((CHUNK, BH), f32)
        for i in range(nsteps):
            mem1, spk1 = _leaky_step(mem1, cur1, spk1)
            s_tile = jnp.where(row_h == i, spk1, s_tile)
        return mem1, spk1, s_tile

    def fc2(s_tile):
        # One batched MXU matmul per chunk: (8, BH) x (BH, BO).
        return jnp.dot(s_tile, w2, preferred_element_type=f32) + b2

    n = len(chunks)

    # Prologue: layer 1 runs two chunks ahead so each fc2 matmul is issued a full chunk
    # before its result is needed by the layer-2 recurrence (hides MXU + concat latency).
    mem1, spk1, s_next = l1_chunk(mem1, spk1, chunks[0])
    cur2_cur = fc2(s_next)
    if n > 1:
        mem1, spk1, s_next = l1_chunk(mem1, spk1, chunks[1])

    row_off = 0
    for c in range(n):
        if c + 1 < n:
            cur2_next = fc2(s_next)                       # operands ready one chunk ago
        if c + 2 < n:
            mem1, spk1, s_next = l1_chunk(mem1, spk1, chunks[c + 2])  # runs 2 chunks ahead

        # Layer-2 recurrence for chunk c; spikes packed into a register tile and written
        # back as one sublane-aligned slab store per chunk.
        cs = chunks[c]
        o_tile = jnp.zeros((CHUNK, BO), f32)
        for i in range(cs):
            mem2, spk2 = _leaky_step(mem2, cur2_cur[i:i + 1, :], spk2)
            o_tile = jnp.where(row_o == i, spk2, o_tile)

        if cs == CHUNK:
            out_ref[pl.ds(row_off, CHUNK), :] = o_tile
        else:  # final partial chunk
            out_ref[pl.ds(row_off, cs), :] = o_tile[0:cs, :]
        row_off += cs

        if c + 1 < n:
            cur2_cur = cur2_next


def snn_forward(x, w1, b1, w2, b2, num_steps=100):
    """x: (B, In); w1: (In, H) pre-transposed; b1: (1, H); w2: (H, Out); b2: (1, Out)."""
    B, In = x.shape
    H = w1.shape[1]
    Out = w2.shape[1]
    f32 = jnp.float32

    # Fold the tiny batch into the lane axis: states become single lane-dense rows and the
    # spike record becomes (num_steps, B*Out). Block-diagonal zero padding is bitwise-exact
    # for f32 accumulation (x + 0.0 == x).
    eye = jnp.eye(B, dtype=f32)
    xb = x.reshape(1, B * In)
    w1b = jnp.kron(eye, w1)          # (B*In, B*H) block-diagonal
    b1b = jnp.tile(b1, (1, B))       # (1, B*H)
    w2b = jnp.kron(eye, w2)          # (B*H, B*Out) block-diagonal
    b2b = jnp.tile(b2, (1, B))       # (1, B*Out)

    chunks = []
    rem = num_steps
    while rem > 0:
        chunks.append(min(CHUNK, rem))
        rem -= chunks[-1]
    chunks = tuple(chunks)

    out2d = pl.pallas_call(
        functools.partial(snn_kernel, chunks=chunks),
        out_shape=jax.ShapeDtypeStruct((num_steps, B * Out), jnp.float32),
        grid=(1,),  # whole run in one kernel body; recurrence state lives in vregs
        in_specs=[
            pl.BlockSpec((1, B * In), lambda i: (0, 0)),
            pl.BlockSpec((B * In, B * H), lambda i: (0, 0)),
            pl.BlockSpec((1, B * H), lambda i: (0, 0)),
            pl.BlockSpec((B * H, B * Out), lambda i: (0, 0)),
            pl.BlockSpec((1, B * Out), lambda i: (0, 0)),
        ],
        out_specs=pl.BlockSpec((num_steps, B * Out), lambda i: (0, 0)),
        compiler_params=pltpu.CompilerParams(
            # Time is a recurrence: must stay sequential. Never shard it across cores.
            dimension_semantics=("arbitrary",),
        ),
    )(xb, w1b, b1b, w2b, b2b)
    return out2d.reshape(num_steps, B, Out)


def snn_reference(x, w1, b1, w2, b2, num_steps=100):
    """Pure-JAX reference mirroring the PyTorch/snntorch loop."""
    B = x.shape[0]
    H, Out = w1.shape[1], w2.shape[1]
    mem1 = jnp.zeros((B, H), jnp.float32)
    mem2 = jnp.zeros((B, Out), jnp.float32)
    spks = []
    for _ in range(num_steps):
        cur1 = x @ w1 + b1
        reset1 = (mem1 > THRESHOLD).astype(jnp.float32)
        mem1 = BETA * mem1 + cur1 - reset1 * THRESHOLD
        spk1 = (mem1 > THRESHOLD).astype(jnp.float32)
        cur2 = spk1 @ w2 + b2
        reset2 = (mem2 > THRESHOLD).astype(jnp.float32)
        mem2 = BETA * mem2 + cur2 - reset2 * THRESHOLD
        spk2 = (mem2 > THRESHOLD).astype(jnp.float32)
        spks.append(spk2)
    return jnp.stack(spks, axis=0)


if __name__ == "__main__":
    # Small shapes consistent with the module: batch=2, input=16, hidden=32, output=8.
    B, IN, HID, OUT = 2, 16, 32, 8
    NUM_STEPS = 100  # forward() default

    key = jax.random.PRNGKey(0)
    kx, kw1, kb1, kw2, kb2 = jax.random.split(key, 5)

    x = jax.random.normal(kx, (B, IN), jnp.float32)
    # Deterministic synthetic parameters (Linear-like scale), stored transposed [in, out].
    w1 = jax.random.normal(kw1, (IN, HID), jnp.float32) / jnp.sqrt(IN)
    b1 = jax.random.normal(kb1, (1, HID), jnp.float32) * 0.1
    w2 = jax.random.normal(kw2, (HID, OUT), jnp.float32) / jnp.sqrt(HID)
    b2 = jax.random.normal(kb2, (1, OUT), jnp.float32) * 0.1

    out = snn_forward(x, w1, b1, w2, b2, num_steps=NUM_STEPS)
    out = jax.block_until_ready(out)

    ref = snn_reference(x, w1, b1, w2, b2, num_steps=NUM_STEPS)
    assert out.shape == (NUM_STEPS, B, OUT)
    assert jnp.allclose(out, ref, atol=1e-5), "Pallas output mismatch vs JAX reference"

    print("KERNEL_OK")
</pallas_src>

<mosaic_0001>
module attributes {stable_mosaic.version = 11 : i64} {
  func.func @snn_kernel(%arg0: i32, %arg1: memref<1x32xf32, #tpu.memory_space<vmem>>, %arg2: memref<32x64xf32, #tpu.memory_space<vmem>>, %arg3: memref<1x64xf32, #tpu.memory_space<vmem>>, %arg4: memref<64x16xf32, #tpu.memory_space<vmem>>, %arg5: memref<1x16xf32, #tpu.memory_space<vmem>>, %arg6: memref<100x16xf32, #tpu.memory_space<vmem>>) attributes {dimension_semantics = [#tpu.dimension_semantics<arbitrary>], iteration_bounds = array<i64: 1>, scalar_prefetch = 0 : i64, scratch_operands = 0 : i64, tpu.core_type = #tpu.core_type<tc>, window_params = [{pipeline_mode = #tpu.pipeline_mode<synchronous>, transform_indices = @transform_0, window_bounds = array<i64: 1, 32>}, {pipeline_mode = #tpu.pipeline_mode<synchronous>, transform_indices = @transform_1, window_bounds = array<i64: 32, 64>}, {pipeline_mode = #tpu.pipeline_mode<synchronous>, transform_indices = @transform_2, window_bounds = array<i64: 1, 64>}, {pipeline_mode = #tpu.pipeline_mode<synchronous>, transform_indices = @transform_3, window_bounds = array<i64: 64, 16>}, {pipeline_mode = #tpu.pipeline_mode<synchronous>, transform_indices = @transform_4, window_bounds = array<i64: 1, 16>}, {pipeline_mode = #tpu.pipeline_mode<synchronous>, transform_indices = @transform_5, window_bounds = array<i64: 100, 16>}]} {
    %c0 = arith.constant 0 : index
    %c0_0 = arith.constant 0 : index
    %0 = vector.load %arg1[%c0, %c0_0] : memref<1x32xf32, #tpu.memory_space<vmem>>, vector<1x32xf32>
    %c0_1 = arith.constant 0 : index
    %c0_2 = arith.constant 0 : index
    %1 = vector.load %arg2[%c0_1, %c0_2] : memref<32x64xf32, #tpu.memory_space<vmem>>, vector<32x64xf32>
    %cst = arith.constant dense<0.000000e+00> : vector<1x64xf32>
    %2 = tpu.matmul %0, %1, %cst {dimension_numbers = #tpu.dot_dimension_numbers<[1], [0], [0], [1], [0, 0, 1, 1], [], []>} : vector<1x32xf32>, vector<32x64xf32>, vector<1x64xf32> -> vector<1x64xf32>
    %c0_3 = arith.constant 0 : index
    %c0_4 = arith.constant 0 : index
    %3 = vector.load %arg3[%c0_3, %c0_4] : memref<1x64xf32, #tpu.memory_space<vmem>>, vector<1x64xf32>
    %4 = arith.addf %2, %3 : vector<1x64xf32>
    %c0_5 = arith.constant 0 : index
    %c0_6 = arith.constant 0 : index
    %5 = vector.load %arg4[%c0_5, %c0_6] : memref<64x16xf32, #tpu.memory_space<vmem>>, vector<64x16xf32>
    %c0_7 = arith.constant 0 : index
    %c0_8 = arith.constant 0 : index
    %6 = vector.load %arg5[%c0_7, %c0_8] : memref<1x16xf32, #tpu.memory_space<vmem>>, vector<1x16xf32>
    %7 = tpu.iota {dimensions = array<i32: 0>} : vector<8x64xi32>
    %8 = tpu.iota {dimensions = array<i32: 0>} : vector<8x16xi32>
    %cst_9 = arith.constant 0.000000e+00 : f32
    %9 = vector.broadcast %cst_9 : f32 to vector<1x64xf32>
    %cst_10 = arith.constant 0.000000e+00 : f32
    %10 = vector.broadcast %cst_10 : f32 to vector<1x64xf32>
    %cst_11 = arith.constant 0.000000e+00 : f32
    %11 = vector.broadcast %cst_11 : f32 to vector<1x16xf32>
    %cst_12 = arith.constant 0.000000e+00 : f32
    %12 = vector.broadcast %cst_12 : f32 to vector<1x16xf32>
    %cst_13 = arith.constant 0.000000e+00 : f32
    %13 = vector.broadcast %cst_13 : f32 to vector<8x64xf32>
    %cst_14 = arith.constant 0.949999988 : f32
    %14 = vector.broadcast %cst_14 : f32 to vector<1x64xf32>
    %15 = arith.mulf %14, %9 : vector<1x64xf32>
    %16 = arith.addf %15, %4 : vector<1x64xf32>
    %17 = arith.subf %16, %10 : vector<1x64xf32>
    %cst_15 = arith.constant 1.000000e+00 : f32
    %18 = vector.broadcast %cst_15 : f32 to vector<1x64xf32>
    %19 = arith.cmpf ogt, %17, %18 : vector<1x64xf32>
    %20 = arith.extui %19 : vector<1x64xi1> to vector<1x64xi32>
    %21 = arith.sitofp %20 : vector<1x64xi32> to vector<1x64xf32>
    %c0_i32 = arith.constant 0 : i32
    %22 = vector.broadcast %c0_i32 : i32 to vector<8x64xi32>
    %23 = arith.cmpi eq, %7, %22 : vector<8x64xi32>
    %24 = vector.shape_cast %21 : vector<1x64xf32> to vector<1x64xf32>
    %25 = vector.broadcast %24 : vector<1x64xf32> to vector<8x64xf32>
    %26 = arith.select %23, %25, %13 : vector<8x64xi1>, vector<8x64xf32>
    %cst_16 = arith.constant 0.949999988 : f32
    %27 = vector.broadcast %cst_16 : f32 to vector<1x64xf32>
    %28 = arith.mulf %27, %17 : vector<1x64xf32>
    %29 = arith.addf %28, %4 : vector<1x64xf32>
    %30 = arith.subf %29, %21 : vector<1x64xf32>
    %cst_17 = arith.constant 1.000000e+00 : f32
    %31 = vector.broadcast %cst_17 : f32 to vector<1x64xf32>
    %32 = arith.cmpf ogt, %30, %31 : vector<1x64xf32>
    %33 = arith.extui %32 : vector<1x64xi1> to vector<1x64xi32>
    %34 = arith.sitofp %33 : vector<1x64xi32> to vector<1x64xf32>
    %c1_i32 = arith.constant 1 : i32
    %35 = vector.broadcast %c1_i32 : i32 to vector<8x64xi32>
    %36 = arith.cmpi eq, %7, %35 : vector<8x64xi32>
    %37 = vector.shape_cast %34 : vector<1x64xf32> to vector<1x64xf32>
    %38 = vector.broadcast %37 : vector<1x64xf32> to vector<8x64xf32>
    %39 = arith.select %36, %38, %26 : vector<8x64xi1>, vector<8x64xf32>
    %cst_18 = arith.constant 0.949999988 : f32
    %40 = vector.broadcast %cst_18 : f32 to vector<1x64xf32>
    %41 = arith.mulf %40, %30 : vector<1x64xf32>
    %42 = arith.addf %41, %4 : vector<1x64xf32>
    %43 = arith.subf %42, %34 : vector<1x64xf32>
    %cst_19 = arith.constant 1.000000e+00 : f32
    %44 = vector.broadcast %cst_19 : f32 to vector<1x64xf32>
    %45 = arith.cmpf ogt, %43, %44 : vector<1x64xf32>
    %46 = arith.extui %45 : vector<1x64xi1> to vector<1x64xi32>
    %47 = arith.sitofp %46 : vector<1x64xi32> to vector<1x64xf32>
    %c2_i32 = arith.constant 2 : i32
    %48 = vector.broadcast %c2_i32 : i32 to vector<8x64xi32>
    %49 = arith.cmpi eq, %7, %48 : vector<8x64xi32>
    %50 = vector.shape_cast %47 : vector<1x64xf32> to vector<1x64xf32>
    %51 = vector.broadcast %50 : vector<1x64xf32> to vector<8x64xf32>
    %52 = arith.select %49, %51, %39 : vector<8x64xi1>, vector<8x64xf32>
    %cst_20 = arith.constant 0.949999988 : f32
    %53 = vector.broadcast %cst_20 : f32 to vector<1x64xf32>
    %54 = arith.mulf %53, %43 : vector<1x64xf32>
    %55 = arith.addf %54, %4 : vector<1x64xf32>
    %56 = arith.subf %55, %47 : vector<1x64xf32>
    %cst_21 = arith.constant 1.000000e+00 : f32
    %57 = vector.broadcast %cst_21 : f32 to vector<1x64xf32>
    %58 = arith.cmpf ogt, %56, %57 : vector<1x64xf32>
    %59 = arith.extui %58 : vector<1x64xi1> to vector<1x64xi32>
    %60 = arith.sitofp %59 : vector<1x64xi32> to vector<1x64xf32>
    %c3_i32 = arith.constant 3 : i32
    %61 = vector.broadcast %c3_i32 : i32 to vector<8x64xi32>
    %62 = arith.cmpi eq, %7, %61 : vector<8x64xi32>
    %63 = vector.shape_cast %60 : vector<1x64xf32> to vector<1x64xf32>
    %64 = vector.broadcast %63 : vector<1x64xf32> to vector<8x64xf32>
    %65 = arith.select %62, %64, %52 : vector<8x64xi1>, vector<8x64xf32>
    %cst_22 = arith.constant 0.949999988 : f32
    %66 = vector.broadcast %cst_22 : f32 to vector<1x64xf32>
    %67 = arith.mulf %66, %56 : vector<1x64xf32>
    %68 = arith.addf %67, %4 : vector<1x64xf32>
    %69 = arith.subf %68, %60 : vector<1x64xf32>
    %cst_23 = arith.constant 1.000000e+00 : f32
    %70 = vector.broadcast %cst_23 : f32 to vector<1x64xf32>
    %71 = arith.cmpf ogt, %69, %70 : vector<1x64xf32>
    %72 = arith.extui %71 : vector<1x64xi1> to vector<1x64xi32>
    %73 = arith.sitofp %72 : vector<1x64xi32> to vector<1x64xf32>
    %c4_i32 = arith.constant 4 : i32
    %74 = vector.broadcast %c4_i32 : i32 to vector<8x64xi32>
    %75 = arith.cmpi eq, %7, %74 : vector<8x64xi32>
    %76 = vector.shape_cast %73 : vector<1x64xf32> to vector<1x64xf32>
    %77 = vector.broadcast %76 : vector<1x64xf32> to vector<8x64xf32>
    %78 = arith.select %75, %77, %65 : vector<8x64xi1>, vector<8x64xf32>
    %cst_24 = arith.constant 0.949999988 : f32
    %79 = vector.broadcast %cst_24 : f32 to vector<1x64xf32>
    %80 = arith.mulf %79, %69 : vector<1x64xf32>
    %81 = arith.addf %80, %4 : vector<1x64xf32>
    %82 = arith.subf %81, %73 : vector<1x64xf32>
    %cst_25 = arith.constant 1.000000e+00 : f32
    %83 = vector.broadcast %cst_25 : f32 to vector<1x64xf32>
    %84 = arith.cmpf ogt, %82, %83 : vector<1x64xf32>
    %85 = arith.extui %84 : vector<1x64xi1> to vector<1x64xi32>
    %86 = arith.sitofp %85 : vector<1x64xi32> to vector<1x64xf32>
    %c5_i32 = arith.constant 5 : i32
    %87 = vector.broadcast %c5_i32 : i32 to vector<8x64xi32>
    %88 = arith.cmpi eq, %7, %87 : vector<8x64xi32>
    %89 = vector.shape_cast %86 : vector<1x64xf32> to vector<1x64xf32>
    %90 = vector.broadcast %89 : vector<1x64xf32> to vector<8x64xf32>
    %91 = arith.select %88, %90, %78 : vector<8x64xi1>, vector<8x64xf32>
    %cst_26 = arith.constant 0.949999988 : f32
    %92 = vector.broadcast %cst_26 : f32 to vector<1x64xf32>
    %93 = arith.mulf %92, %82 : vector<1x64xf32>
    %94 = arith.addf %93, %4 : vector<1x64xf32>
    %95 = arith.subf %94, %86 : vector<1x64xf32>
    %cst_27 = arith.constant 1.000000e+00 : f32
    %96 = vector.broadcast %cst_27 : f32 to vector<1x64xf32>
    %97 = arith.cmpf ogt, %95, %96 : vector<1x64xf32>
    %98 = arith.extui %97 : vector<1x64xi1> to vector<1x64xi32>
    %99 = arith.sitofp %98 : vector<1x64xi32> to vector<1x64xf32>
    %c6_i32 = arith.constant 6 : i32
    %100 = vector.broadcast %c6_i32 : i32 to vector<8x64xi32>
    %101 = arith.cmpi eq, %7, %100 : vector<8x64xi32>
    %102 = vector.shape_cast %99 : vector<1x64xf32> to vector<1x64xf32>
    %103 = vector.broadcast %102 : vector<1x64xf32> to vector<8x64xf32>
    %104 = arith.select %101, %103, %91 : vector<8x64xi1>, vector<8x64xf32>
    %cst_28 = arith.constant 0.949999988 : f32
    %105 = vector.broadcast %cst_28 : f32 to vector<1x64xf32>
    %106 = arith.mulf %105, %95 : vector<1x64xf32>
    %107 = arith.addf %106, %4 : vector<1x64xf32>
    %108 = arith.subf %107, %99 : vector<1x64xf32>
    %cst_29 = arith.constant 1.000000e+00 : f32
    %109 = vector.broadcast %cst_29 : f32 to vector<1x64xf32>
    %110 = arith.cmpf ogt, %108, %109 : vector<1x64xf32>
    %111 = arith.extui %110 : vector<1x64xi1> to vector<1x64xi32>
    %112 = arith.sitofp %111 : vector<1x64xi32> to vector<1x64xf32>
    %c7_i32 = arith.constant 7 : i32
    %113 = vector.broadcast %c7_i32 : i32 to vector<8x64xi32>
    %114 = arith.cmpi eq, %7, %113 : vector<8x64xi32>
    %115 = vector.shape_cast %112 : vector<1x64xf32> to vector<1x64xf32>
    %116 = vector.broadcast %115 : vector<1x64xf32> to vector<8x64xf32>
    %117 = arith.select %114, %116, %104 : vector<8x64xi1>, vector<8x64xf32>
    %cst_30 = arith.constant dense<0.000000e+00> : vector<8x16xf32>
    %118 = tpu.matmul %117, %5, %cst_30 {dimension_numbers = #tpu.dot_dimension_numbers<[1], [0], [0], [1], [0, 0, 1, 1], [], []>} : vector<8x64xf32>, vector<64x16xf32>, vector<8x16xf32> -> vector<8x16xf32>
    %119 = vector.broadcast %6 : vector<1x16xf32> to vector<8x16xf32>
    %120 = arith.addf %118, %119 : vector<8x16xf32>
    %cst_31 = arith.constant 0.000000e+00 : f32
    %121 = vector.broadcast %cst_31 : f32 to vector<8x64xf32>
    %cst_32 = arith.constant 0.949999988 : f32
    %122 = vector.broadcast %cst_32 : f32 to vector<1x64xf32>
    %123 = arith.mulf %122, %108 : vector<1x64xf32>
    %124 = arith.addf %123, %4 : vector<1x64xf32>
    %125 = arith.subf %124, %112 : vector<1x64xf32>
    %cst_33 = arith.constant 1.000000e+00 : f32
    %126 = vector.broadcast %cst_33 : f32 to vector<1x64xf32>
    %127 = arith.cmpf ogt, %125, %126 : vector<1x64xf32>
    %128 = arith.extui %127 : vector<1x64xi1> to vector<1x64xi32>
    %129 = arith.sitofp %128 : vector<1x64xi32> to vector<1x64xf32>
    %c0_i32_34 = arith.constant 0 : i32
    %130 = vector.broadcast %c0_i32_34 : i32 to vector<8x64xi32>
    %131 = arith.cmpi eq, %7, %130 : vector<8x64xi32>
    %132 = vector.shape_cast %129 : vector<1x64xf32> to vector<1x64xf32>
    %133 = vector.broadcast %132 : vector<1x64xf32> to vector<8x64xf32>
    %134 = arith.select %131, %133, %121 : vector<8x64xi1>, vector<8x64xf32>
    %cst_35 = arith.constant 0.949999988 : f32
    %135 = vector.broadcast %cst_35 : f32 to vector<1x64xf32>
    %136 = arith.mulf %135, %125 : vector<1x64xf32>
    %137 = arith.addf %136, %4 : vector<1x64xf32>
    %138 = arith.subf %137, %129 : vector<1x64xf32>
    %cst_36 = arith.constant 1.000000e+00 : f32
    %139 = vector.broadcast %cst_36 : f32 to vector<1x64xf32>
    %140 = arith.cmpf ogt, %138, %139 : vector<1x64xf32>
    %141 = arith.extui %140 : vector<1x64xi1> to vector<1x64xi32>
    %142 = arith.sitofp %141 : vector<1x64xi32> to vector<1x64xf32>
    %c1_i32_37 = arith.constant 1 : i32
    %143 = vector.broadcast %c1_i32_37 : i32 to vector<8x64xi32>
    %144 = arith.cmpi eq, %7, %143 : vector<8x64xi32>
    %145 = vector.shape_cast %142 : vector<1x64xf32> to vector<1x64xf32>
    %146 = vector.broadcast %145 : vector<1x64xf32> to vector<8x64xf32>
    %147 = arith.select %144, %146, %134 : vector<8x64xi1>, vector<8x64xf32>
    %cst_38 = arith.constant 0.949999988 : f32
    %148 = vector.broadcast %cst_38 : f32 to vector<1x64xf32>
    %149 = arith.mulf %148, %138 : vector<1x64xf32>
    %150 = arith.addf %149, %4 : vector<1x64xf32>
    %151 = arith.subf %150, %142 : vector<1x64xf32>
    %cst_39 = arith.constant 1.000000e+00 : f32
    %152 = vector.broadcast %cst_39 : f32 to vector<1x64xf32>
    %153 = arith.cmpf ogt, %151, %152 : vector<1x64xf32>
    %154 = arith.extui %153 : vector<1x64xi1> to vector<1x64xi32>
    %155 = arith.sitofp %154 : vector<1x64xi32> to vector<1x64xf32>
    %c2_i32_40 = arith.constant 2 : i32
    %156 = vector.broadcast %c2_i32_40 : i32 to vector<8x64xi32>
    %157 = arith.cmpi eq, %7, %156 : vector<8x64xi32>
    %158 = vector.shape_cast %155 : vector<1x64xf32> to vector<1x64xf32>
    %159 = vector.broadcast %158 : vector<1x64xf32> to vector<8x64xf32>
    %160 = arith.select %157, %159, %147 : vector<8x64xi1>, vector<8x64xf32>
    %cst_41 = arith.constant 0.949999988 : f32
    %161 = vector.broadcast %cst_41 : f32 to vector<1x64xf32>
    %162 = arith.mulf %161, %151 : vector<1x64xf32>
    %163 = arith.addf %162, %4 : vector<1x64xf32>
    %164 = arith.subf %163, %155 : vector<1x64xf32>
    %cst_42 = arith.constant 1.000000e+00 : f32
    %165 = vector.broadcast %cst_42 : f32 to vector<1x64xf32>
    %166 = arith.cmpf ogt, %164, %165 : vector<1x64xf32>
    %167 = arith.extui %166 : vector<1x64xi1> to vector<1x64xi32>
    %168 = arith.sitofp %167 : vector<1x64xi32> to vector<1x64xf32>
    %c3_i32_43 = arith.constant 3 : i32
    %169 = vector.broadcast %c3_i32_43 : i32 to vector<8x64xi32>
    %170 = arith.cmpi eq, %7, %169 : vector<8x64xi32>
    %171 = vector.shape_cast %168 : vector<1x64xf32> to vector<1x64xf32>
    %172 = vector.broadcast %171 : vector<1x64xf32> to vector<8x64xf32>
    %173 = arith.select %170, %172, %160 : vector<8x64xi1>, vector<8x64xf32>
    %cst_44 = arith.constant 0.949999988 : f32
    %174 = vector.broadcast %cst_44 : f32 to vector<1x64xf32>
    %175 = arith.mulf %174, %164 : vector<1x64xf32>
    %176 = arith.addf %175, %4 : vector<1x64xf32>
    %177 = arith.subf %176, %168 : vector<1x64xf32>
    %cst_45 = arith.constant 1.000000e+00 : f32
    %178 = vector.broadcast %cst_45 : f32 to vector<1x64xf32>
    %179 = arith.cmpf ogt, %177, %178 : vector<1x64xf32>
    %180 = arith.extui %179 : vector<1x64xi1> to vector<1x64xi32>
    %181 = arith.sitofp %180 : vector<1x64xi32> to vector<1x64xf32>
    %c4_i32_46 = arith.constant 4 : i32
    %182 = vector.broadcast %c4_i32_46 : i32 to vector<8x64xi32>
    %183 = arith.cmpi eq, %7, %182 : vector<8x64xi32>
    %184 = vector.shape_cast %181 : vector<1x64xf32> to vector<1x64xf32>
    %185 = vector.broadcast %184 : vector<1x64xf32> to vector<8x64xf32>
    %186 = arith.select %183, %185, %173 : vector<8x64xi1>, vector<8x64xf32>
    %cst_47 = arith.constant 0.949999988 : f32
    %187 = vector.broadcast %cst_47 : f32 to vector<1x64xf32>
    %188 = arith.mulf %187, %177 : vector<1x64xf32>
    %189 = arith.addf %188, %4 : vector<1x64xf32>
    %190 = arith.subf %189, %181 : vector<1x64xf32>
    %cst_48 = arith.constant 1.000000e+00 : f32
    %191 = vector.broadcast %cst_48 : f32 to vector<1x64xf32>
    %192 = arith.cmpf ogt, %190, %191 : vector<1x64xf32>
    %193 = arith.extui %192 : vector<1x64xi1> to vector<1x64xi32>
    %194 = arith.sitofp %193 : vector<1x64xi32> to vector<1x64xf32>
    %c5_i32_49 = arith.constant 5 : i32
    %195 = vector.broadcast %c5_i32_49 : i32 to vector<8x64xi32>
    %196 = arith.cmpi eq, %7, %195 : vector<8x64xi32>
    %197 = vector.shape_cast %194 : vector<1x64xf32> to vector<1x64xf32>
    %198 = vector.broadcast %197 : vector<1x64xf32> to vector<8x64xf32>
    %199 = arith.select %196, %198, %186 : vector<8x64xi1>, vector<8x64xf32>
    %cst_50 = arith.constant 0.949999988 : f32
    %200 = vector.broadcast %cst_50 : f32 to vector<1x64xf32>
    %201 = arith.mulf %200, %190 : vector<1x64xf32>
    %202 = arith.addf %201, %4 : vector<1x64xf32>
    %203 = arith.subf %202, %194 : vector<1x64xf32>
    %cst_51 = arith.constant 1.000000e+00 : f32
    %204 = vector.broadcast %cst_51 : f32 to vector<1x64xf32>
    %205 = arith.cmpf ogt, %203, %204 : vector<1x64xf32>
    %206 = arith.extui %205 : vector<1x64xi1> to vector<1x64xi32>
    %207 = arith.sitofp %206 : vector<1x64xi32> to vector<1x64xf32>
    %c6_i32_52 = arith.constant 6 : i32
    %208 = vector.broadcast %c6_i32_52 : i32 to vector<8x64xi32>
    %209 = arith.cmpi eq, %7, %208 : vector<8x64xi32>
    %210 = vector.shape_cast %207 : vector<1x64xf32> to vector<1x64xf32>
    %211 = vector.broadcast %210 : vector<1x64xf32> to vector<8x64xf32>
    %212 = arith.select %209, %211, %199 : vector<8x64xi1>, vector<8x64xf32>
    %cst_53 = arith.constant 0.949999988 : f32
    %213 = vector.broadcast %cst_53 : f32 to vector<1x64xf32>
    %214 = arith.mulf %213, %203 : vector<1x64xf32>
    %215 = arith.addf %214, %4 : vector<1x64xf32>
    %216 = arith.subf %215, %207 : vector<1x64xf32>
    %cst_54 = arith.constant 1.000000e+00 : f32
    %217 = vector.broadcast %cst_54 : f32 to vector<1x64xf32>
    %218 = arith.cmpf ogt, %216, %217 : vector<1x64xf32>
    %219 = arith.extui %218 : vector<1x64xi1> to vector<1x64xi32>
    %220 = arith.sitofp %219 : vector<1x64xi32> to vector<1x64xf32>
    %c7_i32_55 = arith.constant 7 : i32
    %221 = vector.broadcast %c7_i32_55 : i32 to vector<8x64xi32>
    %222 = arith.cmpi eq, %7, %221 : vector<8x64xi32>
    %223 = vector.shape_cast %220 : vector<1x64xf32> to vector<1x64xf32>
    %224 = vector.broadcast %223 : vector<1x64xf32> to vector<8x64xf32>
    %225 = arith.select %222, %224, %212 : vector<8x64xi1>, vector<8x64xf32>
    %cst_56 = arith.constant dense<0.000000e+00> : vector<8x16xf32>
    %226 = tpu.matmul %225, %5, %cst_56 {dimension_numbers = #tpu.dot_dimension_numbers<[1], [0], [0], [1], [0, 0, 1, 1], [], []>} : vector<8x64xf32>, vector<64x16xf32>, vector<8x16xf32> -> vector<8x16xf32>
    %227 = vector.broadcast %6 : vector<1x16xf32> to vector<8x16xf32>
    %228 = arith.addf %226, %227 : vector<8x16xf32>
    %cst_57 = arith.constant 0.000000e+00 : f32
    %229 = vector.broadcast %cst_57 : f32 to vector<8x64xf32>
    %cst_58 = arith.constant 0.949999988 : f32
    %230 = vector.broadcast %cst_58 : f32 to vector<1x64xf32>
    %231 = arith.mulf %230, %216 : vector<1x64xf32>
    %232 = arith.addf %231, %4 : vector<1x64xf32>
    %233 = arith.subf %232, %220 : vector<1x64xf32>
    %cst_59 = arith.constant 1.000000e+00 : f32
    %234 = vector.broadcast %cst_59 : f32 to vector<1x64xf32>
    %235 = arith.cmpf ogt, %233, %234 : vector<1x64xf32>
    %236 = arith.extui %235 : vector<1x64xi1> to vector<1x64xi32>
    %237 = arith.sitofp %236 : vector<1x64xi32> to vector<1x64xf32>
    %c0_i32_60 = arith.constant 0 : i32
    %238 = vector.broadcast %c0_i32_60 : i32 to vector<8x64xi32>
    %239 = arith.cmpi eq, %7, %238 : vector<8x64xi32>
    %240 = vector.shape_cast %237 : vector<1x64xf32> to vector<1x64xf32>
    %241 = vector.broadcast %240 : vector<1x64xf32> to vector<8x64xf32>
    %242 = arith.select %239, %241, %229 : vector<8x64xi1>, vector<8x64xf32>
    %cst_61 = arith.constant 0.949999988 : f32
    %243 = vector.broadcast %cst_61 : f32 to vector<1x64xf32>
    %244 = arith.mulf %243, %233 : vector<1x64xf32>
    %245 = arith.addf %244, %4 : vector<1x64xf32>
    %246 = arith.subf %245, %237 : vector<1x64xf32>
    %cst_62 = arith.constant 1.000000e+00 : f32
    %247 = vector.broadcast %cst_62 : f32 to vector<1x64xf32>
    %248 = arith.cmpf ogt, %246, %247 : vector<1x64xf32>
    %249 = arith.extui %248 : vector<1x64xi1> to vector<1x64xi32>
    %250 = arith.sitofp %249 : vector<1x64xi32> to vector<1x64xf32>
    %c1_i32_63 = arith.constant 1 : i32
    %251 = vector.broadcast %c1_i32_63 : i32 to vector<8x64xi32>
    %252 = arith.cmpi eq, %7, %251 : vector<8x64xi32>
    %253 = vector.shape_cast %250 : vector<1x64xf32> to vector<1x64xf32>
    %254 = vector.broadcast %253 : vector<1x64xf32> to vector<8x64xf32>
    %255 = arith.select %252, %254, %242 : vector<8x64xi1>, vector<8x64xf32>
    %cst_64 = arith.constant 0.949999988 : f32
    %256 = vector.broadcast %cst_64 : f32 to vector<1x64xf32>
    %257 = arith.mulf %256, %246 : vector<1x64xf32>
    %258 = arith.addf %257, %4 : vector<1x64xf32>
    %259 = arith.subf %258, %250 : vector<1x64xf32>
    %cst_65 = arith.constant 1.000000e+00 : f32
    %260 = vector.broadcast %cst_65 : f32 to vector<1x64xf32>
    %261 = arith.cmpf ogt, %259, %260 : vector<1x64xf32>
    %262 = arith.extui %261 : vector<1x64xi1> to vector<1x64xi32>
    %263 = arith.sitofp %262 : vector<1x64xi32> to vector<1x64xf32>
    %c2_i32_66 = arith.constant 2 : i32
    %264 = vector.broadcast %c2_i32_66 : i32 to vector<8x64xi32>
    %265 = arith.cmpi eq, %7, %264 : vector<8x64xi32>
    %266 = vector.shape_cast %263 : vector<1x64xf32> to vector<1x64xf32>
    %267 = vector.broadcast %266 : vector<1x64xf32> to vector<8x64xf32>
    %268 = arith.select %265, %267, %255 : vector<8x64xi1>, vector<8x64xf32>
    %cst_67 = arith.constant 0.949999988 : f32
    %269 = vector.broadcast %cst_67 : f32 to vector<1x64xf32>
    %270 = arith.mulf %269, %259 : vector<1x64xf32>
    %271 = arith.addf %270, %4 : vector<1x64xf32>
    %272 = arith.subf %271, %263 : vector<1x64xf32>
    %cst_68 = arith.constant 1.000000e+00 : f32
    %273 = vector.broadcast %cst_68 : f32 to vector<1x64xf32>
    %274 = arith.cmpf ogt, %272, %273 : vector<1x64xf32>
    %275 = arith.extui %274 : vector<1x64xi1> to vector<1x64xi32>
    %276 = arith.sitofp %275 : vector<1x64xi32> to vector<1x64xf32>
    %c3_i32_69 = arith.constant 3 : i32
    %277 = vector.broadcast %c3_i32_69 : i32 to vector<8x64xi32>
    %278 = arith.cmpi eq, %7, %277 : vector<8x64xi32>
    %279 = vector.shape_cast %276 : vector<1x64xf32> to vector<1x64xf32>
    %280 = vector.broadcast %279 : vector<1x64xf32> to vector<8x64xf32>
    %281 = arith.select %278, %280, %268 : vector<8x64xi1>, vector<8x64xf32>
    %cst_70 = arith.constant 0.949999988 : f32
    %282 = vector.broadcast %cst_70 : f32 to vector<1x64xf32>
    %283 = arith.mulf %282, %272 : vector<1x64xf32>
    %284 = arith.addf %283, %4 : vector<1x64xf32>
    %285 = arith.subf %284, %276 : vector<1x64xf32>
    %cst_71 = arith.constant 1.000000e+00 : f32
    %286 = vector.broadcast %cst_71 : f32 to vector<1x64xf32>
    %287 = arith.cmpf ogt, %285, %286 : vector<1x64xf32>
    %288 = arith.extui %287 : vector<1x64xi1> to vector<1x64xi32>
    %289 = arith.sitofp %288 : vector<1x64xi32> to vector<1x64xf32>
    %c4_i32_72 = arith.constant 4 : i32
    %290 = vector.broadcast %c4_i32_72 : i32 to vector<8x64xi32>
    %291 = arith.cmpi eq, %7, %290 : vector<8x64xi32>
    %292 = vector.shape_cast %289 : vector<1x64xf32> to vector<1x64xf32>
    %293 = vector.broadcast %292 : vector<1x64xf32> to vector<8x64xf32>
    %294 = arith.select %291, %293, %281 : vector<8x64xi1>, vector<8x64xf32>
    %cst_73 = arith.constant 0.949999988 : f32
    %295 = vector.broadcast %cst_73 : f32 to vector<1x64xf32>
    %296 = arith.mulf %295, %285 : vector<1x64xf32>
    %297 = arith.addf %296, %4 : vector<1x64xf32>
    %298 = arith.subf %297, %289 : vector<1x64xf32>
    %cst_74 = arith.constant 1.000000e+00 : f32
    %299 = vector.broadcast %cst_74 : f32 to vector<1x64xf32>
    %300 = arith.cmpf ogt, %298, %299 : vector<1x64xf32>
    %301 = arith.extui %300 : vector<1x64xi1> to vector<1x64xi32>
    %302 = arith.sitofp %301 : vector<1x64xi32> to vector<1x64xf32>
    %c5_i32_75 = arith.constant 5 : i32
    %303 = vector.broadcast %c5_i32_75 : i32 to vector<8x64xi32>
    %304 = arith.cmpi eq, %7, %303 : vector<8x64xi32>
    %305 = vector.shape_cast %302 : vector<1x64xf32> to vector<1x64xf32>
    %306 = vector.broadcast %305 : vector<1x64xf32> to vector<8x64xf32>
    %307 = arith.select %304, %306, %294 : vector<8x64xi1>, vector<8x64xf32>
    %cst_76 = arith.constant 0.949999988 : f32
    %308 = vector.broadcast %cst_76 : f32 to vector<1x64xf32>
    %309 = arith.mulf %308, %298 : vector<1x64xf32>
    %310 = arith.addf %309, %4 : vector<1x64xf32>
    %311 = arith.subf %310, %302 : vector<1x64xf32>
    %cst_77 = arith.constant 1.000000e+00 : f32
    %312 = vector.broadcast %cst_77 : f32 to vector<1x64xf32>
    %313 = arith.cmpf ogt, %311, %312 : vector<1x64xf32>
    %314 = arith.extui %313 : vector<1x64xi1> to vector<1x64xi32>
    %315 = arith.sitofp %314 : vector<1x64xi32> to vector<1x64xf32>
    %c6_i32_78 = arith.constant 6 : i32
    %316 = vector.broadcast %c6_i32_78 : i32 to vector<8x64xi32>
    %317 = arith.cmpi eq, %7, %316 : vector<8x64xi32>
    %318 = vector.shape_cast %315 : vector<1x64xf32> to vector<1x64xf32>
    %319 = vector.broadcast %318 : vector<1x64xf32> to vector<8x64xf32>
    %320 = arith.select %317, %319, %307 : vector<8x64xi1>, vector<8x64xf32>
    %cst_79 = arith.constant 0.949999988 : f32
    %321 = vector.broadcast %cst_79 : f32 to vector<1x64xf32>
    %322 = arith.mulf %321, %311 : vector<1x64xf32>
    %323 = arith.addf %322, %4 : vector<1x64xf32>
    %324 = arith.subf %323, %315 : vector<1x64xf32>
    %cst_80 = arith.constant 1.000000e+00 : f32
    %325 = vector.broadcast %cst_80 : f32 to vector<1x64xf32>
    %326 = arith.cmpf ogt, %324, %325 : vector<1x64xf32>
    %327 = arith.extui %326 : vector<1x64xi1> to vector<1x64xi32>
    %328 = arith.sitofp %327 : vector<1x64xi32> to vector<1x64xf32>
    %c7_i32_81 = arith.constant 7 : i32
    %329 = vector.broadcast %c7_i32_81 : i32 to vector<8x64xi32>
    %330 = arith.cmpi eq, %7, %329 : vector<8x64xi32>
    %331 = vector.shape_cast %328 : vector<1x64xf32> to vector<1x64xf32>
    %332 = vector.broadcast %331 : vector<1x64xf32> to vector<8x64xf32>
    %333 = arith.select %330, %332, %320 : vector<8x64xi1>, vector<8x64xf32>
    %cst_82 = arith.constant 0.000000e+00 : f32
    %334 = vector.broadcast %cst_82 : f32 to vector<8x16xf32>
    %335 = vector.extract_strided_slice %120 {offsets = [0, 0], sizes = [1, 16], strides = [1, 1]} : vector<8x16xf32> to vector<1x16xf32>
    %cst_83 = arith.constant 0.949999988 : f32
    %336 = vector.broadcast %cst_83 : f32 to vector<1x16xf32>
    %337 = arith.mulf %336, %11 : vector<1x16xf32>
    %338 = arith.addf %337, %335 : vector<1x16xf32>
    %339 = arith.subf %338, %12 : vector<1x16xf32>
    %cst_84 = arith.constant 1.000000e+00 : f32
    %340 = vector.broadcast %cst_84 : f32 to vector<1x16xf32>
    %341 = arith.cmpf ogt, %339, %340 : vector<1x16xf32>
    %342 = arith.extui %341 : vector<1x16xi1> to vector<1x16xi32>
    %343 = arith.sitofp %342 : vector<1x16xi32> to vector<1x16xf32>
    %c0_i32_85 = arith.constant 0 : i32
    %344 = vector.broadcast %c0_i32_85 : i32 to vector<8x16xi32>
    %345 = arith.cmpi eq, %8, %344 : vector<8x16xi32>
    %346 = vector.shape_cast %343 : vector<1x16xf32> to vector<1x16xf32>
    %347 = vector.broadcast %346 : vector<1x16xf32> to vector<8x16xf32>
    %348 = arith.select %345, %347, %334 : vector<8x16xi1>, vector<8x16xf32>
    %349 = vector.extract_strided_slice %120 {offsets = [1, 0], sizes = [1, 16], strides = [1, 1]} : vector<8x16xf32> to vector<1x16xf32>
    %cst_86 = arith.constant 0.949999988 : f32
    %350 = vector.broadcast %cst_86 : f32 to vector<1x16xf32>
    %351 = arith.mulf %350, %339 : vector<1x16xf32>
    %352 = arith.addf %351, %349 : vector<1x16xf32>
    %353 = arith.subf %352, %343 : vector<1x16xf32>
    %cst_87 = arith.constant 1.000000e+00 : f32
    %354 = vector.broadcast %cst_87 : f32 to vector<1x16xf32>
    %355 = arith.cmpf ogt, %353, %354 : vector<1x16xf32>
    %356 = arith.extui %355 : vector<1x16xi1> to vector<1x16xi32>
    %357 = arith.sitofp %356 : vector<1x16xi32> to vector<1x16xf32>
    %c1_i32_88 = arith.constant 1 : i32
    %358 = vector.broadcast %c1_i32_88 : i32 to vector<8x16xi32>
    %359 = arith.cmpi eq, %8, %358 : vector<8x16xi32>
    %360 = vector.shape_cast %357 : vector<1x16xf32> to vector<1x16xf32>
    %361 = vector.broadcast %360 : vector<1x16xf32> to vector<8x16xf32>
    %362 = arith.select %359, %361, %348 : vector<8x16xi1>, vector<8x16xf32>
    %363 = vector.extract_strided_slice %120 {offsets = [2, 0], sizes = [1, 16], strides = [1, 1]} : vector<8x16xf32> to vector<1x16xf32>
    %cst_89 = arith.constant 0.949999988 : f32
    %364 = vector.broadcast %cst_89 : f32 to vector<1x16xf32>
    %365 = arith.mulf %364, %353 : vector<1x16xf32>
    %366 = arith.addf %365, %363 : vector<1x16xf32>
    %367 = arith.subf %366, %357 : vector<1x16xf32>
    %cst_90 = arith.constant 1.000000e+00 : f32
    %368 = vector.broadcast %cst_90 : f32 to vector<1x16xf32>
    %369 = arith.cmpf ogt, %367, %368 : vector<1x16xf32>
    %370 = arith.extui %369 : vector<1x16xi1> to vector<1x16xi32>
    %371 = arith.sitofp %370 : vector<1x16xi32> to vector<1x16xf32>
    %c2_i32_91 = arith.constant 2 : i32
    %372 = vector.broadcast %c2_i32_91 : i32 to vector<8x16xi32>
    %373 = arith.cmpi eq, %8, %372 : vector<8x16xi32>
    %374 = vector.shape_cast %371 : vector<1x16xf32> to vector<1x16xf32>
    %375 = vector.broadcast %374 : vector<1x16xf32> to vector<8x16xf32>
    %376 = arith.select %373, %375, %362 : vector<8x16xi1>, vector<8x16xf32>
    %377 = vector.extract_strided_slice %120 {offsets = [3, 0], sizes = [1, 16], strides = [1, 1]} : vector<8x16xf32> to vector<1x16xf32>
    %cst_92 = arith.constant 0.949999988 : f32
    %378 = vector.broadcast %cst_92 : f32 to vector<1x16xf32>
    %379 = arith.mulf %378, %367 : vector<1x16xf32>
    %380 = arith.addf %379, %377 : vector<1x16xf32>
    %381 = arith.subf %380, %371 : vector<1x16xf32>
    %cst_93 = arith.constant 1.000000e+00 : f32
    %382 = vector.broadcast %cst_93 : f32 to vector<1x16xf32>
    %383 = arith.cmpf ogt, %381, %382 : vector<1x16xf32>
    %384 = arith.extui %383 : vector<1x16xi1> to vector<1x16xi32>
    %385 = arith.sitofp %384 : vector<1x16xi32> to vector<1x16xf32>
    %c3_i32_94 = arith.constant 3 : i32
    %386 = vector.broadcast %c3_i32_94 : i32 to vector<8x16xi32>
    %387 = arith.cmpi eq, %8, %386 : vector<8x16xi32>
    %388 = vector.shape_cast %385 : vector<1x16xf32> to vector<1x16xf32>
    %389 = vector.broadcast %388 : vector<1x16xf32> to vector<8x16xf32>
    %390 = arith.select %387, %389, %376 : vector<8x16xi1>, vector<8x16xf32>
    %391 = vector.extract_strided_slice %120 {offsets = [4, 0], sizes = [1, 16], strides = [1, 1]} : vector<8x16xf32> to vector<1x16xf32>
    %cst_95 = arith.constant 0.949999988 : f32
    %392 = vector.broadcast %cst_95 : f32 to vector<1x16xf32>
    %393 = arith.mulf %392, %381 : vector<1x16xf32>
    %394 = arith.addf %393, %391 : vector<1x16xf32>
    %395 = arith.subf %394, %385 : vector<1x16xf32>
    %cst_96 = arith.constant 1.000000e+00 : f32
    %396 = vector.broadcast %cst_96 : f32 to vector<1x16xf32>
    %397 = arith.cmpf ogt, %395, %396 : vector<1x16xf32>
    %398 = arith.extui %397 : vector<1x16xi1> to vector<1x16xi32>
    %399 = arith.sitofp %398 : vector<1x16xi32> to vector<1x16xf32>
    %c4_i32_97 = arith.constant 4 : i32
    %400 = vector.broadcast %c4_i32_97 : i32 to vector<8x16xi32>
    %401 = arith.cmpi eq, %8, %400 : vector<8x16xi32>
    %402 = vector.shape_cast %399 : vector<1x16xf32> to vector<1x16xf32>
    %403 = vector.broadcast %402 : vector<1x16xf32> to vector<8x16xf32>
    %404 = arith.select %401, %403, %390 : vector<8x16xi1>, vector<8x16xf32>
    %405 = vector.extract_strided_slice %120 {offsets = [5, 0], sizes = [1, 16], strides = [1, 1]} : vector<8x16xf32> to vector<1x16xf32>
    %cst_98 = arith.constant 0.949999988 : f32
    %406 = vector.broadcast %cst_98 : f32 to vector<1x16xf32>
    %407 = arith.mulf %406, %395 : vector<1x16xf32>
    %408 = arith.addf %407, %405 : vector<1x16xf32>
    %409 = arith.subf %408, %399 : vector<1x16xf32>
    %cst_99 = arith.constant 1.000000e+00 : f32
    %410 = vector.broadcast %cst_99 : f32 to vector<1x16xf32>
    %411 = arith.cmpf ogt, %409, %410 : vector<1x16xf32>
    %412 = arith.extui %411 : vector<1x16xi1> to vector<1x16xi32>
    %413 = arith.sitofp %412 : vector<1x16xi32> to vector<1x16xf32>
    %c5_i32_100 = arith.constant 5 : i32
    %414 = vector.broadcast %c5_i32_100 : i32 to vector<8x16xi32>
    %415 = arith.cmpi eq, %8, %414 : vector<8x16xi32>
    %416 = vector.shape_cast %413 : vector<1x16xf32> to vector<1x16xf32>
    %417 = vector.broadcast %416 : vector<1x16xf32> to vector<8x16xf32>
    %418 = arith.select %415, %417, %404 : vector<8x16xi1>, vector<8x16xf32>
    %419 = vector.extract_strided_slice %120 {offsets = [6, 0], sizes = [1, 16], strides = [1, 1]} : vector<8x16xf32> to vector<1x16xf32>
    %cst_101 = arith.constant 0.949999988 : f32
    %420 = vector.broadcast %cst_101 : f32 to vector<1x16xf32>
    %421 = arith.mulf %420, %409 : vector<1x16xf32>
    %422 = arith.addf %421, %419 : vector<1x16xf32>
    %423 = arith.subf %422, %413 : vector<1x16xf32>
    %cst_102 = arith.constant 1.000000e+00 : f32
    %424 = vector.broadcast %cst_102 : f32 to vector<1x16xf32>
    %425 = arith.cmpf ogt, %423, %424 : vector<1x16xf32>
    %426 = arith.extui %425 : vector<1x16xi1> to vector<1x16xi32>
    %427 = arith.sitofp %426 : vector<1x16xi32> to vector<1x16xf32>
    %c6_i32_103 = arith.constant 6 : i32
    %428 = vector.broadcast %c6_i32_103 : i32 to vector<8x16xi32>
    %429 = arith.cmpi eq, %8, %428 : vector<8x16xi32>
    %430 = vector.shape_cast %427 : vector<1x16xf32> to vector<1x16xf32>
    %431 = vector.broadcast %430 : vector<1x16xf32> to vector<8x16xf32>
    %432 = arith.select %429, %431, %418 : vector<8x16xi1>, vector<8x16xf32>
    %433 = vector.extract_strided_slice %120 {offsets = [7, 0], sizes = [1, 16], strides = [1, 1]} : vector<8x16xf32> to vector<1x16xf32>
    %cst_104 = arith.constant 0.949999988 : f32
    %434 = vector.broadcast %cst_104 : f32 to vector<1x16xf32>
    %435 = arith.mulf %434, %423 : vector<1x16xf32>
    %436 = arith.addf %435, %433 : vector<1x16xf32>
    %437 = arith.subf %436, %427 : vector<1x16xf32>
    %cst_105 = arith.constant 1.000000e+00 : f32
    %438 = vector.broadcast %cst_105 : f32 to vector<1x16xf32>
    %439 = arith.cmpf ogt, %437, %438 : vector<1x16xf32>
    %440 = arith.extui %439 : vector<1x16xi1> to vector<1x16xi32>
    %441 = arith.sitofp %440 : vector<1x16xi32> to vector<1x16xf32>
    %c7_i32_106 = arith.constant 7 : i32
    %442 = vector.broadcast %c7_i32_106 : i32 to vector<8x16xi32>
    %443 = arith.cmpi eq, %8, %442 : vector<8x16xi32>
    %444 = vector.shape_cast %441 : vector<1x16xf32> to vector<1x16xf32>
    %445 = vector.broadcast %444 : vector<1x16xf32> to vector<8x16xf32>
    %446 = arith.select %443, %445, %432 : vector<8x16xi1>, vector<8x16xf32>
    %c0_107 = arith.constant 0 : index
    %c0_108 = arith.constant 0 : index
    %447 = vector.load %arg6[%c0_107, %c0_108] : memref<100x16xf32, #tpu.memory_space<vmem>>, vector<8x16xf32>
    tpu.vector_store %arg6[%c0_107, %c0_108], %446 {strides = array<i32>} : memref<100x16xf32, #tpu.memory_space<vmem>>, vector<8x16xf32>,
    %cst_109 = arith.constant dense<0.000000e+00> : vector<8x16xf32>
    %448 = tpu.matmul %333, %5, %cst_109 {dimension_numbers = #tpu.dot_dimension_numbers<[1], [0], [0], [1], [0, 0, 1, 1], [], []>} : vector<8x64xf32>, vector<64x16xf32>, vector<8x16xf32> -> vector<8x16xf32>
    %449 = vector.broadcast %6 : vector<1x16xf32> to vector<8x16xf32>
    %450 = arith.addf %448, %449 : vector<8x16xf32>
    %cst_110 = arith.constant 0.000000e+00 : f32
    %451 = vector.broadcast %cst_110 : f32 to vector<8x64xf32>
    %cst_111 = arith.constant 0.949999988 : f32
    %452 = vector.broadcast %cst_111 : f32 to vector<1x64xf32>
    %453 = arith.mulf %452, %324 : vector<1x64xf32>
    %454 = arith.addf %453, %4 : vector<1x64xf32>
    %455 = arith.subf %454, %328 : vector<1x64xf32>
    %cst_112 = arith.constant 1.000000e+00 : f32
    %456 = vector.broadcast %cst_112 : f32 to vector<1x64xf32>
    %457 = arith.cmpf ogt, %455, %456 : vector<1x64xf32>
    %458 = arith.extui %457 : vector<1x64xi1> to vector<1x64xi32>
    %459 = arith.sitofp %458 : vector<1x64xi32> to vector<1x64xf32>
    %c0_i32_113 = arith.constant 0 : i32
    %460 = vector.broadcast %c0_i32_113 : i32 to vector<8x64xi32>
    %461 = arith.cmpi eq, %7, %460 : vector<8x64xi32>
    %462 = vector.shape_cast %459 : vector<1x64xf32> to vector<1x64xf32>
    %463 = vector.broadcast %462 : vector<1x64xf32> to vector<8x64xf32>
    %464 = arith.select %461, %463, %451 : vector<8x64xi1>, vector<8x64xf32>
    %cst_114 = arith.constant 0.949999988 : f32
    %465 = vector.broadcast %cst_114 : f32 to vector<1x64xf32>
    %466 = arith.mulf %465, %455 : vector<1x64xf32>
    %467 = arith.addf %466, %4 : vector<1x64xf32>
    %468 = arith.subf %467, %459 : vector<1x64xf32>
    %cst_115 = arith.constant 1.000000e+00 : f32
    %469 = vector.broadcast %cst_115 : f32 to vector<1x64xf32>
    %470 = arith.cmpf ogt, %468, %469 : vector<1x64xf32>
    %471 = arith.extui %470 : vector<1x64xi1> to vector<1x64xi32>
    %472 = arith.sitofp %471 : vector<1x64xi32> to vector<1x64xf32>
    %c1_i32_116 = arith.constant 1 : i32
    %473 = vector.broadcast %c1_i32_116 : i32 to vector<8x64xi32>
    %474 = arith.cmpi eq, %7, %473 : vector<8x64xi32>
    %475 = vector.shape_cast %472 : vector<1x64xf32> to vector<1x64xf32>
    %476 = vector.broadcast %475 : vector<1x64xf32> to vector<8x64xf32>
    %477 = arith.select %474, %476, %464 : vector<8x64xi1>, vector<8x64xf32>
    %cst_117 = arith.constant 0.949999988 : f32
    %478 = vector.broadcast %cst_117 : f32 to vector<1x64xf32>
    %479 = arith.mulf %478, %468 : vector<1x64xf32>
    %480 = arith.addf %479, %4 : vector<1x64xf32>
    %481 = arith.subf %480, %472 : vector<1x64xf32>
    %cst_118 = arith.constant 1.000000e+00 : f32
    %482 = vector.broadcast %cst_118 : f32 to vector<1x64xf32>
    %483 = arith.cmpf ogt, %481, %482 : vector<1x64xf32>
    %484 = arith.extui %483 : vector<1x64xi1> to vector<1x64xi32>
    %485 = arith.sitofp %484 : vector<1x64xi32> to vector<1x64xf32>
    %c2_i32_119 = arith.constant 2 : i32
    %486 = vector.broadcast %c2_i32_119 : i32 to vector<8x64xi32>
    %487 = arith.cmpi eq, %7, %486 : vector<8x64xi32>
    %488 = vector.shape_cast %485 : vector<1x64xf32> to vector<1x64xf32>
    %489 = vector.broadcast %488 : vector<1x64xf32> to vector<8x64xf32>
    %490 = arith.select %487, %489, %477 : vector<8x64xi1>, vector<8x64xf32>
    %cst_120 = arith.constant 0.949999988 : f32
    %491 = vector.broadcast %cst_120 : f32 to vector<1x64xf32>
    %492 = arith.mulf %491, %481 : vector<1x64xf32>
    %493 = arith.addf %492, %4 : vector<1x64xf32>
    %494 = arith.subf %493, %485 : vector<1x64xf32>
    %cst_121 = arith.constant 1.000000e+00 : f32
    %495 = vector.broadcast %cst_121 : f32 to vector<1x64xf32>
    %496 = arith.cmpf ogt, %494, %495 : vector<1x64xf32>
    %497 = arith.extui %496 : vector<1x64xi1> to vector<1x64xi32>
    %498 = arith.sitofp %497 : vector<1x64xi32> to vector<1x64xf32>
    %c3_i32_122 = arith.constant 3 : i32
    %499 = vector.broadcast %c3_i32_122 : i32 to vector<8x64xi32>
    %500 = arith.cmpi eq, %7, %499 : vector<8x64xi32>
    %501 = vector.shape_cast %498 : vector<1x64xf32> to vector<1x64xf32>
    %502 = vector.broadcast %501 : vector<1x64xf32> to vector<8x64xf32>
    %503 = arith.select %500, %502, %490 : vector<8x64xi1>, vector<8x64xf32>
    %cst_123 = arith.constant 0.949999988 : f32
    %504 = vector.broadcast %cst_123 : f32 to vector<1x64xf32>
    %505 = arith.mulf %504, %494 : vector<1x64xf32>
    %506 = arith.addf %505, %4 : vector<1x64xf32>
    %507 = arith.subf %506, %498 : vector<1x64xf32>
    %cst_124 = arith.constant 1.000000e+00 : f32
    %508 = vector.broadcast %cst_124 : f32 to vector<1x64xf32>
    %509 = arith.cmpf ogt, %507, %508 : vector<1x64xf32>
    %510 = arith.extui %509 : vector<1x64xi1> to vector<1x64xi32>
    %511 = arith.sitofp %510 : vector<1x64xi32> to vector<1x64xf32>
    %c4_i32_125 = arith.constant 4 : i32
    %512 = vector.broadcast %c4_i32_125 : i32 to vector<8x64xi32>
    %513 = arith.cmpi eq, %7, %512 : vector<8x64xi32>
    %514 = vector.shape_cast %511 : vector<1x64xf32> to vector<1x64xf32>
    %515 = vector.broadcast %514 : vector<1x64xf32> to vector<8x64xf32>
    %516 = arith.select %513, %515, %503 : vector<8x64xi1>, vector<8x64xf32>
    %cst_126 = arith.constant 0.949999988 : f32
    %517 = vector.broadcast %cst_126 : f32 to vector<1x64xf32>
    %518 = arith.mulf %517, %507 : vector<1x64xf32>
    %519 = arith.addf %518, %4 : vector<1x64xf32>
    %520 = arith.subf %519, %511 : vector<1x64xf32>
    %cst_127 = arith.constant 1.000000e+00 : f32
    %521 = vector.broadcast %cst_127 : f32 to vector<1x64xf32>
    %522 = arith.cmpf ogt, %520, %521 : vector<1x64xf32>
    %523 = arith.extui %522 : vector<1x64xi1> to vector<1x64xi32>
    %524 = arith.sitofp %523 : vector<1x64xi32> to vector<1x64xf32>
    %c5_i32_128 = arith.constant 5 : i32
    %525 = vector.broadcast %c5_i32_128 : i32 to vector<8x64xi32>
    %526 = arith.cmpi eq, %7, %525 : vector<8x64xi32>
    %527 = vector.shape_cast %524 : vector<1x64xf32> to vector<1x64xf32>
    %528 = vector.broadcast %527 : vector<1x64xf32> to vector<8x64xf32>
    %529 = arith.select %526, %528, %516 : vector<8x64xi1>, vector<8x64xf32>
    %cst_129 = arith.constant 0.949999988 : f32
    %530 = vector.broadcast %cst_129 : f32 to vector<1x64xf32>
    %531 = arith.mulf %530, %520 : vector<1x64xf32>
    %532 = arith.addf %531, %4 : vector<1x64xf32>
    %533 = arith.subf %532, %524 : vector<1x64xf32>
    %cst_130 = arith.constant 1.000000e+00 : f32
    %534 = vector.broadcast %cst_130 : f32 to vector<1x64xf32>
    %535 = arith.cmpf ogt, %533, %534 : vector<1x64xf32>
    %536 = arith.extui %535 : vector<1x64xi1> to vector<1x64xi32>
    %537 = arith.sitofp %536 : vector<1x64xi32> to vector<1x64xf32>
    %c6_i32_131 = arith.constant 6 : i32
    %538 = vector.broadcast %c6_i32_131 : i32 to vector<8x64xi32>
    %539 = arith.cmpi eq, %7, %538 : vector<8x64xi32>
    %540 = vector.shape_cast %537 : vector<1x64xf32> to vector<1x64xf32>
    %541 = vector.broadcast %540 : vector<1x64xf32> to vector<8x64xf32>
    %542 = arith.select %539, %541, %529 : vector<8x64xi1>, vector<8x64xf32>
    %cst_132 = arith.constant 0.949999988 : f32
    %543 = vector.broadcast %cst_132 : f32 to vector<1x64xf32>
    %544 = arith.mulf %543, %533 : vector<1x64xf32>
    %545 = arith.addf %544, %4 : vector<1x64xf32>
    %546 = arith.subf %545, %537 : vector<1x64xf32>
    %cst_133 = arith.constant 1.000000e+00 : f32
    %547 = vector.broadcast %cst_133 : f32 to vector<1x64xf32>
    %548 = arith.cmpf ogt, %546, %547 : vector<1x64xf32>
    %549 = arith.extui %548 : vector<1x64xi1> to vector<1x64xi32>
    %550 = arith.sitofp %549 : vector<1x64xi32> to vector<1x64xf32>
    %c7_i32_134 = arith.constant 7 : i32
    %551 = vector.broadcast %c7_i32_134 : i32 to vector<8x64xi32>
    %552 = arith.cmpi eq, %7, %551 : vector<8x64xi32>
    %553 = vector.shape_cast %550 : vector<1x64xf32> to vector<1x64xf32>
    %554 = vector.broadcast %553 : vector<1x64xf32> to vector<8x64xf32>
    %555 = arith.select %552, %554, %542 : vector<8x64xi1>, vector<8x64xf32>
    %cst_135 = arith.constant 0.000000e+00 : f32
    %556 = vector.broadcast %cst_135 : f32 to vector<8x16xf32>
    %557 = vector.extract_strided_slice %228 {offsets = [0, 0], sizes = [1, 16], strides = [1, 1]} : vector<8x16xf32> to vector<1x16xf32>
    %cst_136 = arith.constant 0.949999988 : f32
    %558 = vector.broadcast %cst_136 : f32 to vector<1x16xf32>
    %559 = arith.mulf %558, %437 : vector<1x16xf32>
    %560 = arith.addf %559, %557 : vector<1x16xf32>
    %561 = arith.subf %560, %441 : vector<1x16xf32>
    %cst_137 = arith.constant 1.000000e+00 : f32
    %562 = vector.broadcast %cst_137 : f32 to vector<1x16xf32>
    %563 = arith.cmpf ogt, %561, %562 : vector<1x16xf32>
    %564 = arith.extui %563 : vector<1x16xi1> to vector<1x16xi32>
    %565 = arith.sitofp %564 : vector<1x16xi32> to vector<1x16xf32>
    %c0_i32_138 = arith.constant 0 : i32
    %566 = vector.broadcast %c0_i32_138 : i32 to vector<8x16xi32>
    %567 = arith.cmpi eq, %8, %566 : vector<8x16xi32>
    %568 = vector.shape_cast %565 : vector<1x16xf32> to vector<1x16xf32>
    %569 = vector.broadcast %568 : vector<1x16xf32> to vector<8x16xf32>
    %570 = arith.select %567, %569, %556 : vector<8x16xi1>, vector<8x16xf32>
    %571 = vector.extract_strided_slice %228 {offsets = [1, 0], sizes = [1, 16], strides = [1, 1]} : vector<8x16xf32> to vector<1x16xf32>
    %cst_139 = arith.constant 0.949999988 : f32
    %572 = vector.broadcast %cst_139 : f32 to vector<1x16xf32>
    %573 = arith.mulf %572, %561 : vector<1x16xf32>
    %574 = arith.addf %573, %571 : vector<1x16xf32>
    %575 = arith.subf %574, %565 : vector<1x16xf32>
    %cst_140 = arith.constant 1.000000e+00 : f32
    %576 = vector.broadcast %cst_140 : f32 to vector<1x16xf32>
    %577 = arith.cmpf ogt, %575, %576 : vector<1x16xf32>
    %578 = arith.extui %577 : vector<1x16xi1> to vector<1x16xi32>
    %579 = arith.sitofp %578 : vector<1x16xi32> to vector<1x16xf32>
    %c1_i32_141 = arith.constant 1 : i32
    %580 = vector.broadcast %c1_i32_141 : i32 to vector<8x16xi32>
    %581 = arith.cmpi eq, %8, %580 : vector<8x16xi32>
    %582 = vector.shape_cast %579 : vector<1x16xf32> to vector<1x16xf32>
    %583 = vector.broadcast %582 : vector<1x16xf32> to vector<8x16xf32>
    %584 = arith.select %581, %583, %570 : vector<8x16xi1>, vector<8x16xf32>
    %585 = vector.extract_strided_slice %228 {offsets = [2, 0], sizes = [1, 16], strides = [1, 1]} : vector<8x16xf32> to vector<1x16xf32>
    %cst_142 = arith.constant 0.949999988 : f32
    %586 = vector.broadcast %cst_142 : f32 to vector<1x16xf32>
    %587 = arith.mulf %586, %575 : vector<1x16xf32>
    %588 = arith.addf %587, %585 : vector<1x16xf32>
    %589 = arith.subf %588, %579 : vector<1x16xf32>
    %cst_143 = arith.constant 1.000000e+00 : f32
    %590 = vector.broadcast %cst_143 : f32 to vector<1x16xf32>
    %591 = arith.cmpf ogt, %589, %590 : vector<1x16xf32>
    %592 = arith.extui %591 : vector<1x16xi1> to vector<1x16xi32>
    %593 = arith.sitofp %592 : vector<1x16xi32> to vector<1x16xf32>
    %c2_i32_144 = arith.constant 2 : i32
    %594 = vector.broadcast %c2_i32_144 : i32 to vector<8x16xi32>
    %595 = arith.cmpi eq, %8, %594 : vector<8x16xi32>
    %596 = vector.shape_cast %593 : vector<1x16xf32> to vector<1x16xf32>
    %597 = vector.broadcast %596 : vector<1x16xf32> to vector<8x16xf32>
    %598 = arith.select %595, %597, %584 : vector<8x16xi1>, vector<8x16xf32>
    %599 = vector.extract_strided_slice %228 {offsets = [3, 0], sizes = [1, 16], strides = [1, 1]} : vector<8x16xf32> to vector<1x16xf32>
    %cst_145 = arith.constant 0.949999988 : f32
    %600 = vector.broadcast %cst_145 : f32 to vector<1x16xf32>
    %601 = arith.mulf %600, %589 : vector<1x16xf32>
    %602 = arith.addf %601, %599 : vector<1x16xf32>
    %603 = arith.subf %602, %593 : vector<1x16xf32>
    %cst_146 = arith.constant 1.000000e+00 : f32
    %604 = vector.broadcast %cst_146 : f32 to vector<1x16xf32>
    %605 = arith.cmpf ogt, %603, %604 : vector<1x16xf32>
    %606 = arith.extui %605 : vector<1x16xi1> to vector<1x16xi32>
    %607 = arith.sitofp %606 : vector<1x16xi32> to vector<1x16xf32>
    %c3_i32_147 = arith.constant 3 : i32
    %608 = vector.broadcast %c3_i32_147 : i32 to vector<8x16xi32>
    %609 = arith.cmpi eq, %8, %608 : vector<8x16xi32>
    %610 = vector.shape_cast %607 : vector<1x16xf32> to vector<1x16xf32>
    %611 = vector.broadcast %610 : vector<1x16xf32> to vector<8x16xf32>
    %612 = arith.select %609, %611, %598 : vector<8x16xi1>, vector<8x16xf32>
    %613 = vector.extract_strided_slice %228 {offsets = [4, 0], sizes = [1, 16], strides = [1, 1]} : vector<8x16xf32> to vector<1x16xf32>
    %cst_148 = arith.constant 0.949999988 : f32
    %614 = vector.broadcast %cst_148 : f32 to vector<1x16xf32>
    %615 = arith.mulf %614, %603 : vector<1x16xf32>
    %616 = arith.addf %615, %613 : vector<1x16xf32>
    %617 = arith.subf %616, %607 : vector<1x16xf32>
    %cst_149 = arith.constant 1.000000e+00 : f32
    %618 = vector.broadcast %cst_149 : f32 to vector<1x16xf32>
    %619 = arith.cmpf ogt, %617, %618 : vector<1x16xf32>
    %620 = arith.extui %619 : vector<1x16xi1> to vector<1x16xi32>
    %621 = arith.sitofp %620 : vector<1x16xi32> to vector<1x16xf32>
    %c4_i32_150 = arith.constant 4 : i32
    %622 = vector.broadcast %c4_i32_150 : i32 to vector<8x16xi32>
    %623 = arith.cmpi eq, %8, %622 : vector<8x16xi32>
    %624 = vector.shape_cast %621 : vector<1x16xf32> to vector<1x16xf32>
    %625 = vector.broadcast %624 : vector<1x16xf32> to vector<8x16xf32>
    %626 = arith.select %623, %625, %612 : vector<8x16xi1>, vector<8x16xf32>
    %627 = vector.extract_strided_slice %228 {offsets = [5, 0], sizes = [1, 16], strides = [1, 1]} : vector<8x16xf32> to vector<1x16xf32>
    %cst_151 = arith.constant 0.949999988 : f32
    %628 = vector.broadcast %cst_151 : f32 to vector<1x16xf32>
    %629 = arith.mulf %628, %617 : vector<1x16xf32>
    %630 = arith.addf %629, %627 : vector<1x16xf32>
    %631 = arith.subf %630, %621 : vector<1x16xf32>
    %cst_152 = arith.constant 1.000000e+00 : f32
    %632 = vector.broadcast %cst_152 : f32 to vector<1x16xf32>
    %633 = arith.cmpf ogt, %631, %632 : vector<1x16xf32>
    %634 = arith.extui %633 : vector<1x16xi1> to vector<1x16xi32>
    %635 = arith.sitofp %634 : vector<1x16xi32> to vector<1x16xf32>
    %c5_i32_153 = arith.constant 5 : i32
    %636 = vector.broadcast %c5_i32_153 : i32 to vector<8x16xi32>
    %637 = arith.cmpi eq, %8, %636 : vector<8x16xi32>
    %638 = vector.shape_cast %635 : vector<1x16xf32> to vector<1x16xf32>
    %639 = vector.broadcast %638 : vector<1x16xf32> to vector<8x16xf32>
    %640 = arith.select %637, %639, %626 : vector<8x16xi1>, vector<8x16xf32>
    %641 = vector.extract_strided_slice %228 {offsets = [6, 0], sizes = [1, 16], strides = [1, 1]} : vector<8x16xf32> to vector<1x16xf32>
    %cst_154 = arith.constant 0.949999988 : f32
    %642 = vector.broadcast %cst_154 : f32 to vector<1x16xf32>
    %643 = arith.mulf %642, %631 : vector<1x16xf32>
    %644 = arith.addf %643, %641 : vector<1x16xf32>
    %645 = arith.subf %644, %635 : vector<1x16xf32>
    %cst_155 = arith.constant 1.000000e+00 : f32
    %646 = vector.broadcast %cst_155 : f32 to vector<1x16xf32>
    %647 = arith.cmpf ogt, %645, %646 : vector<1x16xf32>
    %648 = arith.extui %647 : vector<1x16xi1> to vector<1x16xi32>
    %649 = arith.sitofp %648 : vector<1x16xi32> to vector<1x16xf32>
    %c6_i32_156 = arith.constant 6 : i32
    %650 = vector.broadcast %c6_i32_156 : i32 to vector<8x16xi32>
    %651 = arith.cmpi eq, %8, %650 : vector<8x16xi32>
    %652 = vector.shape_cast %649 : vector<1x16xf32> to vector<1x16xf32>
    %653 = vector.broadcast %652 : vector<1x16xf32> to vector<8x16xf32>
    %654 = arith.select %651, %653, %640 : vector<8x16xi1>, vector<8x16xf32>
    %655 = vector.extract_strided_slice %228 {offsets = [7, 0], sizes = [1, 16], strides = [1, 1]} : vector<8x16xf32> to vector<1x16xf32>
    %cst_157 = arith.constant 0.949999988 : f32
    %656 = vector.broadcast %cst_157 : f32 to vector<1x16xf32>
    %657 = arith.mulf %656, %645 : vector<1x16xf32>
    %658 = arith.addf %657, %655 : vector<1x16xf32>
    %659 = arith.subf %658, %649 : vector<1x16xf32>
    %cst_158 = arith.constant 1.000000e+00 : f32
    %660 = vector.broadcast %cst_158 : f32 to vector<1x16xf32>
    %661 = arith.cmpf ogt, %659, %660 : vector<1x16xf32>
    %662 = arith.extui %661 : vector<1x16xi1> to vector<1x16xi32>
    %663 = arith.sitofp %662 : vector<1x16xi32> to vector<1x16xf32>
    %c7_i32_159 = arith.constant 7 : i32
    %664 = vector.broadcast %c7_i32_159 : i32 to vector<8x16xi32>
    %665 = arith.cmpi eq, %8, %664 : vector<8x16xi32>
    %666 = vector.shape_cast %663 : vector<1x16xf32> to vector<1x16xf32>
    %667 = vector.broadcast %666 : vector<1x16xf32> to vector<8x16xf32>
    %668 = arith.select %665, %667, %654 : vector<8x16xi1>, vector<8x16xf32>
    %c8 = arith.constant 8 : index
    %c0_160 = arith.constant 0 : index
    %669 = vector.load %arg6[%c8, %c0_160] : memref<100x16xf32, #tpu.memory_space<vmem>>, vector<8x16xf32>
    tpu.vector_store %arg6[%c8, %c0_160], %668 {strides = array<i32>} : memref<100x16xf32, #tpu.memory_space<vmem>>, vector<8x16xf32>,
    %cst_161 = arith.constant dense<0.000000e+00> : vector<8x16xf32>
    %670 = tpu.matmul %555, %5, %cst_161 {dimension_numbers = #tpu.dot_dimension_numbers<[1], [0], [0], [1], [0, 0, 1, 1], [], []>} : vector<8x64xf32>, vector<64x16xf32>, vector<8x16xf32> -> vector<8x16xf32>
    %671 = vector.broadcast %6 : vector<1x16xf32> to vector<8x16xf32>
    %672 = arith.addf %670, %671 : vector<8x16xf32>
    %cst_162 = arith.constant 0.000000e+00 : f32
    %673 = vector.broadcast %cst_162 : f32 to vector<8x64xf32>
    %cst_163 = arith.constant 0.949999988 : f32
    %674 = vector.broadcast %cst_163 : f32 to vector<1x64xf32>
    %675 = arith.mulf %674, %546 : vector<1x64xf32>
    %676 = arith.addf %675, %4 : vector<1x64xf32>
    %677 = arith.subf %676, %550 : vector<1x64xf32>
    %cst_164 = arith.constant 1.000000e+00 : f32
    %678 = vector.broadcast %cst_164 : f32 to vector<1x64xf32>
    %679 = arith.cmpf ogt, %677, %678 : vector<1x64xf32>
    %680 = arith.extui %679 : vector<1x64xi1> to vector<1x64xi32>
    %681 = arith.sitofp %680 : vector<1x64xi32> to vector<1x64xf32>
    %c0_i32_165 = arith.constant 0 : i32
    %682 = vector.broadcast %c0_i32_165 : i32 to vector<8x64xi32>
    %683 = arith.cmpi eq, %7, %682 : vector<8x64xi32>
    %684 = vector.shape_cast %681 : vector<1x64xf32> to vector<1x64xf32>
    %685 = vector.broadcast %684 : vector<1x64xf32> to vector<8x64xf32>
    %686 = arith.select %683, %685, %673 : vector<8x64xi1>, vector<8x64xf32>
    %cst_166 = arith.constant 0.949999988 : f32
    %687 = vector.broadcast %cst_166 : f32 to vector<1x64xf32>
    %688 = arith.mulf %687, %677 : vector<1x64xf32>
    %689 = arith.addf %688, %4 : vector<1x64xf32>
    %690 = arith.subf %689, %681 : vector<1x64xf32>
    %cst_167 = arith.constant 1.000000e+00 : f32
    %691 = vector.broadcast %cst_167 : f32 to vector<1x64xf32>
    %692 = arith.cmpf ogt, %690, %691 : vector<1x64xf32>
    %693 = arith.extui %692 : vector<1x64xi1> to vector<1x64xi32>
    %694 = arith.sitofp %693 : vector<1x64xi32> to vector<1x64xf32>
    %c1_i32_168 = arith.constant 1 : i32
    %695 = vector.broadcast %c1_i32_168 : i32 to vector<8x64xi32>
    %696 = arith.cmpi eq, %7, %695 : vector<8x64xi32>
    %697 = vector.shape_cast %694 : vector<1x64xf32> to vector<1x64xf32>
    %698 = vector.broadcast %697 : vector<1x64xf32> to vector<8x64xf32>
    %699 = arith.select %696, %698, %686 : vector<8x64xi1>, vector<8x64xf32>
    %cst_169 = arith.constant 0.949999988 : f32
    %700 = vector.broadcast %cst_169 : f32 to vector<1x64xf32>
    %701 = arith.mulf %700, %690 : vector<1x64xf32>
    %702 = arith.addf %701, %4 : vector<1x64xf32>
    %703 = arith.subf %702, %694 : vector<1x64xf32>
    %cst_170 = arith.constant 1.000000e+00 : f32
    %704 = vector.broadcast %cst_170 : f32 to vector<1x64xf32>
    %705 = arith.cmpf ogt, %703, %704 : vector<1x64xf32>
    %706 = arith.extui %705 : vector<1x64xi1> to vector<1x64xi32>
    %707 = arith.sitofp %706 : vector<1x64xi32> to vector<1x64xf32>
    %c2_i32_171 = arith.constant 2 : i32
    %708 = vector.broadcast %c2_i32_171 : i32 to vector<8x64xi32>
    %709 = arith.cmpi eq, %7, %708 : vector<8x64xi32>
    %710 = vector.shape_cast %707 : vector<1x64xf32> to vector<1x64xf32>
    %711 = vector.broadcast %710 : vector<1x64xf32> to vector<8x64xf32>
    %712 = arith.select %709, %711, %699 : vector<8x64xi1>, vector<8x64xf32>
    %cst_172 = arith.constant 0.949999988 : f32
    %713 = vector.broadcast %cst_172 : f32 to vector<1x64xf32>
    %714 = arith.mulf %713, %703 : vector<1x64xf32>
    %715 = arith.addf %714, %4 : vector<1x64xf32>
    %716 = arith.subf %715, %707 : vector<1x64xf32>
    %cst_173 = arith.constant 1.000000e+00 : f32
    %717 = vector.broadcast %cst_173 : f32 to vector<1x64xf32>
    %718 = arith.cmpf ogt, %716, %717 : vector<1x64xf32>
    %719 = arith.extui %718 : vector<1x64xi1> to vector<1x64xi32>
    %720 = arith.sitofp %719 : vector<1x64xi32> to vector<1x64xf32>
    %c3_i32_174 = arith.constant 3 : i32
    %721 = vector.broadcast %c3_i32_174 : i32 to vector<8x64xi32>
    %722 = arith.cmpi eq, %7, %721 : vector<8x64xi32>
    %723 = vector.shape_cast %720 : vector<1x64xf32> to vector<1x64xf32>
    %724 = vector.broadcast %723 : vector<1x64xf32> to vector<8x64xf32>
    %725 = arith.select %722, %724, %712 : vector<8x64xi1>, vector<8x64xf32>
    %cst_175 = arith.constant 0.949999988 : f32
    %726 = vector.broadcast %cst_175 : f32 to vector<1x64xf32>
    %727 = arith.mulf %726, %716 : vector<1x64xf32>
    %728 = arith.addf %727, %4 : vector<1x64xf32>
    %729 = arith.subf %728, %720 : vector<1x64xf32>
    %cst_176 = arith.constant 1.000000e+00 : f32
    %730 = vector.broadcast %cst_176 : f32 to vector<1x64xf32>
    %731 = arith.cmpf ogt, %729, %730 : vector<1x64xf32>
    %732 = arith.extui %731 : vector<1x64xi1> to vector<1x64xi32>
    %733 = arith.sitofp %732 : vector<1x64xi32> to vector<1x64xf32>
    %c4_i32_177 = arith.constant 4 : i32
    %734 = vector.broadcast %c4_i32_177 : i32 to vector<8x64xi32>
    %735 = arith.cmpi eq, %7, %734 : vector<8x64xi32>
    %736 = vector.shape_cast %733 : vector<1x64xf32> to vector<1x64xf32>
    %737 = vector.broadcast %736 : vector<1x64xf32> to vector<8x64xf32>
    %738 = arith.select %735, %737, %725 : vector<8x64xi1>, vector<8x64xf32>
    %cst_178 = arith.constant 0.949999988 : f32
    %739 = vector.broadcast %cst_178 : f32 to vector<1x64xf32>
    %740 = arith.mulf %739, %729 : vector<1x64xf32>
    %741 = arith.addf %740, %4 : vector<1x64xf32>
    %742 = arith.subf %741, %733 : vector<1x64xf32>
    %cst_179 = arith.constant 1.000000e+00 : f32
    %743 = vector.broadcast %cst_179 : f32 to vector<1x64xf32>
    %744 = arith.cmpf ogt, %742, %743 : vector<1x64xf32>
    %745 = arith.extui %744 : vector<1x64xi1> to vector<1x64xi32>
    %746 = arith.sitofp %745 : vector<1x64xi32> to vector<1x64xf32>
    %c5_i32_180 = arith.constant 5 : i32
    %747 = vector.broadcast %c5_i32_180 : i32 to vector<8x64xi32>
    %748 = arith.cmpi eq, %7, %747 : vector<8x64xi32>
    %749 = vector.shape_cast %746 : vector<1x64xf32> to vector<1x64xf32>
    %750 = vector.broadcast %749 : vector<1x64xf32> to vector<8x64xf32>
    %751 = arith.select %748, %750, %738 : vector<8x64xi1>, vector<8x64xf32>
    %cst_181 = arith.constant 0.949999988 : f32
    %752 = vector.broadcast %cst_181 : f32 to vector<1x64xf32>
    %753 = arith.mulf %752, %742 : vector<1x64xf32>
    %754 = arith.addf %753, %4 : vector<1x64xf32>
    %755 = arith.subf %754, %746 : vector<1x64xf32>
    %cst_182 = arith.constant 1.000000e+00 : f32
    %756 = vector.broadcast %cst_182 : f32 to vector<1x64xf32>
    %757 = arith.cmpf ogt, %755, %756 : vector<1x64xf32>
    %758 = arith.extui %757 : vector<1x64xi1> to vector<1x64xi32>
    %759 = arith.sitofp %758 : vector<1x64xi32> to vector<1x64xf32>
    %c6_i32_183 = arith.constant 6 : i32
    %760 = vector.broadcast %c6_i32_183 : i32 to vector<8x64xi32>
    %761 = arith.cmpi eq, %7, %760 : vector<8x64xi32>
    %762 = vector.shape_cast %759 : vector<1x64xf32> to vector<1x64xf32>
    %763 = vector.broadcast %762 : vector<1x64xf32> to vector<8x64xf32>
    %764 = arith.select %761, %763, %751 : vector<8x64xi1>, vector<8x64xf32>
    %cst_184 = arith.constant 0.949999988 : f32
    %765 = vector.broadcast %cst_184 : f32 to vector<1x64xf32>
    %766 = arith.mulf %765, %755 : vector<1x64xf32>
    %767 = arith.addf %766, %4 : vector<1x64xf32>
    %768 = arith.subf %767, %759 : vector<1x64xf32>
    %cst_185 = arith.constant 1.000000e+00 : f32
    %769 = vector.broadcast %cst_185 : f32 to vector<1x64xf32>
    %770 = arith.cmpf ogt, %768, %769 : vector<1x64xf32>
    %771 = arith.extui %770 : vector<1x64xi1> to vector<1x64xi32>
    %772 = arith.sitofp %771 : vector<1x64xi32> to vector<1x64xf32>
    %c7_i32_186 = arith.constant 7 : i32
    %773 = vector.broadcast %c7_i32_186 : i32 to vector<8x64xi32>
    %774 = arith.cmpi eq, %7, %773 : vector<8x64xi32>
    %775 = vector.shape_cast %772 : vector<1x64xf32> to vector<1x64xf32>
    %776 = vector.broadcast %775 : vector<1x64xf32> to vector<8x64xf32>
    %777 = arith.select %774, %776, %764 : vector<8x64xi1>, vector<8x64xf32>
    %cst_187 = arith.constant 0.000000e+00 : f32
    %778 = vector.broadcast %cst_187 : f32 to vector<8x16xf32>
    %779 = vector.extract_strided_slice %450 {offsets = [0, 0], sizes = [1, 16], strides = [1, 1]} : vector<8x16xf32> to vector<1x16xf32>
    %cst_188 = arith.constant 0.949999988 : f32
    %780 = vector.broadcast %cst_188 : f32 to vector<1x16xf32>
    %781 = arith.mulf %780, %659 : vector<1x16xf32>
    %782 = arith.addf %781, %779 : vector<1x16xf32>
    %783 = arith.subf %782, %663 : vector<1x16xf32>
    %cst_189 = arith.constant 1.000000e+00 : f32
    %784 = vector.broadcast %cst_189 : f32 to vector<1x16xf32>
    %785 = arith.cmpf ogt, %783, %784 : vector<1x16xf32>
    %786 = arith.extui %785 : vector<1x16xi1> to vector<1x16xi32>
    %787 = arith.sitofp %786 : vector<1x16xi32> to vector<1x16xf32>
    %c0_i32_190 = arith.constant 0 : i32
    %788 = vector.broadcast %c0_i32_190 : i32 to vector<8x16xi32>
    %789 = arith.cmpi eq, %8, %788 : vector<8x16xi32>
    %790 = vector.shape_cast %787 : vector<1x16xf32> to vector<1x16xf32>
    %791 = vector.broadcast %790 : vector<1x16xf32> to vector<8x16xf32>
    %792 = arith.select %789, %791, %778 : vector<8x16xi1>, vector<8x16xf32>
    %793 = vector.extract_strided_slice %450 {offsets = [1, 0], sizes = [1, 16], strides = [1, 1]} : vector<8x16xf32> to vector<1x16xf32>
    %cst_191 = arith.constant 0.949999988 : f32
    %794 = vector.broadcast %cst_191 : f32 to vector<1x16xf32>
    %795 = arith.mulf %794, %783 : vector<1x16xf32>
    %796 = arith.addf %795, %793 : vector<1x16xf32>
    %797 = arith.subf %796, %787 : vector<1x16xf32>
    %cst_192 = arith.constant 1.000000e+00 : f32
    %798 = vector.broadcast %cst_192 : f32 to vector<1x16xf32>
    %799 = arith.cmpf ogt, %797, %798 : vector<1x16xf32>
    %800 = arith.extui %799 : vector<1x16xi1> to vector<1x16xi32>
    %801 = arith.sitofp %800 : vector<1x16xi32> to vector<1x16xf32>
    %c1_i32_193 = arith.constant 1 : i32
    %802 = vector.broadcast %c1_i32_193 : i32 to vector<8x16xi32>
    %803 = arith.cmpi eq, %8, %802 : vector<8x16xi32>
    %804 = vector.shape_cast %801 : vector<1x16xf32> to vector<1x16xf32>
    %805 = vector.broadcast %804 : vector<1x16xf32> to vector<8x16xf32>
    %806 = arith.select %803, %805, %792 : vector<8x16xi1>, vector<8x16xf32>
    %807 = vector.extract_strided_slice %450 {offsets = [2, 0], sizes = [1, 16], strides = [1, 1]} : vector<8x16xf32> to vector<1x16xf32>
    %cst_194 = arith.constant 0.949999988 : f32
    %808 = vector.broadcast %cst_194 : f32 to vector<1x16xf32>
    %809 = arith.mulf %808, %797 : vector<1x16xf32>
    %810 = arith.addf %809, %807 : vector<1x16xf32>
    %811 = arith.subf %810, %801 : vector<1x16xf32>
    %cst_195 = arith.constant 1.000000e+00 : f32
    %812 = vector.broadcast %cst_195 : f32 to vector<1x16xf32>
    %813 = arith.cmpf ogt, %811, %812 : vector<1x16xf32>
    %814 = arith.extui %813 : vector<1x16xi1> to vector<1x16xi32>
    %815 = arith.sitofp %814 : vector<1x16xi32> to vector<1x16xf32>
    %c2_i32_196 = arith.constant 2 : i32
    %816 = vector.broadcast %c2_i32_196 : i32 to vector<8x16xi32>
    %817 = arith.cmpi eq, %8, %816 : vector<8x16xi32>
    %818 = vector.shape_cast %815 : vector<1x16xf32> to vector<1x16xf32>
    %819 = vector.broadcast %818 : vector<1x16xf32> to vector<8x16xf32>
    %820 = arith.select %817, %819, %806 : vector<8x16xi1>, vector<8x16xf32>
    %821 = vector.extract_strided_slice %450 {offsets = [3, 0], sizes = [1, 16], strides = [1, 1]} : vector<8x16xf32> to vector<1x16xf32>
    %cst_197 = arith.constant 0.949999988 : f32
    %822 = vector.broadcast %cst_197 : f32 to vector<1x16xf32>
    %823 = arith.mulf %822, %811 : vector<1x16xf32>
    %824 = arith.addf %823, %821 : vector<1x16xf32>
    %825 = arith.subf %824, %815 : vector<1x16xf32>
    %cst_198 = arith.constant 1.000000e+00 : f32
    %826 = vector.broadcast %cst_198 : f32 to vector<1x16xf32>
    %827 = arith.cmpf ogt, %825, %826 : vector<1x16xf32>
    %828 = arith.extui %827 : vector<1x16xi1> to vector<1x16xi32>
    %829 = arith.sitofp %828 : vector<1x16xi32> to vector<1x16xf32>
    %c3_i32_199 = arith.constant 3 : i32
    %830 = vector.broadcast %c3_i32_199 : i32 to vector<8x16xi32>
    %831 = arith.cmpi eq, %8, %830 : vector<8x16xi32>
    %832 = vector.shape_cast %829 : vector<1x16xf32> to vector<1x16xf32>
    %833 = vector.broadcast %832 : vector<1x16xf32> to vector<8x16xf32>
    %834 = arith.select %831, %833, %820 : vector<8x16xi1>, vector<8x16xf32>
    %835 = vector.extract_strided_slice %450 {offsets = [4, 0], sizes = [1, 16], strides = [1, 1]} : vector<8x16xf32> to vector<1x16xf32>
    %cst_200 = arith.constant 0.949999988 : f32
    %836 = vector.broadcast %cst_200 : f32 to vector<1x16xf32>
    %837 = arith.mulf %836, %825 : vector<1x16xf32>
    %838 = arith.addf %837, %835 : vector<1x16xf32>
    %839 = arith.subf %838, %829 : vector<1x16xf32>
    %cst_201 = arith.constant 1.000000e+00 : f32
    %840 = vector.broadcast %cst_201 : f32 to vector<1x16xf32>
    %841 = arith.cmpf ogt, %839, %840 : vector<1x16xf32>
    %842 = arith.extui %841 : vector<1x16xi1> to vector<1x16xi32>
    %843 = arith.sitofp %842 : vector<1x16xi32> to vector<1x16xf32>
    %c4_i32_202 = arith.constant 4 : i32
    %844 = vector.broadcast %c4_i32_202 : i32 to vector<8x16xi32>
    %845 = arith.cmpi eq, %8, %844 : vector<8x16xi32>
    %846 = vector.shape_cast %843 : vector<1x16xf32> to vector<1x16xf32>
    %847 = vector.broadcast %846 : vector<1x16xf32> to vector<8x16xf32>
    %848 = arith.select %845, %847, %834 : vector<8x16xi1>, vector<8x16xf32>
    %849 = vector.extract_strided_slice %450 {offsets = [5, 0], sizes = [1, 16], strides = [1, 1]} : vector<8x16xf32> to vector<1x16xf32>
    %cst_203 = arith.constant 0.949999988 : f32
    %850 = vector.broadcast %cst_203 : f32 to vector<1x16xf32>
    %851 = arith.mulf %850, %839 : vector<1x16xf32>
    %852 = arith.addf %851, %849 : vector<1x16xf32>
    %853 = arith.subf %852, %843 : vector<1x16xf32>
    %cst_204 = arith.constant 1.000000e+00 : f32
    %854 = vector.broadcast %cst_204 : f32 to vector<1x16xf32>
    %855 = arith.cmpf ogt, %853, %854 : vector<1x16xf32>
    %856 = arith.extui %855 : vector<1x16xi1> to vector<1x16xi32>
    %857 = arith.sitofp %856 : vector<1x16xi32> to vector<1x16xf32>
    %c5_i32_205 = arith.constant 5 : i32
    %858 = vector.broadcast %c5_i32_205 : i32 to vector<8x16xi32>
    %859 = arith.cmpi eq, %8, %858 : vector<8x16xi32>
    %860 = vector.shape_cast %857 : vector<1x16xf32> to vector<1x16xf32>
    %861 = vector.broadcast %860 : vector<1x16xf32> to vector<8x16xf32>
    %862 = arith.select %859, %861, %848 : vector<8x16xi1>, vector<8x16xf32>
    %863 = vector.extract_strided_slice %450 {offsets = [6, 0], sizes = [1, 16], strides = [1, 1]} : vector<8x16xf32> to vector<1x16xf32>
    %cst_206 = arith.constant 0.949999988 : f32
    %864 = vector.broadcast %cst_206 : f32 to vector<1x16xf32>
    %865 = arith.mulf %864, %853 : vector<1x16xf32>
    %866 = arith.addf %865, %863 : vector<1x16xf32>
    %867 = arith.subf %866, %857 : vector<1x16xf32>
    %cst_207 = arith.constant 1.000000e+00 : f32
    %868 = vector.broadcast %cst_207 : f32 to vector<1x16xf32>
    %869 = arith.cmpf ogt, %867, %868 : vector<1x16xf32>
    %870 = arith.extui %869 : vector<1x16xi1> to vector<1x16xi32>
    %871 = arith.sitofp %870 : vector<1x16xi32> to vector<1x16xf32>
    %c6_i32_208 = arith.constant 6 : i32
    %872 = vector.broadcast %c6_i32_208 : i32 to vector<8x16xi32>
    %873 = arith.cmpi eq, %8, %872 : vector<8x16xi32>
    %874 = vector.shape_cast %871 : vector<1x16xf32> to vector<1x16xf32>
    %875 = vector.broadcast %874 : vector<1x16xf32> to vector<8x16xf32>
    %876 = arith.select %873, %875, %862 : vector<8x16xi1>, vector<8x16xf32>
    %877 = vector.extract_strided_slice %450 {offsets = [7, 0], sizes = [1, 16], strides = [1, 1]} : vector<8x16xf32> to vector<1x16xf32>
    %cst_209 = arith.constant 0.949999988 : f32
    %878 = vector.broadcast %cst_209 : f32 to vector<1x16xf32>
    %879 = arith.mulf %878, %867 : vector<1x16xf32>
    %880 = arith.addf %879, %877 : vector<1x16xf32>
    %881 = arith.subf %880, %871 : vector<1x16xf32>
    %cst_210 = arith.constant 1.000000e+00 : f32
    %882 = vector.broadcast %cst_210 : f32 to vector<1x16xf32>
    %883 = arith.cmpf ogt, %881, %882 : vector<1x16xf32>
    %884 = arith.extui %883 : vector<1x16xi1> to vector<1x16xi32>
    %885 = arith.sitofp %884 : vector<1x16xi32> to vector<1x16xf32>
    %c7_i32_211 = arith.constant 7 : i32
    %886 = vector.broadcast %c7_i32_211 : i32 to vector<8x16xi32>
    %887 = arith.cmpi eq, %8, %886 : vector<8x16xi32>
    %888 = vector.shape_cast %885 : vector<1x16xf32> to vector<1x16xf32>
    %889 = vector.broadcast %888 : vector<1x16xf32> to vector<8x16xf32>
    %890 = arith.select %887, %889, %876 : vector<8x16xi1>, vector<8x16xf32>
    %c16 = arith.constant 16 : index
    %c0_212 = arith.constant 0 : index
    %891 = vector.load %arg6[%c16, %c0_212] : memref<100x16xf32, #tpu.memory_space<vmem>>, vector<8x16xf32>
    tpu.vector_store %arg6[%c16, %c0_212], %890 {strides = array<i32>} : memref<100x16xf32, #tpu.memory_space<vmem>>, vector<8x16xf32>,
    %cst_213 = arith.constant dense<0.000000e+00> : vector<8x16xf32>
    %892 = tpu.matmul %777, %5, %cst_213 {dimension_numbers = #tpu.dot_dimension_numbers<[1], [0], [0], [1], [0, 0, 1, 1], [], []>} : vector<8x64xf32>, vector<64x16xf32>, vector<8x16xf32> -> vector<8x16xf32>
    %893 = vector.broadcast %6 : vector<1x16xf32> to vector<8x16xf32>
    %894 = arith.addf %892, %893 : vector<8x16xf32>
    %cst_214 = arith.constant 0.000000e+00 : f32
    %895 = vector.broadcast %cst_214 : f32 to vector<8x64xf32>
    %cst_215 = arith.constant 0.949999988 : f32
    %896 = vector.broadcast %cst_215 : f32 to vector<1x64xf32>
    %897 = arith.mulf %896, %768 : vector<1x64xf32>
    %898 = arith.addf %897, %4 : vector<1x64xf32>
    %899 = arith.subf %898, %772 : vector<1x64xf32>
    %cst_216 = arith.constant 1.000000e+00 : f32
    %900 = vector.broadcast %cst_216 : f32 to vector<1x64xf32>
    %901 = arith.cmpf ogt, %899, %900 : vector<1x64xf32>
    %902 = arith.extui %901 : vector<1x64xi1> to vector<1x64xi32>
    %903 = arith.sitofp %902 : vector<1x64xi32> to vector<1x64xf32>
    %c0_i32_217 = arith.constant 0 : i32
    %904 = vector.broadcast %c0_i32_217 : i32 to vector<8x64xi32>
    %905 = arith.cmpi eq, %7, %904 : vector<8x64xi32>
    %906 = vector.shape_cast %903 : vector<1x64xf32> to vector<1x64xf32>
    %907 = vector.broadcast %906 : vector<1x64xf32> to vector<8x64xf32>
    %908 = arith.select %905, %907, %895 : vector<8x64xi1>, vector<8x64xf32>
    %cst_218 = arith.constant 0.949999988 : f32
    %909 = vector.broadcast %cst_218 : f32 to vector<1x64xf32>
    %910 = arith.mulf %909, %899 : vector<1x64xf32>
    %911 = arith.addf %910, %4 : vector<1x64xf32>
    %912 = arith.subf %911, %903 : vector<1x64xf32>
    %cst_219 = arith.constant 1.000000e+00 : f32
    %913 = vector.broadcast %cst_219 : f32 to vector<1x64xf32>
    %914 = arith.cmpf ogt, %912, %913 : vector<1x64xf32>
    %915 = arith.extui %914 : vector<1x64xi1> to vector<1x64xi32>
    %916 = arith.sitofp %915 : vector<1x64xi32> to vector<1x64xf32>
    %c1_i32_220 = arith.constant 1 : i32
    %917 = vector.broadcast %c1_i32_220 : i32 to vector<8x64xi32>
    %918 = arith.cmpi eq, %7, %917 : vector<8x64xi32>
    %919 = vector.shape_cast %916 : vector<1x64xf32> to vector<1x64xf32>
    %920 = vector.broadcast %919 : vector<1x64xf32> to vector<8x64xf32>
    %921 = arith.select %918, %920, %908 : vector<8x64xi1>, vector<8x64xf32>
    %cst_221 = arith.constant 0.949999988 : f32
    %922 = vector.broadcast %cst_221 : f32 to vector<1x64xf32>
    %923 = arith.mulf %922, %912 : vector<1x64xf32>
    %924 = arith.addf %923, %4 : vector<1x64xf32>
    %925 = arith.subf %924, %916 : vector<1x64xf32>
    %cst_222 = arith.constant 1.000000e+00 : f32
    %926 = vector.broadcast %cst_222 : f32 to vector<1x64xf32>
    %927 = arith.cmpf ogt, %925, %926 : vector<1x64xf32>
    %928 = arith.extui %927 : vector<1x64xi1> to vector<1x64xi32>
    %929 = arith.sitofp %928 : vector<1x64xi32> to vector<1x64xf32>
    %c2_i32_223 = arith.constant 2 : i32
    %930 = vector.broadcast %c2_i32_223 : i32 to vector<8x64xi32>
    %931 = arith.cmpi eq, %7, %930 : vector<8x64xi32>
    %932 = vector.shape_cast %929 : vector<1x64xf32> to vector<1x64xf32>
    %933 = vector.broadcast %932 : vector<1x64xf32> to vector<8x64xf32>
    %934 = arith.select %931, %933, %921 : vector<8x64xi1>, vector<8x64xf32>
    %cst_224 = arith.constant 0.949999988 : f32
    %935 = vector.broadcast %cst_224 : f32 to vector<1x64xf32>
    %936 = arith.mulf %935, %925 : vector<1x64xf32>
    %937 = arith.addf %936, %4 : vector<1x64xf32>
    %938 = arith.subf %937, %929 : vector<1x64xf32>
    %cst_225 = arith.constant 1.000000e+00 : f32
    %939 = vector.broadcast %cst_225 : f32 to vector<1x64xf32>
    %940 = arith.cmpf ogt, %938, %939 : vector<1x64xf32>
    %941 = arith.extui %940 : vector<1x64xi1> to vector<1x64xi32>
    %942 = arith.sitofp %941 : vector<1x64xi32> to vector<1x64xf32>
    %c3_i32_226 = arith.constant 3 : i32
    %943 = vector.broadcast %c3_i32_226 : i32 to vector<8x64xi32>
    %944 = arith.cmpi eq, %7, %943 : vector<8x64xi32>
    %945 = vector.shape_cast %942 : vector<1x64xf32> to vector<1x64xf32>
    %946 = vector.broadcast %945 : vector<1x64xf32> to vector<8x64xf32>
    %947 = arith.select %944, %946, %934 : vector<8x64xi1>, vector<8x64xf32>
    %cst_227 = arith.constant 0.949999988 : f32
    %948 = vector.broadcast %cst_227 : f32 to vector<1x64xf32>
    %949 = arith.mulf %948, %938 : vector<1x64xf32>
    %950 = arith.addf %949, %4 : vector<1x64xf32>
    %951 = arith.subf %950, %942 : vector<1x64xf32>
    %cst_228 = arith.constant 1.000000e+00 : f32
    %952 = vector.broadcast %cst_228 : f32 to vector<1x64xf32>
    %953 = arith.cmpf ogt, %951, %952 : vector<1x64xf32>
    %954 = arith.extui %953 : vector<1x64xi1> to vector<1x64xi32>
    %955 = arith.sitofp %954 : vector<1x64xi32> to vector<1x64xf32>
    %c4_i32_229 = arith.constant 4 : i32
    %956 = vector.broadcast %c4_i32_229 : i32 to vector<8x64xi32>
    %957 = arith.cmpi eq, %7, %956 : vector<8x64xi32>
    %958 = vector.shape_cast %955 : vector<1x64xf32> to vector<1x64xf32>
    %959 = vector.broadcast %958 : vector<1x64xf32> to vector<8x64xf32>
    %960 = arith.select %957, %959, %947 : vector<8x64xi1>, vector<8x64xf32>
    %cst_230 = arith.constant 0.949999988 : f32
    %961 = vector.broadcast %cst_230 : f32 to vector<1x64xf32>
    %962 = arith.mulf %961, %951 : vector<1x64xf32>
    %963 = arith.addf %962, %4 : vector<1x64xf32>
    %964 = arith.subf %963, %955 : vector<1x64xf32>
    %cst_231 = arith.constant 1.000000e+00 : f32
    %965 = vector.broadcast %cst_231 : f32 to vector<1x64xf32>
    %966 = arith.cmpf ogt, %964, %965 : vector<1x64xf32>
    %967 = arith.extui %966 : vector<1x64xi1> to vector<1x64xi32>
    %968 = arith.sitofp %967 : vector<1x64xi32> to vector<1x64xf32>
    %c5_i32_232 = arith.constant 5 : i32
    %969 = vector.broadcast %c5_i32_232 : i32 to vector<8x64xi32>
    %970 = arith.cmpi eq, %7, %969 : vector<8x64xi32>
    %971 = vector.shape_cast %968 : vector<1x64xf32> to vector<1x64xf32>
    %972 = vector.broadcast %971 : vector<1x64xf32> to vector<8x64xf32>
    %973 = arith.select %970, %972, %960 : vector<8x64xi1>, vector<8x64xf32>
    %cst_233 = arith.constant 0.949999988 : f32
    %974 = vector.broadcast %cst_233 : f32 to vector<1x64xf32>
    %975 = arith.mulf %974, %964 : vector<1x64xf32>
    %976 = arith.addf %975, %4 : vector<1x64xf32>
    %977 = arith.subf %976, %968 : vector<1x64xf32>
    %cst_234 = arith.constant 1.000000e+00 : f32
    %978 = vector.broadcast %cst_234 : f32 to vector<1x64xf32>
    %979 = arith.cmpf ogt, %977, %978 : vector<1x64xf32>
    %980 = arith.extui %979 : vector<1x64xi1> to vector<1x64xi32>
    %981 = arith.sitofp %980 : vector<1x64xi32> to vector<1x64xf32>
    %c6_i32_235 = arith.constant 6 : i32
    %982 = vector.broadcast %c6_i32_235 : i32 to vector<8x64xi32>
    %983 = arith.cmpi eq, %7, %982 : vector<8x64xi32>
    %984 = vector.shape_cast %981 : vector<1x64xf32> to vector<1x64xf32>
    %985 = vector.broadcast %984 : vector<1x64xf32> to vector<8x64xf32>
    %986 = arith.select %983, %985, %973 : vector<8x64xi1>, vector<8x64xf32>
    %cst_236 = arith.constant 0.949999988 : f32
    %987 = vector.broadcast %cst_236 : f32 to vector<1x64xf32>
    %988 = arith.mulf %987, %977 : vector<1x64xf32>
    %989 = arith.addf %988, %4 : vector<1x64xf32>
    %990 = arith.subf %989, %981 : vector<1x64xf32>
    %cst_237 = arith.constant 1.000000e+00 : f32
    %991 = vector.broadcast %cst_237 : f32 to vector<1x64xf32>
    %992 = arith.cmpf ogt, %990, %991 : vector<1x64xf32>
    %993 = arith.extui %992 : vector<1x64xi1> to vector<1x64xi32>
    %994 = arith.sitofp %993 : vector<1x64xi32> to vector<1x64xf32>
    %c7_i32_238 = arith.constant 7 : i32
    %995 = vector.broadcast %c7_i32_238 : i32 to vector<8x64xi32>
    %996 = arith.cmpi eq, %7, %995 : vector<8x64xi32>
    %997 = vector.shape_cast %994 : vector<1x64xf32> to vector<1x64xf32>
    %998 = vector.broadcast %997 : vector<1x64xf32> to vector<8x64xf32>
    %999 = arith.select %996, %998, %986 : vector<8x64xi1>, vector<8x64xf32>
    %cst_239 = arith.constant 0.000000e+00 : f32
    %1000 = vector.broadcast %cst_239 : f32 to vector<8x16xf32>
    %1001 = vector.extract_strided_slice %672 {offsets = [0, 0], sizes = [1, 16], strides = [1, 1]} : vector<8x16xf32> to vector<1x16xf32>
    %cst_240 = arith.constant 0.949999988 : f32
    %1002 = vector.broadcast %cst_240 : f32 to vector<1x16xf32>
    %1003 = arith.mulf %1002, %881 : vector<1x16xf32>
    %1004 = arith.addf %1003, %1001 : vector<1x16xf32>
    %1005 = arith.subf %1004, %885 : vector<1x16xf32>
    %cst_241 = arith.constant 1.000000e+00 : f32
    %1006 = vector.broadcast %cst_241 : f32 to vector<1x16xf32>
    %1007 = arith.cmpf ogt, %1005, %1006 : vector<1x16xf32>
    %1008 = arith.extui %1007 : vector<1x16xi1> to vector<1x16xi32>
    %1009 = arith.sitofp %1008 : vector<1x16xi32> to vector<1x16xf32>
    %c0_i32_242 = arith.constant 0 : i32
    %1010 = vector.broadcast %c0_i32_242 : i32 to vector<8x16xi32>
    %1011 = arith.cmpi eq, %8, %1010 : vector<8x16xi32>
    %1012 = vector.shape_cast %1009 : vector<1x16xf32> to vector<1x16xf32>
    %1013 = vector.broadcast %1012 : vector<1x16xf32> to vector<8x16xf32>
    %1014 = arith.select %1011, %1013, %1000 : vector<8x16xi1>, vector<8x16xf32>
    %1015 = vector.extract_strided_slice %672 {offsets = [1, 0], sizes = [1, 16], strides = [1, 1]} : vector<8x16xf32> to vector<1x16xf32>
    %cst_243 = arith.constant 0.949999988 : f32
    %1016 = vector.broadcast %cst_243 : f32 to vector<1x16xf32>
    %1017 = arith.mulf %1016, %1005 : vector<1x16xf32>
    %1018 = arith.addf %1017, %1015 : vector<1x16xf32>
    %1019 = arith.subf %1018, %1009 : vector<1x16xf32>
    %cst_244 = arith.constant 1.000000e+00 : f32
    %1020 = vector.broadcast %cst_244 : f32 to vector<1x16xf32>
    %1021 = arith.cmpf ogt, %1019, %1020 : vector<1x16xf32>
    %1022 = arith.extui %1021 : vector<1x16xi1> to vector<1x16xi32>
    %1023 = arith.sitofp %1022 : vector<1x16xi32> to vector<1x16xf32>
    %c1_i32_245 = arith.constant 1 : i32
    %1024 = vector.broadcast %c1_i32_245 : i32 to vector<8x16xi32>
    %1025 = arith.cmpi eq, %8, %1024 : vector<8x16xi32>
    %1026 = vector.shape_cast %1023 : vector<1x16xf32> to vector<1x16xf32>
    %1027 = vector.broadcast %1026 : vector<1x16xf32> to vector<8x16xf32>
    %1028 = arith.select %1025, %1027, %1014 : vector<8x16xi1>, vector<8x16xf32>
    %1029 = vector.extract_strided_slice %672 {offsets = [2, 0], sizes = [1, 16], strides = [1, 1]} : vector<8x16xf32> to vector<1x16xf32>
    %cst_246 = arith.constant 0.949999988 : f32
    %1030 = vector.broadcast %cst_246 : f32 to vector<1x16xf32>
    %1031 = arith.mulf %1030, %1019 : vector<1x16xf32>
    %1032 = arith.addf %1031, %1029 : vector<1x16xf32>
    %1033 = arith.subf %1032, %1023 : vector<1x16xf32>
    %cst_247 = arith.constant 1.000000e+00 : f32
    %1034 = vector.broadcast %cst_247 : f32 to vector<1x16xf32>
    %1035 = arith.cmpf ogt, %1033, %1034 : vector<1x16xf32>
    %1036 = arith.extui %1035 : vector<1x16xi1> to vector<1x16xi32>
    %1037 = arith.sitofp %1036 : vector<1x16xi32> to vector<1x16xf32>
    %c2_i32_248 = arith.constant 2 : i32
    %1038 = vector.broadcast %c2_i32_248 : i32 to vector<8x16xi32>
    %1039 = arith.cmpi eq, %8, %1038 : vector<8x16xi32>
    %1040 = vector.shape_cast %1037 : vector<1x16xf32> to vector<1x16xf32>
    %1041 = vector.broadcast %1040 : vector<1x16xf32> to vector<8x16xf32>
    %1042 = arith.select %1039, %1041, %1028 : vector<8x16xi1>, vector<8x16xf32>
    %1043 = vector.extract_strided_slice %672 {offsets = [3, 0], sizes = [1, 16], strides = [1, 1]} : vector<8x16xf32> to vector<1x16xf32>
    %cst_249 = arith.constant 0.949999988 : f32
    %1044 = vector.broadcast %cst_249 : f32 to vector<1x16xf32>
    %1045 = arith.mulf %1044, %1033 : vector<1x16xf32>
    %1046 = arith.addf %1045, %1043 : vector<1x16xf32>
    %1047 = arith.subf %1046, %1037 : vector<1x16xf32>
    %cst_250 = arith.constant 1.000000e+00 : f32
    %1048 = vector.broadcast %cst_250 : f32 to vector<1x16xf32>
    %1049 = arith.cmpf ogt, %1047, %1048 : vector<1x16xf32>
    %1050 = arith.extui %1049 : vector<1x16xi1> to vector<1x16xi32>
    %1051 = arith.sitofp %1050 : vector<1x16xi32> to vector<1x16xf32>
    %c3_i32_251 = arith.constant 3 : i32
    %1052 = vector.broadcast %c3_i32_251 : i32 to vector<8x16xi32>
    %1053 = arith.cmpi eq, %8, %1052 : vector<8x16xi32>
    %1054 = vector.shape_cast %1051 : vector<1x16xf32> to vector<1x16xf32>
    %1055 = vector.broadcast %1054 : vector<1x16xf32> to vector<8x16xf32>
    %1056 = arith.select %1053, %1055, %1042 : vector<8x16xi1>, vector<8x16xf32>
    %1057 = vector.extract_strided_slice %672 {offsets = [4, 0], sizes = [1, 16], strides = [1, 1]} : vector<8x16xf32> to vector<1x16xf32>
    %cst_252 = arith.constant 0.949999988 : f32
    %1058 = vector.broadcast %cst_252 : f32 to vector<1x16xf32>
    %1059 = arith.mulf %1058, %1047 : vector<1x16xf32>
    %1060 = arith.addf %1059, %1057 : vector<1x16xf32>
    %1061 = arith.subf %1060, %1051 : vector<1x16xf32>
    %cst_253 = arith.constant 1.000000e+00 : f32
    %1062 = vector.broadcast %cst_253 : f32 to vector<1x16xf32>
    %1063 = arith.cmpf ogt, %1061, %1062 : vector<1x16xf32>
    %1064 = arith.extui %1063 : vector<1x16xi1> to vector<1x16xi32>
    %1065 = arith.sitofp %1064 : vector<1x16xi32> to vector<1x16xf32>
    %c4_i32_254 = arith.constant 4 : i32
    %1066 = vector.broadcast %c4_i32_254 : i32 to vector<8x16xi32>
    %1067 = arith.cmpi eq, %8, %1066 : vector<8x16xi32>
    %1068 = vector.shape_cast %1065 : vector<1x16xf32> to vector<1x16xf32>
    %1069 = vector.broadcast %1068 : vector<1x16xf32> to vector<8x16xf32>
    %1070 = arith.select %1067, %1069, %1056 : vector<8x16xi1>, vector<8x16xf32>
    %1071 = vector.extract_strided_slice %672 {offsets = [5, 0], sizes = [1, 16], strides = [1, 1]} : vector<8x16xf32> to vector<1x16xf32>
    %cst_255 = arith.constant 0.949999988 : f32
    %1072 = vector.broadcast %cst_255 : f32 to vector<1x16xf32>
    %1073 = arith.mulf %1072, %1061 : vector<1x16xf32>
    %1074 = arith.addf %1073, %1071 : vector<1x16xf32>
    %1075 = arith.subf %1074, %1065 : vector<1x16xf32>
    %cst_256 = arith.constant 1.000000e+00 : f32
    %1076 = vector.broadcast %cst_256 : f32 to vector<1x16xf32>
    %1077 = arith.cmpf ogt, %1075, %1076 : vector<1x16xf32>
    %1078 = arith.extui %1077 : vector<1x16xi1> to vector<1x16xi32>
    %1079 = arith.sitofp %1078 : vector<1x16xi32> to vector<1x16xf32>
    %c5_i32_257 = arith.constant 5 : i32
    %1080 = vector.broadcast %c5_i32_257 : i32 to vector<8x16xi32>
    %1081 = arith.cmpi eq, %8, %1080 : vector<8x16xi32>
    %1082 = vector.shape_cast %1079 : vector<1x16xf32> to vector<1x16xf32>
    %1083 = vector.broadcast %1082 : vector<1x16xf32> to vector<8x16xf32>
    %1084 = arith.select %1081, %1083, %1070 : vector<8x16xi1>, vector<8x16xf32>
    %1085 = vector.extract_strided_slice %672 {offsets = [6, 0], sizes = [1, 16], strides = [1, 1]} : vector<8x16xf32> to vector<1x16xf32>
    %cst_258 = arith.constant 0.949999988 : f32
    %1086 = vector.broadcast %cst_258 : f32 to vector<1x16xf32>
    %1087 = arith.mulf %1086, %1075 : vector<1x16xf32>
    %1088 = arith.addf %1087, %1085 : vector<1x16xf32>
    %1089 = arith.subf %1088, %1079 : vector<1x16xf32>
    %cst_259 = arith.constant 1.000000e+00 : f32
    %1090 = vector.broadcast %cst_259 : f32 to vector<1x16xf32>
    %1091 = arith.cmpf ogt, %1089, %1090 : vector<1x16xf32>
    %1092 = arith.extui %1091 : vector<1x16xi1> to vector<1x16xi32>
    %1093 = arith.sitofp %1092 : vector<1x16xi32> to vector<1x16xf32>
    %c6_i32_260 = arith.constant 6 : i32
    %1094 = vector.broadcast %c6_i32_260 : i32 to vector<8x16xi32>
    %1095 = arith.cmpi eq, %8, %1094 : vector<8x16xi32>
    %1096 = vector.shape_cast %1093 : vector<1x16xf32> to vector<1x16xf32>
    %1097 = vector.broadcast %1096 : vector<1x16xf32> to vector<8x16xf32>
    %1098 = arith.select %1095, %1097, %1084 : vector<8x16xi1>, vector<8x16xf32>
    %1099 = vector.extract_strided_slice %672 {offsets = [7, 0], sizes = [1, 16], strides = [1, 1]} : vector<8x16xf32> to vector<1x16xf32>
    %cst_261 = arith.constant 0.949999988 : f32
    %1100 = vector.broadcast %cst_261 : f32 to vector<1x16xf32>
    %1101 = arith.mulf %1100, %1089 : vector<1x16xf32>
    %1102 = arith.addf %1101, %1099 : vector<1x16xf32>
    %1103 = arith.subf %1102, %1093 : vector<1x16xf32>
    %cst_262 = arith.constant 1.000000e+00 : f32
    %1104 = vector.broadcast %cst_262 : f32 to vector<1x16xf32>
    %1105 = arith.cmpf ogt, %1103, %1104 : vector<1x16xf32>
    %1106 = arith.extui %1105 : vector<1x16xi1> to vector<1x16xi32>
    %1107 = arith.sitofp %1106 : vector<1x16xi32> to vector<1x16xf32>
    %c7_i32_263 = arith.constant 7 : i32
    %1108 = vector.broadcast %c7_i32_263 : i32 to vector<8x16xi32>
    %1109 = arith.cmpi eq, %8, %1108 : vector<8x16xi32>
    %1110 = vector.shape_cast %1107 : vector<1x16xf32> to vector<1x16xf32>
    %1111 = vector.broadcast %1110 : vector<1x16xf32> to vector<8x16xf32>
    %1112 = arith.select %1109, %1111, %1098 : vector<8x16xi1>, vector<8x16xf32>
    %c24 = arith.constant 24 : index
    %c0_264 = arith.constant 0 : index
    %1113 = vector.load %arg6[%c24, %c0_264] : memref<100x16xf32, #tpu.memory_space<vmem>>, vector<8x16xf32>
    tpu.vector_store %arg6[%c24, %c0_264], %1112 {strides = array<i32>} : memref<100x16xf32, #tpu.memory_space<vmem>>, vector<8x16xf32>,
    %cst_265 = arith.constant dense<0.000000e+00> : vector<8x16xf32>
    %1114 = tpu.matmul %999, %5, %cst_265 {dimension_numbers = #tpu.dot_dimension_numbers<[1], [0], [0], [1], [0, 0, 1, 1], [], []>} : vector<8x64xf32>, vector<64x16xf32>, vector<8x16xf32> -> vector<8x16xf32>
    %1115 = vector.broadcast %6 : vector<1x16xf32> to vector<8x16xf32>
    %1116 = arith.addf %1114, %1115 : vector<8x16xf32>
    %cst_266 = arith.constant 0.000000e+00 : f32
    %1117 = vector.broadcast %cst_266 : f32 to vector<8x64xf32>
    %cst_267 = arith.constant 0.949999988 : f32
    %1118 = vector.broadcast %cst_267 : f32 to vector<1x64xf32>
    %1119 = arith.mulf %1118, %990 : vector<1x64xf32>
    %1120 = arith.addf %1119, %4 : vector<1x64xf32>
    %1121 = arith.subf %1120, %994 : vector<1x64xf32>
    %cst_268 = arith.constant 1.000000e+00 : f32
    %1122 = vector.broadcast %cst_268 : f32 to vector<1x64xf32>
    %1123 = arith.cmpf ogt, %1121, %1122 : vector<1x64xf32>
    %1124 = arith.extui %1123 : vector<1x64xi1> to vector<1x64xi32>
    %1125 = arith.sitofp %1124 : vector<1x64xi32> to vector<1x64xf32>
    %c0_i32_269 = arith.constant 0 : i32
    %1126 = vector.broadcast %c0_i32_269 : i32 to vector<8x64xi32>
    %1127 = arith.cmpi eq, %7, %1126 : vector<8x64xi32>
    %1128 = vector.shape_cast %1125 : vector<1x64xf32> to vector<1x64xf32>
    %1129 = vector.broadcast %1128 : vector<1x64xf32> to vector<8x64xf32>
    %1130 = arith.select %1127, %1129, %1117 : vector<8x64xi1>, vector<8x64xf32>
    %cst_270 = arith.constant 0.949999988 : f32
    %1131 = vector.broadcast %cst_270 : f32 to vector<1x64xf32>
    %1132 = arith.mulf %1131, %1121 : vector<1x64xf32>
    %1133 = arith.addf %1132, %4 : vector<1x64xf32>
    %1134 = arith.subf %1133, %1125 : vector<1x64xf32>
    %cst_271 = arith.constant 1.000000e+00 : f32
    %1135 = vector.broadcast %cst_271 : f32 to vector<1x64xf32>
    %1136 = arith.cmpf ogt, %1134, %1135 : vector<1x64xf32>
    %1137 = arith.extui %1136 : vector<1x64xi1> to vector<1x64xi32>
    %1138 = arith.sitofp %1137 : vector<1x64xi32> to vector<1x64xf32>
    %c1_i32_272 = arith.constant 1 : i32
    %1139 = vector.broadcast %c1_i32_272 : i32 to vector<8x64xi32>
    %1140 = arith.cmpi eq, %7, %1139 : vector<8x64xi32>
    %1141 = vector.shape_cast %1138 : vector<1x64xf32> to vector<1x64xf32>
    %1142 = vector.broadcast %1141 : vector<1x64xf32> to vector<8x64xf32>
    %1143 = arith.select %1140, %1142, %1130 : vector<8x64xi1>, vector<8x64xf32>
    %cst_273 = arith.constant 0.949999988 : f32
    %1144 = vector.broadcast %cst_273 : f32 to vector<1x64xf32>
    %1145 = arith.mulf %1144, %1134 : vector<1x64xf32>
    %1146 = arith.addf %1145, %4 : vector<1x64xf32>
    %1147 = arith.subf %1146, %1138 : vector<1x64xf32>
    %cst_274 = arith.constant 1.000000e+00 : f32
    %1148 = vector.broadcast %cst_274 : f32 to vector<1x64xf32>
    %1149 = arith.cmpf ogt, %1147, %1148 : vector<1x64xf32>
    %1150 = arith.extui %1149 : vector<1x64xi1> to vector<1x64xi32>
    %1151 = arith.sitofp %1150 : vector<1x64xi32> to vector<1x64xf32>
    %c2_i32_275 = arith.constant 2 : i32
    %1152 = vector.broadcast %c2_i32_275 : i32 to vector<8x64xi32>
    %1153 = arith.cmpi eq, %7, %1152 : vector<8x64xi32>
    %1154 = vector.shape_cast %1151 : vector<1x64xf32> to vector<1x64xf32>
    %1155 = vector.broadcast %1154 : vector<1x64xf32> to vector<8x64xf32>
    %1156 = arith.select %1153, %1155, %1143 : vector<8x64xi1>, vector<8x64xf32>
    %cst_276 = arith.constant 0.949999988 : f32
    %1157 = vector.broadcast %cst_276 : f32 to vector<1x64xf32>
    %1158 = arith.mulf %1157, %1147 : vector<1x64xf32>
    %1159 = arith.addf %1158, %4 : vector<1x64xf32>
    %1160 = arith.subf %1159, %1151 : vector<1x64xf32>
    %cst_277 = arith.constant 1.000000e+00 : f32
    %1161 = vector.broadcast %cst_277 : f32 to vector<1x64xf32>
    %1162 = arith.cmpf ogt, %1160, %1161 : vector<1x64xf32>
    %1163 = arith.extui %1162 : vector<1x64xi1> to vector<1x64xi32>
    %1164 = arith.sitofp %1163 : vector<1x64xi32> to vector<1x64xf32>
    %c3_i32_278 = arith.constant 3 : i32
    %1165 = vector.broadcast %c3_i32_278 : i32 to vector<8x64xi32>
    %1166 = arith.cmpi eq, %7, %1165 : vector<8x64xi32>
    %1167 = vector.shape_cast %1164 : vector<1x64xf32> to vector<1x64xf32>
    %1168 = vector.broadcast %1167 : vector<1x64xf32> to vector<8x64xf32>
    %1169 = arith.select %1166, %1168, %1156 : vector<8x64xi1>, vector<8x64xf32>
    %cst_279 = arith.constant 0.949999988 : f32
    %1170 = vector.broadcast %cst_279 : f32 to vector<1x64xf32>
    %1171 = arith.mulf %1170, %1160 : vector<1x64xf32>
    %1172 = arith.addf %1171, %4 : vector<1x64xf32>
    %1173 = arith.subf %1172, %1164 : vector<1x64xf32>
    %cst_280 = arith.constant 1.000000e+00 : f32
    %1174 = vector.broadcast %cst_280 : f32 to vector<1x64xf32>
    %1175 = arith.cmpf ogt, %1173, %1174 : vector<1x64xf32>
    %1176 = arith.extui %1175 : vector<1x64xi1> to vector<1x64xi32>
    %1177 = arith.sitofp %1176 : vector<1x64xi32> to vector<1x64xf32>
    %c4_i32_281 = arith.constant 4 : i32
    %1178 = vector.broadcast %c4_i32_281 : i32 to vector<8x64xi32>
    %1179 = arith.cmpi eq, %7, %1178 : vector<8x64xi32>
    %1180 = vector.shape_cast %1177 : vector<1x64xf32> to vector<1x64xf32>
    %1181 = vector.broadcast %1180 : vector<1x64xf32> to vector<8x64xf32>
    %1182 = arith.select %1179, %1181, %1169 : vector<8x64xi1>, vector<8x64xf32>
    %cst_282 = arith.constant 0.949999988 : f32
    %1183 = vector.broadcast %cst_282 : f32 to vector<1x64xf32>
    %1184 = arith.mulf %1183, %1173 : vector<1x64xf32>
    %1185 = arith.addf %1184, %4 : vector<1x64xf32>
    %1186 = arith.subf %1185, %1177 : vector<1x64xf32>
    %cst_283 = arith.constant 1.000000e+00 : f32
    %1187 = vector.broadcast %cst_283 : f32 to vector<1x64xf32>
    %1188 = arith.cmpf ogt, %1186, %1187 : vector<1x64xf32>
    %1189 = arith.extui %1188 : vector<1x64xi1> to vector<1x64xi32>
    %1190 = arith.sitofp %1189 : vector<1x64xi32> to vector<1x64xf32>
    %c5_i32_284 = arith.constant 5 : i32
    %1191 = vector.broadcast %c5_i32_284 : i32 to vector<8x64xi32>
    %1192 = arith.cmpi eq, %7, %1191 : vector<8x64xi32>
    %1193 = vector.shape_cast %1190 : vector<1x64xf32> to vector<1x64xf32>
    %1194 = vector.broadcast %1193 : vector<1x64xf32> to vector<8x64xf32>
    %1195 = arith.select %1192, %1194, %1182 : vector<8x64xi1>, vector<8x64xf32>
    %cst_285 = arith.constant 0.949999988 : f32
    %1196 = vector.broadcast %cst_285 : f32 to vector<1x64xf32>
    %1197 = arith.mulf %1196, %1186 : vector<1x64xf32>
    %1198 = arith.addf %1197, %4 : vector<1x64xf32>
    %1199 = arith.subf %1198, %1190 : vector<1x64xf32>
    %cst_286 = arith.constant 1.000000e+00 : f32
    %1200 = vector.broadcast %cst_286 : f32 to vector<1x64xf32>
    %1201 = arith.cmpf ogt, %1199, %1200 : vector<1x64xf32>
    %1202 = arith.extui %1201 : vector<1x64xi1> to vector<1x64xi32>
    %1203 = arith.sitofp %1202 : vector<1x64xi32> to vector<1x64xf32>
    %c6_i32_287 = arith.constant 6 : i32
    %1204 = vector.broadcast %c6_i32_287 : i32 to vector<8x64xi32>
    %1205 = arith.cmpi eq, %7, %1204 : vector<8x64xi32>
    %1206 = vector.shape_cast %1203 : vector<1x64xf32> to vector<1x64xf32>
    %1207 = vector.broadcast %1206 : vector<1x64xf32> to vector<8x64xf32>
    %1208 = arith.select %1205, %1207, %1195 : vector<8x64xi1>, vector<8x64xf32>
    %cst_288 = arith.constant 0.949999988 : f32
    %1209 = vector.broadcast %cst_288 : f32 to vector<1x64xf32>
    %1210 = arith.mulf %1209, %1199 : vector<1x64xf32>
    %1211 = arith.addf %1210, %4 : vector<1x64xf32>
    %1212 = arith.subf %1211, %1203 : vector<1x64xf32>
    %cst_289 = arith.constant 1.000000e+00 : f32
    %1213 = vector.broadcast %cst_289 : f32 to vector<1x64xf32>
    %1214 = arith.cmpf ogt, %1212, %1213 : vector<1x64xf32>
    %1215 = arith.extui %1214 : vector<1x64xi1> to vector<1x64xi32>
    %1216 = arith.sitofp %1215 : vector<1x64xi32> to vector<1x64xf32>
    %c7_i32_290 = arith.constant 7 : i32
    %1217 = vector.broadcast %c7_i32_290 : i32 to vector<8x64xi32>
    %1218 = arith.cmpi eq, %7, %1217 : vector<8x64xi32>
    %1219 = vector.shape_cast %1216 : vector<1x64xf32> to vector<1x64xf32>
    %1220 = vector.broadcast %1219 : vector<1x64xf32> to vector<8x64xf32>
    %1221 = arith.select %1218, %1220, %1208 : vector<8x64xi1>, vector<8x64xf32>
    %cst_291 = arith.constant 0.000000e+00 : f32
    %1222 = vector.broadcast %cst_291 : f32 to vector<8x16xf32>
    %1223 = vector.extract_strided_slice %894 {offsets = [0, 0], sizes = [1, 16], strides = [1, 1]} : vector<8x16xf32> to vector<1x16xf32>
    %cst_292 = arith.constant 0.949999988 : f32
    %1224 = vector.broadcast %cst_292 : f32 to vector<1x16xf32>
    %1225 = arith.mulf %1224, %1103 : vector<1x16xf32>
    %1226 = arith.addf %1225, %1223 : vector<1x16xf32>
    %1227 = arith.subf %1226, %1107 : vector<1x16xf32>
    %cst_293 = arith.constant 1.000000e+00 : f32
    %1228 = vector.broadcast %cst_293 : f32 to vector<1x16xf32>
    %1229 = arith.cmpf ogt, %1227, %1228 : vector<1x16xf32>
    %1230 = arith.extui %1229 : vector<1x16xi1> to vector<1x16xi32>
    %1231 = arith.sitofp %1230 : vector<1x16xi32> to vector<1x16xf32>
    %c0_i32_294 = arith.constant 0 : i32
    %1232 = vector.broadcast %c0_i32_294 : i32 to vector<8x16xi32>
    %1233 = arith.cmpi eq, %8, %1232 : vector<8x16xi32>
    %1234 = vector.shape_cast %1231 : vector<1x16xf32> to vector<1x16xf32>
    %1235 = vector.broadcast %1234 : vector<1x16xf32> to vector<8x16xf32>
    %1236 = arith.select %1233, %1235, %1222 : vector<8x16xi1>, vector<8x16xf32>
    %1237 = vector.extract_strided_slice %894 {offsets = [1, 0], sizes = [1, 16], strides = [1, 1]} : vector<8x16xf32> to vector<1x16xf32>
    %cst_295 = arith.constant 0.949999988 : f32
    %1238 = vector.broadcast %cst_295 : f32 to vector<1x16xf32>
    %1239 = arith.mulf %1238, %1227 : vector<1x16xf32>
    %1240 = arith.addf %1239, %1237 : vector<1x16xf32>
    %1241 = arith.subf %1240, %1231 : vector<1x16xf32>
    %cst_296 = arith.constant 1.000000e+00 : f32
    %1242 = vector.broadcast %cst_296 : f32 to vector<1x16xf32>
    %1243 = arith.cmpf ogt, %1241, %1242 : vector<1x16xf32>
    %1244 = arith.extui %1243 : vector<1x16xi1> to vector<1x16xi32>
    %1245 = arith.sitofp %1244 : vector<1x16xi32> to vector<1x16xf32>
    %c1_i32_297 = arith.constant 1 : i32
    %1246 = vector.broadcast %c1_i32_297 : i32 to vector<8x16xi32>
    %1247 = arith.cmpi eq, %8, %1246 : vector<8x16xi32>
    %1248 = vector.shape_cast %1245 : vector<1x16xf32> to vector<1x16xf32>
    %1249 = vector.broadcast %1248 : vector<1x16xf32> to vector<8x16xf32>
    %1250 = arith.select %1247, %1249, %1236 : vector<8x16xi1>, vector<8x16xf32>
    %1251 = vector.extract_strided_slice %894 {offsets = [2, 0], sizes = [1, 16], strides = [1, 1]} : vector<8x16xf32> to vector<1x16xf32>
    %cst_298 = arith.constant 0.949999988 : f32
    %1252 = vector.broadcast %cst_298 : f32 to vector<1x16xf32>
    %1253 = arith.mulf %1252, %1241 : vector<1x16xf32>
    %1254 = arith.addf %1253, %1251 : vector<1x16xf32>
    %1255 = arith.subf %1254, %1245 : vector<1x16xf32>
    %cst_299 = arith.constant 1.000000e+00 : f32
    %1256 = vector.broadcast %cst_299 : f32 to vector<1x16xf32>
    %1257 = arith.cmpf ogt, %1255, %1256 : vector<1x16xf32>
    %1258 = arith.extui %1257 : vector<1x16xi1> to vector<1x16xi32>
    %1259 = arith.sitofp %1258 : vector<1x16xi32> to vector<1x16xf32>
    %c2_i32_300 = arith.constant 2 : i32
    %1260 = vector.broadcast %c2_i32_300 : i32 to vector<8x16xi32>
    %1261 = arith.cmpi eq, %8, %1260 : vector<8x16xi32>
    %1262 = vector.shape_cast %1259 : vector<1x16xf32> to vector<1x16xf32>
    %1263 = vector.broadcast %1262 : vector<1x16xf32> to vector<8x16xf32>
    %1264 = arith.select %1261, %1263, %1250 : vector<8x16xi1>, vector<8x16xf32>
    %1265 = vector.extract_strided_slice %894 {offsets = [3, 0], sizes = [1, 16], strides = [1, 1]} : vector<8x16xf32> to vector<1x16xf32>
    %cst_301 = arith.constant 0.949999988 : f32
    %1266 = vector.broadcast %cst_301 : f32 to vector<1x16xf32>
    %1267 = arith.mulf %1266, %1255 : vector<1x16xf32>
    %1268 = arith.addf %1267, %1265 : vector<1x16xf32>
    %1269 = arith.subf %1268, %1259 : vector<1x16xf32>
    %cst_302 = arith.constant 1.000000e+00 : f32
    %1270 = vector.broadcast %cst_302 : f32 to vector<1x16xf32>
    %1271 = arith.cmpf ogt, %1269, %1270 : vector<1x16xf32>
    %1272 = arith.extui %1271 : vector<1x16xi1> to vector<1x16xi32>
    %1273 = arith.sitofp %1272 : vector<1x16xi32> to vector<1x16xf32>
    %c3_i32_303 = arith.constant 3 : i32
    %1274 = vector.broadcast %c3_i32_303 : i32 to vector<8x16xi32>
    %1275 = arith.cmpi eq, %8, %1274 : vector<8x16xi32>
    %1276 = vector.shape_cast %1273 : vector<1x16xf32> to vector<1x16xf32>
    %1277 = vector.broadcast %1276 : vector<1x16xf32> to vector<8x16xf32>
    %1278 = arith.select %1275, %1277, %1264 : vector<8x16xi1>, vector<8x16xf32>
    %1279 = vector.extract_strided_slice %894 {offsets = [4, 0], sizes = [1, 16], strides = [1, 1]} : vector<8x16xf32> to vector<1x16xf32>
    %cst_304 = arith.constant 0.949999988 : f32
    %1280 = vector.broadcast %cst_304 : f32 to vector<1x16xf32>
    %1281 = arith.mulf %1280, %1269 : vector<1x16xf32>
    %1282 = arith.addf %1281, %1279 : vector<1x16xf32>
    %1283 = arith.subf %1282, %1273 : vector<1x16xf32>
    %cst_305 = arith.constant 1.000000e+00 : f32
    %1284 = vector.broadcast %cst_305 : f32 to vector<1x16xf32>
    %1285 = arith.cmpf ogt, %1283, %1284 : vector<1x16xf32>
    %1286 = arith.extui %1285 : vector<1x16xi1> to vector<1x16xi32>
    %1287 = arith.sitofp %1286 : vector<1x16xi32> to vector<1x16xf32>
    %c4_i32_306 = arith.constant 4 : i32
    %1288 = vector.broadcast %c4_i32_306 : i32 to vector<8x16xi32>
    %1289 = arith.cmpi eq, %8, %1288 : vector<8x16xi32>
    %1290 = vector.shape_cast %1287 : vector<1x16xf32> to vector<1x16xf32>
    %1291 = vector.broadcast %1290 : vector<1x16xf32> to vector<8x16xf32>
    %1292 = arith.select %1289, %1291, %1278 : vector<8x16xi1>, vector<8x16xf32>
    %1293 = vector.extract_strided_slice %894 {offsets = [5, 0], sizes = [1, 16], strides = [1, 1]} : vector<8x16xf32> to vector<1x16xf32>
    %cst_307 = arith.constant 0.949999988 : f32
    %1294 = vector.broadcast %cst_307 : f32 to vector<1x16xf32>
    %1295 = arith.mulf %1294, %1283 : vector<1x16xf32>
    %1296 = arith.addf %1295, %1293 : vector<1x16xf32>
    %1297 = arith.subf %1296, %1287 : vector<1x16xf32>
    %cst_308 = arith.constant 1.000000e+00 : f32
    %1298 = vector.broadcast %cst_308 : f32 to vector<1x16xf32>
    %1299 = arith.cmpf ogt, %1297, %1298 : vector<1x16xf32>
    %1300 = arith.extui %1299 : vector<1x16xi1> to vector<1x16xi32>
    %1301 = arith.sitofp %1300 : vector<1x16xi32> to vector<1x16xf32>
    %c5_i32_309 = arith.constant 5 : i32
    %1302 = vector.broadcast %c5_i32_309 : i32 to vector<8x16xi32>
    %1303 = arith.cmpi eq, %8, %1302 : vector<8x16xi32>
    %1304 = vector.shape_cast %1301 : vector<1x16xf32> to vector<1x16xf32>
    %1305 = vector.broadcast %1304 : vector<1x16xf32> to vector<8x16xf32>
    %1306 = arith.select %1303, %1305, %1292 : vector<8x16xi1>, vector<8x16xf32>
    %1307 = vector.extract_strided_slice %894 {offsets = [6, 0], sizes = [1, 16], strides = [1, 1]} : vector<8x16xf32> to vector<1x16xf32>
    %cst_310 = arith.constant 0.949999988 : f32
    %1308 = vector.broadcast %cst_310 : f32 to vector<1x16xf32>
    %1309 = arith.mulf %1308, %1297 : vector<1x16xf32>
    %1310 = arith.addf %1309, %1307 : vector<1x16xf32>
    %1311 = arith.subf %1310, %1301 : vector<1x16xf32>
    %cst_311 = arith.constant 1.000000e+00 : f32
    %1312 = vector.broadcast %cst_311 : f32 to vector<1x16xf32>
    %1313 = arith.cmpf ogt, %1311, %1312 : vector<1x16xf32>
    %1314 = arith.extui %1313 : vector<1x16xi1> to vector<1x16xi32>
    %1315 = arith.sitofp %1314 : vector<1x16xi32> to vector<1x16xf32>
    %c6_i32_312 = arith.constant 6 : i32
    %1316 = vector.broadcast %c6_i32_312 : i32 to vector<8x16xi32>
    %1317 = arith.cmpi eq, %8, %1316 : vector<8x16xi32>
    %1318 = vector.shape_cast %1315 : vector<1x16xf32> to vector<1x16xf32>
    %1319 = vector.broadcast %1318 : vector<1x16xf32> to vector<8x16xf32>
    %1320 = arith.select %1317, %1319, %1306 : vector<8x16xi1>, vector<8x16xf32>
    %1321 = vector.extract_strided_slice %894 {offsets = [7, 0], sizes = [1, 16], strides = [1, 1]} : vector<8x16xf32> to vector<1x16xf32>
    %cst_313 = arith.constant 0.949999988 : f32
    %1322 = vector.broadcast %cst_313 : f32 to vector<1x16xf32>
    %1323 = arith.mulf %1322, %1311 : vector<1x16xf32>
    %1324 = arith.addf %1323, %1321 : vector<1x16xf32>
    %1325 = arith.subf %1324, %1315 : vector<1x16xf32>
    %cst_314 = arith.constant 1.000000e+00 : f32
    %1326 = vector.broadcast %cst_314 : f32 to vector<1x16xf32>
    %1327 = arith.cmpf ogt, %1325, %1326 : vector<1x16xf32>
    %1328 = arith.extui %1327 : vector<1x16xi1> to vector<1x16xi32>
    %1329 = arith.sitofp %1328 : vector<1x16xi32> to vector<1x16xf32>
    %c7_i32_315 = arith.constant 7 : i32
    %1330 = vector.broadcast %c7_i32_315 : i32 to vector<8x16xi32>
    %1331 = arith.cmpi eq, %8, %1330 : vector<8x16xi32>
    %1332 = vector.shape_cast %1329 : vector<1x16xf32> to vector<1x16xf32>
    %1333 = vector.broadcast %1332 : vector<1x16xf32> to vector<8x16xf32>
    %1334 = arith.select %1331, %1333, %1320 : vector<8x16xi1>, vector<8x16xf32>
    %c32 = arith.constant 32 : index
    %c0_316 = arith.constant 0 : index
    %1335 = vector.load %arg6[%c32, %c0_316] : memref<100x16xf32, #tpu.memory_space<vmem>>, vector<8x16xf32>
    tpu.vector_store %arg6[%c32, %c0_316], %1334 {strides = array<i32>} : memref<100x16xf32, #tpu.memory_space<vmem>>, vector<8x16xf32>,
    %cst_317 = arith.constant dense<0.000000e+00> : vector<8x16xf32>
    %1336 = tpu.matmul %1221, %5, %cst_317 {dimension_numbers = #tpu.dot_dimension_numbers<[1], [0], [0], [1], [0, 0, 1, 1], [], []>} : vector<8x64xf32>, vector<64x16xf32>, vector<8x16xf32> -> vector<8x16xf32>
    %1337 = vector.broadcast %6 : vector<1x16xf32> to vector<8x16xf32>
    %1338 = arith.addf %1336, %1337 : vector<8x16xf32>
    %cst_318 = arith.constant 0.000000e+00 : f32
    %1339 = vector.broadcast %cst_318 : f32 to vector<8x64xf32>
    %cst_319 = arith.constant 0.949999988 : f32
    %1340 = vector.broadcast %cst_319 : f32 to vector<1x64xf32>
    %1341 = arith.mulf %1340, %1212 : vector<1x64xf32>
    %1342 = arith.addf %1341, %4 : vector<1x64xf32>
    %1343 = arith.subf %1342, %1216 : vector<1x64xf32>
    %cst_320 = arith.constant 1.000000e+00 : f32
    %1344 = vector.broadcast %cst_320 : f32 to vector<1x64xf32>
    %1345 = arith.cmpf ogt, %1343, %1344 : vector<1x64xf32>
    %1346 = arith.extui %1345 : vector<1x64xi1> to vector<1x64xi32>
    %1347 = arith.sitofp %1346 : vector<1x64xi32> to vector<1x64xf32>
    %c0_i32_321 = arith.constant 0 : i32
    %1348 = vector.broadcast %c0_i32_321 : i32 to vector<8x64xi32>
    %1349 = arith.cmpi eq, %7, %1348 : vector<8x64xi32>
    %1350 = vector.shape_cast %1347 : vector<1x64xf32> to vector<1x64xf32>
    %1351 = vector.broadcast %1350 : vector<1x64xf32> to vector<8x64xf32>
    %1352 = arith.select %1349, %1351, %1339 : vector<8x64xi1>, vector<8x64xf32>
    %cst_322 = arith.constant 0.949999988 : f32
    %1353 = vector.broadcast %cst_322 : f32 to vector<1x64xf32>
    %1354 = arith.mulf %1353, %1343 : vector<1x64xf32>
    %1355 = arith.addf %1354, %4 : vector<1x64xf32>
    %1356 = arith.subf %1355, %1347 : vector<1x64xf32>
    %cst_323 = arith.constant 1.000000e+00 : f32
    %1357 = vector.broadcast %cst_323 : f32 to vector<1x64xf32>
    %1358 = arith.cmpf ogt, %1356, %1357 : vector<1x64xf32>
    %1359 = arith.extui %1358 : vector<1x64xi1> to vector<1x64xi32>
    %1360 = arith.sitofp %1359 : vector<1x64xi32> to vector<1x64xf32>
    %c1_i32_324 = arith.constant 1 : i32
    %1361 = vector.broadcast %c1_i32_324 : i32 to vector<8x64xi32>
    %1362 = arith.cmpi eq, %7, %1361 : vector<8x64xi32>
    %1363 = vector.shape_cast %1360 : vector<1x64xf32> to vector<1x64xf32>
    %1364 = vector.broadcast %1363 : vector<1x64xf32> to vector<8x64xf32>
    %1365 = arith.select %1362, %1364, %1352 : vector<8x64xi1>, vector<8x64xf32>
    %cst_325 = arith.constant 0.949999988 : f32
    %1366 = vector.broadcast %cst_325 : f32 to vector<1x64xf32>
    %1367 = arith.mulf %1366, %1356 : vector<1x64xf32>
    %1368 = arith.addf %1367, %4 : vector<1x64xf32>
    %1369 = arith.subf %1368, %1360 : vector<1x64xf32>
    %cst_326 = arith.constant 1.000000e+00 : f32
    %1370 = vector.broadcast %cst_326 : f32 to vector<1x64xf32>
    %1371 = arith.cmpf ogt, %1369, %1370 : vector<1x64xf32>
    %1372 = arith.extui %1371 : vector<1x64xi1> to vector<1x64xi32>
    %1373 = arith.sitofp %1372 : vector<1x64xi32> to vector<1x64xf32>
    %c2_i32_327 = arith.constant 2 : i32
    %1374 = vector.broadcast %c2_i32_327 : i32 to vector<8x64xi32>
    %1375 = arith.cmpi eq, %7, %1374 : vector<8x64xi32>
    %1376 = vector.shape_cast %1373 : vector<1x64xf32> to vector<1x64xf32>
    %1377 = vector.broadcast %1376 : vector<1x64xf32> to vector<8x64xf32>
    %1378 = arith.select %1375, %1377, %1365 : vector<8x64xi1>, vector<8x64xf32>
    %cst_328 = arith.constant 0.949999988 : f32
    %1379 = vector.broadcast %cst_328 : f32 to vector<1x64xf32>
    %1380 = arith.mulf %1379, %1369 : vector<1x64xf32>
    %1381 = arith.addf %1380, %4 : vector<1x64xf32>
    %1382 = arith.subf %1381, %1373 : vector<1x64xf32>
    %cst_329 = arith.constant 1.000000e+00 : f32
    %1383 = vector.broadcast %cst_329 : f32 to vector<1x64xf32>
    %1384 = arith.cmpf ogt, %1382, %1383 : vector<1x64xf32>
    %1385 = arith.extui %1384 : vector<1x64xi1> to vector<1x64xi32>
    %1386 = arith.sitofp %1385 : vector<1x64xi32> to vector<1x64xf32>
    %c3_i32_330 = arith.constant 3 : i32
    %1387 = vector.broadcast %c3_i32_330 : i32 to vector<8x64xi32>
    %1388 = arith.cmpi eq, %7, %1387 : vector<8x64xi32>
    %1389 = vector.shape_cast %1386 : vector<1x64xf32> to vector<1x64xf32>
    %1390 = vector.broadcast %1389 : vector<1x64xf32> to vector<8x64xf32>
    %1391 = arith.select %1388, %1390, %1378 : vector<8x64xi1>, vector<8x64xf32>
    %cst_331 = arith.constant 0.949999988 : f32
    %1392 = vector.broadcast %cst_331 : f32 to vector<1x64xf32>
    %1393 = arith.mulf %1392, %1382 : vector<1x64xf32>
    %1394 = arith.addf %1393, %4 : vector<1x64xf32>
    %1395 = arith.subf %1394, %1386 : vector<1x64xf32>
    %cst_332 = arith.constant 1.000000e+00 : f32
    %1396 = vector.broadcast %cst_332 : f32 to vector<1x64xf32>
    %1397 = arith.cmpf ogt, %1395, %1396 : vector<1x64xf32>
    %1398 = arith.extui %1397 : vector<1x64xi1> to vector<1x64xi32>
    %1399 = arith.sitofp %1398 : vector<1x64xi32> to vector<1x64xf32>
    %c4_i32_333 = arith.constant 4 : i32
    %1400 = vector.broadcast %c4_i32_333 : i32 to vector<8x64xi32>
    %1401 = arith.cmpi eq, %7, %1400 : vector<8x64xi32>
    %1402 = vector.shape_cast %1399 : vector<1x64xf32> to vector<1x64xf32>
    %1403 = vector.broadcast %1402 : vector<1x64xf32> to vector<8x64xf32>
    %1404 = arith.select %1401, %1403, %1391 : vector<8x64xi1>, vector<8x64xf32>
    %cst_334 = arith.constant 0.949999988 : f32
    %1405 = vector.broadcast %cst_334 : f32 to vector<1x64xf32>
    %1406 = arith.mulf %1405, %1395 : vector<1x64xf32>
    %1407 = arith.addf %1406, %4 : vector<1x64xf32>
    %1408 = arith.subf %1407, %1399 : vector<1x64xf32>
    %cst_335 = arith.constant 1.000000e+00 : f32
    %1409 = vector.broadcast %cst_335 : f32 to vector<1x64xf32>
    %1410 = arith.cmpf ogt, %1408, %1409 : vector<1x64xf32>
    %1411 = arith.extui %1410 : vector<1x64xi1> to vector<1x64xi32>
    %1412 = arith.sitofp %1411 : vector<1x64xi32> to vector<1x64xf32>
    %c5_i32_336 = arith.constant 5 : i32
    %1413 = vector.broadcast %c5_i32_336 : i32 to vector<8x64xi32>
    %1414 = arith.cmpi eq, %7, %1413 : vector<8x64xi32>
    %1415 = vector.shape_cast %1412 : vector<1x64xf32> to vector<1x64xf32>
    %1416 = vector.broadcast %1415 : vector<1x64xf32> to vector<8x64xf32>
    %1417 = arith.select %1414, %1416, %1404 : vector<8x64xi1>, vector<8x64xf32>
    %cst_337 = arith.constant 0.949999988 : f32
    %1418 = vector.broadcast %cst_337 : f32 to vector<1x64xf32>
    %1419 = arith.mulf %1418, %1408 : vector<1x64xf32>
    %1420 = arith.addf %1419, %4 : vector<1x64xf32>
    %1421 = arith.subf %1420, %1412 : vector<1x64xf32>
    %cst_338 = arith.constant 1.000000e+00 : f32
    %1422 = vector.broadcast %cst_338 : f32 to vector<1x64xf32>
    %1423 = arith.cmpf ogt, %1421, %1422 : vector<1x64xf32>
    %1424 = arith.extui %1423 : vector<1x64xi1> to vector<1x64xi32>
    %1425 = arith.sitofp %1424 : vector<1x64xi32> to vector<1x64xf32>
    %c6_i32_339 = arith.constant 6 : i32
    %1426 = vector.broadcast %c6_i32_339 : i32 to vector<8x64xi32>
    %1427 = arith.cmpi eq, %7, %1426 : vector<8x64xi32>
    %1428 = vector.shape_cast %1425 : vector<1x64xf32> to vector<1x64xf32>
    %1429 = vector.broadcast %1428 : vector<1x64xf32> to vector<8x64xf32>
    %1430 = arith.select %1427, %1429, %1417 : vector<8x64xi1>, vector<8x64xf32>
    %cst_340 = arith.constant 0.949999988 : f32
    %1431 = vector.broadcast %cst_340 : f32 to vector<1x64xf32>
    %1432 = arith.mulf %1431, %1421 : vector<1x64xf32>
    %1433 = arith.addf %1432, %4 : vector<1x64xf32>
    %1434 = arith.subf %1433, %1425 : vector<1x64xf32>
    %cst_341 = arith.constant 1.000000e+00 : f32
    %1435 = vector.broadcast %cst_341 : f32 to vector<1x64xf32>
    %1436 = arith.cmpf ogt, %1434, %1435 : vector<1x64xf32>
    %1437 = arith.extui %1436 : vector<1x64xi1> to vector<1x64xi32>
    %1438 = arith.sitofp %1437 : vector<1x64xi32> to vector<1x64xf32>
    %c7_i32_342 = arith.constant 7 : i32
    %1439 = vector.broadcast %c7_i32_342 : i32 to vector<8x64xi32>
    %1440 = arith.cmpi eq, %7, %1439 : vector<8x64xi32>
    %1441 = vector.shape_cast %1438 : vector<1x64xf32> to vector<1x64xf32>
    %1442 = vector.broadcast %1441 : vector<1x64xf32> to vector<8x64xf32>
    %1443 = arith.select %1440, %1442, %1430 : vector<8x64xi1>, vector<8x64xf32>
    %cst_343 = arith.constant 0.000000e+00 : f32
    %1444 = vector.broadcast %cst_343 : f32 to vector<8x16xf32>
    %1445 = vector.extract_strided_slice %1116 {offsets = [0, 0], sizes = [1, 16], strides = [1, 1]} : vector<8x16xf32> to vector<1x16xf32>
    %cst_344 = arith.constant 0.949999988 : f32
    %1446 = vector.broadcast %cst_344 : f32 to vector<1x16xf32>
    %1447 = arith.mulf %1446, %1325 : vector<1x16xf32>
    %1448 = arith.addf %1447, %1445 : vector<1x16xf32>
    %1449 = arith.subf %1448, %1329 : vector<1x16xf32>
    %cst_345 = arith.constant 1.000000e+00 : f32
    %1450 = vector.broadcast %cst_345 : f32 to vector<1x16xf32>
    %1451 = arith.cmpf ogt, %1449, %1450 : vector<1x16xf32>
    %1452 = arith.extui %1451 : vector<1x16xi1> to vector<1x16xi32>
    %1453 = arith.sitofp %1452 : vector<1x16xi32> to vector<1x16xf32>
    %c0_i32_346 = arith.constant 0 : i32
    %1454 = vector.broadcast %c0_i32_346 : i32 to vector<8x16xi32>
    %1455 = arith.cmpi eq, %8, %1454 : vector<8x16xi32>
    %1456 = vector.shape_cast %1453 : vector<1x16xf32> to vector<1x16xf32>
    %1457 = vector.broadcast %1456 : vector<1x16xf32> to vector<8x16xf32>
    %1458 = arith.select %1455, %1457, %1444 : vector<8x16xi1>, vector<8x16xf32>
    %1459 = vector.extract_strided_slice %1116 {offsets = [1, 0], sizes = [1, 16], strides = [1, 1]} : vector<8x16xf32> to vector<1x16xf32>
    %cst_347 = arith.constant 0.949999988 : f32
    %1460 = vector.broadcast %cst_347 : f32 to vector<1x16xf32>
    %1461 = arith.mulf %1460, %1449 : vector<1x16xf32>
    %1462 = arith.addf %1461, %1459 : vector<1x16xf32>
    %1463 = arith.subf %1462, %1453 : vector<1x16xf32>
    %cst_348 = arith.constant 1.000000e+00 : f32
    %1464 = vector.broadcast %cst_348 : f32 to vector<1x16xf32>
    %1465 = arith.cmpf ogt, %1463, %1464 : vector<1x16xf32>
    %1466 = arith.extui %1465 : vector<1x16xi1> to vector<1x16xi32>
    %1467 = arith.sitofp %1466 : vector<1x16xi32> to vector<1x16xf32>
    %c1_i32_349 = arith.constant 1 : i32
    %1468 = vector.broadcast %c1_i32_349 : i32 to vector<8x16xi32>
    %1469 = arith.cmpi eq, %8, %1468 : vector<8x16xi32>
    %1470 = vector.shape_cast %1467 : vector<1x16xf32> to vector<1x16xf32>
    %1471 = vector.broadcast %1470 : vector<1x16xf32> to vector<8x16xf32>
    %1472 = arith.select %1469, %1471, %1458 : vector<8x16xi1>, vector<8x16xf32>
    %1473 = vector.extract_strided_slice %1116 {offsets = [2, 0], sizes = [1, 16], strides = [1, 1]} : vector<8x16xf32> to vector<1x16xf32>
    %cst_350 = arith.constant 0.949999988 : f32
    %1474 = vector.broadcast %cst_350 : f32 to vector<1x16xf32>
    %1475 = arith.mulf %1474, %1463 : vector<1x16xf32>
    %1476 = arith.addf %1475, %1473 : vector<1x16xf32>
    %1477 = arith.subf %1476, %1467 : vector<1x16xf32>
    %cst_351 = arith.constant 1.000000e+00 : f32
    %1478 = vector.broadcast %cst_351 : f32 to vector<1x16xf32>
    %1479 = arith.cmpf ogt, %1477, %1478 : vector<1x16xf32>
    %1480 = arith.extui %1479 : vector<1x16xi1> to vector<1x16xi32>
    %1481 = arith.sitofp %1480 : vector<1x16xi32> to vector<1x16xf32>
    %c2_i32_352 = arith.constant 2 : i32
    %1482 = vector.broadcast %c2_i32_352 : i32 to vector<8x16xi32>
    %1483 = arith.cmpi eq, %8, %1482 : vector<8x16xi32>
    %1484 = vector.shape_cast %1481 : vector<1x16xf32> to vector<1x16xf32>
    %1485 = vector.broadcast %1484 : vector<1x16xf32> to vector<8x16xf32>
    %1486 = arith.select %1483, %1485, %1472 : vector<8x16xi1>, vector<8x16xf32>
    %1487 = vector.extract_strided_slice %1116 {offsets = [3, 0], sizes = [1, 16], strides = [1, 1]} : vector<8x16xf32> to vector<1x16xf32>
    %cst_353 = arith.constant 0.949999988 : f32
    %1488 = vector.broadcast %cst_353 : f32 to vector<1x16xf32>
    %1489 = arith.mulf %1488, %1477 : vector<1x16xf32>
    %1490 = arith.addf %1489, %1487 : vector<1x16xf32>
    %1491 = arith.subf %1490, %1481 : vector<1x16xf32>
    %cst_354 = arith.constant 1.000000e+00 : f32
    %1492 = vector.broadcast %cst_354 : f32 to vector<1x16xf32>
    %1493 = arith.cmpf ogt, %1491, %1492 : vector<1x16xf32>
    %1494 = arith.extui %1493 : vector<1x16xi1> to vector<1x16xi32>
    %1495 = arith.sitofp %1494 : vector<1x16xi32> to vector<1x16xf32>
    %c3_i32_355 = arith.constant 3 : i32
    %1496 = vector.broadcast %c3_i32_355 : i32 to vector<8x16xi32>
    %1497 = arith.cmpi eq, %8, %1496 : vector<8x16xi32>
    %1498 = vector.shape_cast %1495 : vector<1x16xf32> to vector<1x16xf32>
    %1499 = vector.broadcast %1498 : vector<1x16xf32> to vector<8x16xf32>
    %1500 = arith.select %1497, %1499, %1486 : vector<8x16xi1>, vector<8x16xf32>
    %1501 = vector.extract_strided_slice %1116 {offsets = [4, 0], sizes = [1, 16], strides = [1, 1]} : vector<8x16xf32> to vector<1x16xf32>
    %cst_356 = arith.constant 0.949999988 : f32
    %1502 = vector.broadcast %cst_356 : f32 to vector<1x16xf32>
    %1503 = arith.mulf %1502, %1491 : vector<1x16xf32>
    %1504 = arith.addf %1503, %1501 : vector<1x16xf32>
    %1505 = arith.subf %1504, %1495 : vector<1x16xf32>
    %cst_357 = arith.constant 1.000000e+00 : f32
    %1506 = vector.broadcast %cst_357 : f32 to vector<1x16xf32>
    %1507 = arith.cmpf ogt, %1505, %1506 : vector<1x16xf32>
    %1508 = arith.extui %1507 : vector<1x16xi1> to vector<1x16xi32>
    %1509 = arith.sitofp %1508 : vector<1x16xi32> to vector<1x16xf32>
    %c4_i32_358 = arith.constant 4 : i32
    %1510 = vector.broadcast %c4_i32_358 : i32 to vector<8x16xi32>
    %1511 = arith.cmpi eq, %8, %1510 : vector<8x16xi32>
    %1512 = vector.shape_cast %1509 : vector<1x16xf32> to vector<1x16xf32>
    %1513 = vector.broadcast %1512 : vector<1x16xf32> to vector<8x16xf32>
    %1514 = arith.select %1511, %1513, %1500 : vector<8x16xi1>, vector<8x16xf32>
    %1515 = vector.extract_strided_slice %1116 {offsets = [5, 0], sizes = [1, 16], strides = [1, 1]} : vector<8x16xf32> to vector<1x16xf32>
    %cst_359 = arith.constant 0.949999988 : f32
    %1516 = vector.broadcast %cst_359 : f32 to vector<1x16xf32>
    %1517 = arith.mulf %1516, %1505 : vector<1x16xf32>
    %1518 = arith.addf %1517, %1515 : vector<1x16xf32>
    %1519 = arith.subf %1518, %1509 : vector<1x16xf32>
    %cst_360 = arith.constant 1.000000e+00 : f32
    %1520 = vector.broadcast %cst_360 : f32 to vector<1x16xf32>
    %1521 = arith.cmpf ogt, %1519, %1520 : vector<1x16xf32>
    %1522 = arith.extui %1521 : vector<1x16xi1> to vector<1x16xi32>
    %1523 = arith.sitofp %1522 : vector<1x16xi32> to vector<1x16xf32>
    %c5_i32_361 = arith.constant 5 : i32
    %1524 = vector.broadcast %c5_i32_361 : i32 to vector<8x16xi32>
    %1525 = arith.cmpi eq, %8, %1524 : vector<8x16xi32>
    %1526 = vector.shape_cast %1523 : vector<1x16xf32> to vector<1x16xf32>
    %1527 = vector.broadcast %1526 : vector<1x16xf32> to vector<8x16xf32>
    %1528 = arith.select %1525, %1527, %1514 : vector<8x16xi1>, vector<8x16xf32>
    %1529 = vector.extract_strided_slice %1116 {offsets = [6, 0], sizes = [1, 16], strides = [1, 1]} : vector<8x16xf32> to vector<1x16xf32>
    %cst_362 = arith.constant 0.949999988 : f32
    %1530 = vector.broadcast %cst_362 : f32 to vector<1x16xf32>
    %1531 = arith.mulf %1530, %1519 : vector<1x16xf32>
    %1532 = arith.addf %1531, %1529 : vector<1x16xf32>
    %1533 = arith.subf %1532, %1523 : vector<1x16xf32>
    %cst_363 = arith.constant 1.000000e+00 : f32
    %1534 = vector.broadcast %cst_363 : f32 to vector<1x16xf32>
    %1535 = arith.cmpf ogt, %1533, %1534 : vector<1x16xf32>
    %1536 = arith.extui %1535 : vector<1x16xi1> to vector<1x16xi32>
    %1537 = arith.sitofp %1536 : vector<1x16xi32> to vector<1x16xf32>
    %c6_i32_364 = arith.constant 6 : i32
    %1538 = vector.broadcast %c6_i32_364 : i32 to vector<8x16xi32>
    %1539 = arith.cmpi eq, %8, %1538 : vector<8x16xi32>
    %1540 = vector.shape_cast %1537 : vector<1x16xf32> to vector<1x16xf32>
    %1541 = vector.broadcast %1540 : vector<1x16xf32> to vector<8x16xf32>
    %1542 = arith.select %1539, %1541, %1528 : vector<8x16xi1>, vector<8x16xf32>
    %1543 = vector.extract_strided_slice %1116 {offsets = [7, 0], sizes = [1, 16], strides = [1, 1]} : vector<8x16xf32> to vector<1x16xf32>
    %cst_365 = arith.constant 0.949999988 : f32
    %1544 = vector.broadcast %cst_365 : f32 to vector<1x16xf32>
    %1545 = arith.mulf %1544, %1533 : vector<1x16xf32>
    %1546 = arith.addf %1545, %1543 : vector<1x16xf32>
    %1547 = arith.subf %1546, %1537 : vector<1x16xf32>
    %cst_366 = arith.constant 1.000000e+00 : f32
    %1548 = vector.broadcast %cst_366 : f32 to vector<1x16xf32>
    %1549 = arith.cmpf ogt, %1547, %1548 : vector<1x16xf32>
    %1550 = arith.extui %1549 : vector<1x16xi1> to vector<1x16xi32>
    %1551 = arith.sitofp %1550 : vector<1x16xi32> to vector<1x16xf32>
    %c7_i32_367 = arith.constant 7 : i32
    %1552 = vector.broadcast %c7_i32_367 : i32 to vector<8x16xi32>
    %1553 = arith.cmpi eq, %8, %1552 : vector<8x16xi32>
    %1554 = vector.shape_cast %1551 : vector<1x16xf32> to vector<1x16xf32>
    %1555 = vector.broadcast %1554 : vector<1x16xf32> to vector<8x16xf32>
    %1556 = arith.select %1553, %1555, %1542 : vector<8x16xi1>, vector<8x16xf32>
    %c40 = arith.constant 40 : index
    %c0_368 = arith.constant 0 : index
    %1557 = vector.load %arg6[%c40, %c0_368] : memref<100x16xf32, #tpu.memory_space<vmem>>, vector<8x16xf32>
    tpu.vector_store %arg6[%c40, %c0_368], %1556 {strides = array<i32>} : memref<100x16xf32, #tpu.memory_space<vmem>>, vector<8x16xf32>,
    %cst_369 = arith.constant dense<0.000000e+00> : vector<8x16xf32>
    %1558 = tpu.matmul %1443, %5, %cst_369 {dimension_numbers = #tpu.dot_dimension_numbers<[1], [0], [0], [1], [0, 0, 1, 1], [], []>} : vector<8x64xf32>, vector<64x16xf32>, vector<8x16xf32> -> vector<8x16xf32>
    %1559 = vector.broadcast %6 : vector<1x16xf32> to vector<8x16xf32>
    %1560 = arith.addf %1558, %1559 : vector<8x16xf32>
    %cst_370 = arith.constant 0.000000e+00 : f32
    %1561 = vector.broadcast %cst_370 : f32 to vector<8x64xf32>
    %cst_371 = arith.constant 0.949999988 : f32
    %1562 = vector.broadcast %cst_371 : f32 to vector<1x64xf32>
    %1563 = arith.mulf %1562, %1434 : vector<1x64xf32>
    %1564 = arith.addf %1563, %4 : vector<1x64xf32>
    %1565 = arith.subf %1564, %1438 : vector<1x64xf32>
    %cst_372 = arith.constant 1.000000e+00 : f32
    %1566 = vector.broadcast %cst_372 : f32 to vector<1x64xf32>
    %1567 = arith.cmpf ogt, %1565, %1566 : vector<1x64xf32>
    %1568 = arith.extui %1567 : vector<1x64xi1> to vector<1x64xi32>
    %1569 = arith.sitofp %1568 : vector<1x64xi32> to vector<1x64xf32>
    %c0_i32_373 = arith.constant 0 : i32
    %1570 = vector.broadcast %c0_i32_373 : i32 to vector<8x64xi32>
    %1571 = arith.cmpi eq, %7, %1570 : vector<8x64xi32>
    %1572 = vector.shape_cast %1569 : vector<1x64xf32> to vector<1x64xf32>
    %1573 = vector.broadcast %1572 : vector<1x64xf32> to vector<8x64xf32>
    %1574 = arith.select %1571, %1573, %1561 : vector<8x64xi1>, vector<8x64xf32>
    %cst_374 = arith.constant 0.949999988 : f32
    %1575 = vector.broadcast %cst_374 : f32 to vector<1x64xf32>
    %1576 = arith.mulf %1575, %1565 : vector<1x64xf32>
    %1577 = arith.addf %1576, %4 : vector<1x64xf32>
    %1578 = arith.subf %1577, %1569 : vector<1x64xf32>
    %cst_375 = arith.constant 1.000000e+00 : f32
    %1579 = vector.broadcast %cst_375 : f32 to vector<1x64xf32>
    %1580 = arith.cmpf ogt, %1578, %1579 : vector<1x64xf32>
    %1581 = arith.extui %1580 : vector<1x64xi1> to vector<1x64xi32>
    %1582 = arith.sitofp %1581 : vector<1x64xi32> to vector<1x64xf32>
    %c1_i32_376 = arith.constant 1 : i32
    %1583 = vector.broadcast %c1_i32_376 : i32 to vector<8x64xi32>
    %1584 = arith.cmpi eq, %7, %1583 : vector<8x64xi32>
    %1585 = vector.shape_cast %1582 : vector<1x64xf32> to vector<1x64xf32>
    %1586 = vector.broadcast %1585 : vector<1x64xf32> to vector<8x64xf32>
    %1587 = arith.select %1584, %1586, %1574 : vector<8x64xi1>, vector<8x64xf32>
    %cst_377 = arith.constant 0.949999988 : f32
    %1588 = vector.broadcast %cst_377 : f32 to vector<1x64xf32>
    %1589 = arith.mulf %1588, %1578 : vector<1x64xf32>
    %1590 = arith.addf %1589, %4 : vector<1x64xf32>
    %1591 = arith.subf %1590, %1582 : vector<1x64xf32>
    %cst_378 = arith.constant 1.000000e+00 : f32
    %1592 = vector.broadcast %cst_378 : f32 to vector<1x64xf32>
    %1593 = arith.cmpf ogt, %1591, %1592 : vector<1x64xf32>
    %1594 = arith.extui %1593 : vector<1x64xi1> to vector<1x64xi32>
    %1595 = arith.sitofp %1594 : vector<1x64xi32> to vector<1x64xf32>
    %c2_i32_379 = arith.constant 2 : i32
    %1596 = vector.broadcast %c2_i32_379 : i32 to vector<8x64xi32>
    %1597 = arith.cmpi eq, %7, %1596 : vector<8x64xi32>
    %1598 = vector.shape_cast %1595 : vector<1x64xf32> to vector<1x64xf32>
    %1599 = vector.broadcast %1598 : vector<1x64xf32> to vector<8x64xf32>
    %1600 = arith.select %1597, %1599, %1587 : vector<8x64xi1>, vector<8x64xf32>
    %cst_380 = arith.constant 0.949999988 : f32
    %1601 = vector.broadcast %cst_380 : f32 to vector<1x64xf32>
    %1602 = arith.mulf %1601, %1591 : vector<1x64xf32>
    %1603 = arith.addf %1602, %4 : vector<1x64xf32>
    %1604 = arith.subf %1603, %1595 : vector<1x64xf32>
    %cst_381 = arith.constant 1.000000e+00 : f32
    %1605 = vector.broadcast %cst_381 : f32 to vector<1x64xf32>
    %1606 = arith.cmpf ogt, %1604, %1605 : vector<1x64xf32>
    %1607 = arith.extui %1606 : vector<1x64xi1> to vector<1x64xi32>
    %1608 = arith.sitofp %1607 : vector<1x64xi32> to vector<1x64xf32>
    %c3_i32_382 = arith.constant 3 : i32
    %1609 = vector.broadcast %c3_i32_382 : i32 to vector<8x64xi32>
    %1610 = arith.cmpi eq, %7, %1609 : vector<8x64xi32>
    %1611 = vector.shape_cast %1608 : vector<1x64xf32> to vector<1x64xf32>
    %1612 = vector.broadcast %1611 : vector<1x64xf32> to vector<8x64xf32>
    %1613 = arith.select %1610, %1612, %1600 : vector<8x64xi1>, vector<8x64xf32>
    %cst_383 = arith.constant 0.949999988 : f32
    %1614 = vector.broadcast %cst_383 : f32 to vector<1x64xf32>
    %1615 = arith.mulf %1614, %1604 : vector<1x64xf32>
    %1616 = arith.addf %1615, %4 : vector<1x64xf32>
    %1617 = arith.subf %1616, %1608 : vector<1x64xf32>
    %cst_384 = arith.constant 1.000000e+00 : f32
    %1618 = vector.broadcast %cst_384 : f32 to vector<1x64xf32>
    %1619 = arith.cmpf ogt, %1617, %1618 : vector<1x64xf32>
    %1620 = arith.extui %1619 : vector<1x64xi1> to vector<1x64xi32>
    %1621 = arith.sitofp %1620 : vector<1x64xi32> to vector<1x64xf32>
    %c4_i32_385 = arith.constant 4 : i32
    %1622 = vector.broadcast %c4_i32_385 : i32 to vector<8x64xi32>
    %1623 = arith.cmpi eq, %7, %1622 : vector<8x64xi32>
    %1624 = vector.shape_cast %1621 : vector<1x64xf32> to vector<1x64xf32>
    %1625 = vector.broadcast %1624 : vector<1x64xf32> to vector<8x64xf32>
    %1626 = arith.select %1623, %1625, %1613 : vector<8x64xi1>, vector<8x64xf32>
    %cst_386 = arith.constant 0.949999988 : f32
    %1627 = vector.broadcast %cst_386 : f32 to vector<1x64xf32>
    %1628 = arith.mulf %1627, %1617 : vector<1x64xf32>
    %1629 = arith.addf %1628, %4 : vector<1x64xf32>
    %1630 = arith.subf %1629, %1621 : vector<1x64xf32>
    %cst_387 = arith.constant 1.000000e+00 : f32
    %1631 = vector.broadcast %cst_387 : f32 to vector<1x64xf32>
    %1632 = arith.cmpf ogt, %1630, %1631 : vector<1x64xf32>
    %1633 = arith.extui %1632 : vector<1x64xi1> to vector<1x64xi32>
    %1634 = arith.sitofp %1633 : vector<1x64xi32> to vector<1x64xf32>
    %c5_i32_388 = arith.constant 5 : i32
    %1635 = vector.broadcast %c5_i32_388 : i32 to vector<8x64xi32>
    %1636 = arith.cmpi eq, %7, %1635 : vector<8x64xi32>
    %1637 = vector.shape_cast %1634 : vector<1x64xf32> to vector<1x64xf32>
    %1638 = vector.broadcast %1637 : vector<1x64xf32> to vector<8x64xf32>
    %1639 = arith.select %1636, %1638, %1626 : vector<8x64xi1>, vector<8x64xf32>
    %cst_389 = arith.constant 0.949999988 : f32
    %1640 = vector.broadcast %cst_389 : f32 to vector<1x64xf32>
    %1641 = arith.mulf %1640, %1630 : vector<1x64xf32>
    %1642 = arith.addf %1641, %4 : vector<1x64xf32>
    %1643 = arith.subf %1642, %1634 : vector<1x64xf32>
    %cst_390 = arith.constant 1.000000e+00 : f32
    %1644 = vector.broadcast %cst_390 : f32 to vector<1x64xf32>
    %1645 = arith.cmpf ogt, %1643, %1644 : vector<1x64xf32>
    %1646 = arith.extui %1645 : vector<1x64xi1> to vector<1x64xi32>
    %1647 = arith.sitofp %1646 : vector<1x64xi32> to vector<1x64xf32>
    %c6_i32_391 = arith.constant 6 : i32
    %1648 = vector.broadcast %c6_i32_391 : i32 to vector<8x64xi32>
    %1649 = arith.cmpi eq, %7, %1648 : vector<8x64xi32>
    %1650 = vector.shape_cast %1647 : vector<1x64xf32> to vector<1x64xf32>
    %1651 = vector.broadcast %1650 : vector<1x64xf32> to vector<8x64xf32>
    %1652 = arith.select %1649, %1651, %1639 : vector<8x64xi1>, vector<8x64xf32>
    %cst_392 = arith.constant 0.949999988 : f32
    %1653 = vector.broadcast %cst_392 : f32 to vector<1x64xf32>
    %1654 = arith.mulf %1653, %1643 : vector<1x64xf32>
    %1655 = arith.addf %1654, %4 : vector<1x64xf32>
    %1656 = arith.subf %1655, %1647 : vector<1x64xf32>
    %cst_393 = arith.constant 1.000000e+00 : f32
    %1657 = vector.broadcast %cst_393 : f32 to vector<1x64xf32>
    %1658 = arith.cmpf ogt, %1656, %1657 : vector<1x64xf32>
    %1659 = arith.extui %1658 : vector<1x64xi1> to vector<1x64xi32>
    %1660 = arith.sitofp %1659 : vector<1x64xi32> to vector<1x64xf32>
    %c7_i32_394 = arith.constant 7 : i32
    %1661 = vector.broadcast %c7_i32_394 : i32 to vector<8x64xi32>
    %1662 = arith.cmpi eq, %7, %1661 : vector<8x64xi32>
    %1663 = vector.shape_cast %1660 : vector<1x64xf32> to vector<1x64xf32>
    %1664 = vector.broadcast %1663 : vector<1x64xf32> to vector<8x64xf32>
    %1665 = arith.select %1662, %1664, %1652 : vector<8x64xi1>, vector<8x64xf32>
    %cst_395 = arith.constant 0.000000e+00 : f32
    %1666 = vector.broadcast %cst_395 : f32 to vector<8x16xf32>
    %1667 = vector.extract_strided_slice %1338 {offsets = [0, 0], sizes = [1, 16], strides = [1, 1]} : vector<8x16xf32> to vector<1x16xf32>
    %cst_396 = arith.constant 0.949999988 : f32
    %1668 = vector.broadcast %cst_396 : f32 to vector<1x16xf32>
    %1669 = arith.mulf %1668, %1547 : vector<1x16xf32>
    %1670 = arith.addf %1669, %1667 : vector<1x16xf32>
    %1671 = arith.subf %1670, %1551 : vector<1x16xf32>
    %cst_397 = arith.constant 1.000000e+00 : f32
    %1672 = vector.broadcast %cst_397 : f32 to vector<1x16xf32>
    %1673 = arith.cmpf ogt, %1671, %1672 : vector<1x16xf32>
    %1674 = arith.extui %1673 : vector<1x16xi1> to vector<1x16xi32>
    %1675 = arith.sitofp %1674 : vector<1x16xi32> to vector<1x16xf32>
    %c0_i32_398 = arith.constant 0 : i32
    %1676 = vector.broadcast %c0_i32_398 : i32 to vector<8x16xi32>
    %1677 = arith.cmpi eq, %8, %1676 : vector<8x16xi32>
    %1678 = vector.shape_cast %1675 : vector<1x16xf32> to vector<1x16xf32>
    %1679 = vector.broadcast %1678 : vector<1x16xf32> to vector<8x16xf32>
    %1680 = arith.select %1677, %1679, %1666 : vector<8x16xi1>, vector<8x16xf32>
    %1681 = vector.extract_strided_slice %1338 {offsets = [1, 0], sizes = [1, 16], strides = [1, 1]} : vector<8x16xf32> to vector<1x16xf32>
    %cst_399 = arith.constant 0.949999988 : f32
    %1682 = vector.broadcast %cst_399 : f32 to vector<1x16xf32>
    %1683 = arith.mulf %1682, %1671 : vector<1x16xf32>
    %1684 = arith.addf %1683, %1681 : vector<1x16xf32>
    %1685 = arith.subf %1684, %1675 : vector<1x16xf32>
    %cst_400 = arith.constant 1.000000e+00 : f32
    %1686 = vector.broadcast %cst_400 : f32 to vector<1x16xf32>
    %1687 = arith.cmpf ogt, %1685, %1686 : vector<1x16xf32>
    %1688 = arith.extui %1687 : vector<1x16xi1> to vector<1x16xi32>
    %1689 = arith.sitofp %1688 : vector<1x16xi32> to vector<1x16xf32>
    %c1_i32_401 = arith.constant 1 : i32
    %1690 = vector.broadcast %c1_i32_401 : i32 to vector<8x16xi32>
    %1691 = arith.cmpi eq, %8, %1690 : vector<8x16xi32>
    %1692 = vector.shape_cast %1689 : vector<1x16xf32> to vector<1x16xf32>
    %1693 = vector.broadcast %1692 : vector<1x16xf32> to vector<8x16xf32>
    %1694 = arith.select %1691, %1693, %1680 : vector<8x16xi1>, vector<8x16xf32>
    %1695 = vector.extract_strided_slice %1338 {offsets = [2, 0], sizes = [1, 16], strides = [1, 1]} : vector<8x16xf32> to vector<1x16xf32>
    %cst_402 = arith.constant 0.949999988 : f32
    %1696 = vector.broadcast %cst_402 : f32 to vector<1x16xf32>
    %1697 = arith.mulf %1696, %1685 : vector<1x16xf32>
    %1698 = arith.addf %1697, %1695 : vector<1x16xf32>
    %1699 = arith.subf %1698, %1689 : vector<1x16xf32>
    %cst_403 = arith.constant 1.000000e+00 : f32
    %1700 = vector.broadcast %cst_403 : f32 to vector<1x16xf32>
    %1701 = arith.cmpf ogt, %1699, %1700 : vector<1x16xf32>
    %1702 = arith.extui %1701 : vector<1x16xi1> to vector<1x16xi32>
    %1703 = arith.sitofp %1702 : vector<1x16xi32> to vector<1x16xf32>
    %c2_i32_404 = arith.constant 2 : i32
    %1704 = vector.broadcast %c2_i32_404 : i32 to vector<8x16xi32>
    %1705 = arith.cmpi eq, %8, %1704 : vector<8x16xi32>
    %1706 = vector.shape_cast %1703 : vector<1x16xf32> to vector<1x16xf32>
    %1707 = vector.broadcast %1706 : vector<1x16xf32> to vector<8x16xf32>
    %1708 = arith.select %1705, %1707, %1694 : vector<8x16xi1>, vector<8x16xf32>
    %1709 = vector.extract_strided_slice %1338 {offsets = [3, 0], sizes = [1, 16], strides = [1, 1]} : vector<8x16xf32> to vector<1x16xf32>
    %cst_405 = arith.constant 0.949999988 : f32
    %1710 = vector.broadcast %cst_405 : f32 to vector<1x16xf32>
    %1711 = arith.mulf %1710, %1699 : vector<1x16xf32>
    %1712 = arith.addf %1711, %1709 : vector<1x16xf32>
    %1713 = arith.subf %1712, %1703 : vector<1x16xf32>
    %cst_406 = arith.constant 1.000000e+00 : f32
    %1714 = vector.broadcast %cst_406 : f32 to vector<1x16xf32>
    %1715 = arith.cmpf ogt, %1713, %1714 : vector<1x16xf32>
    %1716 = arith.extui %1715 : vector<1x16xi1> to vector<1x16xi32>
    %1717 = arith.sitofp %1716 : vector<1x16xi32> to vector<1x16xf32>
    %c3_i32_407 = arith.constant 3 : i32
    %1718 = vector.broadcast %c3_i32_407 : i32 to vector<8x16xi32>
    %1719 = arith.cmpi eq, %8, %1718 : vector<8x16xi32>
    %1720 = vector.shape_cast %1717 : vector<1x16xf32> to vector<1x16xf32>
    %1721 = vector.broadcast %1720 : vector<1x16xf32> to vector<8x16xf32>
    %1722 = arith.select %1719, %1721, %1708 : vector<8x16xi1>, vector<8x16xf32>
    %1723 = vector.extract_strided_slice %1338 {offsets = [4, 0], sizes = [1, 16], strides = [1, 1]} : vector<8x16xf32> to vector<1x16xf32>
    %cst_408 = arith.constant 0.949999988 : f32
    %1724 = vector.broadcast %cst_408 : f32 to vector<1x16xf32>
    %1725 = arith.mulf %1724, %1713 : vector<1x16xf32>
    %1726 = arith.addf %1725, %1723 : vector<1x16xf32>
    %1727 = arith.subf %1726, %1717 : vector<1x16xf32>
    %cst_409 = arith.constant 1.000000e+00 : f32
    %1728 = vector.broadcast %cst_409 : f32 to vector<1x16xf32>
    %1729 = arith.cmpf ogt, %1727, %1728 : vector<1x16xf32>
    %1730 = arith.extui %1729 : vector<1x16xi1> to vector<1x16xi32>
    %1731 = arith.sitofp %1730 : vector<1x16xi32> to vector<1x16xf32>
    %c4_i32_410 = arith.constant 4 : i32
    %1732 = vector.broadcast %c4_i32_410 : i32 to vector<8x16xi32>
    %1733 = arith.cmpi eq, %8, %1732 : vector<8x16xi32>
    %1734 = vector.shape_cast %1731 : vector<1x16xf32> to vector<1x16xf32>
    %1735 = vector.broadcast %1734 : vector<1x16xf32> to vector<8x16xf32>
    %1736 = arith.select %1733, %1735, %1722 : vector<8x16xi1>, vector<8x16xf32>
    %1737 = vector.extract_strided_slice %1338 {offsets = [5, 0], sizes = [1, 16], strides = [1, 1]} : vector<8x16xf32> to vector<1x16xf32>
    %cst_411 = arith.constant 0.949999988 : f32
    %1738 = vector.broadcast %cst_411 : f32 to vector<1x16xf32>
    %1739 = arith.mulf %1738, %1727 : vector<1x16xf32>
    %1740 = arith.addf %1739, %1737 : vector<1x16xf32>
    %1741 = arith.subf %1740, %1731 : vector<1x16xf32>
    %cst_412 = arith.constant 1.000000e+00 : f32
    %1742 = vector.broadcast %cst_412 : f32 to vector<1x16xf32>
    %1743 = arith.cmpf ogt, %1741, %1742 : vector<1x16xf32>
    %1744 = arith.extui %1743 : vector<1x16xi1> to vector<1x16xi32>
    %1745 = arith.sitofp %1744 : vector<1x16xi32> to vector<1x16xf32>
    %c5_i32_413 = arith.constant 5 : i32
    %1746 = vector.broadcast %c5_i32_413 : i32 to vector<8x16xi32>
    %1747 = arith.cmpi eq, %8, %1746 : vector<8x16xi32>
    %1748 = vector.shape_cast %1745 : vector<1x16xf32> to vector<1x16xf32>
    %1749 = vector.broadcast %1748 : vector<1x16xf32> to vector<8x16xf32>
    %1750 = arith.select %1747, %1749, %1736 : vector<8x16xi1>, vector<8x16xf32>
    %1751 = vector.extract_strided_slice %1338 {offsets = [6, 0], sizes = [1, 16], strides = [1, 1]} : vector<8x16xf32> to vector<1x16xf32>
    %cst_414 = arith.constant 0.949999988 : f32
    %1752 = vector.broadcast %cst_414 : f32 to vector<1x16xf32>
    %1753 = arith.mulf %1752, %1741 : vector<1x16xf32>
    %1754 = arith.addf %1753, %1751 : vector<1x16xf32>
    %1755 = arith.subf %1754, %1745 : vector<1x16xf32>
    %cst_415 = arith.constant 1.000000e+00 : f32
    %1756 = vector.broadcast %cst_415 : f32 to vector<1x16xf32>
    %1757 = arith.cmpf ogt, %1755, %1756 : vector<1x16xf32>
    %1758 = arith.extui %1757 : vector<1x16xi1> to vector<1x16xi32>
    %1759 = arith.sitofp %1758 : vector<1x16xi32> to vector<1x16xf32>
    %c6_i32_416 = arith.constant 6 : i32
    %1760 = vector.broadcast %c6_i32_416 : i32 to vector<8x16xi32>
    %1761 = arith.cmpi eq, %8, %1760 : vector<8x16xi32>
    %1762 = vector.shape_cast %1759 : vector<1x16xf32> to vector<1x16xf32>
    %1763 = vector.broadcast %1762 : vector<1x16xf32> to vector<8x16xf32>
    %1764 = arith.select %1761, %1763, %1750 : vector<8x16xi1>, vector<8x16xf32>
    %1765 = vector.extract_strided_slice %1338 {offsets = [7, 0], sizes = [1, 16], strides = [1, 1]} : vector<8x16xf32> to vector<1x16xf32>
    %cst_417 = arith.constant 0.949999988 : f32
    %1766 = vector.broadcast %cst_417 : f32 to vector<1x16xf32>
    %1767 = arith.mulf %1766, %1755 : vector<1x16xf32>
    %1768 = arith.addf %1767, %1765 : vector<1x16xf32>
    %1769 = arith.subf %1768, %1759 : vector<1x16xf32>
    %cst_418 = arith.constant 1.000000e+00 : f32
    %1770 = vector.broadcast %cst_418 : f32 to vector<1x16xf32>
    %1771 = arith.cmpf ogt, %1769, %1770 : vector<1x16xf32>
    %1772 = arith.extui %1771 : vector<1x16xi1> to vector<1x16xi32>
    %1773 = arith.sitofp %1772 : vector<1x16xi32> to vector<1x16xf32>
    %c7_i32_419 = arith.constant 7 : i32
    %1774 = vector.broadcast %c7_i32_419 : i32 to vector<8x16xi32>
    %1775 = arith.cmpi eq, %8, %1774 : vector<8x16xi32>
    %1776 = vector.shape_cast %1773 : vector<1x16xf32> to vector<1x16xf32>
    %1777 = vector.broadcast %1776 : vector<1x16xf32> to vector<8x16xf32>
    %1778 = arith.select %1775, %1777, %1764 : vector<8x16xi1>, vector<8x16xf32>
    %c48 = arith.constant 48 : index
    %c0_420 = arith.constant 0 : index
    %1779 = vector.load %arg6[%c48, %c0_420] : memref<100x16xf32, #tpu.memory_space<vmem>>, vector<8x16xf32>
    tpu.vector_store %arg6[%c48, %c0_420], %1778 {strides = array<i32>} : memref<100x16xf32, #tpu.memory_space<vmem>>, vector<8x16xf32>,
    %cst_421 = arith.constant dense<0.000000e+00> : vector<8x16xf32>
    %1780 = tpu.matmul %1665, %5, %cst_421 {dimension_numbers = #tpu.dot_dimension_numbers<[1], [0], [0], [1], [0, 0, 1, 1], [], []>} : vector<8x64xf32>, vector<64x16xf32>, vector<8x16xf32> -> vector<8x16xf32>
    %1781 = vector.broadcast %6 : vector<1x16xf32> to vector<8x16xf32>
    %1782 = arith.addf %1780, %1781 : vector<8x16xf32>
    %cst_422 = arith.constant 0.000000e+00 : f32
    %1783 = vector.broadcast %cst_422 : f32 to vector<8x64xf32>
    %cst_423 = arith.constant 0.949999988 : f32
    %1784 = vector.broadcast %cst_423 : f32 to vector<1x64xf32>
    %1785 = arith.mulf %1784, %1656 : vector<1x64xf32>
    %1786 = arith.addf %1785, %4 : vector<1x64xf32>
    %1787 = arith.subf %1786, %1660 : vector<1x64xf32>
    %cst_424 = arith.constant 1.000000e+00 : f32
    %1788 = vector.broadcast %cst_424 : f32 to vector<1x64xf32>
    %1789 = arith.cmpf ogt, %1787, %1788 : vector<1x64xf32>
    %1790 = arith.extui %1789 : vector<1x64xi1> to vector<1x64xi32>
    %1791 = arith.sitofp %1790 : vector<1x64xi32> to vector<1x64xf32>
    %c0_i32_425 = arith.constant 0 : i32
    %1792 = vector.broadcast %c0_i32_425 : i32 to vector<8x64xi32>
    %1793 = arith.cmpi eq, %7, %1792 : vector<8x64xi32>
    %1794 = vector.shape_cast %1791 : vector<1x64xf32> to vector<1x64xf32>
    %1795 = vector.broadcast %1794 : vector<1x64xf32> to vector<8x64xf32>
    %1796 = arith.select %1793, %1795, %1783 : vector<8x64xi1>, vector<8x64xf32>
    %cst_426 = arith.constant 0.949999988 : f32
    %1797 = vector.broadcast %cst_426 : f32 to vector<1x64xf32>
    %1798 = arith.mulf %1797, %1787 : vector<1x64xf32>
    %1799 = arith.addf %1798, %4 : vector<1x64xf32>
    %1800 = arith.subf %1799, %1791 : vector<1x64xf32>
    %cst_427 = arith.constant 1.000000e+00 : f32
    %1801 = vector.broadcast %cst_427 : f32 to vector<1x64xf32>
    %1802 = arith.cmpf ogt, %1800, %1801 : vector<1x64xf32>
    %1803 = arith.extui %1802 : vector<1x64xi1> to vector<1x64xi32>
    %1804 = arith.sitofp %1803 : vector<1x64xi32> to vector<1x64xf32>
    %c1_i32_428 = arith.constant 1 : i32
    %1805 = vector.broadcast %c1_i32_428 : i32 to vector<8x64xi32>
    %1806 = arith.cmpi eq, %7, %1805 : vector<8x64xi32>
    %1807 = vector.shape_cast %1804 : vector<1x64xf32> to vector<1x64xf32>
    %1808 = vector.broadcast %1807 : vector<1x64xf32> to vector<8x64xf32>
    %1809 = arith.select %1806, %1808, %1796 : vector<8x64xi1>, vector<8x64xf32>
    %cst_429 = arith.constant 0.949999988 : f32
    %1810 = vector.broadcast %cst_429 : f32 to vector<1x64xf32>
    %1811 = arith.mulf %1810, %1800 : vector<1x64xf32>
    %1812 = arith.addf %1811, %4 : vector<1x64xf32>
    %1813 = arith.subf %1812, %1804 : vector<1x64xf32>
    %cst_430 = arith.constant 1.000000e+00 : f32
    %1814 = vector.broadcast %cst_430 : f32 to vector<1x64xf32>
    %1815 = arith.cmpf ogt, %1813, %1814 : vector<1x64xf32>
    %1816 = arith.extui %1815 : vector<1x64xi1> to vector<1x64xi32>
    %1817 = arith.sitofp %1816 : vector<1x64xi32> to vector<1x64xf32>
    %c2_i32_431 = arith.constant 2 : i32
    %1818 = vector.broadcast %c2_i32_431 : i32 to vector<8x64xi32>
    %1819 = arith.cmpi eq, %7, %1818 : vector<8x64xi32>
    %1820 = vector.shape_cast %1817 : vector<1x64xf32> to vector<1x64xf32>
    %1821 = vector.broadcast %1820 : vector<1x64xf32> to vector<8x64xf32>
    %1822 = arith.select %1819, %1821, %1809 : vector<8x64xi1>, vector<8x64xf32>
    %cst_432 = arith.constant 0.949999988 : f32
    %1823 = vector.broadcast %cst_432 : f32 to vector<1x64xf32>
    %1824 = arith.mulf %1823, %1813 : vector<1x64xf32>
    %1825 = arith.addf %1824, %4 : vector<1x64xf32>
    %1826 = arith.subf %1825, %1817 : vector<1x64xf32>
    %cst_433 = arith.constant 1.000000e+00 : f32
    %1827 = vector.broadcast %cst_433 : f32 to vector<1x64xf32>
    %1828 = arith.cmpf ogt, %1826, %1827 : vector<1x64xf32>
    %1829 = arith.extui %1828 : vector<1x64xi1> to vector<1x64xi32>
    %1830 = arith.sitofp %1829 : vector<1x64xi32> to vector<1x64xf32>
    %c3_i32_434 = arith.constant 3 : i32
    %1831 = vector.broadcast %c3_i32_434 : i32 to vector<8x64xi32>
    %1832 = arith.cmpi eq, %7, %1831 : vector<8x64xi32>
    %1833 = vector.shape_cast %1830 : vector<1x64xf32> to vector<1x64xf32>
    %1834 = vector.broadcast %1833 : vector<1x64xf32> to vector<8x64xf32>
    %1835 = arith.select %1832, %1834, %1822 : vector<8x64xi1>, vector<8x64xf32>
    %cst_435 = arith.constant 0.949999988 : f32
    %1836 = vector.broadcast %cst_435 : f32 to vector<1x64xf32>
    %1837 = arith.mulf %1836, %1826 : vector<1x64xf32>
    %1838 = arith.addf %1837, %4 : vector<1x64xf32>
    %1839 = arith.subf %1838, %1830 : vector<1x64xf32>
    %cst_436 = arith.constant 1.000000e+00 : f32
    %1840 = vector.broadcast %cst_436 : f32 to vector<1x64xf32>
    %1841 = arith.cmpf ogt, %1839, %1840 : vector<1x64xf32>
    %1842 = arith.extui %1841 : vector<1x64xi1> to vector<1x64xi32>
    %1843 = arith.sitofp %1842 : vector<1x64xi32> to vector<1x64xf32>
    %c4_i32_437 = arith.constant 4 : i32
    %1844 = vector.broadcast %c4_i32_437 : i32 to vector<8x64xi32>
    %1845 = arith.cmpi eq, %7, %1844 : vector<8x64xi32>
    %1846 = vector.shape_cast %1843 : vector<1x64xf32> to vector<1x64xf32>
    %1847 = vector.broadcast %1846 : vector<1x64xf32> to vector<8x64xf32>
    %1848 = arith.select %1845, %1847, %1835 : vector<8x64xi1>, vector<8x64xf32>
    %cst_438 = arith.constant 0.949999988 : f32
    %1849 = vector.broadcast %cst_438 : f32 to vector<1x64xf32>
    %1850 = arith.mulf %1849, %1839 : vector<1x64xf32>
    %1851 = arith.addf %1850, %4 : vector<1x64xf32>
    %1852 = arith.subf %1851, %1843 : vector<1x64xf32>
    %cst_439 = arith.constant 1.000000e+00 : f32
    %1853 = vector.broadcast %cst_439 : f32 to vector<1x64xf32>
    %1854 = arith.cmpf ogt, %1852, %1853 : vector<1x64xf32>
    %1855 = arith.extui %1854 : vector<1x64xi1> to vector<1x64xi32>
    %1856 = arith.sitofp %1855 : vector<1x64xi32> to vector<1x64xf32>
    %c5_i32_440 = arith.constant 5 : i32
    %1857 = vector.broadcast %c5_i32_440 : i32 to vector<8x64xi32>
    %1858 = arith.cmpi eq, %7, %1857 : vector<8x64xi32>
    %1859 = vector.shape_cast %1856 : vector<1x64xf32> to vector<1x64xf32>
    %1860 = vector.broadcast %1859 : vector<1x64xf32> to vector<8x64xf32>
    %1861 = arith.select %1858, %1860, %1848 : vector<8x64xi1>, vector<8x64xf32>
    %cst_441 = arith.constant 0.949999988 : f32
    %1862 = vector.broadcast %cst_441 : f32 to vector<1x64xf32>
    %1863 = arith.mulf %1862, %1852 : vector<1x64xf32>
    %1864 = arith.addf %1863, %4 : vector<1x64xf32>
    %1865 = arith.subf %1864, %1856 : vector<1x64xf32>
    %cst_442 = arith.constant 1.000000e+00 : f32
    %1866 = vector.broadcast %cst_442 : f32 to vector<1x64xf32>
    %1867 = arith.cmpf ogt, %1865, %1866 : vector<1x64xf32>
    %1868 = arith.extui %1867 : vector<1x64xi1> to vector<1x64xi32>
    %1869 = arith.sitofp %1868 : vector<1x64xi32> to vector<1x64xf32>
    %c6_i32_443 = arith.constant 6 : i32
    %1870 = vector.broadcast %c6_i32_443 : i32 to vector<8x64xi32>
    %1871 = arith.cmpi eq, %7, %1870 : vector<8x64xi32>
    %1872 = vector.shape_cast %1869 : vector<1x64xf32> to vector<1x64xf32>
    %1873 = vector.broadcast %1872 : vector<1x64xf32> to vector<8x64xf32>
    %1874 = arith.select %1871, %1873, %1861 : vector<8x64xi1>, vector<8x64xf32>
    %cst_444 = arith.constant 0.949999988 : f32
    %1875 = vector.broadcast %cst_444 : f32 to vector<1x64xf32>
    %1876 = arith.mulf %1875, %1865 : vector<1x64xf32>
    %1877 = arith.addf %1876, %4 : vector<1x64xf32>
    %1878 = arith.subf %1877, %1869 : vector<1x64xf32>
    %cst_445 = arith.constant 1.000000e+00 : f32
    %1879 = vector.broadcast %cst_445 : f32 to vector<1x64xf32>
    %1880 = arith.cmpf ogt, %1878, %1879 : vector<1x64xf32>
    %1881 = arith.extui %1880 : vector<1x64xi1> to vector<1x64xi32>
    %1882 = arith.sitofp %1881 : vector<1x64xi32> to vector<1x64xf32>
    %c7_i32_446 = arith.constant 7 : i32
    %1883 = vector.broadcast %c7_i32_446 : i32 to vector<8x64xi32>
    %1884 = arith.cmpi eq, %7, %1883 : vector<8x64xi32>
    %1885 = vector.shape_cast %1882 : vector<1x64xf32> to vector<1x64xf32>
    %1886 = vector.broadcast %1885 : vector<1x64xf32> to vector<8x64xf32>
    %1887 = arith.select %1884, %1886, %1874 : vector<8x64xi1>, vector<8x64xf32>
    %cst_447 = arith.constant 0.000000e+00 : f32
    %1888 = vector.broadcast %cst_447 : f32 to vector<8x16xf32>
    %1889 = vector.extract_strided_slice %1560 {offsets = [0, 0], sizes = [1, 16], strides = [1, 1]} : vector<8x16xf32> to vector<1x16xf32>
    %cst_448 = arith.constant 0.949999988 : f32
    %1890 = vector.broadcast %cst_448 : f32 to vector<1x16xf32>
    %1891 = arith.mulf %1890, %1769 : vector<1x16xf32>
    %1892 = arith.addf %1891, %1889 : vector<1x16xf32>
    %1893 = arith.subf %1892, %1773 : vector<1x16xf32>
    %cst_449 = arith.constant 1.000000e+00 : f32
    %1894 = vector.broadcast %cst_449 : f32 to vector<1x16xf32>
    %1895 = arith.cmpf ogt, %1893, %1894 : vector<1x16xf32>
    %1896 = arith.extui %1895 : vector<1x16xi1> to vector<1x16xi32>
    %1897 = arith.sitofp %1896 : vector<1x16xi32> to vector<1x16xf32>
    %c0_i32_450 = arith.constant 0 : i32
    %1898 = vector.broadcast %c0_i32_450 : i32 to vector<8x16xi32>
    %1899 = arith.cmpi eq, %8, %1898 : vector<8x16xi32>
    %1900 = vector.shape_cast %1897 : vector<1x16xf32> to vector<1x16xf32>
    %1901 = vector.broadcast %1900 : vector<1x16xf32> to vector<8x16xf32>
    %1902 = arith.select %1899, %1901, %1888 : vector<8x16xi1>, vector<8x16xf32>
    %1903 = vector.extract_strided_slice %1560 {offsets = [1, 0], sizes = [1, 16], strides = [1, 1]} : vector<8x16xf32> to vector<1x16xf32>
    %cst_451 = arith.constant 0.949999988 : f32
    %1904 = vector.broadcast %cst_451 : f32 to vector<1x16xf32>
    %1905 = arith.mulf %1904, %1893 : vector<1x16xf32>
    %1906 = arith.addf %1905, %1903 : vector<1x16xf32>
    %1907 = arith.subf %1906, %1897 : vector<1x16xf32>
    %cst_452 = arith.constant 1.000000e+00 : f32
    %1908 = vector.broadcast %cst_452 : f32 to vector<1x16xf32>
    %1909 = arith.cmpf ogt, %1907, %1908 : vector<1x16xf32>
    %1910 = arith.extui %1909 : vector<1x16xi1> to vector<1x16xi32>
    %1911 = arith.sitofp %1910 : vector<1x16xi32> to vector<1x16xf32>
    %c1_i32_453 = arith.constant 1 : i32
    %1912 = vector.broadcast %c1_i32_453 : i32 to vector<8x16xi32>
    %1913 = arith.cmpi eq, %8, %1912 : vector<8x16xi32>
    %1914 = vector.shape_cast %1911 : vector<1x16xf32> to vector<1x16xf32>
    %1915 = vector.broadcast %1914 : vector<1x16xf32> to vector<8x16xf32>
    %1916 = arith.select %1913, %1915, %1902 : vector<8x16xi1>, vector<8x16xf32>
    %1917 = vector.extract_strided_slice %1560 {offsets = [2, 0], sizes = [1, 16], strides = [1, 1]} : vector<8x16xf32> to vector<1x16xf32>
    %cst_454 = arith.constant 0.949999988 : f32
    %1918 = vector.broadcast %cst_454 : f32 to vector<1x16xf32>
    %1919 = arith.mulf %1918, %1907 : vector<1x16xf32>
    %1920 = arith.addf %1919, %1917 : vector<1x16xf32>
    %1921 = arith.subf %1920, %1911 : vector<1x16xf32>
    %cst_455 = arith.constant 1.000000e+00 : f32
    %1922 = vector.broadcast %cst_455 : f32 to vector<1x16xf32>
    %1923 = arith.cmpf ogt, %1921, %1922 : vector<1x16xf32>
    %1924 = arith.extui %1923 : vector<1x16xi1> to vector<1x16xi32>
    %1925 = arith.sitofp %1924 : vector<1x16xi32> to vector<1x16xf32>
    %c2_i32_456 = arith.constant 2 : i32
    %1926 = vector.broadcast %c2_i32_456 : i32 to vector<8x16xi32>
    %1927 = arith.cmpi eq, %8, %1926 : vector<8x16xi32>
    %1928 = vector.shape_cast %1925 : vector<1x16xf32> to vector<1x16xf32>
    %1929 = vector.broadcast %1928 : vector<1x16xf32> to vector<8x16xf32>
    %1930 = arith.select %1927, %1929, %1916 : vector<8x16xi1>, vector<8x16xf32>
    %1931 = vector.extract_strided_slice %1560 {offsets = [3, 0], sizes = [1, 16], strides = [1, 1]} : vector<8x16xf32> to vector<1x16xf32>
    %cst_457 = arith.constant 0.949999988 : f32
    %1932 = vector.broadcast %cst_457 : f32 to vector<1x16xf32>
    %1933 = arith.mulf %1932, %1921 : vector<1x16xf32>
    %1934 = arith.addf %1933, %1931 : vector<1x16xf32>
    %1935 = arith.subf %1934, %1925 : vector<1x16xf32>
    %cst_458 = arith.constant 1.000000e+00 : f32
    %1936 = vector.broadcast %cst_458 : f32 to vector<1x16xf32>
    %1937 = arith.cmpf ogt, %1935, %1936 : vector<1x16xf32>
    %1938 = arith.extui %1937 : vector<1x16xi1> to vector<1x16xi32>
    %1939 = arith.sitofp %1938 : vector<1x16xi32> to vector<1x16xf32>
    %c3_i32_459 = arith.constant 3 : i32
    %1940 = vector.broadcast %c3_i32_459 : i32 to vector<8x16xi32>
    %1941 = arith.cmpi eq, %8, %1940 : vector<8x16xi32>
    %1942 = vector.shape_cast %1939 : vector<1x16xf32> to vector<1x16xf32>
    %1943 = vector.broadcast %1942 : vector<1x16xf32> to vector<8x16xf32>
    %1944 = arith.select %1941, %1943, %1930 : vector<8x16xi1>, vector<8x16xf32>
    %1945 = vector.extract_strided_slice %1560 {offsets = [4, 0], sizes = [1, 16], strides = [1, 1]} : vector<8x16xf32> to vector<1x16xf32>
    %cst_460 = arith.constant 0.949999988 : f32
    %1946 = vector.broadcast %cst_460 : f32 to vector<1x16xf32>
    %1947 = arith.mulf %1946, %1935 : vector<1x16xf32>
    %1948 = arith.addf %1947, %1945 : vector<1x16xf32>
    %1949 = arith.subf %1948, %1939 : vector<1x16xf32>
    %cst_461 = arith.constant 1.000000e+00 : f32
    %1950 = vector.broadcast %cst_461 : f32 to vector<1x16xf32>
    %1951 = arith.cmpf ogt, %1949, %1950 : vector<1x16xf32>
    %1952 = arith.extui %1951 : vector<1x16xi1> to vector<1x16xi32>
    %1953 = arith.sitofp %1952 : vector<1x16xi32> to vector<1x16xf32>
    %c4_i32_462 = arith.constant 4 : i32
    %1954 = vector.broadcast %c4_i32_462 : i32 to vector<8x16xi32>
    %1955 = arith.cmpi eq, %8, %1954 : vector<8x16xi32>
    %1956 = vector.shape_cast %1953 : vector<1x16xf32> to vector<1x16xf32>
    %1957 = vector.broadcast %1956 : vector<1x16xf32> to vector<8x16xf32>
    %1958 = arith.select %1955, %1957, %1944 : vector<8x16xi1>, vector<8x16xf32>
    %1959 = vector.extract_strided_slice %1560 {offsets = [5, 0], sizes = [1, 16], strides = [1, 1]} : vector<8x16xf32> to vector<1x16xf32>
    %cst_463 = arith.constant 0.949999988 : f32
    %1960 = vector.broadcast %cst_463 : f32 to vector<1x16xf32>
    %1961 = arith.mulf %1960, %1949 : vector<1x16xf32>
    %1962 = arith.addf %1961, %1959 : vector<1x16xf32>
    %1963 = arith.subf %1962, %1953 : vector<1x16xf32>
    %cst_464 = arith.constant 1.000000e+00 : f32
    %1964 = vector.broadcast %cst_464 : f32 to vector<1x16xf32>
    %1965 = arith.cmpf ogt, %1963, %1964 : vector<1x16xf32>
    %1966 = arith.extui %1965 : vector<1x16xi1> to vector<1x16xi32>
    %1967 = arith.sitofp %1966 : vector<1x16xi32> to vector<1x16xf32>
    %c5_i32_465 = arith.constant 5 : i32
    %1968 = vector.broadcast %c5_i32_465 : i32 to vector<8x16xi32>
    %1969 = arith.cmpi eq, %8, %1968 : vector<8x16xi32>
    %1970 = vector.shape_cast %1967 : vector<1x16xf32> to vector<1x16xf32>
    %1971 = vector.broadcast %1970 : vector<1x16xf32> to vector<8x16xf32>
    %1972 = arith.select %1969, %1971, %1958 : vector<8x16xi1>, vector<8x16xf32>
    %1973 = vector.extract_strided_slice %1560 {offsets = [6, 0], sizes = [1, 16], strides = [1, 1]} : vector<8x16xf32> to vector<1x16xf32>
    %cst_466 = arith.constant 0.949999988 : f32
    %1974 = vector.broadcast %cst_466 : f32 to vector<1x16xf32>
    %1975 = arith.mulf %1974, %1963 : vector<1x16xf32>
    %1976 = arith.addf %1975, %1973 : vector<1x16xf32>
    %1977 = arith.subf %1976, %1967 : vector<1x16xf32>
    %cst_467 = arith.constant 1.000000e+00 : f32
    %1978 = vector.broadcast %cst_467 : f32 to vector<1x16xf32>
    %1979 = arith.cmpf ogt, %1977, %1978 : vector<1x16xf32>
    %1980 = arith.extui %1979 : vector<1x16xi1> to vector<1x16xi32>
    %1981 = arith.sitofp %1980 : vector<1x16xi32> to vector<1x16xf32>
    %c6_i32_468 = arith.constant 6 : i32
    %1982 = vector.broadcast %c6_i32_468 : i32 to vector<8x16xi32>
    %1983 = arith.cmpi eq, %8, %1982 : vector<8x16xi32>
    %1984 = vector.shape_cast %1981 : vector<1x16xf32> to vector<1x16xf32>
    %1985 = vector.broadcast %1984 : vector<1x16xf32> to vector<8x16xf32>
    %1986 = arith.select %1983, %1985, %1972 : vector<8x16xi1>, vector<8x16xf32>
    %1987 = vector.extract_strided_slice %1560 {offsets = [7, 0], sizes = [1, 16], strides = [1, 1]} : vector<8x16xf32> to vector<1x16xf32>
    %cst_469 = arith.constant 0.949999988 : f32
    %1988 = vector.broadcast %cst_469 : f32 to vector<1x16xf32>
    %1989 = arith.mulf %1988, %1977 : vector<1x16xf32>
    %1990 = arith.addf %1989, %1987 : vector<1x16xf32>
    %1991 = arith.subf %1990, %1981 : vector<1x16xf32>
    %cst_470 = arith.constant 1.000000e+00 : f32
    %1992 = vector.broadcast %cst_470 : f32 to vector<1x16xf32>
    %1993 = arith.cmpf ogt, %1991, %1992 : vector<1x16xf32>
    %1994 = arith.extui %1993 : vector<1x16xi1> to vector<1x16xi32>
    %1995 = arith.sitofp %1994 : vector<1x16xi32> to vector<1x16xf32>
    %c7_i32_471 = arith.constant 7 : i32
    %1996 = vector.broadcast %c7_i32_471 : i32 to vector<8x16xi32>
    %1997 = arith.cmpi eq, %8, %1996 : vector<8x16xi32>
    %1998 = vector.shape_cast %1995 : vector<1x16xf32> to vector<1x16xf32>
    %1999 = vector.broadcast %1998 : vector<1x16xf32> to vector<8x16xf32>
    %2000 = arith.select %1997, %1999, %1986 : vector<8x16xi1>, vector<8x16xf32>
    %c56 = arith.constant 56 : index
    %c0_472 = arith.constant 0 : index
    %2001 = vector.load %arg6[%c56, %c0_472] : memref<100x16xf32, #tpu.memory_space<vmem>>, vector<8x16xf32>
    tpu.vector_store %arg6[%c56, %c0_472], %2000 {strides = array<i32>} : memref<100x16xf32, #tpu.memory_space<vmem>>, vector<8x16xf32>,
    %cst_473 = arith.constant dense<0.000000e+00> : vector<8x16xf32>
    %2002 = tpu.matmul %1887, %5, %cst_473 {dimension_numbers = #tpu.dot_dimension_numbers<[1], [0], [0], [1], [0, 0, 1, 1], [], []>} : vector<8x64xf32>, vector<64x16xf32>, vector<8x16xf32> -> vector<8x16xf32>
    %2003 = vector.broadcast %6 : vector<1x16xf32> to vector<8x16xf32>
    %2004 = arith.addf %2002, %2003 : vector<8x16xf32>
    %cst_474 = arith.constant 0.000000e+00 : f32
    %2005 = vector.broadcast %cst_474 : f32 to vector<8x64xf32>
    %cst_475 = arith.constant 0.949999988 : f32
    %2006 = vector.broadcast %cst_475 : f32 to vector<1x64xf32>
    %2007 = arith.mulf %2006, %1878 : vector<1x64xf32>
    %2008 = arith.addf %2007, %4 : vector<1x64xf32>
    %2009 = arith.subf %2008, %1882 : vector<1x64xf32>
    %cst_476 = arith.constant 1.000000e+00 : f32
    %2010 = vector.broadcast %cst_476 : f32 to vector<1x64xf32>
    %2011 = arith.cmpf ogt, %2009, %2010 : vector<1x64xf32>
    %2012 = arith.extui %2011 : vector<1x64xi1> to vector<1x64xi32>
    %2013 = arith.sitofp %2012 : vector<1x64xi32> to vector<1x64xf32>
    %c0_i32_477 = arith.constant 0 : i32
    %2014 = vector.broadcast %c0_i32_477 : i32 to vector<8x64xi32>
    %2015 = arith.cmpi eq, %7, %2014 : vector<8x64xi32>
    %2016 = vector.shape_cast %2013 : vector<1x64xf32> to vector<1x64xf32>
    %2017 = vector.broadcast %2016 : vector<1x64xf32> to vector<8x64xf32>
    %2018 = arith.select %2015, %2017, %2005 : vector<8x64xi1>, vector<8x64xf32>
    %cst_478 = arith.constant 0.949999988 : f32
    %2019 = vector.broadcast %cst_478 : f32 to vector<1x64xf32>
    %2020 = arith.mulf %2019, %2009 : vector<1x64xf32>
    %2021 = arith.addf %2020, %4 : vector<1x64xf32>
    %2022 = arith.subf %2021, %2013 : vector<1x64xf32>
    %cst_479 = arith.constant 1.000000e+00 : f32
    %2023 = vector.broadcast %cst_479 : f32 to vector<1x64xf32>
    %2024 = arith.cmpf ogt, %2022, %2023 : vector<1x64xf32>
    %2025 = arith.extui %2024 : vector<1x64xi1> to vector<1x64xi32>
    %2026 = arith.sitofp %2025 : vector<1x64xi32> to vector<1x64xf32>
    %c1_i32_480 = arith.constant 1 : i32
    %2027 = vector.broadcast %c1_i32_480 : i32 to vector<8x64xi32>
    %2028 = arith.cmpi eq, %7, %2027 : vector<8x64xi32>
    %2029 = vector.shape_cast %2026 : vector<1x64xf32> to vector<1x64xf32>
    %2030 = vector.broadcast %2029 : vector<1x64xf32> to vector<8x64xf32>
    %2031 = arith.select %2028, %2030, %2018 : vector<8x64xi1>, vector<8x64xf32>
    %cst_481 = arith.constant 0.949999988 : f32
    %2032 = vector.broadcast %cst_481 : f32 to vector<1x64xf32>
    %2033 = arith.mulf %2032, %2022 : vector<1x64xf32>
    %2034 = arith.addf %2033, %4 : vector<1x64xf32>
    %2035 = arith.subf %2034, %2026 : vector<1x64xf32>
    %cst_482 = arith.constant 1.000000e+00 : f32
    %2036 = vector.broadcast %cst_482 : f32 to vector<1x64xf32>
    %2037 = arith.cmpf ogt, %2035, %2036 : vector<1x64xf32>
    %2038 = arith.extui %2037 : vector<1x64xi1> to vector<1x64xi32>
    %2039 = arith.sitofp %2038 : vector<1x64xi32> to vector<1x64xf32>
    %c2_i32_483 = arith.constant 2 : i32
    %2040 = vector.broadcast %c2_i32_483 : i32 to vector<8x64xi32>
    %2041 = arith.cmpi eq, %7, %2040 : vector<8x64xi32>
    %2042 = vector.shape_cast %2039 : vector<1x64xf32> to vector<1x64xf32>
    %2043 = vector.broadcast %2042 : vector<1x64xf32> to vector<8x64xf32>
    %2044 = arith.select %2041, %2043, %2031 : vector<8x64xi1>, vector<8x64xf32>
    %cst_484 = arith.constant 0.949999988 : f32
    %2045 = vector.broadcast %cst_484 : f32 to vector<1x64xf32>
    %2046 = arith.mulf %2045, %2035 : vector<1x64xf32>
    %2047 = arith.addf %2046, %4 : vector<1x64xf32>
    %2048 = arith.subf %2047, %2039 : vector<1x64xf32>
    %cst_485 = arith.constant 1.000000e+00 : f32
    %2049 = vector.broadcast %cst_485 : f32 to vector<1x64xf32>
    %2050 = arith.cmpf ogt, %2048, %2049 : vector<1x64xf32>
    %2051 = arith.extui %2050 : vector<1x64xi1> to vector<1x64xi32>
    %2052 = arith.sitofp %2051 : vector<1x64xi32> to vector<1x64xf32>
    %c3_i32_486 = arith.constant 3 : i32
    %2053 = vector.broadcast %c3_i32_486 : i32 to vector<8x64xi32>
    %2054 = arith.cmpi eq, %7, %2053 : vector<8x64xi32>
    %2055 = vector.shape_cast %2052 : vector<1x64xf32> to vector<1x64xf32>
    %2056 = vector.broadcast %2055 : vector<1x64xf32> to vector<8x64xf32>
    %2057 = arith.select %2054, %2056, %2044 : vector<8x64xi1>, vector<8x64xf32>
    %cst_487 = arith.constant 0.949999988 : f32
    %2058 = vector.broadcast %cst_487 : f32 to vector<1x64xf32>
    %2059 = arith.mulf %2058, %2048 : vector<1x64xf32>
    %2060 = arith.addf %2059, %4 : vector<1x64xf32>
    %2061 = arith.subf %2060, %2052 : vector<1x64xf32>
    %cst_488 = arith.constant 1.000000e+00 : f32
    %2062 = vector.broadcast %cst_488 : f32 to vector<1x64xf32>
    %2063 = arith.cmpf ogt, %2061, %2062 : vector<1x64xf32>
    %2064 = arith.extui %2063 : vector<1x64xi1> to vector<1x64xi32>
    %2065 = arith.sitofp %2064 : vector<1x64xi32> to vector<1x64xf32>
    %c4_i32_489 = arith.constant 4 : i32
    %2066 = vector.broadcast %c4_i32_489 : i32 to vector<8x64xi32>
    %2067 = arith.cmpi eq, %7, %2066 : vector<8x64xi32>
    %2068 = vector.shape_cast %2065 : vector<1x64xf32> to vector<1x64xf32>
    %2069 = vector.broadcast %2068 : vector<1x64xf32> to vector<8x64xf32>
    %2070 = arith.select %2067, %2069, %2057 : vector<8x64xi1>, vector<8x64xf32>
    %cst_490 = arith.constant 0.949999988 : f32
    %2071 = vector.broadcast %cst_490 : f32 to vector<1x64xf32>
    %2072 = arith.mulf %2071, %2061 : vector<1x64xf32>
    %2073 = arith.addf %2072, %4 : vector<1x64xf32>
    %2074 = arith.subf %2073, %2065 : vector<1x64xf32>
    %cst_491 = arith.constant 1.000000e+00 : f32
    %2075 = vector.broadcast %cst_491 : f32 to vector<1x64xf32>
    %2076 = arith.cmpf ogt, %2074, %2075 : vector<1x64xf32>
    %2077 = arith.extui %2076 : vector<1x64xi1> to vector<1x64xi32>
    %2078 = arith.sitofp %2077 : vector<1x64xi32> to vector<1x64xf32>
    %c5_i32_492 = arith.constant 5 : i32
    %2079 = vector.broadcast %c5_i32_492 : i32 to vector<8x64xi32>
    %2080 = arith.cmpi eq, %7, %2079 : vector<8x64xi32>
    %2081 = vector.shape_cast %2078 : vector<1x64xf32> to vector<1x64xf32>
    %2082 = vector.broadcast %2081 : vector<1x64xf32> to vector<8x64xf32>
    %2083 = arith.select %2080, %2082, %2070 : vector<8x64xi1>, vector<8x64xf32>
    %cst_493 = arith.constant 0.949999988 : f32
    %2084 = vector.broadcast %cst_493 : f32 to vector<1x64xf32>
    %2085 = arith.mulf %2084, %2074 : vector<1x64xf32>
    %2086 = arith.addf %2085, %4 : vector<1x64xf32>
    %2087 = arith.subf %2086, %2078 : vector<1x64xf32>
    %cst_494 = arith.constant 1.000000e+00 : f32
    %2088 = vector.broadcast %cst_494 : f32 to vector<1x64xf32>
    %2089 = arith.cmpf ogt, %2087, %2088 : vector<1x64xf32>
    %2090 = arith.extui %2089 : vector<1x64xi1> to vector<1x64xi32>
    %2091 = arith.sitofp %2090 : vector<1x64xi32> to vector<1x64xf32>
    %c6_i32_495 = arith.constant 6 : i32
    %2092 = vector.broadcast %c6_i32_495 : i32 to vector<8x64xi32>
    %2093 = arith.cmpi eq, %7, %2092 : vector<8x64xi32>
    %2094 = vector.shape_cast %2091 : vector<1x64xf32> to vector<1x64xf32>
    %2095 = vector.broadcast %2094 : vector<1x64xf32> to vector<8x64xf32>
    %2096 = arith.select %2093, %2095, %2083 : vector<8x64xi1>, vector<8x64xf32>
    %cst_496 = arith.constant 0.949999988 : f32
    %2097 = vector.broadcast %cst_496 : f32 to vector<1x64xf32>
    %2098 = arith.mulf %2097, %2087 : vector<1x64xf32>
    %2099 = arith.addf %2098, %4 : vector<1x64xf32>
    %2100 = arith.subf %2099, %2091 : vector<1x64xf32>
    %cst_497 = arith.constant 1.000000e+00 : f32
    %2101 = vector.broadcast %cst_497 : f32 to vector<1x64xf32>
    %2102 = arith.cmpf ogt, %2100, %2101 : vector<1x64xf32>
    %2103 = arith.extui %2102 : vector<1x64xi1> to vector<1x64xi32>
    %2104 = arith.sitofp %2103 : vector<1x64xi32> to vector<1x64xf32>
    %c7_i32_498 = arith.constant 7 : i32
    %2105 = vector.broadcast %c7_i32_498 : i32 to vector<8x64xi32>
    %2106 = arith.cmpi eq, %7, %2105 : vector<8x64xi32>
    %2107 = vector.shape_cast %2104 : vector<1x64xf32> to vector<1x64xf32>
    %2108 = vector.broadcast %2107 : vector<1x64xf32> to vector<8x64xf32>
    %2109 = arith.select %2106, %2108, %2096 : vector<8x64xi1>, vector<8x64xf32>
    %cst_499 = arith.constant 0.000000e+00 : f32
    %2110 = vector.broadcast %cst_499 : f32 to vector<8x16xf32>
    %2111 = vector.extract_strided_slice %1782 {offsets = [0, 0], sizes = [1, 16], strides = [1, 1]} : vector<8x16xf32> to vector<1x16xf32>
    %cst_500 = arith.constant 0.949999988 : f32
    %2112 = vector.broadcast %cst_500 : f32 to vector<1x16xf32>
    %2113 = arith.mulf %2112, %1991 : vector<1x16xf32>
    %2114 = arith.addf %2113, %2111 : vector<1x16xf32>
    %2115 = arith.subf %2114, %1995 : vector<1x16xf32>
    %cst_501 = arith.constant 1.000000e+00 : f32
    %2116 = vector.broadcast %cst_501 : f32 to vector<1x16xf32>
    %2117 = arith.cmpf ogt, %2115, %2116 : vector<1x16xf32>
    %2118 = arith.extui %2117 : vector<1x16xi1> to vector<1x16xi32>
    %2119 = arith.sitofp %2118 : vector<1x16xi32> to vector<1x16xf32>
    %c0_i32_502 = arith.constant 0 : i32
    %2120 = vector.broadcast %c0_i32_502 : i32 to vector<8x16xi32>
    %2121 = arith.cmpi eq, %8, %2120 : vector<8x16xi32>
    %2122 = vector.shape_cast %2119 : vector<1x16xf32> to vector<1x16xf32>
    %2123 = vector.broadcast %2122 : vector<1x16xf32> to vector<8x16xf32>
    %2124 = arith.select %2121, %2123, %2110 : vector<8x16xi1>, vector<8x16xf32>
    %2125 = vector.extract_strided_slice %1782 {offsets = [1, 0], sizes = [1, 16], strides = [1, 1]} : vector<8x16xf32> to vector<1x16xf32>
    %cst_503 = arith.constant 0.949999988 : f32
    %2126 = vector.broadcast %cst_503 : f32 to vector<1x16xf32>
    %2127 = arith.mulf %2126, %2115 : vector<1x16xf32>
    %2128 = arith.addf %2127, %2125 : vector<1x16xf32>
    %2129 = arith.subf %2128, %2119 : vector<1x16xf32>
    %cst_504 = arith.constant 1.000000e+00 : f32
    %2130 = vector.broadcast %cst_504 : f32 to vector<1x16xf32>
    %2131 = arith.cmpf ogt, %2129, %2130 : vector<1x16xf32>
    %2132 = arith.extui %2131 : vector<1x16xi1> to vector<1x16xi32>
    %2133 = arith.sitofp %2132 : vector<1x16xi32> to vector<1x16xf32>
    %c1_i32_505 = arith.constant 1 : i32
    %2134 = vector.broadcast %c1_i32_505 : i32 to vector<8x16xi32>
    %2135 = arith.cmpi eq, %8, %2134 : vector<8x16xi32>
    %2136 = vector.shape_cast %2133 : vector<1x16xf32> to vector<1x16xf32>
    %2137 = vector.broadcast %2136 : vector<1x16xf32> to vector<8x16xf32>
    %2138 = arith.select %2135, %2137, %2124 : vector<8x16xi1>, vector<8x16xf32>
    %2139 = vector.extract_strided_slice %1782 {offsets = [2, 0], sizes = [1, 16], strides = [1, 1]} : vector<8x16xf32> to vector<1x16xf32>
    %cst_506 = arith.constant 0.949999988 : f32
    %2140 = vector.broadcast %cst_506 : f32 to vector<1x16xf32>
    %2141 = arith.mulf %2140, %2129 : vector<1x16xf32>
    %2142 = arith.addf %2141, %2139 : vector<1x16xf32>
    %2143 = arith.subf %2142, %2133 : vector<1x16xf32>
    %cst_507 = arith.constant 1.000000e+00 : f32
    %2144 = vector.broadcast %cst_507 : f32 to vector<1x16xf32>
    %2145 = arith.cmpf ogt, %2143, %2144 : vector<1x16xf32>
    %2146 = arith.extui %2145 : vector<1x16xi1> to vector<1x16xi32>
    %2147 = arith.sitofp %2146 : vector<1x16xi32> to vector<1x16xf32>
    %c2_i32_508 = arith.constant 2 : i32
    %2148 = vector.broadcast %c2_i32_508 : i32 to vector<8x16xi32>
    %2149 = arith.cmpi eq, %8, %2148 : vector<8x16xi32>
    %2150 = vector.shape_cast %2147 : vector<1x16xf32> to vector<1x16xf32>
    %2151 = vector.broadcast %2150 : vector<1x16xf32> to vector<8x16xf32>
    %2152 = arith.select %2149, %2151, %2138 : vector<8x16xi1>, vector<8x16xf32>
    %2153 = vector.extract_strided_slice %1782 {offsets = [3, 0], sizes = [1, 16], strides = [1, 1]} : vector<8x16xf32> to vector<1x16xf32>
    %cst_509 = arith.constant 0.949999988 : f32
    %2154 = vector.broadcast %cst_509 : f32 to vector<1x16xf32>
    %2155 = arith.mulf %2154, %2143 : vector<1x16xf32>
    %2156 = arith.addf %2155, %2153 : vector<1x16xf32>
    %2157 = arith.subf %2156, %2147 : vector<1x16xf32>
    %cst_510 = arith.constant 1.000000e+00 : f32
    %2158 = vector.broadcast %cst_510 : f32 to vector<1x16xf32>
    %2159 = arith.cmpf ogt, %2157, %2158 : vector<1x16xf32>
    %2160 = arith.extui %2159 : vector<1x16xi1> to vector<1x16xi32>
    %2161 = arith.sitofp %2160 : vector<1x16xi32> to vector<1x16xf32>
    %c3_i32_511 = arith.constant 3 : i32
    %2162 = vector.broadcast %c3_i32_511 : i32 to vector<8x16xi32>
    %2163 = arith.cmpi eq, %8, %2162 : vector<8x16xi32>
    %2164 = vector.shape_cast %2161 : vector<1x16xf32> to vector<1x16xf32>
    %2165 = vector.broadcast %2164 : vector<1x16xf32> to vector<8x16xf32>
    %2166 = arith.select %2163, %2165, %2152 : vector<8x16xi1>, vector<8x16xf32>
    %2167 = vector.extract_strided_slice %1782 {offsets = [4, 0], sizes = [1, 16], strides = [1, 1]} : vector<8x16xf32> to vector<1x16xf32>
    %cst_512 = arith.constant 0.949999988 : f32
    %2168 = vector.broadcast %cst_512 : f32 to vector<1x16xf32>
    %2169 = arith.mulf %2168, %2157 : vector<1x16xf32>
    %2170 = arith.addf %2169, %2167 : vector<1x16xf32>
    %2171 = arith.subf %2170, %2161 : vector<1x16xf32>
    %cst_513 = arith.constant 1.000000e+00 : f32
    %2172 = vector.broadcast %cst_513 : f32 to vector<1x16xf32>
    %2173 = arith.cmpf ogt, %2171, %2172 : vector<1x16xf32>
    %2174 = arith.extui %2173 : vector<1x16xi1> to vector<1x16xi32>
    %2175 = arith.sitofp %2174 : vector<1x16xi32> to vector<1x16xf32>
    %c4_i32_514 = arith.constant 4 : i32
    %2176 = vector.broadcast %c4_i32_514 : i32 to vector<8x16xi32>
    %2177 = arith.cmpi eq, %8, %2176 : vector<8x16xi32>
    %2178 = vector.shape_cast %2175 : vector<1x16xf32> to vector<1x16xf32>
    %2179 = vector.broadcast %2178 : vector<1x16xf32> to vector<8x16xf32>
    %2180 = arith.select %2177, %2179, %2166 : vector<8x16xi1>, vector<8x16xf32>
    %2181 = vector.extract_strided_slice %1782 {offsets = [5, 0], sizes = [1, 16], strides = [1, 1]} : vector<8x16xf32> to vector<1x16xf32>
    %cst_515 = arith.constant 0.949999988 : f32
    %2182 = vector.broadcast %cst_515 : f32 to vector<1x16xf32>
    %2183 = arith.mulf %2182, %2171 : vector<1x16xf32>
    %2184 = arith.addf %2183, %2181 : vector<1x16xf32>
    %2185 = arith.subf %2184, %2175 : vector<1x16xf32>
    %cst_516 = arith.constant 1.000000e+00 : f32
    %2186 = vector.broadcast %cst_516 : f32 to vector<1x16xf32>
    %2187 = arith.cmpf ogt, %2185, %2186 : vector<1x16xf32>
    %2188 = arith.extui %2187 : vector<1x16xi1> to vector<1x16xi32>
    %2189 = arith.sitofp %2188 : vector<1x16xi32> to vector<1x16xf32>
    %c5_i32_517 = arith.constant 5 : i32
    %2190 = vector.broadcast %c5_i32_517 : i32 to vector<8x16xi32>
    %2191 = arith.cmpi eq, %8, %2190 : vector<8x16xi32>
    %2192 = vector.shape_cast %2189 : vector<1x16xf32> to vector<1x16xf32>
    %2193 = vector.broadcast %2192 : vector<1x16xf32> to vector<8x16xf32>
    %2194 = arith.select %2191, %2193, %2180 : vector<8x16xi1>, vector<8x16xf32>
    %2195 = vector.extract_strided_slice %1782 {offsets = [6, 0], sizes = [1, 16], strides = [1, 1]} : vector<8x16xf32> to vector<1x16xf32>
    %cst_518 = arith.constant 0.949999988 : f32
    %2196 = vector.broadcast %cst_518 : f32 to vector<1x16xf32>
    %2197 = arith.mulf %2196, %2185 : vector<1x16xf32>
    %2198 = arith.addf %2197, %2195 : vector<1x16xf32>
    %2199 = arith.subf %2198, %2189 : vector<1x16xf32>
    %cst_519 = arith.constant 1.000000e+00 : f32
    %2200 = vector.broadcast %cst_519 : f32 to vector<1x16xf32>
    %2201 = arith.cmpf ogt, %2199, %2200 : vector<1x16xf32>
    %2202 = arith.extui %2201 : vector<1x16xi1> to vector<1x16xi32>
    %2203 = arith.sitofp %2202 : vector<1x16xi32> to vector<1x16xf32>
    %c6_i32_520 = arith.constant 6 : i32
    %2204 = vector.broadcast %c6_i32_520 : i32 to vector<8x16xi32>
    %2205 = arith.cmpi eq, %8, %2204 : vector<8x16xi32>
    %2206 = vector.shape_cast %2203 : vector<1x16xf32> to vector<1x16xf32>
    %2207 = vector.broadcast %2206 : vector<1x16xf32> to vector<8x16xf32>
    %2208 = arith.select %2205, %2207, %2194 : vector<8x16xi1>, vector<8x16xf32>
    %2209 = vector.extract_strided_slice %1782 {offsets = [7, 0], sizes = [1, 16], strides = [1, 1]} : vector<8x16xf32> to vector<1x16xf32>
    %cst_521 = arith.constant 0.949999988 : f32
    %2210 = vector.broadcast %cst_521 : f32 to vector<1x16xf32>
    %2211 = arith.mulf %2210, %2199 : vector<1x16xf32>
    %2212 = arith.addf %2211, %2209 : vector<1x16xf32>
    %2213 = arith.subf %2212, %2203 : vector<1x16xf32>
    %cst_522 = arith.constant 1.000000e+00 : f32
    %2214 = vector.broadcast %cst_522 : f32 to vector<1x16xf32>
    %2215 = arith.cmpf ogt, %2213, %2214 : vector<1x16xf32>
    %2216 = arith.extui %2215 : vector<1x16xi1> to vector<1x16xi32>
    %2217 = arith.sitofp %2216 : vector<1x16xi32> to vector<1x16xf32>
    %c7_i32_523 = arith.constant 7 : i32
    %2218 = vector.broadcast %c7_i32_523 : i32 to vector<8x16xi32>
    %2219 = arith.cmpi eq, %8, %2218 : vector<8x16xi32>
    %2220 = vector.shape_cast %2217 : vector<1x16xf32> to vector<1x16xf32>
    %2221 = vector.broadcast %2220 : vector<1x16xf32> to vector<8x16xf32>
    %2222 = arith.select %2219, %2221, %2208 : vector<8x16xi1>, vector<8x16xf32>
    %c64 = arith.constant 64 : index
    %c0_524 = arith.constant 0 : index
    %2223 = vector.load %arg6[%c64, %c0_524] : memref<100x16xf32, #tpu.memory_space<vmem>>, vector<8x16xf32>
    tpu.vector_store %arg6[%c64, %c0_524], %2222 {strides = array<i32>} : memref<100x16xf32, #tpu.memory_space<vmem>>, vector<8x16xf32>,
    %cst_525 = arith.constant dense<0.000000e+00> : vector<8x16xf32>
    %2224 = tpu.matmul %2109, %5, %cst_525 {dimension_numbers = #tpu.dot_dimension_numbers<[1], [0], [0], [1], [0, 0, 1, 1], [], []>} : vector<8x64xf32>, vector<64x16xf32>, vector<8x16xf32> -> vector<8x16xf32>
    %2225 = vector.broadcast %6 : vector<1x16xf32> to vector<8x16xf32>
    %2226 = arith.addf %2224, %2225 : vector<8x16xf32>
    %cst_526 = arith.constant 0.000000e+00 : f32
    %2227 = vector.broadcast %cst_526 : f32 to vector<8x64xf32>
    %cst_527 = arith.constant 0.949999988 : f32
    %2228 = vector.broadcast %cst_527 : f32 to vector<1x64xf32>
    %2229 = arith.mulf %2228, %2100 : vector<1x64xf32>
    %2230 = arith.addf %2229, %4 : vector<1x64xf32>
    %2231 = arith.subf %2230, %2104 : vector<1x64xf32>
    %cst_528 = arith.constant 1.000000e+00 : f32
    %2232 = vector.broadcast %cst_528 : f32 to vector<1x64xf32>
    %2233 = arith.cmpf ogt, %2231, %2232 : vector<1x64xf32>
    %2234 = arith.extui %2233 : vector<1x64xi1> to vector<1x64xi32>
    %2235 = arith.sitofp %2234 : vector<1x64xi32> to vector<1x64xf32>
    %c0_i32_529 = arith.constant 0 : i32
    %2236 = vector.broadcast %c0_i32_529 : i32 to vector<8x64xi32>
    %2237 = arith.cmpi eq, %7, %2236 : vector<8x64xi32>
    %2238 = vector.shape_cast %2235 : vector<1x64xf32> to vector<1x64xf32>
    %2239 = vector.broadcast %2238 : vector<1x64xf32> to vector<8x64xf32>
    %2240 = arith.select %2237, %2239, %2227 : vector<8x64xi1>, vector<8x64xf32>
    %cst_530 = arith.constant 0.949999988 : f32
    %2241 = vector.broadcast %cst_530 : f32 to vector<1x64xf32>
    %2242 = arith.mulf %2241, %2231 : vector<1x64xf32>
    %2243 = arith.addf %2242, %4 : vector<1x64xf32>
    %2244 = arith.subf %2243, %2235 : vector<1x64xf32>
    %cst_531 = arith.constant 1.000000e+00 : f32
    %2245 = vector.broadcast %cst_531 : f32 to vector<1x64xf32>
    %2246 = arith.cmpf ogt, %2244, %2245 : vector<1x64xf32>
    %2247 = arith.extui %2246 : vector<1x64xi1> to vector<1x64xi32>
    %2248 = arith.sitofp %2247 : vector<1x64xi32> to vector<1x64xf32>
    %c1_i32_532 = arith.constant 1 : i32
    %2249 = vector.broadcast %c1_i32_532 : i32 to vector<8x64xi32>
    %2250 = arith.cmpi eq, %7, %2249 : vector<8x64xi32>
    %2251 = vector.shape_cast %2248 : vector<1x64xf32> to vector<1x64xf32>
    %2252 = vector.broadcast %2251 : vector<1x64xf32> to vector<8x64xf32>
    %2253 = arith.select %2250, %2252, %2240 : vector<8x64xi1>, vector<8x64xf32>
    %cst_533 = arith.constant 0.949999988 : f32
    %2254 = vector.broadcast %cst_533 : f32 to vector<1x64xf32>
    %2255 = arith.mulf %2254, %2244 : vector<1x64xf32>
    %2256 = arith.addf %2255, %4 : vector<1x64xf32>
    %2257 = arith.subf %2256, %2248 : vector<1x64xf32>
    %cst_534 = arith.constant 1.000000e+00 : f32
    %2258 = vector.broadcast %cst_534 : f32 to vector<1x64xf32>
    %2259 = arith.cmpf ogt, %2257, %2258 : vector<1x64xf32>
    %2260 = arith.extui %2259 : vector<1x64xi1> to vector<1x64xi32>
    %2261 = arith.sitofp %2260 : vector<1x64xi32> to vector<1x64xf32>
    %c2_i32_535 = arith.constant 2 : i32
    %2262 = vector.broadcast %c2_i32_535 : i32 to vector<8x64xi32>
    %2263 = arith.cmpi eq, %7, %2262 : vector<8x64xi32>
    %2264 = vector.shape_cast %2261 : vector<1x64xf32> to vector<1x64xf32>
    %2265 = vector.broadcast %2264 : vector<1x64xf32> to vector<8x64xf32>
    %2266 = arith.select %2263, %2265, %2253 : vector<8x64xi1>, vector<8x64xf32>
    %cst_536 = arith.constant 0.949999988 : f32
    %2267 = vector.broadcast %cst_536 : f32 to vector<1x64xf32>
    %2268 = arith.mulf %2267, %2257 : vector<1x64xf32>
    %2269 = arith.addf %2268, %4 : vector<1x64xf32>
    %2270 = arith.subf %2269, %2261 : vector<1x64xf32>
    %cst_537 = arith.constant 1.000000e+00 : f32
    %2271 = vector.broadcast %cst_537 : f32 to vector<1x64xf32>
    %2272 = arith.cmpf ogt, %2270, %2271 : vector<1x64xf32>
    %2273 = arith.extui %2272 : vector<1x64xi1> to vector<1x64xi32>
    %2274 = arith.sitofp %2273 : vector<1x64xi32> to vector<1x64xf32>
    %c3_i32_538 = arith.constant 3 : i32
    %2275 = vector.broadcast %c3_i32_538 : i32 to vector<8x64xi32>
    %2276 = arith.cmpi eq, %7, %2275 : vector<8x64xi32>
    %2277 = vector.shape_cast %2274 : vector<1x64xf32> to vector<1x64xf32>
    %2278 = vector.broadcast %2277 : vector<1x64xf32> to vector<8x64xf32>
    %2279 = arith.select %2276, %2278, %2266 : vector<8x64xi1>, vector<8x64xf32>
    %cst_539 = arith.constant 0.949999988 : f32
    %2280 = vector.broadcast %cst_539 : f32 to vector<1x64xf32>
    %2281 = arith.mulf %2280, %2270 : vector<1x64xf32>
    %2282 = arith.addf %2281, %4 : vector<1x64xf32>
    %2283 = arith.subf %2282, %2274 : vector<1x64xf32>
    %cst_540 = arith.constant 1.000000e+00 : f32
    %2284 = vector.broadcast %cst_540 : f32 to vector<1x64xf32>
    %2285 = arith.cmpf ogt, %2283, %2284 : vector<1x64xf32>
    %2286 = arith.extui %2285 : vector<1x64xi1> to vector<1x64xi32>
    %2287 = arith.sitofp %2286 : vector<1x64xi32> to vector<1x64xf32>
    %c4_i32_541 = arith.constant 4 : i32
    %2288 = vector.broadcast %c4_i32_541 : i32 to vector<8x64xi32>
    %2289 = arith.cmpi eq, %7, %2288 : vector<8x64xi32>
    %2290 = vector.shape_cast %2287 : vector<1x64xf32> to vector<1x64xf32>
    %2291 = vector.broadcast %2290 : vector<1x64xf32> to vector<8x64xf32>
    %2292 = arith.select %2289, %2291, %2279 : vector<8x64xi1>, vector<8x64xf32>
    %cst_542 = arith.constant 0.949999988 : f32
    %2293 = vector.broadcast %cst_542 : f32 to vector<1x64xf32>
    %2294 = arith.mulf %2293, %2283 : vector<1x64xf32>
    %2295 = arith.addf %2294, %4 : vector<1x64xf32>
    %2296 = arith.subf %2295, %2287 : vector<1x64xf32>
    %cst_543 = arith.constant 1.000000e+00 : f32
    %2297 = vector.broadcast %cst_543 : f32 to vector<1x64xf32>
    %2298 = arith.cmpf ogt, %2296, %2297 : vector<1x64xf32>
    %2299 = arith.extui %2298 : vector<1x64xi1> to vector<1x64xi32>
    %2300 = arith.sitofp %2299 : vector<1x64xi32> to vector<1x64xf32>
    %c5_i32_544 = arith.constant 5 : i32
    %2301 = vector.broadcast %c5_i32_544 : i32 to vector<8x64xi32>
    %2302 = arith.cmpi eq, %7, %2301 : vector<8x64xi32>
    %2303 = vector.shape_cast %2300 : vector<1x64xf32> to vector<1x64xf32>
    %2304 = vector.broadcast %2303 : vector<1x64xf32> to vector<8x64xf32>
    %2305 = arith.select %2302, %2304, %2292 : vector<8x64xi1>, vector<8x64xf32>
    %cst_545 = arith.constant 0.949999988 : f32
    %2306 = vector.broadcast %cst_545 : f32 to vector<1x64xf32>
    %2307 = arith.mulf %2306, %2296 : vector<1x64xf32>
    %2308 = arith.addf %2307, %4 : vector<1x64xf32>
    %2309 = arith.subf %2308, %2300 : vector<1x64xf32>
    %cst_546 = arith.constant 1.000000e+00 : f32
    %2310 = vector.broadcast %cst_546 : f32 to vector<1x64xf32>
    %2311 = arith.cmpf ogt, %2309, %2310 : vector<1x64xf32>
    %2312 = arith.extui %2311 : vector<1x64xi1> to vector<1x64xi32>
    %2313 = arith.sitofp %2312 : vector<1x64xi32> to vector<1x64xf32>
    %c6_i32_547 = arith.constant 6 : i32
    %2314 = vector.broadcast %c6_i32_547 : i32 to vector<8x64xi32>
    %2315 = arith.cmpi eq, %7, %2314 : vector<8x64xi32>
    %2316 = vector.shape_cast %2313 : vector<1x64xf32> to vector<1x64xf32>
    %2317 = vector.broadcast %2316 : vector<1x64xf32> to vector<8x64xf32>
    %2318 = arith.select %2315, %2317, %2305 : vector<8x64xi1>, vector<8x64xf32>
    %cst_548 = arith.constant 0.949999988 : f32
    %2319 = vector.broadcast %cst_548 : f32 to vector<1x64xf32>
    %2320 = arith.mulf %2319, %2309 : vector<1x64xf32>
    %2321 = arith.addf %2320, %4 : vector<1x64xf32>
    %2322 = arith.subf %2321, %2313 : vector<1x64xf32>
    %cst_549 = arith.constant 1.000000e+00 : f32
    %2323 = vector.broadcast %cst_549 : f32 to vector<1x64xf32>
    %2324 = arith.cmpf ogt, %2322, %2323 : vector<1x64xf32>
    %2325 = arith.extui %2324 : vector<1x64xi1> to vector<1x64xi32>
    %2326 = arith.sitofp %2325 : vector<1x64xi32> to vector<1x64xf32>
    %c7_i32_550 = arith.constant 7 : i32
    %2327 = vector.broadcast %c7_i32_550 : i32 to vector<8x64xi32>
    %2328 = arith.cmpi eq, %7, %2327 : vector<8x64xi32>
    %2329 = vector.shape_cast %2326 : vector<1x64xf32> to vector<1x64xf32>
    %2330 = vector.broadcast %2329 : vector<1x64xf32> to vector<8x64xf32>
    %2331 = arith.select %2328, %2330, %2318 : vector<8x64xi1>, vector<8x64xf32>
    %cst_551 = arith.constant 0.000000e+00 : f32
    %2332 = vector.broadcast %cst_551 : f32 to vector<8x16xf32>
    %2333 = vector.extract_strided_slice %2004 {offsets = [0, 0], sizes = [1, 16], strides = [1, 1]} : vector<8x16xf32> to vector<1x16xf32>
    %cst_552 = arith.constant 0.949999988 : f32
    %2334 = vector.broadcast %cst_552 : f32 to vector<1x16xf32>
    %2335 = arith.mulf %2334, %2213 : vector<1x16xf32>
    %2336 = arith.addf %2335, %2333 : vector<1x16xf32>
    %2337 = arith.subf %2336, %2217 : vector<1x16xf32>
    %cst_553 = arith.constant 1.000000e+00 : f32
    %2338 = vector.broadcast %cst_553 : f32 to vector<1x16xf32>
    %2339 = arith.cmpf ogt, %2337, %2338 : vector<1x16xf32>
    %2340 = arith.extui %2339 : vector<1x16xi1> to vector<1x16xi32>
    %2341 = arith.sitofp %2340 : vector<1x16xi32> to vector<1x16xf32>
    %c0_i32_554 = arith.constant 0 : i32
    %2342 = vector.broadcast %c0_i32_554 : i32 to vector<8x16xi32>
    %2343 = arith.cmpi eq, %8, %2342 : vector<8x16xi32>
    %2344 = vector.shape_cast %2341 : vector<1x16xf32> to vector<1x16xf32>
    %2345 = vector.broadcast %2344 : vector<1x16xf32> to vector<8x16xf32>
    %2346 = arith.select %2343, %2345, %2332 : vector<8x16xi1>, vector<8x16xf32>
    %2347 = vector.extract_strided_slice %2004 {offsets = [1, 0], sizes = [1, 16], strides = [1, 1]} : vector<8x16xf32> to vector<1x16xf32>
    %cst_555 = arith.constant 0.949999988 : f32
    %2348 = vector.broadcast %cst_555 : f32 to vector<1x16xf32>
    %2349 = arith.mulf %2348, %2337 : vector<1x16xf32>
    %2350 = arith.addf %2349, %2347 : vector<1x16xf32>
    %2351 = arith.subf %2350, %2341 : vector<1x16xf32>
    %cst_556 = arith.constant 1.000000e+00 : f32
    %2352 = vector.broadcast %cst_556 : f32 to vector<1x16xf32>
    %2353 = arith.cmpf ogt, %2351, %2352 : vector<1x16xf32>
    %2354 = arith.extui %2353 : vector<1x16xi1> to vector<1x16xi32>
    %2355 = arith.sitofp %2354 : vector<1x16xi32> to vector<1x16xf32>
    %c1_i32_557 = arith.constant 1 : i32
    %2356 = vector.broadcast %c1_i32_557 : i32 to vector<8x16xi32>
    %2357 = arith.cmpi eq, %8, %2356 : vector<8x16xi32>
    %2358 = vector.shape_cast %2355 : vector<1x16xf32> to vector<1x16xf32>
    %2359 = vector.broadcast %2358 : vector<1x16xf32> to vector<8x16xf32>
    %2360 = arith.select %2357, %2359, %2346 : vector<8x16xi1>, vector<8x16xf32>
    %2361 = vector.extract_strided_slice %2004 {offsets = [2, 0], sizes = [1, 16], strides = [1, 1]} : vector<8x16xf32> to vector<1x16xf32>
    %cst_558 = arith.constant 0.949999988 : f32
    %2362 = vector.broadcast %cst_558 : f32 to vector<1x16xf32>
    %2363 = arith.mulf %2362, %2351 : vector<1x16xf32>
    %2364 = arith.addf %2363, %2361 : vector<1x16xf32>
    %2365 = arith.subf %2364, %2355 : vector<1x16xf32>
    %cst_559 = arith.constant 1.000000e+00 : f32
    %2366 = vector.broadcast %cst_559 : f32 to vector<1x16xf32>
    %2367 = arith.cmpf ogt, %2365, %2366 : vector<1x16xf32>
    %2368 = arith.extui %2367 : vector<1x16xi1> to vector<1x16xi32>
    %2369 = arith.sitofp %2368 : vector<1x16xi32> to vector<1x16xf32>
    %c2_i32_560 = arith.constant 2 : i32
    %2370 = vector.broadcast %c2_i32_560 : i32 to vector<8x16xi32>
    %2371 = arith.cmpi eq, %8, %2370 : vector<8x16xi32>
    %2372 = vector.shape_cast %2369 : vector<1x16xf32> to vector<1x16xf32>
    %2373 = vector.broadcast %2372 : vector<1x16xf32> to vector<8x16xf32>
    %2374 = arith.select %2371, %2373, %2360 : vector<8x16xi1>, vector<8x16xf32>
    %2375 = vector.extract_strided_slice %2004 {offsets = [3, 0], sizes = [1, 16], strides = [1, 1]} : vector<8x16xf32> to vector<1x16xf32>
    %cst_561 = arith.constant 0.949999988 : f32
    %2376 = vector.broadcast %cst_561 : f32 to vector<1x16xf32>
    %2377 = arith.mulf %2376, %2365 : vector<1x16xf32>
    %2378 = arith.addf %2377, %2375 : vector<1x16xf32>
    %2379 = arith.subf %2378, %2369 : vector<1x16xf32>
    %cst_562 = arith.constant 1.000000e+00 : f32
    %2380 = vector.broadcast %cst_562 : f32 to vector<1x16xf32>
    %2381 = arith.cmpf ogt, %2379, %2380 : vector<1x16xf32>
    %2382 = arith.extui %2381 : vector<1x16xi1> to vector<1x16xi32>
    %2383 = arith.sitofp %2382 : vector<1x16xi32> to vector<1x16xf32>
    %c3_i32_563 = arith.constant 3 : i32
    %2384 = vector.broadcast %c3_i32_563 : i32 to vector<8x16xi32>
    %2385 = arith.cmpi eq, %8, %2384 : vector<8x16xi32>
    %2386 = vector.shape_cast %2383 : vector<1x16xf32> to vector<1x16xf32>
    %2387 = vector.broadcast %2386 : vector<1x16xf32> to vector<8x16xf32>
    %2388 = arith.select %2385, %2387, %2374 : vector<8x16xi1>, vector<8x16xf32>
    %2389 = vector.extract_strided_slice %2004 {offsets = [4, 0], sizes = [1, 16], strides = [1, 1]} : vector<8x16xf32> to vector<1x16xf32>
    %cst_564 = arith.constant 0.949999988 : f32
    %2390 = vector.broadcast %cst_564 : f32 to vector<1x16xf32>
    %2391 = arith.mulf %2390, %2379 : vector<1x16xf32>
    %2392 = arith.addf %2391, %2389 : vector<1x16xf32>
    %2393 = arith.subf %2392, %2383 : vector<1x16xf32>
    %cst_565 = arith.constant 1.000000e+00 : f32
    %2394 = vector.broadcast %cst_565 : f32 to vector<1x16xf32>
    %2395 = arith.cmpf ogt, %2393, %2394 : vector<1x16xf32>
    %2396 = arith.extui %2395 : vector<1x16xi1> to vector<1x16xi32>
    %2397 = arith.sitofp %2396 : vector<1x16xi32> to vector<1x16xf32>
    %c4_i32_566 = arith.constant 4 : i32
    %2398 = vector.broadcast %c4_i32_566 : i32 to vector<8x16xi32>
    %2399 = arith.cmpi eq, %8, %2398 : vector<8x16xi32>
    %2400 = vector.shape_cast %2397 : vector<1x16xf32> to vector<1x16xf32>
    %2401 = vector.broadcast %2400 : vector<1x16xf32> to vector<8x16xf32>
    %2402 = arith.select %2399, %2401, %2388 : vector<8x16xi1>, vector<8x16xf32>
    %2403 = vector.extract_strided_slice %2004 {offsets = [5, 0], sizes = [1, 16], strides = [1, 1]} : vector<8x16xf32> to vector<1x16xf32>
    %cst_567 = arith.constant 0.949999988 : f32
    %2404 = vector.broadcast %cst_567 : f32 to vector<1x16xf32>
    %2405 = arith.mulf %2404, %2393 : vector<1x16xf32>
    %2406 = arith.addf %2405, %2403 : vector<1x16xf32>
    %2407 = arith.subf %2406, %2397 : vector<1x16xf32>
    %cst_568 = arith.constant 1.000000e+00 : f32
    %2408 = vector.broadcast %cst_568 : f32 to vector<1x16xf32>
    %2409 = arith.cmpf ogt, %2407, %2408 : vector<1x16xf32>
    %2410 = arith.extui %2409 : vector<1x16xi1> to vector<1x16xi32>
    %2411 = arith.sitofp %2410 : vector<1x16xi32> to vector<1x16xf32>
    %c5_i32_569 = arith.constant 5 : i32
    %2412 = vector.broadcast %c5_i32_569 : i32 to vector<8x16xi32>
    %2413 = arith.cmpi eq, %8, %2412 : vector<8x16xi32>
    %2414 = vector.shape_cast %2411 : vector<1x16xf32> to vector<1x16xf32>
    %2415 = vector.broadcast %2414 : vector<1x16xf32> to vector<8x16xf32>
    %2416 = arith.select %2413, %2415, %2402 : vector<8x16xi1>, vector<8x16xf32>
    %2417 = vector.extract_strided_slice %2004 {offsets = [6, 0], sizes = [1, 16], strides = [1, 1]} : vector<8x16xf32> to vector<1x16xf32>
    %cst_570 = arith.constant 0.949999988 : f32
    %2418 = vector.broadcast %cst_570 : f32 to vector<1x16xf32>
    %2419 = arith.mulf %2418, %2407 : vector<1x16xf32>
    %2420 = arith.addf %2419, %2417 : vector<1x16xf32>
    %2421 = arith.subf %2420, %2411 : vector<1x16xf32>
    %cst_571 = arith.constant 1.000000e+00 : f32
    %2422 = vector.broadcast %cst_571 : f32 to vector<1x16xf32>
    %2423 = arith.cmpf ogt, %2421, %2422 : vector<1x16xf32>
    %2424 = arith.extui %2423 : vector<1x16xi1> to vector<1x16xi32>
    %2425 = arith.sitofp %2424 : vector<1x16xi32> to vector<1x16xf32>
    %c6_i32_572 = arith.constant 6 : i32
    %2426 = vector.broadcast %c6_i32_572 : i32 to vector<8x16xi32>
    %2427 = arith.cmpi eq, %8, %2426 : vector<8x16xi32>
    %2428 = vector.shape_cast %2425 : vector<1x16xf32> to vector<1x16xf32>
    %2429 = vector.broadcast %2428 : vector<1x16xf32> to vector<8x16xf32>
    %2430 = arith.select %2427, %2429, %2416 : vector<8x16xi1>, vector<8x16xf32>
    %2431 = vector.extract_strided_slice %2004 {offsets = [7, 0], sizes = [1, 16], strides = [1, 1]} : vector<8x16xf32> to vector<1x16xf32>
    %cst_573 = arith.constant 0.949999988 : f32
    %2432 = vector.broadcast %cst_573 : f32 to vector<1x16xf32>
    %2433 = arith.mulf %2432, %2421 : vector<1x16xf32>
    %2434 = arith.addf %2433, %2431 : vector<1x16xf32>
    %2435 = arith.subf %2434, %2425 : vector<1x16xf32>
    %cst_574 = arith.constant 1.000000e+00 : f32
    %2436 = vector.broadcast %cst_574 : f32 to vector<1x16xf32>
    %2437 = arith.cmpf ogt, %2435, %2436 : vector<1x16xf32>
    %2438 = arith.extui %2437 : vector<1x16xi1> to vector<1x16xi32>
    %2439 = arith.sitofp %2438 : vector<1x16xi32> to vector<1x16xf32>
    %c7_i32_575 = arith.constant 7 : i32
    %2440 = vector.broadcast %c7_i32_575 : i32 to vector<8x16xi32>
    %2441 = arith.cmpi eq, %8, %2440 : vector<8x16xi32>
    %2442 = vector.shape_cast %2439 : vector<1x16xf32> to vector<1x16xf32>
    %2443 = vector.broadcast %2442 : vector<1x16xf32> to vector<8x16xf32>
    %2444 = arith.select %2441, %2443, %2430 : vector<8x16xi1>, vector<8x16xf32>
    %c72 = arith.constant 72 : index
    %c0_576 = arith.constant 0 : index
    %2445 = vector.load %arg6[%c72, %c0_576] : memref<100x16xf32, #tpu.memory_space<vmem>>, vector<8x16xf32>
    tpu.vector_store %arg6[%c72, %c0_576], %2444 {strides = array<i32>} : memref<100x16xf32, #tpu.memory_space<vmem>>, vector<8x16xf32>,
    %cst_577 = arith.constant dense<0.000000e+00> : vector<8x16xf32>
    %2446 = tpu.matmul %2331, %5, %cst_577 {dimension_numbers = #tpu.dot_dimension_numbers<[1], [0], [0], [1], [0, 0, 1, 1], [], []>} : vector<8x64xf32>, vector<64x16xf32>, vector<8x16xf32> -> vector<8x16xf32>
    %2447 = vector.broadcast %6 : vector<1x16xf32> to vector<8x16xf32>
    %2448 = arith.addf %2446, %2447 : vector<8x16xf32>
    %cst_578 = arith.constant 0.000000e+00 : f32
    %2449 = vector.broadcast %cst_578 : f32 to vector<8x64xf32>
    %cst_579 = arith.constant 0.949999988 : f32
    %2450 = vector.broadcast %cst_579 : f32 to vector<1x64xf32>
    %2451 = arith.mulf %2450, %2322 : vector<1x64xf32>
    %2452 = arith.addf %2451, %4 : vector<1x64xf32>
    %2453 = arith.subf %2452, %2326 : vector<1x64xf32>
    %cst_580 = arith.constant 1.000000e+00 : f32
    %2454 = vector.broadcast %cst_580 : f32 to vector<1x64xf32>
    %2455 = arith.cmpf ogt, %2453, %2454 : vector<1x64xf32>
    %2456 = arith.extui %2455 : vector<1x64xi1> to vector<1x64xi32>
    %2457 = arith.sitofp %2456 : vector<1x64xi32> to vector<1x64xf32>
    %c0_i32_581 = arith.constant 0 : i32
    %2458 = vector.broadcast %c0_i32_581 : i32 to vector<8x64xi32>
    %2459 = arith.cmpi eq, %7, %2458 : vector<8x64xi32>
    %2460 = vector.shape_cast %2457 : vector<1x64xf32> to vector<1x64xf32>
    %2461 = vector.broadcast %2460 : vector<1x64xf32> to vector<8x64xf32>
    %2462 = arith.select %2459, %2461, %2449 : vector<8x64xi1>, vector<8x64xf32>
    %cst_582 = arith.constant 0.949999988 : f32
    %2463 = vector.broadcast %cst_582 : f32 to vector<1x64xf32>
    %2464 = arith.mulf %2463, %2453 : vector<1x64xf32>
    %2465 = arith.addf %2464, %4 : vector<1x64xf32>
    %2466 = arith.subf %2465, %2457 : vector<1x64xf32>
    %cst_583 = arith.constant 1.000000e+00 : f32
    %2467 = vector.broadcast %cst_583 : f32 to vector<1x64xf32>
    %2468 = arith.cmpf ogt, %2466, %2467 : vector<1x64xf32>
    %2469 = arith.extui %2468 : vector<1x64xi1> to vector<1x64xi32>
    %2470 = arith.sitofp %2469 : vector<1x64xi32> to vector<1x64xf32>
    %c1_i32_584 = arith.constant 1 : i32
    %2471 = vector.broadcast %c1_i32_584 : i32 to vector<8x64xi32>
    %2472 = arith.cmpi eq, %7, %2471 : vector<8x64xi32>
    %2473 = vector.shape_cast %2470 : vector<1x64xf32> to vector<1x64xf32>
    %2474 = vector.broadcast %2473 : vector<1x64xf32> to vector<8x64xf32>
    %2475 = arith.select %2472, %2474, %2462 : vector<8x64xi1>, vector<8x64xf32>
    %cst_585 = arith.constant 0.949999988 : f32
    %2476 = vector.broadcast %cst_585 : f32 to vector<1x64xf32>
    %2477 = arith.mulf %2476, %2466 : vector<1x64xf32>
    %2478 = arith.addf %2477, %4 : vector<1x64xf32>
    %2479 = arith.subf %2478, %2470 : vector<1x64xf32>
    %cst_586 = arith.constant 1.000000e+00 : f32
    %2480 = vector.broadcast %cst_586 : f32 to vector<1x64xf32>
    %2481 = arith.cmpf ogt, %2479, %2480 : vector<1x64xf32>
    %2482 = arith.extui %2481 : vector<1x64xi1> to vector<1x64xi32>
    %2483 = arith.sitofp %2482 : vector<1x64xi32> to vector<1x64xf32>
    %c2_i32_587 = arith.constant 2 : i32
    %2484 = vector.broadcast %c2_i32_587 : i32 to vector<8x64xi32>
    %2485 = arith.cmpi eq, %7, %2484 : vector<8x64xi32>
    %2486 = vector.shape_cast %2483 : vector<1x64xf32> to vector<1x64xf32>
    %2487 = vector.broadcast %2486 : vector<1x64xf32> to vector<8x64xf32>
    %2488 = arith.select %2485, %2487, %2475 : vector<8x64xi1>, vector<8x64xf32>
    %cst_588 = arith.constant 0.949999988 : f32
    %2489 = vector.broadcast %cst_588 : f32 to vector<1x64xf32>
    %2490 = arith.mulf %2489, %2479 : vector<1x64xf32>
    %2491 = arith.addf %2490, %4 : vector<1x64xf32>
    %2492 = arith.subf %2491, %2483 : vector<1x64xf32>
    %cst_589 = arith.constant 1.000000e+00 : f32
    %2493 = vector.broadcast %cst_589 : f32 to vector<1x64xf32>
    %2494 = arith.cmpf ogt, %2492, %2493 : vector<1x64xf32>
    %2495 = arith.extui %2494 : vector<1x64xi1> to vector<1x64xi32>
    %2496 = arith.sitofp %2495 : vector<1x64xi32> to vector<1x64xf32>
    %c3_i32_590 = arith.constant 3 : i32
    %2497 = vector.broadcast %c3_i32_590 : i32 to vector<8x64xi32>
    %2498 = arith.cmpi eq, %7, %2497 : vector<8x64xi32>
    %2499 = vector.shape_cast %2496 : vector<1x64xf32> to vector<1x64xf32>
    %2500 = vector.broadcast %2499 : vector<1x64xf32> to vector<8x64xf32>
    %2501 = arith.select %2498, %2500, %2488 : vector<8x64xi1>, vector<8x64xf32>
    %cst_591 = arith.constant 0.000000e+00 : f32
    %2502 = vector.broadcast %cst_591 : f32 to vector<8x16xf32>
    %2503 = vector.extract_strided_slice %2226 {offsets = [0, 0], sizes = [1, 16], strides = [1, 1]} : vector<8x16xf32> to vector<1x16xf32>
    %cst_592 = arith.constant 0.949999988 : f32
    %2504 = vector.broadcast %cst_592 : f32 to vector<1x16xf32>
    %2505 = arith.mulf %2504, %2435 : vector<1x16xf32>
    %2506 = arith.addf %2505, %2503 : vector<1x16xf32>
    %2507 = arith.subf %2506, %2439 : vector<1x16xf32>
    %cst_593 = arith.constant 1.000000e+00 : f32
    %2508 = vector.broadcast %cst_593 : f32 to vector<1x16xf32>
    %2509 = arith.cmpf ogt, %2507, %2508 : vector<1x16xf32>
    %2510 = arith.extui %2509 : vector<1x16xi1> to vector<1x16xi32>
    %2511 = arith.sitofp %2510 : vector<1x16xi32> to vector<1x16xf32>
    %c0_i32_594 = arith.constant 0 : i32
    %2512 = vector.broadcast %c0_i32_594 : i32 to vector<8x16xi32>
    %2513 = arith.cmpi eq, %8, %2512 : vector<8x16xi32>
    %2514 = vector.shape_cast %2511 : vector<1x16xf32> to vector<1x16xf32>
    %2515 = vector.broadcast %2514 : vector<1x16xf32> to vector<8x16xf32>
    %2516 = arith.select %2513, %2515, %2502 : vector<8x16xi1>, vector<8x16xf32>
    %2517 = vector.extract_strided_slice %2226 {offsets = [1, 0], sizes = [1, 16], strides = [1, 1]} : vector<8x16xf32> to vector<1x16xf32>
    %cst_595 = arith.constant 0.949999988 : f32
    %2518 = vector.broadcast %cst_595 : f32 to vector<1x16xf32>
    %2519 = arith.mulf %2518, %2507 : vector<1x16xf32>
    %2520 = arith.addf %2519, %2517 : vector<1x16xf32>
    %2521 = arith.subf %2520, %2511 : vector<1x16xf32>
    %cst_596 = arith.constant 1.000000e+00 : f32
    %2522 = vector.broadcast %cst_596 : f32 to vector<1x16xf32>
    %2523 = arith.cmpf ogt, %2521, %2522 : vector<1x16xf32>
    %2524 = arith.extui %2523 : vector<1x16xi1> to vector<1x16xi32>
    %2525 = arith.sitofp %2524 : vector<1x16xi32> to vector<1x16xf32>
    %c1_i32_597 = arith.constant 1 : i32
    %2526 = vector.broadcast %c1_i32_597 : i32 to vector<8x16xi32>
    %2527 = arith.cmpi eq, %8, %2526 : vector<8x16xi32>
    %2528 = vector.shape_cast %2525 : vector<1x16xf32> to vector<1x16xf32>
    %2529 = vector.broadcast %2528 : vector<1x16xf32> to vector<8x16xf32>
    %2530 = arith.select %2527, %2529, %2516 : vector<8x16xi1>, vector<8x16xf32>
    %2531 = vector.extract_strided_slice %2226 {offsets = [2, 0], sizes = [1, 16], strides = [1, 1]} : vector<8x16xf32> to vector<1x16xf32>
    %cst_598 = arith.constant 0.949999988 : f32
    %2532 = vector.broadcast %cst_598 : f32 to vector<1x16xf32>
    %2533 = arith.mulf %2532, %2521 : vector<1x16xf32>
    %2534 = arith.addf %2533, %2531 : vector<1x16xf32>
    %2535 = arith.subf %2534, %2525 : vector<1x16xf32>
    %cst_599 = arith.constant 1.000000e+00 : f32
    %2536 = vector.broadcast %cst_599 : f32 to vector<1x16xf32>
    %2537 = arith.cmpf ogt, %2535, %2536 : vector<1x16xf32>
    %2538 = arith.extui %2537 : vector<1x16xi1> to vector<1x16xi32>
    %2539 = arith.sitofp %2538 : vector<1x16xi32> to vector<1x16xf32>
    %c2_i32_600 = arith.constant 2 : i32
    %2540 = vector.broadcast %c2_i32_600 : i32 to vector<8x16xi32>
    %2541 = arith.cmpi eq, %8, %2540 : vector<8x16xi32>
    %2542 = vector.shape_cast %2539 : vector<1x16xf32> to vector<1x16xf32>
    %2543 = vector.broadcast %2542 : vector<1x16xf32> to vector<8x16xf32>
    %2544 = arith.select %2541, %2543, %2530 : vector<8x16xi1>, vector<8x16xf32>
    %2545 = vector.extract_strided_slice %2226 {offsets = [3, 0], sizes = [1, 16], strides = [1, 1]} : vector<8x16xf32> to vector<1x16xf32>
    %cst_601 = arith.constant 0.949999988 : f32
    %2546 = vector.broadcast %cst_601 : f32 to vector<1x16xf32>
    %2547 = arith.mulf %2546, %2535 : vector<1x16xf32>
    %2548 = arith.addf %2547, %2545 : vector<1x16xf32>
    %2549 = arith.subf %2548, %2539 : vector<1x16xf32>
    %cst_602 = arith.constant 1.000000e+00 : f32
    %2550 = vector.broadcast %cst_602 : f32 to vector<1x16xf32>
    %2551 = arith.cmpf ogt, %2549, %2550 : vector<1x16xf32>
    %2552 = arith.extui %2551 : vector<1x16xi1> to vector<1x16xi32>
    %2553 = arith.sitofp %2552 : vector<1x16xi32> to vector<1x16xf32>
    %c3_i32_603 = arith.constant 3 : i32
    %2554 = vector.broadcast %c3_i32_603 : i32 to vector<8x16xi32>
    %2555 = arith.cmpi eq, %8, %2554 : vector<8x16xi32>
    %2556 = vector.shape_cast %2553 : vector<1x16xf32> to vector<1x16xf32>
    %2557 = vector.broadcast %2556 : vector<1x16xf32> to vector<8x16xf32>
    %2558 = arith.select %2555, %2557, %2544 : vector<8x16xi1>, vector<8x16xf32>
    %2559 = vector.extract_strided_slice %2226 {offsets = [4, 0], sizes = [1, 16], strides = [1, 1]} : vector<8x16xf32> to vector<1x16xf32>
    %cst_604 = arith.constant 0.949999988 : f32
    %2560 = vector.broadcast %cst_604 : f32 to vector<1x16xf32>
    %2561 = arith.mulf %2560, %2549 : vector<1x16xf32>
    %2562 = arith.addf %2561, %2559 : vector<1x16xf32>
    %2563 = arith.subf %2562, %2553 : vector<1x16xf32>
    %cst_605 = arith.constant 1.000000e+00 : f32
    %2564 = vector.broadcast %cst_605 : f32 to vector<1x16xf32>
    %2565 = arith.cmpf ogt, %2563, %2564 : vector<1x16xf32>
    %2566 = arith.extui %2565 : vector<1x16xi1> to vector<1x16xi32>
    %2567 = arith.sitofp %2566 : vector<1x16xi32> to vector<1x16xf32>
    %c4_i32_606 = arith.constant 4 : i32
    %2568 = vector.broadcast %c4_i32_606 : i32 to vector<8x16xi32>
    %2569 = arith.cmpi eq, %8, %2568 : vector<8x16xi32>
    %2570 = vector.shape_cast %2567 : vector<1x16xf32> to vector<1x16xf32>
    %2571 = vector.broadcast %2570 : vector<1x16xf32> to vector<8x16xf32>
    %2572 = arith.select %2569, %2571, %2558 : vector<8x16xi1>, vector<8x16xf32>
    %2573 = vector.extract_strided_slice %2226 {offsets = [5, 0], sizes = [1, 16], strides = [1, 1]} : vector<8x16xf32> to vector<1x16xf32>
    %cst_607 = arith.constant 0.949999988 : f32
    %2574 = vector.broadcast %cst_607 : f32 to vector<1x16xf32>
    %2575 = arith.mulf %2574, %2563 : vector<1x16xf32>
    %2576 = arith.addf %2575, %2573 : vector<1x16xf32>
    %2577 = arith.subf %2576, %2567 : vector<1x16xf32>
    %cst_608 = arith.constant 1.000000e+00 : f32
    %2578 = vector.broadcast %cst_608 : f32 to vector<1x16xf32>
    %2579 = arith.cmpf ogt, %2577, %2578 : vector<1x16xf32>
    %2580 = arith.extui %2579 : vector<1x16xi1> to vector<1x16xi32>
    %2581 = arith.sitofp %2580 : vector<1x16xi32> to vector<1x16xf32>
    %c5_i32_609 = arith.constant 5 : i32
    %2582 = vector.broadcast %c5_i32_609 : i32 to vector<8x16xi32>
    %2583 = arith.cmpi eq, %8, %2582 : vector<8x16xi32>
    %2584 = vector.shape_cast %2581 : vector<1x16xf32> to vector<1x16xf32>
    %2585 = vector.broadcast %2584 : vector<1x16xf32> to vector<8x16xf32>
    %2586 = arith.select %2583, %2585, %2572 : vector<8x16xi1>, vector<8x16xf32>
    %2587 = vector.extract_strided_slice %2226 {offsets = [6, 0], sizes = [1, 16], strides = [1, 1]} : vector<8x16xf32> to vector<1x16xf32>
    %cst_610 = arith.constant 0.949999988 : f32
    %2588 = vector.broadcast %cst_610 : f32 to vector<1x16xf32>
    %2589 = arith.mulf %2588, %2577 : vector<1x16xf32>
    %2590 = arith.addf %2589, %2587 : vector<1x16xf32>
    %2591 = arith.subf %2590, %2581 : vector<1x16xf32>
    %cst_611 = arith.constant 1.000000e+00 : f32
    %2592 = vector.broadcast %cst_611 : f32 to vector<1x16xf32>
    %2593 = arith.cmpf ogt, %2591, %2592 : vector<1x16xf32>
    %2594 = arith.extui %2593 : vector<1x16xi1> to vector<1x16xi32>
    %2595 = arith.sitofp %2594 : vector<1x16xi32> to vector<1x16xf32>
    %c6_i32_612 = arith.constant 6 : i32
    %2596 = vector.broadcast %c6_i32_612 : i32 to vector<8x16xi32>
    %2597 = arith.cmpi eq, %8, %2596 : vector<8x16xi32>
    %2598 = vector.shape_cast %2595 : vector<1x16xf32> to vector<1x16xf32>
    %2599 = vector.broadcast %2598 : vector<1x16xf32> to vector<8x16xf32>
    %2600 = arith.select %2597, %2599, %2586 : vector<8x16xi1>, vector<8x16xf32>
    %2601 = vector.extract_strided_slice %2226 {offsets = [7, 0], sizes = [1, 16], strides = [1, 1]} : vector<8x16xf32> to vector<1x16xf32>
    %cst_613 = arith.constant 0.949999988 : f32
    %2602 = vector.broadcast %cst_613 : f32 to vector<1x16xf32>
    %2603 = arith.mulf %2602, %2591 : vector<1x16xf32>
    %2604 = arith.addf %2603, %2601 : vector<1x16xf32>
    %2605 = arith.subf %2604, %2595 : vector<1x16xf32>
    %cst_614 = arith.constant 1.000000e+00 : f32
    %2606 = vector.broadcast %cst_614 : f32 to vector<1x16xf32>
    %2607 = arith.cmpf ogt, %2605, %2606 : vector<1x16xf32>
    %2608 = arith.extui %2607 : vector<1x16xi1> to vector<1x16xi32>
    %2609 = arith.sitofp %2608 : vector<1x16xi32> to vector<1x16xf32>
    %c7_i32_615 = arith.constant 7 : i32
    %2610 = vector.broadcast %c7_i32_615 : i32 to vector<8x16xi32>
    %2611 = arith.cmpi eq, %8, %2610 : vector<8x16xi32>
    %2612 = vector.shape_cast %2609 : vector<1x16xf32> to vector<1x16xf32>
    %2613 = vector.broadcast %2612 : vector<1x16xf32> to vector<8x16xf32>
    %2614 = arith.select %2611, %2613, %2600 : vector<8x16xi1>, vector<8x16xf32>
    %c80 = arith.constant 80 : index
    %c0_616 = arith.constant 0 : index
    %2615 = vector.load %arg6[%c80, %c0_616] : memref<100x16xf32, #tpu.memory_space<vmem>>, vector<8x16xf32>
    tpu.vector_store %arg6[%c80, %c0_616], %2614 {strides = array<i32>} : memref<100x16xf32, #tpu.memory_space<vmem>>, vector<8x16xf32>,
    %cst_617 = arith.constant dense<0.000000e+00> : vector<8x16xf32>
    %2616 = tpu.matmul %2501, %5, %cst_617 {dimension_numbers = #tpu.dot_dimension_numbers<[1], [0], [0], [1], [0, 0, 1, 1], [], []>} : vector<8x64xf32>, vector<64x16xf32>, vector<8x16xf32> -> vector<8x16xf32>
    %2617 = vector.broadcast %6 : vector<1x16xf32> to vector<8x16xf32>
    %2618 = arith.addf %2616, %2617 : vector<8x16xf32>
    %cst_618 = arith.constant 0.000000e+00 : f32
    %2619 = vector.broadcast %cst_618 : f32 to vector<8x16xf32>
    %2620 = vector.extract_strided_slice %2448 {offsets = [0, 0], sizes = [1, 16], strides = [1, 1]} : vector<8x16xf32> to vector<1x16xf32>
    %cst_619 = arith.constant 0.949999988 : f32
    %2621 = vector.broadcast %cst_619 : f32 to vector<1x16xf32>
    %2622 = arith.mulf %2621, %2605 : vector<1x16xf32>
    %2623 = arith.addf %2622, %2620 : vector<1x16xf32>
    %2624 = arith.subf %2623, %2609 : vector<1x16xf32>
    %cst_620 = arith.constant 1.000000e+00 : f32
    %2625 = vector.broadcast %cst_620 : f32 to vector<1x16xf32>
    %2626 = arith.cmpf ogt, %2624, %2625 : vector<1x16xf32>
    %2627 = arith.extui %2626 : vector<1x16xi1> to vector<1x16xi32>
    %2628 = arith.sitofp %2627 : vector<1x16xi32> to vector<1x16xf32>
    %c0_i32_621 = arith.constant 0 : i32
    %2629 = vector.broadcast %c0_i32_621 : i32 to vector<8x16xi32>
    %2630 = arith.cmpi eq, %8, %2629 : vector<8x16xi32>
    %2631 = vector.shape_cast %2628 : vector<1x16xf32> to vector<1x16xf32>
    %2632 = vector.broadcast %2631 : vector<1x16xf32> to vector<8x16xf32>
    %2633 = arith.select %2630, %2632, %2619 : vector<8x16xi1>, vector<8x16xf32>
    %2634 = vector.extract_strided_slice %2448 {offsets = [1, 0], sizes = [1, 16], strides = [1, 1]} : vector<8x16xf32> to vector<1x16xf32>
    %cst_622 = arith.constant 0.949999988 : f32
    %2635 = vector.broadcast %cst_622 : f32 to vector<1x16xf32>
    %2636 = arith.mulf %2635, %2624 : vector<1x16xf32>
    %2637 = arith.addf %2636, %2634 : vector<1x16xf32>
    %2638 = arith.subf %2637, %2628 : vector<1x16xf32>
    %cst_623 = arith.constant 1.000000e+00 : f32
    %2639 = vector.broadcast %cst_623 : f32 to vector<1x16xf32>
    %2640 = arith.cmpf ogt, %2638, %2639 : vector<1x16xf32>
    %2641 = arith.extui %2640 : vector<1x16xi1> to vector<1x16xi32>
    %2642 = arith.sitofp %2641 : vector<1x16xi32> to vector<1x16xf32>
    %c1_i32_624 = arith.constant 1 : i32
    %2643 = vector.broadcast %c1_i32_624 : i32 to vector<8x16xi32>
    %2644 = arith.cmpi eq, %8, %2643 : vector<8x16xi32>
    %2645 = vector.shape_cast %2642 : vector<1x16xf32> to vector<1x16xf32>
    %2646 = vector.broadcast %2645 : vector<1x16xf32> to vector<8x16xf32>
    %2647 = arith.select %2644, %2646, %2633 : vector<8x16xi1>, vector<8x16xf32>
    %2648 = vector.extract_strided_slice %2448 {offsets = [2, 0], sizes = [1, 16], strides = [1, 1]} : vector<8x16xf32> to vector<1x16xf32>
    %cst_625 = arith.constant 0.949999988 : f32
    %2649 = vector.broadcast %cst_625 : f32 to vector<1x16xf32>
    %2650 = arith.mulf %2649, %2638 : vector<1x16xf32>
    %2651 = arith.addf %2650, %2648 : vector<1x16xf32>
    %2652 = arith.subf %2651, %2642 : vector<1x16xf32>
    %cst_626 = arith.constant 1.000000e+00 : f32
    %2653 = vector.broadcast %cst_626 : f32 to vector<1x16xf32>
    %2654 = arith.cmpf ogt, %2652, %2653 : vector<1x16xf32>
    %2655 = arith.extui %2654 : vector<1x16xi1> to vector<1x16xi32>
    %2656 = arith.sitofp %2655 : vector<1x16xi32> to vector<1x16xf32>
    %c2_i32_627 = arith.constant 2 : i32
    %2657 = vector.broadcast %c2_i32_627 : i32 to vector<8x16xi32>
    %2658 = arith.cmpi eq, %8, %2657 : vector<8x16xi32>
    %2659 = vector.shape_cast %2656 : vector<1x16xf32> to vector<1x16xf32>
    %2660 = vector.broadcast %2659 : vector<1x16xf32> to vector<8x16xf32>
    %2661 = arith.select %2658, %2660, %2647 : vector<8x16xi1>, vector<8x16xf32>
    %2662 = vector.extract_strided_slice %2448 {offsets = [3, 0], sizes = [1, 16], strides = [1, 1]} : vector<8x16xf32> to vector<1x16xf32>
    %cst_628 = arith.constant 0.949999988 : f32
    %2663 = vector.broadcast %cst_628 : f32 to vector<1x16xf32>
    %2664 = arith.mulf %2663, %2652 : vector<1x16xf32>
    %2665 = arith.addf %2664, %2662 : vector<1x16xf32>
    %2666 = arith.subf %2665, %2656 : vector<1x16xf32>
    %cst_629 = arith.constant 1.000000e+00 : f32
    %2667 = vector.broadcast %cst_629 : f32 to vector<1x16xf32>
    %2668 = arith.cmpf ogt, %2666, %2667 : vector<1x16xf32>
    %2669 = arith.extui %2668 : vector<1x16xi1> to vector<1x16xi32>
    %2670 = arith.sitofp %2669 : vector<1x16xi32> to vector<1x16xf32>
    %c3_i32_630 = arith.constant 3 : i32
    %2671 = vector.broadcast %c3_i32_630 : i32 to vector<8x16xi32>
    %2672 = arith.cmpi eq, %8, %2671 : vector<8x16xi32>
    %2673 = vector.shape_cast %2670 : vector<1x16xf32> to vector<1x16xf32>
    %2674 = vector.broadcast %2673 : vector<1x16xf32> to vector<8x16xf32>
    %2675 = arith.select %2672, %2674, %2661 : vector<8x16xi1>, vector<8x16xf32>
    %2676 = vector.extract_strided_slice %2448 {offsets = [4, 0], sizes = [1, 16], strides = [1, 1]} : vector<8x16xf32> to vector<1x16xf32>
    %cst_631 = arith.constant 0.949999988 : f32
    %2677 = vector.broadcast %cst_631 : f32 to vector<1x16xf32>
    %2678 = arith.mulf %2677, %2666 : vector<1x16xf32>
    %2679 = arith.addf %2678, %2676 : vector<1x16xf32>
    %2680 = arith.subf %2679, %2670 : vector<1x16xf32>
    %cst_632 = arith.constant 1.000000e+00 : f32
    %2681 = vector.broadcast %cst_632 : f32 to vector<1x16xf32>
    %2682 = arith.cmpf ogt, %2680, %2681 : vector<1x16xf32>
    %2683 = arith.extui %2682 : vector<1x16xi1> to vector<1x16xi32>
    %2684 = arith.sitofp %2683 : vector<1x16xi32> to vector<1x16xf32>
    %c4_i32_633 = arith.constant 4 : i32
    %2685 = vector.broadcast %c4_i32_633 : i32 to vector<8x16xi32>
    %2686 = arith.cmpi eq, %8, %2685 : vector<8x16xi32>
    %2687 = vector.shape_cast %2684 : vector<1x16xf32> to vector<1x16xf32>
    %2688 = vector.broadcast %2687 : vector<1x16xf32> to vector<8x16xf32>
    %2689 = arith.select %2686, %2688, %2675 : vector<8x16xi1>, vector<8x16xf32>
    %2690 = vector.extract_strided_slice %2448 {offsets = [5, 0], sizes = [1, 16], strides = [1, 1]} : vector<8x16xf32> to vector<1x16xf32>
    %cst_634 = arith.constant 0.949999988 : f32
    %2691 = vector.broadcast %cst_634 : f32 to vector<1x16xf32>
    %2692 = arith.mulf %2691, %2680 : vector<1x16xf32>
    %2693 = arith.addf %2692, %2690 : vector<1x16xf32>
    %2694 = arith.subf %2693, %2684 : vector<1x16xf32>
    %cst_635 = arith.constant 1.000000e+00 : f32
    %2695 = vector.broadcast %cst_635 : f32 to vector<1x16xf32>
    %2696 = arith.cmpf ogt, %2694, %2695 : vector<1x16xf32>
    %2697 = arith.extui %2696 : vector<1x16xi1> to vector<1x16xi32>
    %2698 = arith.sitofp %2697 : vector<1x16xi32> to vector<1x16xf32>
    %c5_i32_636 = arith.constant 5 : i32
    %2699 = vector.broadcast %c5_i32_636 : i32 to vector<8x16xi32>
    %2700 = arith.cmpi eq, %8, %2699 : vector<8x16xi32>
    %2701 = vector.shape_cast %2698 : vector<1x16xf32> to vector<1x16xf32>
    %2702 = vector.broadcast %2701 : vector<1x16xf32> to vector<8x16xf32>
    %2703 = arith.select %2700, %2702, %2689 : vector<8x16xi1>, vector<8x16xf32>
    %2704 = vector.extract_strided_slice %2448 {offsets = [6, 0], sizes = [1, 16], strides = [1, 1]} : vector<8x16xf32> to vector<1x16xf32>
    %cst_637 = arith.constant 0.949999988 : f32
    %2705 = vector.broadcast %cst_637 : f32 to vector<1x16xf32>
    %2706 = arith.mulf %2705, %2694 : vector<1x16xf32>
    %2707 = arith.addf %2706, %2704 : vector<1x16xf32>
    %2708 = arith.subf %2707, %2698 : vector<1x16xf32>
    %cst_638 = arith.constant 1.000000e+00 : f32
    %2709 = vector.broadcast %cst_638 : f32 to vector<1x16xf32>
    %2710 = arith.cmpf ogt, %2708, %2709 : vector<1x16xf32>
    %2711 = arith.extui %2710 : vector<1x16xi1> to vector<1x16xi32>
    %2712 = arith.sitofp %2711 : vector<1x16xi32> to vector<1x16xf32>
    %c6_i32_639 = arith.constant 6 : i32
    %2713 = vector.broadcast %c6_i32_639 : i32 to vector<8x16xi32>
    %2714 = arith.cmpi eq, %8, %2713 : vector<8x16xi32>
    %2715 = vector.shape_cast %2712 : vector<1x16xf32> to vector<1x16xf32>
    %2716 = vector.broadcast %2715 : vector<1x16xf32> to vector<8x16xf32>
    %2717 = arith.select %2714, %2716, %2703 : vector<8x16xi1>, vector<8x16xf32>
    %2718 = vector.extract_strided_slice %2448 {offsets = [7, 0], sizes = [1, 16], strides = [1, 1]} : vector<8x16xf32> to vector<1x16xf32>
    %cst_640 = arith.constant 0.949999988 : f32
    %2719 = vector.broadcast %cst_640 : f32 to vector<1x16xf32>
    %2720 = arith.mulf %2719, %2708 : vector<1x16xf32>
    %2721 = arith.addf %2720, %2718 : vector<1x16xf32>
    %2722 = arith.subf %2721, %2712 : vector<1x16xf32>
    %cst_641 = arith.constant 1.000000e+00 : f32
    %2723 = vector.broadcast %cst_641 : f32 to vector<1x16xf32>
    %2724 = arith.cmpf ogt, %2722, %2723 : vector<1x16xf32>
    %2725 = arith.extui %2724 : vector<1x16xi1> to vector<1x16xi32>
    %2726 = arith.sitofp %2725 : vector<1x16xi32> to vector<1x16xf32>
    %c7_i32_642 = arith.constant 7 : i32
    %2727 = vector.broadcast %c7_i32_642 : i32 to vector<8x16xi32>
    %2728 = arith.cmpi eq, %8, %2727 : vector<8x16xi32>
    %2729 = vector.shape_cast %2726 : vector<1x16xf32> to vector<1x16xf32>
    %2730 = vector.broadcast %2729 : vector<1x16xf32> to vector<8x16xf32>
    %2731 = arith.select %2728, %2730, %2717 : vector<8x16xi1>, vector<8x16xf32>
    %c88 = arith.constant 88 : index
    %c0_643 = arith.constant 0 : index
    %2732 = vector.load %arg6[%c88, %c0_643] : memref<100x16xf32, #tpu.memory_space<vmem>>, vector<8x16xf32>
    tpu.vector_store %arg6[%c88, %c0_643], %2731 {strides = array<i32>} : memref<100x16xf32, #tpu.memory_space<vmem>>, vector<8x16xf32>,
    %cst_644 = arith.constant 0.000000e+00 : f32
    %2733 = vector.broadcast %cst_644 : f32 to vector<8x16xf32>
    %2734 = vector.extract_strided_slice %2618 {offsets = [0, 0], sizes = [1, 16], strides = [1, 1]} : vector<8x16xf32> to vector<1x16xf32>
    %cst_645 = arith.constant 0.949999988 : f32
    %2735 = vector.broadcast %cst_645 : f32 to vector<1x16xf32>
    %2736 = arith.mulf %2735, %2722 : vector<1x16xf32>
    %2737 = arith.addf %2736, %2734 : vector<1x16xf32>
    %2738 = arith.subf %2737, %2726 : vector<1x16xf32>
    %cst_646 = arith.constant 1.000000e+00 : f32
    %2739 = vector.broadcast %cst_646 : f32 to vector<1x16xf32>
    %2740 = arith.cmpf ogt, %2738, %2739 : vector<1x16xf32>
    %2741 = arith.extui %2740 : vector<1x16xi1> to vector<1x16xi32>
    %2742 = arith.sitofp %2741 : vector<1x16xi32> to vector<1x16xf32>
    %c0_i32_647 = arith.constant 0 : i32
    %2743 = vector.broadcast %c0_i32_647 : i32 to vector<8x16xi32>
    %2744 = arith.cmpi eq, %8, %2743 : vector<8x16xi32>
    %2745 = vector.shape_cast %2742 : vector<1x16xf32> to vector<1x16xf32>
    %2746 = vector.broadcast %2745 : vector<1x16xf32> to vector<8x16xf32>
    %2747 = arith.select %2744, %2746, %2733 : vector<8x16xi1>, vector<8x16xf32>
    %2748 = vector.extract_strided_slice %2618 {offsets = [1, 0], sizes = [1, 16], strides = [1, 1]} : vector<8x16xf32> to vector<1x16xf32>
    %cst_648 = arith.constant 0.949999988 : f32
    %2749 = vector.broadcast %cst_648 : f32 to vector<1x16xf32>
    %2750 = arith.mulf %2749, %2738 : vector<1x16xf32>
    %2751 = arith.addf %2750, %2748 : vector<1x16xf32>
    %2752 = arith.subf %2751, %2742 : vector<1x16xf32>
    %cst_649 = arith.constant 1.000000e+00 : f32
    %2753 = vector.broadcast %cst_649 : f32 to vector<1x16xf32>
    %2754 = arith.cmpf ogt, %2752, %2753 : vector<1x16xf32>
    %2755 = arith.extui %2754 : vector<1x16xi1> to vector<1x16xi32>
    %2756 = arith.sitofp %2755 : vector<1x16xi32> to vector<1x16xf32>
    %c1_i32_650 = arith.constant 1 : i32
    %2757 = vector.broadcast %c1_i32_650 : i32 to vector<8x16xi32>
    %2758 = arith.cmpi eq, %8, %2757 : vector<8x16xi32>
    %2759 = vector.shape_cast %2756 : vector<1x16xf32> to vector<1x16xf32>
    %2760 = vector.broadcast %2759 : vector<1x16xf32> to vector<8x16xf32>
    %2761 = arith.select %2758, %2760, %2747 : vector<8x16xi1>, vector<8x16xf32>
    %2762 = vector.extract_strided_slice %2618 {offsets = [2, 0], sizes = [1, 16], strides = [1, 1]} : vector<8x16xf32> to vector<1x16xf32>
    %cst_651 = arith.constant 0.949999988 : f32
    %2763 = vector.broadcast %cst_651 : f32 to vector<1x16xf32>
    %2764 = arith.mulf %2763, %2752 : vector<1x16xf32>
    %2765 = arith.addf %2764, %2762 : vector<1x16xf32>
    %2766 = arith.subf %2765, %2756 : vector<1x16xf32>
    %cst_652 = arith.constant 1.000000e+00 : f32
    %2767 = vector.broadcast %cst_652 : f32 to vector<1x16xf32>
    %2768 = arith.cmpf ogt, %2766, %2767 : vector<1x16xf32>
    %2769 = arith.extui %2768 : vector<1x16xi1> to vector<1x16xi32>
    %2770 = arith.sitofp %2769 : vector<1x16xi32> to vector<1x16xf32>
    %c2_i32_653 = arith.constant 2 : i32
    %2771 = vector.broadcast %c2_i32_653 : i32 to vector<8x16xi32>
    %2772 = arith.cmpi eq, %8, %2771 : vector<8x16xi32>
    %2773 = vector.shape_cast %2770 : vector<1x16xf32> to vector<1x16xf32>
    %2774 = vector.broadcast %2773 : vector<1x16xf32> to vector<8x16xf32>
    %2775 = arith.select %2772, %2774, %2761 : vector<8x16xi1>, vector<8x16xf32>
    %2776 = vector.extract_strided_slice %2618 {offsets = [3, 0], sizes = [1, 16], strides = [1, 1]} : vector<8x16xf32> to vector<1x16xf32>
    %cst_654 = arith.constant 0.949999988 : f32
    %2777 = vector.broadcast %cst_654 : f32 to vector<1x16xf32>
    %2778 = arith.mulf %2777, %2766 : vector<1x16xf32>
    %2779 = arith.addf %2778, %2776 : vector<1x16xf32>
    %2780 = arith.subf %2779, %2770 : vector<1x16xf32>
    %cst_655 = arith.constant 1.000000e+00 : f32
    %2781 = vector.broadcast %cst_655 : f32 to vector<1x16xf32>
    %2782 = arith.cmpf ogt, %2780, %2781 : vector<1x16xf32>
    %2783 = arith.extui %2782 : vector<1x16xi1> to vector<1x16xi32>
    %2784 = arith.sitofp %2783 : vector<1x16xi32> to vector<1x16xf32>
    %c3_i32_656 = arith.constant 3 : i32
    %2785 = vector.broadcast %c3_i32_656 : i32 to vector<8x16xi32>
    %2786 = arith.cmpi eq, %8, %2785 : vector<8x16xi32>
    %2787 = vector.shape_cast %2784 : vector<1x16xf32> to vector<1x16xf32>
    %2788 = vector.broadcast %2787 : vector<1x16xf32> to vector<8x16xf32>
    %2789 = arith.select %2786, %2788, %2775 : vector<8x16xi1>, vector<8x16xf32>
    %2790 = vector.extract_strided_slice %2789 {offsets = [0, 0], sizes = [4, 16], strides = [1, 1]} : vector<8x16xf32> to vector<4x16xf32>
    %c96 = arith.constant 96 : index
    %c0_657 = arith.constant 0 : index
    %2791 = vector.load %arg6[%c96, %c0_657] : memref<100x16xf32, #tpu.memory_space<vmem>>, vector<4x16xf32>
    tpu.vector_store %arg6[%c96, %c0_657], %2790 {strides = array<i32>} : memref<100x16xf32, #tpu.memory_space<vmem>>, vector<4x16xf32>,
    return
  }
  func.func @transform_0(%arg0: i32) -> (i32, i32) {
    %c0_i32 = arith.constant 0 : i32
    %c0_i32_0 = arith.constant 0 : i32
    %c0_i32_1 = arith.constant 0 : i32
    return %c0_i32, %c0_i32_0 : i32, i32
  }
  func.func @transform_1(%arg0: i32) -> (i32, i32) {
    %c0_i32 = arith.constant 0 : i32
    %c0_i32_0 = arith.constant 0 : i32
    %c0_i32_1 = arith.constant 0 : i32
    return %c0_i32, %c0_i32_0 : i32, i32
  }
  func.func @transform_2(%arg0: i32) -> (i32, i32) {
    %c0_i32 = arith.constant 0 : i32
    %c0_i32_0 = arith.constant 0 : i32
    %c0_i32_1 = arith.constant 0 : i32
    return %c0_i32, %c0_i32_0 : i32, i32
  }
  func.func @transform_3(%arg0: i32) -> (i32, i32) {
    %c0_i32 = arith.constant 0 : i32
    %c0_i32_0 = arith.constant 0 : i32
    %c0_i32_1 = arith.constant 0 : i32
    return %c0_i32, %c0_i32_0 : i32, i32
  }
  func.func @transform_4(%arg0: i32) -> (i32, i32) {
    %c0_i32 = arith.constant 0 : i32
    %c0_i32_0 = arith.constant 0 : i32
    %c0_i32_1 = arith.constant 0 : i32
    return %c0_i32, %c0_i32_0 : i32, i32
  }
  func.func @transform_5(%arg0: i32) -> (i32, i32) {
    %c0_i32 = arith.constant 0 : i32
    %c0_i32_0 = arith.constant 0 : i32
    %c0_i32_1 = arith.constant 0 : i32
    return %c0_i32, %c0_i32_0 : i32, i32
  }
}

</mosaic_0001>

<bundles_post_ra>
// kernel: tpu_custom_call.1
= control target key start
LH: loop header
LB: loop body
LE: loop exit
PB: predicated region body
PF: predicated region fallthrough
CT: control target
= control target key end

     0   :  { %vm26_vm0 = vcmask 261120   ;;  %v2392_v18 = vmov 0.0   ;;  %v59_v36 = vlaneseq  ;;  %s3681_s1 = inlined_call_operand.vmem [shape: f32[32,64], index: 1, kind: input, shape index: {}]   ;;  %s3682_s0 = inlined_call_operand.vmem [shape: f32[1,32], index: 0, kind: input, shape index: {}]   ;;  %s3683_s3 = inlined_call_operand.vmem [shape: f32[64,16], index: 3, kind: input, shape index: {}]   ;;  %s3684_s2 = inlined_call_operand.vmem [shape: f32[1,64], index: 2, kind: input, shape index: {}]   ;;  %s3685_s4 = inlined_call_operand.vmem [shape: f32[1,16], index: 4, kind: input, shape index: {}]   ;;  %s3686_s5 = inlined_call_operand.vmem [shape: f32[100,16], index: 5, kind: output, shape index: {}]  }
   0x1   :  { %v24_v0 = vld [vmem:[%s3681_s1 + $0x18] sm:$0xff]  ;;  %v23_v1 = vld [vmem:[%s3681_s1 + $0x10] sm:$0xff]  ;;  %v22_v2 = vld [vmem:[%s3681_s1 + $0x8] sm:$0xff] }
   0x2   :  { %42 = vmatpush.msra.mxu0 %v24_v0  ;;  %v21_v3 = vld [vmem:[%s3681_s1] sm:$0xff]  ;;  %v2441_v5 = vld [vmem:[%s3683_s3 + $0x38] sm:$0xff]  ;;  %v2446_v6 = vld [vmem:[%s3683_s3 + $0x30] sm:$0xff]  ;;  %v2559_v39 = vshrl.u32 %v59_v36, 7 }
   0x3   :  { %v20_v4 = vld [vmem:[%s3682_s0] sm:$0x1]  ;;  %146 = vmatpush.msra.mxu1 %v2441_v5  ;;  %233 = vmatpush.msra.mxu2 %v2441_v5  ;;  %v2453_v7 = vld [vmem:[%s3683_s3 + $0x28] sm:$0xff]  ;;  %v2471_v9 = vld [vmem:[%s3683_s3 + $0x18] sm:$0xff] }
   0x4   :  { %43 = vmatpush.msra.mxu0 %v23_v1  ;;  %399 = vmatpush.msra.mxu3 %v2441_v5  ;;  %v2462_v8 = vld [vmem:[%s3683_s3 + $0x20] sm:$0xff]  ;;  %v2480_v10 = vld [vmem:[%s3683_s3 + $0x10] sm:$0xff]  ;;  %v2489_v11 = vld [vmem:[%s3683_s3 + $0x8] sm:$0xff]  ;;  %vm65_vm7 = vcmp.eq.s32.totalorder %v2559_v39, 0  ;;  %vm74_vm9 = vcmp.eq.s32.totalorder %v2559_v39, 1  ;;  %vm83_vm10 = vcmp.eq.s32.totalorder %v2559_v39, 2 }
   0x5   :  { %147 = vmatpush.msra.mxu1 %v2446_v6  ;;  %234 = vmatpush.msra.mxu2 %v2446_v6  ;;  %v2498_v12 = vld [vmem:[%s3683_s3] sm:$0xff]  ;;  %vm92_vm11 = vcmp.eq.s32.totalorder %v2559_v39, 3  ;;  %vm101_vm12 = vcmp.eq.s32.totalorder %v2559_v39, 4  ;;  %vm110_vm13 = vcmp.eq.s32.totalorder %v2559_v39, 5  ;;  %vm119_vm14 = vcmp.eq.s32.totalorder %v2559_v39, 6 }
   0x6   :  { %44 = vmatpush.msra.mxu0 %v22_v2  ;;  %400 = vmatpush.msra.mxu3 %v2446_v6  ;;  %v25_v13 = vld [vmem:[%s3684_s2] sm:$0x1] }
   0x7   :  { %148 = vmatpush.msra.mxu1 %v2453_v7  ;;  %235 = vmatpush.msra.mxu2 %v2453_v7 }
   0x8   :  { %45 = vmatpush.msra.mxu0 %v21_v3  ;;  %401 = vmatpush.msra.mxu3 %v2453_v7 }
   0x9   :  { %2174 = vmatmul.msk.f32.vlgmr.msra.gmra.mxu0 %vm26_vm0, %v20_v4  ;;  %149 = vmatpush.msra.mxu1 %v2462_v8  ;;  %vm128_vm0 = vcmp.eq.s32.totalorder %v2559_v39, 7 }
   0xa   :  { %566 = vmatpush.msrb.mxu0 %v2441_v5  ;;  %236 = vmatpush.msra.mxu2 %v2462_v8 }
   0xb   :  { %402 = vmatpush.msra.mxu3 %v2462_v8  ;;  %150 = vmatpush.msra.mxu1 %v2471_v9 }
   0xc   :  { %567 = vmatpush.msrb.mxu0 %v2446_v6  ;;  %237 = vmatpush.msra.mxu2 %v2471_v9 }
   0xd   :  { %403 = vmatpush.msra.mxu3 %v2471_v9  ;;  %151 = vmatpush.msra.mxu1 %v2480_v10 }
   0xe   :  { %568 = vmatpush.msrb.mxu0 %v2453_v7  ;;  %238 = vmatpush.msra.mxu2 %v2480_v10 }
   0xf   :  { %404 = vmatpush.msra.mxu3 %v2480_v10  ;;  %152 = vmatpush.msra.mxu1 %v2489_v11 }
  0x10   :  { %569 = vmatpush.msrb.mxu0 %v2462_v8  ;;  %239 = vmatpush.msra.mxu2 %v2489_v11 }
  0x11   :  { %405 = vmatpush.msra.mxu3 %v2489_v11  ;;  %153 = vmatpush.msra.mxu1 %v2498_v12 }
  0x12   :  { %570 = vmatpush.msrb.mxu0 %v2471_v9  ;;  %240 = vmatpush.msra.mxu2 %v2498_v12 }
  0x13   :  { %406 = vmatpush.msra.mxu3 %v2498_v12  ;;  %733 = vmatpush.msrb.mxu1 %v2441_v5 }
  0x14   :  { %571 = vmatpush.msrb.mxu0 %v2480_v10  ;;  %900 = vmatpush.msrb.mxu2 %v2441_v5 }
  0x15   :  { %1067 = vmatpush.msrb.mxu3 %v2441_v5  ;;  %734 = vmatpush.msrb.mxu1 %v2446_v6 }
  0x16   :  { %572 = vmatpush.msrb.mxu0 %v2489_v11  ;;  %901 = vmatpush.msrb.mxu2 %v2446_v6 }
  0x17   :  { %1068 = vmatpush.msrb.mxu3 %v2446_v6  ;;  %735 = vmatpush.msrb.mxu1 %v2453_v7 }
  0x18   :  { %573 = vmatpush.msrb.mxu0 %v2498_v12  ;;  %902 = vmatpush.msrb.mxu2 %v2453_v7 }
  0x19   :  { %1069 = vmatpush.msrb.mxu3 %v2453_v7  ;;  %736 = vmatpush.msrb.mxu1 %v2462_v8 }
  0x1a   :  { %1234 = vmatpush.msra.mxu0 %v2441_v5  ;;  %903 = vmatpush.msrb.mxu2 %v2462_v8 }
  0x1b   :  { %1070 = vmatpush.msrb.mxu3 %v2462_v8  ;;  %737 = vmatpush.msrb.mxu1 %v2471_v9 }
  0x1c   :  { %1235 = vmatpush.msra.mxu0 %v2446_v6  ;;  %904 = vmatpush.msrb.mxu2 %v2471_v9 }
  0x1d   :  { %1071 = vmatpush.msrb.mxu3 %v2471_v9  ;;  %738 = vmatpush.msrb.mxu1 %v2480_v10 }
  0x1e   :  { %1236 = vmatpush.msra.mxu0 %v2453_v7  ;;  %905 = vmatpush.msrb.mxu2 %v2480_v10 }
  0x1f   :  { %1072 = vmatpush.msrb.mxu3 %v2480_v10  ;;  %739 = vmatpush.msrb.mxu1 %v2489_v11 }
  0x20   :  { %1237 = vmatpush.msra.mxu0 %v2462_v8  ;;  %906 = vmatpush.msrb.mxu2 %v2489_v11 }
  0x21   :  { %1073 = vmatpush.msrb.mxu3 %v2489_v11  ;;  %740 = vmatpush.msrb.mxu1 %v2498_v12 }
  0x22   :  { %1238 = vmatpush.msra.mxu0 %v2471_v9  ;;  %907 = vmatpush.msrb.mxu2 %v2498_v12 }
  0x23   :  { %1074 = vmatpush.msrb.mxu3 %v2498_v12 }
  0x24   :  { %1239 = vmatpush.msra.mxu0 %v2480_v10 }
  0x26   :  { %1240 = vmatpush.msra.mxu0 %v2489_v11 }
  0x28   :  { %1241 = vmatpush.msra.mxu0 %v2498_v12 }
  0x86   :  { %v47_v14 = vpop.f32.mrf.mxu0 }
  0x87   :  { %v2543_v15 = vadd.f32 %v47_v14, %v25_v13 }
  0x89   :  { %vm62_vm1 = vcmp.gt.f32.partialorder %v2543_v15, 1.0  ;;  %v68_v16 = vmul.f32 0.95, %v2543_v15 }
  0x8a   :  { %v2175_v19 = vsel %vm62_vm1, 1.0, %v2392_v18  ;;  %vm134_vm1 = vcmask 523264  }
  0x8b   :  { %v69_v17 = vadd.f32 %v68_v16, %v2543_v15  ;;  %v66_v43 = vperm.slane %v2175_v19, 0 }
  0x8d   :  { %v70_v20 = vsub.f32 %v69_v17, %v2175_v19  ;;  %v67_v50 = vsel %vm65_vm7, %v66_v43, 0.0 }
  0x8f   :  { %vm71_vm2 = vcmp.gt.f32.partialorder %v70_v20, 1.0  ;;  %v77_v21 = vmul.f32 0.95, %v70_v20 }
  0x90   :  { %v2176_v23 = vsel %vm71_vm2, 1.0, %v2392_v18 }
  0x91   :  { %v78_v22 = vadd.f32 %v77_v21, %v2543_v15  ;;  %v75_v44 = vperm.slane %v2176_v23, 0 }
  0x93   :  { %v79_v24 = vsub.f32 %v78_v22, %v2176_v23  ;;  %v76_v52 = vsel %vm74_vm9, %v75_v44, %v67_v50 }
  0x95   :  { %vm80_vm3 = vcmp.gt.f32.partialorder %v79_v24, 1.0  ;;  %v86_v25 = vmul.f32 0.95, %v79_v24 }
  0x96   :  { %v2177_v27 = vsel %vm80_vm3, 1.0, %v2392_v18 }
  0x97   :  { %v87_v26 = vadd.f32 %v86_v25, %v2543_v15  ;;  %v84_v46 = vperm.slane %v2177_v27, 0 }
  0x99   :  { %v88_v28 = vsub.f32 %v87_v26, %v2177_v27  ;;  %v85_v55 = vsel %vm83_vm10, %v84_v46, %v76_v52 }
  0x9b   :  { %vm89_vm4 = vcmp.gt.f32.partialorder %v88_v28, 1.0  ;;  %v95_v29 = vmul.f32 0.95, %v88_v28 }
  0x9c   :  { %v2178_v31 = vsel %vm89_vm4, 1.0, %v2392_v18 }
  0x9d   :  { %v96_v30 = vadd.f32 %v95_v29, %v2543_v15  ;;  %v93_v47 = vperm.slane %v2178_v31, 0 }
  0x9f   :  { %v97_v32 = vsub.f32 %v96_v30, %v2178_v31  ;;  %v94_v57 = vsel %vm92_vm11, %v93_v47, %v85_v55 }
  0xa1   :  { %vm98_vm5 = vcmp.gt.f32.partialorder %v97_v32, 1.0  ;;  %v104_v33 = vmul.f32 0.95, %v97_v32 }
  0xa2   :  { %v2179_v35 = vsel %vm98_vm5, 1.0, %v2392_v18 }
  0xa3   :  { %v105_v34 = vadd.f32 %v104_v33, %v2543_v15  ;;  %v102_v51 = vperm.slane %v2179_v35, 0 }
  0xa5   :  { %v106_v37 = vsub.f32 %v105_v34, %v2179_v35  ;;  %v103_v59 = vsel %vm101_vm12, %v102_v51, %v94_v57 }
  0xa7   :  { %vm107_vm6 = vcmp.gt.f32.partialorder %v106_v37, 1.0  ;;  %v113_v38 = vmul.f32 0.95, %v106_v37 }
  0xa8   :  { %v2180_v41 = vsel %vm107_vm6, 1.0, %v2392_v18 }
  0xa9   :  { %v114_v40 = vadd.f32 %v113_v38, %v2543_v15  ;;  %v111_v53 = vperm.slane %v2180_v41, 0 }
  0xab   :  { %v115_v42 = vsub.f32 %v114_v40, %v2180_v41  ;;  %v112_v61 = vsel %vm110_vm13, %v111_v53, %v103_v59 }
  0xad   :  { %vm116_vm8 = vcmp.gt.f32.partialorder %v115_v42, 1.0  ;;  %v122_v45 = vmul.f32 0.95, %v115_v42 }
  0xae   :  { %v2181_v48 = vsel %vm116_vm8, 1.0, %v2392_v18 }
  0xaf   :  { %v123_v49 = vadd.f32 %v122_v45, %v2543_v15  ;;  %v120_v56 = vperm.slane %v2181_v48, 0 }
  0xb1   :  { %v124_v54 = vsub.f32 %v123_v49, %v2181_v48  ;;  %v121_v0 = vsel %vm119_vm14, %v120_v56, %v112_v61 }
  0xb3   :  { %vm125_vm15 = vcmp.gt.f32.partialorder %v124_v54, 1.0  ;;  %v158_v58 = vmul.f32 0.95, %v124_v54 }
  0xb4   :  { %v2182_v60 = vsel %vm125_vm15, 1.0, %v2392_v18 }
  0xb5   :  { %v129_v62 = vperm.slane %v2182_v60, 0  ;;  %v159_v63 = vadd.f32 %v158_v58, %v2543_v15 }
  0xb7   :  { %v130_v1 = vsel %vm128_vm0, %v129_v62, %v121_v0  ;;  %v160_v2 = vsub.f32 %v159_v63, %v2182_v60 }
  0xb8   :  { %2183 = vmatmul.msk.f32.vlgmr.msra.gmra.mxu1 %vm134_vm1, %v130_v1 }
  0xb9   :  { %vm161_vm2 = vcmp.gt.f32.partialorder %v160_v2, 1.0  ;;  %v166_v3 = vmul.f32 0.95, %v160_v2  ;;  %1401 = vmatpush.msra.mxu1 %v2441_v5 }
  0xba   :  { %v2184_v13 = vsel %vm161_vm2, 1.0, %v2392_v18 }
  0xbb   :  { %v167_v4 = vadd.f32 %v166_v3, %v2543_v15  ;;  %1402 = vmatpush.msra.mxu1 %v2446_v6  ;;  %v164_v37 = vperm.slane %v2184_v13, 0 }
  0xbd   :  { %v168_v14 = vsub.f32 %v167_v4, %v2184_v13  ;;  %1403 = vmatpush.msra.mxu1 %v2453_v7  ;;  %v165_v45 = vsel %vm65_vm7, %v164_v37, 0.0 }
  0xbf   :  { %vm169_vm3 = vcmp.gt.f32.partialorder %v168_v14, 1.0  ;;  %v174_v16 = vmul.f32 0.95, %v168_v14  ;;  %1404 = vmatpush.msra.mxu1 %v2462_v8 }
  0xc0   :  { %v2185_v19 = vsel %vm169_vm3, 1.0, %v2392_v18 }
  0xc1   :  { %v175_v17 = vadd.f32 %v174_v16, %v2543_v15  ;;  %1405 = vmatpush.msra.mxu1 %v2471_v9  ;;  %v172_v38 = vperm.slane %v2185_v19, 0 }
  0xc3   :  { %v176_v20 = vsub.f32 %v175_v17, %v2185_v19  ;;  %1406 = vmatpush.msra.mxu1 %v2480_v10  ;;  %v173_v47 = vsel %vm74_vm9, %v172_v38, %v165_v45 }
  0xc5   :  { %vm177_vm4 = vcmp.gt.f32.partialorder %v176_v20, 1.0  ;;  %v182_v21 = vmul.f32 0.95, %v176_v20  ;;  %1407 = vmatpush.msra.mxu1 %v2489_v11 }
  0xc6   :  { %v2186_v23 = vsel %vm177_vm4, 1.0, %v2392_v18 }
  0xc7   :  { %v183_v22 = vadd.f32 %v182_v21, %v2543_v15  ;;  %1408 = vmatpush.msra.mxu1 %v2498_v12  ;;  %v180_v41 = vperm.slane %v2186_v23, 0 }
  0xc9   :  { %v184_v24 = vsub.f32 %v183_v22, %v2186_v23  ;;  %v181_v50 = vsel %vm83_vm10, %v180_v41, %v173_v47 }
  0xcb   :  { %vm185_vm5 = vcmp.gt.f32.partialorder %v184_v24, 1.0  ;;  %v190_v25 = vmul.f32 0.95, %v184_v24 }
  0xcc   :  { %v2187_v27 = vsel %vm185_vm5, 1.0, %v2392_v18 }
  0xcd   :  { %v191_v26 = vadd.f32 %v190_v25, %v2543_v15  ;;  %v188_v42 = vperm.slane %v2187_v27, 0 }
  0xcf   :  { %v192_v28 = vsub.f32 %v191_v26, %v2187_v27  ;;  %v189_v52 = vsel %vm92_vm11, %v188_v42, %v181_v50 }
  0xd1   :  { %vm193_vm6 = vcmp.gt.f32.partialorder %v192_v28, 1.0  ;;  %v198_v29 = vmul.f32 0.95, %v192_v28 }
  0xd2   :  { %v2188_v31 = vsel %vm193_vm6, 1.0, %v2392_v18 }
  0xd3   :  { %v199_v30 = vadd.f32 %v198_v29, %v2543_v15  ;;  %v196_v46 = vperm.slane %v2188_v31, 0 }
  0xd5   :  { %v200_v32 = vsub.f32 %v199_v30, %v2188_v31  ;;  %v197_v54 = vsel %vm101_vm12, %v196_v46, %v189_v52 }
  0xd7   :  { %vm201_vm8 = vcmp.gt.f32.partialorder %v200_v32, 1.0  ;;  %v206_v33 = vmul.f32 0.95, %v200_v32 }
  0xd8   :  { %v2189_v35 = vsel %vm201_vm8, 1.0, %v2392_v18 }
  0xd9   :  { %v207_v34 = vadd.f32 %v206_v33, %v2543_v15  ;;  %v204_v48 = vperm.slane %v2189_v35, 0 }
  0xdb   :  { %v208_v36 = vsub.f32 %v207_v34, %v2189_v35  ;;  %v205_v56 = vsel %vm110_vm13, %v204_v48, %v197_v54 }
  0xdd   :  { %vm209_vm15 = vcmp.gt.f32.partialorder %v208_v36, 1.0  ;;  %v214_v40 = vmul.f32 0.95, %v208_v36 }
  0xde   :  { %v2190_v43 = vsel %vm209_vm15, 1.0, %v2392_v18 }
  0xdf   :  { %v215_v44 = vadd.f32 %v214_v40, %v2543_v15  ;;  %v212_v51 = vperm.slane %v2190_v43, 0 }
  0xe1   :  { %v216_v49 = vsub.f32 %v215_v44, %v2190_v43  ;;  %v213_v59 = vsel %vm119_vm14, %v212_v51, %v205_v56 }
  0xe3   :  { %vm217_vm2 = vcmp.gt.f32.partialorder %v216_v49, 1.0  ;;  %v245_v53 = vmul.f32 0.95, %v216_v49 }
  0xe4   :  { %v2191_v55 = vsel %vm217_vm2, 1.0, %v2392_v18 }
  0xe5   :  { %v220_v57 = vperm.slane %v2191_v55, 0  ;;  %v246_v58 = vadd.f32 %v245_v53, %v2543_v15 }
  0xe7   :  { %v221_v60 = vsel %vm128_vm0, %v220_v57, %v213_v59  ;;  %v247_v61 = vsub.f32 %v246_v58, %v2191_v55 }
  0xe8   :  { %2192 = vmatmul.msk.f32.vlgmr.msra.gmra.mxu2 %vm134_vm1, %v221_v60 }
  0xe9   :  { %vm248_vm3 = vcmp.gt.f32.partialorder %v247_v61, 1.0  ;;  %v253_v62 = vmul.f32 0.95, %v247_v61  ;;  %1568 = vmatpush.msra.mxu2 %v2441_v5 }
  0xea   :  { %v2193_v0 = vsel %vm248_vm3, 1.0, %v2392_v18 }
  0xeb   :  { %v254_v63 = vadd.f32 %v253_v62, %v2543_v15  ;;  %1569 = vmatpush.msra.mxu2 %v2446_v6  ;;  %v251_v32 = vperm.slane %v2193_v0, 0 }
  0xed   :  { %v255_v1 = vsub.f32 %v254_v63, %v2193_v0  ;;  %1570 = vmatpush.msra.mxu2 %v2453_v7  ;;  %v252_v40 = vsel %vm65_vm7, %v251_v32, 0.0 }
  0xef   :  { %vm256_vm4 = vcmp.gt.f32.partialorder %v255_v1, 1.0  ;;  %v261_v2 = vmul.f32 0.95, %v255_v1  ;;  %1571 = vmatpush.msra.mxu2 %v2462_v8 }
  0xf0   :  { %v2194_v4 = vsel %vm256_vm4, 1.0, %v2392_v18 }
  0xf1   :  { %v262_v3 = vadd.f32 %v261_v2, %v2543_v15  ;;  %1572 = vmatpush.msra.mxu2 %v2471_v9  ;;  %v259_v33 = vperm.slane %v2194_v4, 0 }
  0xf3   :  { %v263_v13 = vsub.f32 %v262_v3, %v2194_v4  ;;  %1573 = vmatpush.msra.mxu2 %v2480_v10  ;;  %v260_v42 = vsel %vm74_vm9, %v259_v33, %v252_v40 }
  0xf5   :  { %vm264_vm5 = vcmp.gt.f32.partialorder %v263_v13, 1.0  ;;  %v269_v14 = vmul.f32 0.95, %v263_v13  ;;  %1574 = vmatpush.msra.mxu2 %v2489_v11 }
  0xf6   :  { %v2195_v17 = vsel %vm264_vm5, 1.0, %v2392_v18 }
  0xf7   :  { %v270_v16 = vadd.f32 %v269_v14, %v2543_v15  ;;  %1575 = vmatpush.msra.mxu2 %v2498_v12  ;;  %v267_v35 = vperm.slane %v2195_v17, 0 }
  0xf9   :  { %v271_v19 = vsub.f32 %v270_v16, %v2195_v17  ;;  %v268_v45 = vsel %vm83_vm10, %v267_v35, %v260_v42 }
  0xfb   :  { %vm272_vm6 = vcmp.gt.f32.partialorder %v271_v19, 1.0  ;;  %v277_v20 = vmul.f32 0.95, %v271_v19 }
  0xfc   :  { %v2196_v22 = vsel %vm272_vm6, 1.0, %v2392_v18 }
  0xfd   :  { %v278_v21 = vadd.f32 %v277_v20, %v2543_v15  ;;  %v275_v36 = vperm.slane %v2196_v22, 0  ;;  %v2693_v20 = vld [vmem:[%s3685_s4] ss:$0 sm:$0xff] }
  0xff   :  { %v279_v23 = vsub.f32 %v278_v21, %v2196_v22  ;;  %v276_v47 = vsel %vm92_vm11, %v275_v36, %v268_v45 }
 0x101   :  { %vm280_vm8 = vcmp.gt.f32.partialorder %v279_v23, 1.0  ;;  %v285_v24 = vmul.f32 0.95, %v279_v23 }
 0x102   :  { %v2197_v26 = vsel %vm280_vm8, 1.0, %v2392_v18 }
 0x103   :  { %v286_v25 = vadd.f32 %v285_v24, %v2543_v15  ;;  %v283_v41 = vperm.slane %v2197_v26, 0 }
 0x105   :  { %v287_v27 = vsub.f32 %v286_v25, %v2197_v26  ;;  %v284_v49 = vsel %vm101_vm12, %v283_v41, %v276_v47 }
 0x107   :  { %vm288_vm15 = vcmp.gt.f32.partialorder %v287_v27, 1.0  ;;  %v293_v28 = vmul.f32 0.95, %v287_v27 }
 0x108   :  { %v2198_v30 = vsel %vm288_vm15, 1.0, %v2392_v18 }
 0x109   :  { %v294_v29 = vadd.f32 %v293_v28, %v2543_v15  ;;  %v291_v43 = vperm.slane %v2198_v30, 0 }
 0x10b   :  { %v295_v31 = vsub.f32 %v294_v29, %v2198_v30  ;;  %v292_v51 = vsel %vm110_vm13, %v291_v43, %v284_v49 }
 0x10d   :  { %vm296_vm2 = vcmp.gt.f32.partialorder %v295_v31, 1.0  ;;  %v301_v34 = vmul.f32 0.95, %v295_v31 }
 0x10e   :  { %v2199_v37 = vsel %vm296_vm2, 1.0, %v2392_v18 }
 0x10f   :  { %v302_v38 = vadd.f32 %v301_v34, %v2543_v15  ;;  %v299_v46 = vperm.slane %v2199_v37, 0 }
 0x111   :  { %v303_v44 = vsub.f32 %v302_v38, %v2199_v37  ;;  %v300_v54 = vsel %vm119_vm14, %v299_v46, %v292_v51 }
 0x113   :  { %vm304_vm3 = vcmp.gt.f32.partialorder %v303_v44, 1.0  ;;  %v411_v48 = vmul.f32 0.95, %v303_v44 }
 0x114   :  { %v2200_v50 = vsel %vm304_vm3, 1.0, %v2392_v18 }
 0x115   :  { %v307_v52 = vperm.slane %v2200_v50, 0  ;;  %v412_v53 = vadd.f32 %v411_v48, %v2543_v15 }
 0x117   :  { %v308_v55 = vsel %vm128_vm0, %v307_v52, %v300_v54  ;;  %v413_v56 = vsub.f32 %v412_v53, %v2200_v50 }
 0x118   :  { %2209 = vmatmul.msk.f32.vlgmr.msra.gmra.mxu3 %vm134_vm1, %v308_v55 }
 0x119   :  { %vm414_vm4 = vcmp.gt.f32.partialorder %v413_v56, 1.0  ;;  %v419_v57 = vmul.f32 0.95, %v413_v56  ;;  %1735 = vmatpush.msra.mxu3 %v2441_v5 }
 0x11a   :  { %v2210_v59 = vsel %vm414_vm4, 1.0, %v2392_v18 }
 0x11b   :  { %v420_v58 = vadd.f32 %v419_v57, %v2543_v15  ;;  %1736 = vmatpush.msra.mxu3 %v2446_v6  ;;  %v417_v32 = vperm.slane %v2210_v59, 0 }
 0x11d   :  { %v421_v60 = vsub.f32 %v420_v58, %v2210_v59  ;;  %1737 = vmatpush.msra.mxu3 %v2453_v7  ;;  %v418_v42 = vsel %vm65_vm7, %v417_v32, 0.0 }
 0x11f   :  { %vm422_vm5 = vcmp.gt.f32.partialorder %v421_v60, 1.0  ;;  %v427_v61 = vmul.f32 0.95, %v421_v60  ;;  %1738 = vmatpush.msra.mxu3 %v2462_v8 }
 0x120   :  { %v2211_v63 = vsel %vm422_vm5, 1.0, %v2392_v18 }
 0x121   :  { %v428_v62 = vadd.f32 %v427_v61, %v2543_v15  ;;  %1739 = vmatpush.msra.mxu3 %v2471_v9  ;;  %v425_v36 = vperm.slane %v2211_v63, 0 }
 0x123   :  { %v429_v0 = vsub.f32 %v428_v62, %v2211_v63  ;;  %1740 = vmatpush.msra.mxu3 %v2480_v10  ;;  %v426_v48 = vsel %vm74_vm9, %v425_v36, %v418_v42 }
 0x125   :  { %vm430_vm6 = vcmp.gt.f32.partialorder %v429_v0, 1.0  ;;  %v435_v1 = vmul.f32 0.95, %v429_v0  ;;  %1741 = vmatpush.msra.mxu3 %v2489_v11 }
 0x126   :  { %v2212_v3 = vsel %vm430_vm6, 1.0, %v2392_v18 }
 0x127   :  { %v436_v2 = vadd.f32 %v435_v1, %v2543_v15  ;;  %1742 = vmatpush.msra.mxu3 %v2498_v12  ;;  %v433_v40 = vperm.slane %v2212_v3, 0 }
 0x129   :  { %v437_v4 = vsub.f32 %v436_v2, %v2212_v3  ;;  %v434_v51 = vsel %vm83_vm10, %v433_v40, %v426_v48 }
 0x12b   :  { %v443_v13 = vmul.f32 0.95, %v437_v4  ;;  %vm438_vm8 = vcmp.gt.f32.partialorder %v437_v4, 1.0 }
 0x12c   :  { %v2213_v16 = vsel %vm438_vm8, 1.0, %v2392_v18 }
 0x12d   :  { %v444_v14 = vadd.f32 %v443_v13, %v2543_v15  ;;  %v441_v45 = vperm.slane %v2213_v16, 0 }
 0x12f   :  { %v445_v17 = vsub.f32 %v444_v14, %v2213_v16  ;;  %v442_v57 = vsel %vm92_vm11, %v441_v45, %v434_v51 }
 0x131   :  { %vm446_vm15 = vcmp.gt.f32.partialorder %v445_v17, 1.0  ;;  %v451_v19 = vmul.f32 0.95, %v445_v17 }
 0x132   :  { %v2214_v22 = vsel %vm446_vm15, 1.0, %v2392_v18 }
 0x133   :  { %v452_v21 = vadd.f32 %v451_v19, %v2543_v15  ;;  %v449_v50 = vperm.slane %v2214_v22, 0 }
 0x135   :  { %v155_v23 = vpop.f32.mrf.mxu1  ;;  %v453_v24 = vsub.f32 %v452_v21, %v2214_v22  ;;  %v450_v60 = vsel %vm101_vm12, %v449_v50, %v442_v57 }
 0x136   :  { %v2698_v25 = vadd.f32 %v2693_v20, %v155_v23 }
 0x137   :  { %v459_v26 = vmul.f32 0.95, %v453_v24  ;;  %vm454_vm3 = vcmp.gt.f32.partialorder %v453_v24, 1.0 }
 0x138   :  { %vm310_vm2 = vcmp.gt.f32.partialorder %v2698_v25, 1.0  ;;  %v315_v27 = vmul.f32 0.95, %v2698_v25  ;;  %v317_v28 = vrot.slane %v2698_v25, 1  ;;  %v2215_v34 = vsel %vm454_vm3, 1.0, %v2392_v18 }
 0x139   :  { %v2704_v30 = vsel %vm310_vm2, 1.0, %v2392_v18  ;;  %v460_v31 = vadd.f32 %v459_v26, %v2543_v15  ;;  %v327_v38 = vrot.slane %v2698_v25, 2  ;;  %v457_v52 = vperm.slane %v2215_v34, 0 }
 0x13a   :  { %v319_v29 = vadd.f32 %v317_v28, %v315_v27  ;;  %v337_v55 = vrot.slane %v2698_v25, 3  ;;  %v347_v16 = vrot.slane %v2698_v25, 4  ;;  %v357_v28 = vrot.slane %v2698_v25, 5 }
 0x13b   :  { %v461_v35 = vsub.f32 %v460_v31, %v2215_v34  ;;  %v458_v63 = vsel %vm110_vm13, %v457_v52, %v450_v60  ;;  %v377_v51 = vrot.slane %v2698_v25, 7 }
 0x13c   :  { %v320_v33 = vsub.f32 %v319_v29, %v2704_v30 }
 0x13d   :  { %vm462_vm5 = vcmp.gt.f32.partialorder %v461_v35, 1.0  ;;  %v467_v41 = vmul.f32 0.95, %v461_v35 }
 0x13e   :  { %vm321_vm4 = vcmp.gt.f32.partialorder %v320_v33, 1.0  ;;  %v326_v37 = vmul.f32 0.95, %v320_v33  ;;  %v2216_v46 = vsel %vm462_vm5, 1.0, %v2392_v18 }
 0x13f   :  { %v2713_v44 = vsel %vm321_vm4, 1.0, %v2392_v18  ;;  %v468_v47 = vadd.f32 %v467_v41, %v2543_v15  ;;  %v465_v56 = vperm.slane %v2216_v46, 0 }
 0x140   :  { %v329_v43 = vadd.f32 %v327_v38, %v326_v37  ;;  %v367_v38 = vrot.slane %v2698_v25, 6 }
 0x141   :  { %v469_v53 = vsub.f32 %v468_v47, %v2216_v46  ;;  %v466_v3 = vsel %vm119_vm14, %v465_v56, %v458_v63  ;;  %v313_v47 = vperm.slane %v2704_v30, 0 }
 0x142   :  { %v330_v49 = vsub.f32 %v329_v43, %v2713_v44 }
 0x143   :  { %vm470_vm8 = vcmp.gt.f32.partialorder %v469_v53, 1.0  ;;  %v578_v58 = vmul.f32 0.95, %v469_v53  ;;  %v314_v57 = vsel %vm65_vm7, %v313_v47, 0.0 }
 0x144   :  { %vm331_vm6 = vcmp.gt.f32.partialorder %v330_v49, 1.0  ;;  %v336_v54 = vmul.f32 0.95, %v330_v49  ;;  %v2217_v61 = vsel %vm470_vm8, 1.0, %v2392_v18  ;;  %v324_v49 = vperm.slane %v2713_v44, 0 }
 0x145   :  { %v2729_v62 = vsel %vm331_vm6, 1.0, %v2392_v18  ;;  %v473_v0 = vperm.slane %v2217_v61, 0  ;;  %v579_v1 = vadd.f32 %v578_v58, %v2543_v15 }
 0x146   :  { %v339_v59 = vadd.f32 %v337_v55, %v336_v54  ;;  %v334_v52 = vperm.slane %v2729_v62, 0  ;;  %v325_v44 = vsel %vm74_vm9, %v324_v49, %v314_v57 }
 0x147   :  { %v474_v4 = vsel %vm128_vm0, %v473_v0, %v466_v3  ;;  %v580_v13 = vsub.f32 %v579_v1, %v2217_v61 }
 0x148   :  { %v340_v2 = vsub.f32 %v339_v59, %v2729_v62  ;;  %2226 = vmatmul.msk.f32.vlgmr.msrb.gmra.mxu0 %vm134_vm1, %v474_v4  ;;  %v335_v61 = vsel %vm83_vm10, %v334_v52, %v325_v44 }
 0x149   :  { %vm581_vm2 = vcmp.gt.f32.partialorder %v580_v13, 1.0  ;;  %v586_v17 = vmul.f32 0.95, %v580_v13  ;;  %1902 = vmatpush.msrb.mxu0 %v2441_v5 }
 0x14a   :  { %vm341_vm15 = vcmp.gt.f32.partialorder %v340_v2, 1.0  ;;  %v346_v14 = vmul.f32 0.95, %v340_v2  ;;  %v2746_v24 = vsel %vm581_vm2, 1.0, %v2392_v18 }
 0x14b   :  { %v2204_v21 = vsel %vm341_vm15, 1.0, %v2392_v18  ;;  %v587_v22 = vadd.f32 %v586_v17, %v2543_v15  ;;  %1903 = vmatpush.msrb.mxu0 %v2446_v6 }
 0x14c   :  { %v349_v19 = vadd.f32 %v347_v16, %v346_v14  ;;  %v344_v54 = vperm.slane %v2204_v21, 0 }
 0x14d   :  { %v588_v26 = vsub.f32 %v587_v22, %v2746_v24  ;;  %1904 = vmatpush.msrb.mxu0 %v2453_v7 }
 0x14e   :  { %v350_v23 = vsub.f32 %v349_v19, %v2204_v21  ;;  %v345_v0 = vsel %vm92_vm11, %v344_v54, %v335_v61 }
 0x14f   :  { %vm589_vm4 = vcmp.gt.f32.partialorder %v588_v26, 1.0  ;;  %v594_v29 = vmul.f32 0.95, %v588_v26  ;;  %1905 = vmatpush.msrb.mxu0 %v2462_v8 }
 0x150   :  { %vm351_vm3 = vcmp.gt.f32.partialorder %v350_v23, 1.0  ;;  %v356_v27 = vmul.f32 0.95, %v350_v23  ;;  %v2756_v35 = vsel %vm589_vm4, 1.0, %v2392_v18  ;;  %vm386_vm4 = vcmask 130048  }
 0x151   :  { %v2205_v32 = vsel %vm351_vm3, 1.0, %v2392_v18  ;;  %v595_v33 = vadd.f32 %v594_v29, %v2543_v15  ;;  %1906 = vmatpush.msrb.mxu0 %v2471_v9 }
 0x152   :  { %v359_v31 = vadd.f32 %v357_v28, %v356_v27  ;;  %v354_v30 = vperm.slane %v2205_v32, 0 }
 0x153   :  { %v596_v36 = vsub.f32 %v595_v33, %v2756_v35  ;;  %1907 = vmatpush.msrb.mxu0 %v2480_v10 }
 0x154   :  { %v360_v34 = vsub.f32 %v359_v31, %v2205_v32  ;;  %v355_v2 = vsel %vm101_vm12, %v354_v30, %v345_v0  ;;  %v584_v31 = vperm.slane %v2746_v24, 0 }
 0x155   :  { %vm597_vm6 = vcmp.gt.f32.partialorder %v596_v36, 1.0  ;;  %v602_v40 = vmul.f32 0.95, %v596_v36  ;;  %1908 = vmatpush.msrb.mxu0 %v2489_v11 }
 0x156   :  { %vm361_vm5 = vcmp.gt.f32.partialorder %v360_v34, 1.0  ;;  %v366_v37 = vmul.f32 0.95, %v360_v34  ;;  %v2766_v46 = vsel %vm597_vm6, 1.0, %v2392_v18  ;;  %v592_v34 = vperm.slane %v2756_v35, 0 }
 0x157   :  { %v2206_v42 = vsel %vm361_vm5, 1.0, %v2392_v18  ;;  %v603_v43 = vadd.f32 %v602_v40, %v2543_v15  ;;  %1909 = vmatpush.msrb.mxu0 %v2498_v12  ;;  %v585_v40 = vsel %vm65_vm7, %v584_v31, 0.0 }
 0x158   :  { %v369_v41 = vadd.f32 %v367_v38, %v366_v37  ;;  %v364_v60 = vperm.slane %v2206_v42, 0  ;;  %v600_v37 = vperm.slane %v2766_v46, 0  ;;  %v593_v35 = vsel %vm74_vm9, %v592_v34, %v585_v40 }
 0x159   :  { %v604_v48 = vsub.f32 %v603_v43, %v2766_v46 }
 0x15a   :  { %v370_v45 = vsub.f32 %v369_v41, %v2206_v42  ;;  %v365_v13 = vsel %vm110_vm13, %v364_v60, %v355_v2  ;;  %v601_v49 = vsel %vm83_vm10, %v600_v37, %v593_v35 }
 0x15b   :  { %vm605_vm15 = vcmp.gt.f32.partialorder %v604_v48, 1.0  ;;  %v610_v53 = vmul.f32 0.95, %v604_v48 }
 0x15c   :  { %vm371_vm8 = vcmp.gt.f32.partialorder %v370_v45, 1.0  ;;  %v376_v50 = vmul.f32 0.95, %v370_v45  ;;  %v2230_v25 = vsel %vm605_vm15, 1.0, %v2392_v18 }
 0x15d   :  { %v2207_v55 = vsel %vm371_vm8, 1.0, %v2392_v18  ;;  %v611_v58 = vadd.f32 %v610_v53, %v2543_v15  ;;  %v608_v42 = vperm.slane %v2230_v25, 0 }
 0x15e   :  { %v379_v56 = vadd.f32 %v377_v51, %v376_v50  ;;  %v374_v62 = vperm.slane %v2207_v55, 0 }
 0x15f   :  { %v612_v63 = vsub.f32 %v611_v58, %v2230_v25  ;;  %v609_v52 = vsel %vm92_vm11, %v608_v42, %v601_v49 }
 0x160   :  { %v380_v59 = vsub.f32 %v379_v56, %v2207_v55  ;;  %v375_v14 = vsel %vm119_vm14, %v374_v62, %v365_v13 }
 0x161   :  { %vm613_vm3 = vcmp.gt.f32.partialorder %v612_v63, 1.0  ;;  %v618_v3 = vmul.f32 0.95, %v612_v63 }
 0x162   :  { %vm381_vm2 = vcmp.gt.f32.partialorder %v380_v59, 1.0  ;;  %v2231_v19 = vsel %vm613_vm3, 1.0, %v2392_v18  ;;  %v475_v28 = vmul.f32 0.95, %v380_v59 }
 0x163   :  { %v2208_v1 = vsel %vm381_vm2, 1.0, %v2392_v18  ;;  %v619_v16 = vadd.f32 %v618_v3, %v2543_v15  ;;  %v616_v43 = vperm.slane %v2231_v19, 0 }
 0x164   :  { %v384_v4 = vperm.slane %v2208_v1, 0 }
 0x165   :  { %v620_v21 = vsub.f32 %v619_v16, %v2231_v19  ;;  %v617_v55 = vsel %vm101_vm12, %v616_v43, %v609_v52 }
 0x166   :  { %v385_v17 = vsel %vm128_vm0, %v384_v4, %v375_v14 }
 0x167   :  { %387 = vst.msk [vmem:[%s3686_s5] sm:$0xff] %vm386_vm4, %v385_v17  ;;  %vm621_vm5 = vcmp.gt.f32.partialorder %v620_v21, 1.0  ;;  %v626_v22 = vmul.f32 0.95, %v620_v21 }
 0x168   :  { %v2232_v29 = vsel %vm621_vm5, 1.0, %v2392_v18 }
 0x169   :  { %v627_v26 = vadd.f32 %v626_v22, %v2543_v15  ;;  %v624_v48 = vperm.slane %v2232_v29, 0 }
 0x16b   :  { %v242_v23 = vpop.f32.mrf.mxu2  ;;  %v628_v32 = vsub.f32 %v627_v26, %v2232_v29  ;;  %v625_v30 = vsel %vm110_vm13, %v624_v48, %v617_v55 }
 0x16c   :  { %v2801_v27 = vadd.f32 %v2693_v20, %v242_v23 }
 0x16d   :  { %vm629_vm6 = vcmp.gt.f32.partialorder %v628_v32, 1.0  ;;  %v634_v38 = vmul.f32 0.95, %v628_v32 }
 0x16e   :  { %v476_v33 = vadd.f32 %v475_v28, %v2801_v27  ;;  %v485_v41 = vrot.slane %v2801_v27, 1  ;;  %v2233_v24 = vsel %vm629_vm6, 1.0, %v2392_v18  ;;  %v495_v57 = vrot.slane %v2801_v27, 2 }
 0x16f   :  { %v635_v47 = vadd.f32 %v634_v38, %v2543_v15  ;;  %v632_v53 = vperm.slane %v2233_v24, 0  ;;  %v505_v4 = vrot.slane %v2801_v27, 3  ;;  %v515_v23 = vrot.slane %v2801_v27, 4 }
 0x170   :  { %v477_v36 = vsub.f32 %v476_v33, %v2208_v1  ;;  %v525_v33 = vrot.slane %v2801_v27, 5 }
 0x171   :  { %v636_v50 = vsub.f32 %v635_v47, %v2233_v24  ;;  %v633_v25 = vsel %vm119_vm14, %v632_v53, %v625_v30 }
 0x172   :  { %vm478_vm8 = vcmp.gt.f32.partialorder %v477_v36, 1.0  ;;  %v483_v45 = vmul.f32 0.95, %v477_v36 }
 0x173   :  { %v2818_v51 = vsel %vm478_vm8, 1.0, %v2392_v18  ;;  %vm637_vm15 = vcmp.gt.f32.partialorder %v636_v50, 1.0  ;;  %v745_v56 = vmul.f32 0.95, %v636_v50 }
 0x174   :  { %v487_v46 = vadd.f32 %v485_v41, %v483_v45  ;;  %v2234_v58 = vsel %vm637_vm15, 1.0, %v2392_v18  ;;  %v535_v41 = vrot.slane %v2801_v27, 6  ;;  %v481_v48 = vperm.slane %v2818_v51, 0 }
 0x175   :  { %v640_v59 = vperm.slane %v2234_v58, 0  ;;  %v746_v60 = vadd.f32 %v745_v56, %v2543_v15 }
 0x176   :  { %v488_v54 = vsub.f32 %v487_v46, %v2818_v51  ;;  %v545_v46 = vrot.slane %v2801_v27, 7 }
 0x177   :  { %v641_v62 = vsel %vm128_vm0, %v640_v59, %v633_v25  ;;  %v747_v63 = vsub.f32 %v746_v60, %v2234_v58  ;;  %v482_v58 = vsel %vm65_vm7, %v481_v48, 0.0 }
 0x178   :  { %vm489_vm2 = vcmp.gt.f32.partialorder %v488_v54, 1.0  ;;  %v494_v44 = vmul.f32 0.95, %v488_v54  ;;  %2243 = vmatmul.msk.f32.vlgmr.msrb.gmra.mxu1 %vm134_vm1, %v641_v62 }
 0x179   :  { %v2835_v0 = vsel %vm489_vm2, 1.0, %v2392_v18  ;;  %vm748_vm3 = vcmp.gt.f32.partialorder %v747_v63, 1.0  ;;  %v753_v2 = vmul.f32 0.95, %v747_v63  ;;  %2037 = vmatpush.msrb.mxu1 %v2441_v5 }
 0x17a   :  { %v497_v61 = vadd.f32 %v495_v57, %v494_v44  ;;  %v2844_v14 = vsel %vm748_vm3, 1.0, %v2392_v18  ;;  %v492_v49 = vperm.slane %v2835_v0, 0 }
 0x17b   :  { %v754_v13 = vadd.f32 %v753_v2, %v2543_v15  ;;  %2038 = vmatpush.msrb.mxu1 %v2446_v6 }
 0x17c   :  { %v498_v1 = vsub.f32 %v497_v61, %v2835_v0  ;;  %v493_v27 = vsel %vm74_vm9, %v492_v49, %v482_v58 }
 0x17d   :  { %v755_v17 = vsub.f32 %v754_v13, %v2844_v14  ;;  %2039 = vmatpush.msrb.mxu1 %v2453_v7 }
 0x17e   :  { %vm499_vm5 = vcmp.gt.f32.partialorder %v498_v1, 1.0  ;;  %v504_v3 = vmul.f32 0.95, %v498_v1 }
 0x17f   :  { %v2220_v19 = vsel %vm499_vm5, 1.0, %v2392_v18  ;;  %vm756_vm6 = vcmp.gt.f32.partialorder %v755_v17, 1.0  ;;  %v761_v5 = vmul.f32 0.95, %v755_v17  ;;  %2040 = vmatpush.msrb.mxu1 %v2462_v8 }
 0x180   :  { %v507_v16 = vadd.f32 %v505_v4, %v504_v3  ;;  %v2854_v26 = vsel %vm756_vm6, 1.0, %v2392_v18  ;;  %v502_v53 = vperm.slane %v2220_v19, 0 }
 0x181   :  { %v762_v6 = vadd.f32 %v761_v5, %v2543_v15  ;;  %2041 = vmatpush.msrb.mxu1 %v2471_v9 }
 0x182   :  { %v508_v21 = vsub.f32 %v507_v16, %v2220_v19  ;;  %v503_v25 = vsel %vm83_vm10, %v502_v53, %v493_v27 }
 0x183   :  { %v763_v7 = vsub.f32 %v762_v6, %v2854_v26  ;;  %2042 = vmatpush.msrb.mxu1 %v2480_v10 }
 0x184   :  { %vm509_vm8 = vcmp.gt.f32.partialorder %v508_v21, 1.0  ;;  %v514_v22 = vmul.f32 0.95, %v508_v21  ;;  %v751_v21 = vperm.slane %v2844_v14, 0 }
 0x185   :  { %v2221_v29 = vsel %vm509_vm8, 1.0, %v2392_v18  ;;  %vm764_vm15 = vcmp.gt.f32.partialorder %v763_v7, 1.0  ;;  %v769_v8 = vmul.f32 0.95, %v763_v7  ;;  %2043 = vmatpush.msrb.mxu1 %v2489_v11 }
 0x186   :  { %v517_v28 = vadd.f32 %v515_v23, %v514_v22  ;;  %v2864_v34 = vsel %vm764_vm15, 1.0, %v2392_v18  ;;  %v512_v55 = vperm.slane %v2221_v29, 0 }
 0x187   :  { %v770_v9 = vadd.f32 %v769_v8, %v2543_v15  ;;  %2044 = vmatpush.msrb.mxu1 %v2498_v12  ;;  %v767_v14 = vperm.slane %v2864_v34, 0  ;;  %v752_v8 = vsel %vm65_vm7, %v751_v21, 0.0 }
 0x188   :  { %v518_v31 = vsub.f32 %v517_v28, %v2221_v29  ;;  %v513_v63 = vsel %vm92_vm11, %v512_v55, %v503_v25  ;;  %v759_v28 = vperm.slane %v2854_v26, 0 }
 0x189   :  { %v771_v10 = vsub.f32 %v770_v9, %v2864_v34 }
 0x18a   :  { %vm519_vm2 = vcmp.gt.f32.partialorder %v518_v31, 1.0  ;;  %v524_v32 = vmul.f32 0.95, %v518_v31  ;;  %v760_v34 = vsel %vm74_vm9, %v759_v28, %v752_v8 }
 0x18b   :  { %v2222_v37 = vsel %vm519_vm2, 1.0, %v2392_v18  ;;  %vm772_vm3 = vcmp.gt.f32.partialorder %v771_v10, 1.0  ;;  %v777_v40 = vmul.f32 0.95, %v771_v10 }
 0x18c   :  { %v527_v36 = vadd.f32 %v525_v33, %v524_v32  ;;  %v2871_v43 = vsel %vm772_vm3, 1.0, %v2392_v18  ;;  %v522_v51 = vperm.slane %v2222_v37, 0 }
 0x18d   :  { %v778_v42 = vadd.f32 %v777_v40, %v2543_v15  ;;  %v775_v9 = vperm.slane %v2871_v43, 0 }
 0x18e   :  { %v528_v38 = vsub.f32 %v527_v36, %v2222_v37  ;;  %v523_v2 = vsel %vm101_vm12, %v522_v51, %v513_v63 }
 0x18f   :  { %v779_v45 = vsub.f32 %v778_v42, %v2871_v43 }
 0x190   :  { %vm529_vm5 = vcmp.gt.f32.partialorder %v528_v38, 1.0  ;;  %v534_v11 = vmul.f32 0.95, %v528_v38  ;;  %v768_v38 = vsel %vm83_vm10, %v767_v14, %v760_v34 }
 0x191   :  { %v2223_v24 = vsel %vm529_vm5, 1.0, %v2392_v18  ;;  %vm780_vm6 = vcmp.gt.f32.partialorder %v779_v45, 1.0  ;;  %v785_v35 = vmul.f32 0.95, %v779_v45 }
 0x192   :  { %v537_v12 = vadd.f32 %v535_v41, %v534_v11  ;;  %v2248_v54 = vsel %vm780_vm6, 1.0, %v2392_v18  ;;  %v532_v44 = vperm.slane %v2223_v24, 0 }
 0x193   :  { %v786_v52 = vadd.f32 %v785_v35, %v2543_v15  ;;  %v783_v37 = vperm.slane %v2248_v54, 0 }
 0x194   :  { %v538_v47 = vsub.f32 %v537_v12, %v2223_v24  ;;  %v533_v13 = vsel %vm110_vm13, %v532_v44, %v523_v2  ;;  %v776_v12 = vsel %vm92_vm11, %v775_v9, %v768_v38 }
 0x195   :  { %v787_v30 = vsub.f32 %v786_v52, %v2248_v54 }
 0x196   :  { %v544_v50 = vmul.f32 0.95, %v538_v47  ;;  %vm539_vm8 = vcmp.gt.f32.partialorder %v538_v47, 1.0  ;;  %v784_v47 = vsel %vm101_vm12, %v783_v37, %v776_v12 }
 0x197   :  { %v2224_v57 = vsel %vm539_vm8, 1.0, %v2392_v18  ;;  %v793_v60 = vmul.f32 0.95, %v787_v30  ;;  %vm788_vm2 = vcmp.gt.f32.partialorder %v787_v30, 1.0 }
 0x198   :  { %v547_v56 = vadd.f32 %v545_v46, %v544_v50  ;;  %v542_v62 = vperm.slane %v2224_v57, 0  ;;  %v2249_v23 = vsel %vm788_vm2, 1.0, %v2392_v18 }
 0x199   :  { %v794_v4 = vadd.f32 %v793_v60, %v2543_v15  ;;  %v791_v40 = vperm.slane %v2249_v23, 0 }
 0x19a   :  { %v548_v59 = vsub.f32 %v547_v56, %v2224_v57  ;;  %v543_v19 = vsel %vm119_vm14, %v542_v62, %v533_v13 }
 0x19b   :  { %v408_v61 = vpop.f32.mrf.mxu3  ;;  %v795_v6 = vsub.f32 %v794_v4, %v2249_v23  ;;  %v792_v46 = vsel %vm110_vm13, %v791_v40, %v784_v47 }
 0x19c   :  { %v2890_v0 = vadd.f32 %v2693_v20, %v408_v61  ;;  %vm549_vm15 = vcmp.gt.f32.partialorder %v548_v59, 1.0  ;;  %v642_v1 = vmul.f32 0.95, %v548_v59 }
 0x19d   :  { %v2225_v3 = vsel %vm549_vm15, 1.0, %v2392_v18  ;;  %vm796_vm5 = vcmp.gt.f32.partialorder %v795_v6, 1.0  ;;  %v801_v31 = vmul.f32 0.95, %v795_v6 }
 0x19e   :  { %v552_v16 = vperm.slane %v2225_v3, 0  ;;  %v643_v17 = vadd.f32 %v642_v1, %v2890_v0  ;;  %v652_v29 = vrot.slane %v2890_v0, 1  ;;  %v2250_v36 = vsel %vm796_vm5, 1.0, %v2392_v18 }
 0x19f   :  { %v802_v26 = vadd.f32 %v801_v31, %v2543_v15  ;;  %v662_v42 = vrot.slane %v2890_v0, 2  ;;  %v799_v43 = vperm.slane %v2250_v36, 0  ;;  %v672_v57 = vrot.slane %v2890_v0, 3 }
 0x1a0   :  { %v553_v5 = vsel %vm128_vm0, %v552_v16, %v543_v19  ;;  %v644_v22 = vsub.f32 %v643_v17, %v2225_v3  ;;  %v682_v61 = vrot.slane %v2890_v0, 4  ;;  %v692_v17 = vrot.slane %v2890_v0, 5 }
 0x1a1   :  { %554 = vst.msk [vmem:[%s3686_s5 + $0x8] sm:$0xff] %vm386_vm4, %v553_v5  ;;  %v803_v11 = vsub.f32 %v802_v26, %v2250_v36  ;;  %v800_v53 = vsel %vm119_vm14, %v799_v43, %v792_v46  ;;  %v712_v40 = vrot.slane %v2890_v0, 7 }
 0x1a2   :  { %vm645_vm3 = vcmp.gt.f32.partialorder %v644_v22, 1.0  ;;  %v650_v7 = vmul.f32 0.95, %v644_v22 }
 0x1a3   :  { %v2915_v33 = vsel %vm645_vm3, 1.0, %v2392_v18  ;;  %vm804_vm8 = vcmp.gt.f32.partialorder %v803_v11, 1.0  ;;  %v912_v45 = vmul.f32 0.95, %v803_v11 }
 0x1a4   :  { %v654_v32 = vadd.f32 %v652_v29, %v650_v7  ;;  %v2251_v35 = vsel %vm804_vm8, 1.0, %v2392_v18  ;;  %v702_v29 = vrot.slane %v2890_v0, 6  ;;  %v648_v9 = vperm.slane %v2915_v33, 0 }
 0x1a5   :  { %v807_v49 = vperm.slane %v2251_v35, 0  ;;  %v913_v50 = vadd.f32 %v912_v45, %v2543_v15 }
 0x1a6   :  { %v655_v10 = vsub.f32 %v654_v32, %v2915_v33 }
 0x1a7   :  { %v808_v54 = vsel %vm128_vm0, %v807_v49, %v800_v53  ;;  %v914_v55 = vsub.f32 %v913_v50, %v2251_v35 }
 0x1a8   :  { %vm656_vm6 = vcmp.gt.f32.partialorder %v655_v10, 1.0  ;;  %v661_v41 = vmul.f32 0.95, %v655_v10  ;;  %2260 = vmatmul.msk.f32.vlgmr.msrb.gmra.mxu2 %vm134_vm1, %v808_v54 }
 0x1a9   :  { %v2932_v48 = vsel %vm656_vm6, 1.0, %v2392_v18  ;;  %vm915_vm2 = vcmp.gt.f32.partialorder %v914_v55, 1.0  ;;  %v920_v30 = vmul.f32 0.95, %v914_v55 }
 0x1aa   :  { %v664_v24 = vadd.f32 %v662_v42, %v661_v41  ;;  %v2947_v59 = vsel %vm915_vm2, 1.0, %v2392_v18  ;;  %v659_v10 = vperm.slane %v2932_v48, 0  ;;  %v649_v42 = vsel %vm65_vm7, %v648_v9, 0.0 }
 0x1ab   :  { %v921_v27 = vadd.f32 %v920_v30, %v2543_v15 }
 0x1ac   :  { %v665_v52 = vsub.f32 %v664_v24, %v2932_v48  ;;  %v660_v12 = vsel %vm74_vm9, %v659_v10, %v649_v42 }
 0x1ad   :  { %v922_v60 = vsub.f32 %v921_v27, %v2947_v59 }
 0x1ae   :  { %vm666_vm15 = vcmp.gt.f32.partialorder %v665_v52, 1.0  ;;  %v671_v56 = vmul.f32 0.95, %v665_v52 }
 0x1af   :  { %v2237_v51 = vsel %vm666_vm15, 1.0, %v2392_v18  ;;  %vm923_vm5 = vcmp.gt.f32.partialorder %v922_v60, 1.0  ;;  %v928_v62 = vmul.f32 0.95, %v922_v60 }
 0x1b0   :  { %v674_v58 = vadd.f32 %v672_v57, %v671_v56  ;;  %v2954_v4 = vsel %vm923_vm5, 1.0, %v2392_v18  ;;  %v669_v37 = vperm.slane %v2237_v51, 0 }
 0x1b1   :  { %v929_v2 = vadd.f32 %v928_v62, %v2543_v15 }
 0x1b2   :  { %v675_v44 = vsub.f32 %v674_v58, %v2237_v51  ;;  %v670_v0 = vsel %vm83_vm10, %v669_v37, %v660_v12 }
 0x1b3   :  { %v930_v13 = vsub.f32 %v929_v2, %v2954_v4 }
 0x1b4   :  { %vm676_vm3 = vcmp.gt.f32.partialorder %v675_v44, 1.0  ;;  %v681_v25 = vmul.f32 0.95, %v675_v44 }
 0x1b5   :  { %v2238_v1 = vsel %vm676_vm3, 1.0, %v2392_v18  ;;  %vm931_vm8 = vcmp.gt.f32.partialorder %v930_v13, 1.0  ;;  %v936_v19 = vmul.f32 0.95, %v930_v13  ;;  %v926_v13 = vperm.slane %v2954_v4, 0 }
 0x1b6   :  { %v684_v63 = vadd.f32 %v682_v61, %v681_v25  ;;  %v2961_v6 = vsel %vm931_vm8, 1.0, %v2392_v18  ;;  %v679_v11 = vperm.slane %v2238_v1, 0 }
 0x1b7   :  { %v937_v22 = vadd.f32 %v936_v19, %v2543_v15 }
 0x1b8   :  { %v685_v3 = vsub.f32 %v684_v63, %v2238_v1  ;;  %v680_v46 = vsel %vm92_vm11, %v679_v11, %v670_v0  ;;  %v918_v1 = vperm.slane %v2947_v59, 0 }
 0x1b9   :  { %v938_v28 = vsub.f32 %v937_v22, %v2961_v6 }
 0x1ba   :  { %vm686_vm6 = vcmp.gt.f32.partialorder %v685_v3, 1.0  ;;  %v691_v16 = vmul.f32 0.95, %v685_v3 }
 0x1bb   :  { %v2239_v5 = vsel %vm686_vm6, 1.0, %v2392_v18  ;;  %vm939_vm2 = vcmp.gt.f32.partialorder %v938_v28, 1.0  ;;  %v944_v14 = vmul.f32 0.95, %v938_v28 }
 0x1bc   :  { %v694_v21 = vadd.f32 %v692_v17, %v691_v16  ;;  %v2969_v26 = vsel %vm939_vm2, 1.0, %v2392_v18  ;;  %v689_v45 = vperm.slane %v2239_v5, 0 }
 0x1bd   :  { %v945_v32 = vadd.f32 %v944_v14, %v2543_v15  ;;  %v942_v22 = vperm.slane %v2969_v26, 0 }
 0x1be   :  { %v695_v23 = vsub.f32 %v694_v21, %v2239_v5  ;;  %v690_v54 = vsel %vm101_vm12, %v689_v45, %v680_v46  ;;  %v934_v21 = vperm.slane %v2961_v6, 0  ;;  %v919_v5 = vsel %vm65_vm7, %v918_v1, 0.0 }
 0x1bf   :  { %v946_v34 = vsub.f32 %v945_v32, %v2969_v26 }
 0x1c0   :  { %vm696_vm15 = vcmp.gt.f32.partialorder %v695_v23, 1.0  ;;  %v701_v7 = vmul.f32 0.95, %v695_v23 }
 0x1c1   :  { %v2240_v8 = vsel %vm696_vm15, 1.0, %v2392_v18  ;;  %v952_v41 = vmul.f32 0.95, %v946_v34  ;;  %vm947_vm5 = vcmp.gt.f32.partialorder %v946_v34, 1.0 }
 0x1c2   :  { %v704_v31 = vadd.f32 %v702_v29, %v701_v7  ;;  %v699_v35 = vperm.slane %v2240_v8, 0  ;;  %v2265_v53 = vsel %vm947_vm5, 1.0, %v2392_v18  ;;  %v927_v29 = vsel %vm74_vm9, %v926_v13, %v919_v5 }
 0x1c3   :  { %v953_v47 = vadd.f32 %v952_v41, %v2543_v15  ;;  %v950_v7 = vperm.slane %v2265_v53, 0 }
 0x1c4   :  { %v705_v36 = vsub.f32 %v704_v31, %v2240_v8  ;;  %v700_v57 = vsel %vm110_vm13, %v699_v35, %v690_v54  ;;  %v935_v8 = vsel %vm83_vm10, %v934_v21, %v927_v29 }
 0x1c5   :  { %v575_v24 = vpop.f32.mrf.mxu0  ;;  %v954_v56 = vsub.f32 %v953_v47, %v2265_v53 }
 0x1c6   :  { %v711_v38 = vmul.f32 0.95, %v705_v36  ;;  %vm706_vm3 = vcmp.gt.f32.partialorder %v705_v36, 1.0  ;;  %v2985_v50 = vadd.f32 %v2693_v20, %v575_v24  ;;  %v943_v36 = vsel %vm92_vm11, %v942_v22, %v935_v8 }
 0x1c7   :  { %v2241_v33 = vsel %vm706_vm3, 1.0, %v2392_v18  ;;  %vm955_vm8 = vcmp.gt.f32.partialorder %v954_v56, 1.0  ;;  %v960_v27 = vmul.f32 0.95, %v954_v56  ;;  %v951_v34 = vsel %vm101_vm12, %v950_v7, %v943_v36 }
 0x1c8   :  { %v714_v43 = vadd.f32 %v712_v40, %v711_v38  ;;  %v709_v49 = vperm.slane %v2241_v33, 0  ;;  %v819_v62 = vrot.slane %v2985_v50, 1  ;;  %v2266_v63 = vsel %vm955_vm8, 1.0, %v2392_v18 }
 0x1c9   :  { %v961_v25 = vadd.f32 %v960_v27, %v2543_v15  ;;  %v829_v28 = vrot.slane %v2985_v50, 2  ;;  %v958_v14 = vperm.slane %v2266_v63, 0  ;;  %v839_v42 = vrot.slane %v2985_v50, 3 }
 0x1ca   :  { %v715_v48 = vsub.f32 %v714_v43, %v2241_v33  ;;  %v710_v51 = vsel %vm119_vm14, %v709_v49, %v700_v57  ;;  %v849_v46 = vrot.slane %v2985_v50, 4  ;;  %v869_v1 = vrot.slane %v2985_v50, 6 }
 0x1cb   :  { %v962_v2 = vsub.f32 %v961_v25, %v2266_v63  ;;  %v959_v38 = vsel %vm110_vm13, %v958_v14, %v951_v34  ;;  %v879_v22 = vrot.slane %v2985_v50, 7 }
 0x1cc   :  { %vm716_vm6 = vcmp.gt.f32.partialorder %v715_v48, 1.0  ;;  %v809_v52 = vmul.f32 0.95, %v715_v48 }
 0x1cd   :  { %v2242_v55 = vsel %vm716_vm6, 1.0, %v2392_v18  ;;  %vm963_vm2 = vcmp.gt.f32.partialorder %v962_v2, 1.0  ;;  %v968_v17 = vmul.f32 0.95, %v962_v2 }
 0x1ce   :  { %v719_v30 = vperm.slane %v2242_v55, 0  ;;  %v810_v58 = vadd.f32 %v809_v52, %v2985_v50  ;;  %v2267_v59 = vsel %vm963_vm2, 1.0, %v2392_v18 }
 0x1cf   :  { %v969_v23 = vadd.f32 %v968_v17, %v2543_v15  ;;  %v966_v32 = vperm.slane %v2267_v59, 0 }
 0x1d0   :  { %v720_v44 = vsel %vm128_vm0, %v719_v30, %v710_v51  ;;  %v811_v60 = vsub.f32 %v810_v58, %v2242_v55  ;;  %v859_v58 = vrot.slane %v2985_v50, 5 }
 0x1d1   :  { %721 = vst.msk [vmem:[%s3686_s5 + $0x10] sm:$0xff] %vm386_vm4, %v720_v44  ;;  %v970_v31 = vsub.f32 %v969_v23, %v2267_v59  ;;  %v967_v43 = vsel %vm119_vm14, %v966_v32, %v959_v38 }
 0x1d2   :  { %vm812_vm15 = vcmp.gt.f32.partialorder %v811_v60, 1.0  ;;  %v817_v61 = vmul.f32 0.95, %v811_v60 }
 0x1d3   :  { %v3008_v16 = vsel %vm812_vm15, 1.0, %v2392_v18  ;;  %vm971_vm5 = vcmp.gt.f32.partialorder %v970_v31, 1.0  ;;  %v1079_v26 = vmul.f32 0.95, %v970_v31 }
 0x1d4   :  { %v821_v3 = vadd.f32 %v819_v62, %v817_v61  ;;  %v2268_v37 = vsel %vm971_vm5, 1.0, %v2392_v18  ;;  %v815_v5 = vperm.slane %v3008_v16, 0 }
 0x1d5   :  { %v974_v40 = vperm.slane %v2268_v37, 0  ;;  %v1080_v11 = vadd.f32 %v1079_v26, %v2543_v15 }
 0x1d6   :  { %v822_v19 = vsub.f32 %v821_v3, %v3008_v16  ;;  %v816_v16 = vsel %vm65_vm7, %v815_v5, 0.0 }
 0x1d7   :  { %v975_v33 = vsel %vm128_vm0, %v974_v40, %v967_v43  ;;  %v1081_v12 = vsub.f32 %v1080_v11, %v2268_v37 }
 0x1d8   :  { %vm823_vm3 = vcmp.gt.f32.partialorder %v822_v19, 1.0  ;;  %v828_v4 = vmul.f32 0.95, %v822_v19  ;;  %2277 = vmatmul.msk.f32.vlgmr.msrb.gmra.mxu3 %vm134_vm1, %v975_v33 }
 0x1d9   :  { %v3023_v9 = vsel %vm823_vm3, 1.0, %v2392_v18  ;;  %vm1082_vm8 = vcmp.gt.f32.partialorder %v1081_v12, 1.0  ;;  %v1087_v47 = vmul.f32 0.95, %v1081_v12 }
 0x1da   :  { %v831_v6 = vadd.f32 %v829_v28, %v828_v4  ;;  %v3044_v49 = vsel %vm1082_vm8, 1.0, %v2392_v18  ;;  %v826_v23 = vperm.slane %v3023_v9, 0 }
 0x1db   :  { %v1088_v35 = vadd.f32 %v1087_v47, %v2543_v15 }
 0x1dc   :  { %v832_v10 = vsub.f32 %v831_v6, %v3023_v9  ;;  %v827_v9 = vsel %vm74_vm9, %v826_v23, %v816_v16 }
 0x1dd   :  { %v1089_v52 = vsub.f32 %v1088_v35, %v3044_v49 }
 0x1de   :  { %vm833_vm6 = vcmp.gt.f32.partialorder %v832_v10, 1.0  ;;  %v838_v41 = vmul.f32 0.95, %v832_v10 }
 0x1df   :  { %v2254_v24 = vsel %vm833_vm6, 1.0, %v2392_v18  ;;  %vm1090_vm2 = vcmp.gt.f32.partialorder %v1089_v52, 1.0  ;;  %v1095_v55 = vmul.f32 0.95, %v1089_v52 }
 0x1e0   :  { %v841_v45 = vadd.f32 %v839_v42, %v838_v41  ;;  %v3051_v51 = vsel %vm1090_vm2, 1.0, %v2392_v18  ;;  %v836_v7 = vperm.slane %v2254_v24, 0 }
 0x1e1   :  { %v1096_v57 = vadd.f32 %v1095_v55, %v2543_v15 }
 0x1e2   :  { %v842_v0 = vsub.f32 %v841_v45, %v2254_v24  ;;  %v837_v10 = vsel %vm83_vm10, %v836_v7, %v827_v9 }
 0x1e3   :  { %v1097_v27 = vsub.f32 %v1096_v57, %v3051_v51  ;;  %v1085_v57 = vperm.slane %v3044_v49, 0 }
 0x1e4   :  { %vm843_vm15 = vcmp.gt.f32.partialorder %v842_v0, 1.0  ;;  %v848_v48 = vmul.f32 0.95, %v842_v0 }
 0x1e5   :  { %v2255_v54 = vsel %vm843_vm15, 1.0, %v2392_v18  ;;  %vm1098_vm5 = vcmp.gt.f32.partialorder %v1097_v27, 1.0  ;;  %v1103_v25 = vmul.f32 0.95, %v1097_v27  ;;  %v1086_v49 = vsel %vm65_vm7, %v1085_v57, 0.0 }
 0x1e6   :  { %v851_v53 = vadd.f32 %v849_v46, %v848_v48  ;;  %v3058_v2 = vsel %vm1098_vm5, 1.0, %v2392_v18  ;;  %v846_v14 = vperm.slane %v2255_v54, 0 }
 0x1e7   :  { %v1104_v62 = vadd.f32 %v1103_v25, %v2543_v15  ;;  %v1101_v25 = vperm.slane %v3058_v2, 0 }
 0x1e8   :  { %v852_v56 = vsub.f32 %v851_v53, %v2255_v54  ;;  %v847_v37 = vsel %vm92_vm11, %v846_v14, %v837_v10 }
 0x1e9   :  { %v1105_v3 = vsub.f32 %v1104_v62, %v3058_v2 }
 0x1ea   :  { %vm853_vm3 = vcmp.gt.f32.partialorder %v852_v56, 1.0  ;;  %v858_v30 = vmul.f32 0.95, %v852_v56 }
 0x1eb   :  { %v2256_v60 = vsel %vm853_vm3, 1.0, %v2392_v18  ;;  %v1111_v19 = vmul.f32 0.95, %v1105_v3  ;;  %vm1106_vm8 = vcmp.gt.f32.partialorder %v1105_v3, 1.0 }
 0x1ec   :  { %v861_v44 = vadd.f32 %v859_v58, %v858_v30  ;;  %v3067_v28 = vsel %vm1106_vm8, 1.0, %v2392_v18  ;;  %v856_v50 = vperm.slane %v2256_v60, 0  ;;  %v1093_v58 = vperm.slane %v3051_v51, 0 }
 0x1ed   :  { %v1112_v59 = vadd.f32 %v1111_v19, %v2543_v15 }
 0x1ee   :  { %v862_v61 = vsub.f32 %v861_v44, %v2256_v60  ;;  %v857_v11 = vsel %vm101_vm12, %v856_v50, %v847_v37  ;;  %v1094_v51 = vsel %vm74_vm9, %v1093_v58, %v1086_v49 }
 0x1ef   :  { %v1113_v29 = vsub.f32 %v1112_v59, %v3067_v28 }
 0x1f0   :  { %vm863_vm6 = vcmp.gt.f32.partialorder %v862_v61, 1.0  ;;  %v868_v63 = vmul.f32 0.95, %v862_v61  ;;  %v1109_v61 = vperm.slane %v3067_v28, 0 }
 0x1f1   :  { %v2257_v17 = vsel %vm863_vm6, 1.0, %v2392_v18  ;;  %v1119_v32 = vmul.f32 0.95, %v1113_v29  ;;  %vm1114_vm2 = vcmp.gt.f32.partialorder %v1113_v29, 1.0 }
 0x1f2   :  { %v871_v13 = vadd.f32 %v869_v1, %v868_v63  ;;  %v866_v36 = vperm.slane %v2257_v17, 0  ;;  %v2282_v45 = vsel %vm1114_vm2, 1.0, %v2392_v18 }
 0x1f3   :  { %v1120_v42 = vadd.f32 %v1119_v32, %v2543_v15  ;;  %v1117_v3 = vperm.slane %v2282_v45, 0 }
 0x1f4   :  { %v872_v21 = vsub.f32 %v871_v13, %v2257_v17  ;;  %v867_v43 = vsel %vm110_vm13, %v866_v36, %v857_v11 }
 0x1f5   :  { %v742_v8 = vpop.f32.mrf.mxu1  ;;  %v1121_v24 = vsub.f32 %v1120_v42, %v2282_v45 }
 0x1f6   :  { %v878_v4 = vmul.f32 0.95, %v872_v21  ;;  %vm873_vm15 = vcmp.gt.f32.partialorder %v872_v21, 1.0  ;;  %v3080_v38 = vadd.f32 %v2693_v20, %v742_v8  ;;  %v1102_v21 = vsel %vm83_vm10, %v1101_v25, %v1094_v51 }
 0x1f7   :  { %v2258_v6 = vsel %vm873_vm15, 1.0, %v2392_v18  ;;  %vm1122_vm5 = vcmp.gt.f32.partialorder %v1121_v24, 1.0  ;;  %v1127_v35 = vmul.f32 0.95, %v1121_v24  ;;  %v1110_v59 = vsel %vm92_vm11, %v1109_v61, %v1102_v21 }
 0x1f8   :  { %v881_v31 = vadd.f32 %v879_v22, %v878_v4  ;;  %v876_v34 = vperm.slane %v2258_v6, 0  ;;  %v986_v46 = vrot.slane %v3080_v38, 1  ;;  %v2283_v54 = vsel %vm1122_vm5, 1.0, %v2392_v18 }
 0x1f9   :  { %v1128_v52 = vadd.f32 %v1127_v35, %v2543_v15  ;;  %v996_v60 = vrot.slane %v3080_v38, 2  ;;  %v1125_v17 = vperm.slane %v2283_v54, 0  ;;  %v1006_v22 = vrot.slane %v3080_v38, 3 }
 0x1fa   :  { %v882_v26 = vsub.f32 %v881_v31, %v2258_v6  ;;  %v877_v20 = vsel %vm119_vm14, %v876_v34, %v867_v43  ;;  %v1118_v28 = vsel %vm101_vm12, %v1117_v3, %v1110_v59  ;;  %v1016_v10 = vrot.slane %v3080_v38, 4 }
 0x1fb   :  { %v1129_v56 = vsub.f32 %v1128_v52, %v2283_v54  ;;  %v1126_v29 = vsel %vm110_vm13, %v1125_v17, %v1118_v28  ;;  %v1036_v52 = vrot.slane %v3080_v38, 6  ;;  %v1046_v61 = vrot.slane %v3080_v38, 7 }
 0x1fc   :  { %vm883_vm3 = vcmp.gt.f32.partialorder %v882_v26, 1.0  ;;  %v976_v40 = vmul.f32 0.95, %v882_v26 }
 0x1fd   :  { %v2259_v41 = vsel %vm883_vm3, 1.0, %v2392_v18  ;;  %vm1130_vm8 = vcmp.gt.f32.partialorder %v1129_v56, 1.0  ;;  %v1135_v27 = vmul.f32 0.95, %v1129_v56 }
 0x1fe   :  { %v886_v33 = vperm.slane %v2259_v41, 0  ;;  %v977_v12 = vadd.f32 %v976_v40, %v3080_v38  ;;  %v2284_v62 = vsel %vm1130_vm8, 1.0, %v2392_v18 }
 0x1ff   :  { %v1136_v63 = vadd.f32 %v1135_v27, %v2543_v15  ;;  %v1133_v5 = vperm.slane %v2284_v62, 0 }
 0x200   :  { %v887_v47 = vsel %vm128_vm0, %v886_v33, %v877_v20  ;;  %v978_v0 = vsub.f32 %v977_v12, %v2259_v41  ;;  %v1026_v12 = vrot.slane %v3080_v38, 5 }
 0x201   :  { %888 = vst.msk [vmem:[%s3686_s5 + $0x18] sm:$0xff] %vm386_vm4, %v887_v47  ;;  %v1137_v19 = vsub.f32 %v1136_v63, %v2284_v62  ;;  %v1134_v16 = vsel %vm119_vm14, %v1133_v5, %v1126_v29 }
 0x202   :  { %vm979_vm6 = vcmp.gt.f32.partialorder %v978_v0, 1.0  ;;  %v984_v48 = vmul.f32 0.95, %v978_v0 }
 0x203   :  { %v3102_v55 = vsel %vm979_vm6, 1.0, %v2392_v18  ;;  %vm1138_vm2 = vcmp.gt.f32.partialorder %v1137_v19, 1.0  ;;  %v1246_v23 = vmul.f32 0.95, %v1137_v19 }
 0x204   :  { %v988_v53 = vadd.f32 %v986_v46, %v984_v48  ;;  %v2285_v7 = vsel %vm1138_vm2, 1.0, %v2392_v18  ;;  %v982_v27 = vperm.slane %v3102_v55, 0 }
 0x205   :  { %v1141_v14 = vperm.slane %v2285_v7, 0  ;;  %v1247_v31 = vadd.f32 %v1246_v23, %v2543_v15 }
 0x206   :  { %v989_v30 = vsub.f32 %v988_v53, %v3102_v55  ;;  %v983_v55 = vsel %vm65_vm7, %v982_v27, 0.0 }
 0x207   :  { %v1142_v8 = vsel %vm128_vm0, %v1141_v14, %v1134_v16  ;;  %v1248_v32 = vsub.f32 %v1247_v31, %v2285_v7 }
 0x208   :  { %vm990_vm15 = vcmp.gt.f32.partialorder %v989_v30, 1.0  ;;  %v995_v44 = vmul.f32 0.95, %v989_v30  ;;  %2294 = vmatmul.msk.f32.vlgmr.msra.gmra.mxu0 %vm134_vm1, %v1142_v8 }
 0x209   :  { %v3117_v13 = vsel %vm990_vm15, 1.0, %v2392_v18  ;;  %vm1249_vm5 = vcmp.gt.f32.partialorder %v1248_v32, 1.0  ;;  %v1254_v36 = vmul.f32 0.95, %v1248_v32 }
 0x20a   :  { %v998_v1 = vadd.f32 %v996_v60, %v995_v44  ;;  %v3140_v40 = vsel %vm1249_vm5, 1.0, %v2392_v18  ;;  %v993_v60 = vperm.slane %v3117_v13, 0 }
 0x20b   :  { %v1255_v34 = vadd.f32 %v1254_v36, %v2543_v15 }
 0x20c   :  { %v999_v2 = vsub.f32 %v998_v1, %v3117_v13  ;;  %v994_v13 = vsel %vm74_vm9, %v993_v60, %v983_v55 }
 0x20d   :  { %v1256_v41 = vsub.f32 %v1255_v34, %v3140_v40 }
 0x20e   :  { %vm1000_vm3 = vcmp.gt.f32.partialorder %v999_v2, 1.0  ;;  %v1005_v4 = vmul.f32 0.95, %v999_v2 }
 0x20f   :  { %v2271_v50 = vsel %vm1000_vm3, 1.0, %v2392_v18  ;;  %vm1257_vm8 = vcmp.gt.f32.partialorder %v1256_v41, 1.0  ;;  %v1262_v43 = vmul.f32 0.95, %v1256_v41 }
 0x210   :  { %v1008_v6 = vadd.f32 %v1006_v22, %v1005_v4  ;;  %v3147_v24 = vsel %vm1257_vm8, 1.0, %v2392_v18  ;;  %v1003_v62 = vperm.slane %v2271_v50, 0 }
 0x211   :  { %v1263_v45 = vadd.f32 %v1262_v43, %v2543_v15 }
 0x212   :  { %v1009_v9 = vsub.f32 %v1008_v6, %v2271_v50  ;;  %v1004_v21 = vsel %vm83_vm10, %v1003_v62, %v994_v13 }
 0x213   :  { %v1264_v0 = vsub.f32 %v1263_v45, %v3147_v24 }
 0x214   :  { %vm1010_vm6 = vcmp.gt.f32.partialorder %v1009_v9, 1.0  ;;  %v1015_v26 = vmul.f32 0.95, %v1009_v9  ;;  %v3190_v9 = vld [vmem:[%s3685_s4] ss:$0 sm:$0xff] }
 0x215   :  { %v2272_v11 = vsel %vm1010_vm6, 1.0, %v2392_v18  ;;  %vm1265_vm2 = vcmp.gt.f32.partialorder %v1264_v0, 1.0  ;;  %v1270_v48 = vmul.f32 0.95, %v1264_v0 }
 0x216   :  { %v1018_v37 = vadd.f32 %v1016_v10, %v1015_v26  ;;  %v3154_v56 = vsel %vm1265_vm2, 1.0, %v2392_v18  ;;  %v1013_v49 = vperm.slane %v2272_v11, 0 }
 0x217   :  { %v1271_v53 = vadd.f32 %v1270_v48, %v2543_v15 }
 0x218   :  { %v1019_v42 = vsub.f32 %v1018_v37, %v2272_v11  ;;  %v1014_v59 = vsel %vm92_vm11, %v1013_v49, %v1004_v21  ;;  %v1252_v37 = vperm.slane %v3140_v40, 0 }
 0x219   :  { %v1272_v30 = vsub.f32 %v1271_v53, %v3154_v56 }
 0x21a   :  { %vm1020_vm15 = vcmp.gt.f32.partialorder %v1019_v42, 1.0  ;;  %v1025_v33 = vmul.f32 0.95, %v1019_v42  ;;  %v1260_v42 = vperm.slane %v3147_v24, 0 }
 0x21b   :  { %v2273_v47 = vsel %vm1020_vm15, 1.0, %v2392_v18  ;;  %vm1273_vm5 = vcmp.gt.f32.partialorder %v1272_v30, 1.0  ;;  %v1278_v44 = vmul.f32 0.95, %v1272_v30 }
 0x21c   :  { %v1028_v20 = vadd.f32 %v1026_v12, %v1025_v33  ;;  %v2298_v51 = vsel %vm1273_vm5, 1.0, %v2392_v18  ;;  %v1023_v17 = vperm.slane %v2273_v47, 0  ;;  %v1268_v33 = vperm.slane %v3154_v56, 0 }
 0x21d   :  { %v1279_v63 = vadd.f32 %v1278_v44, %v2543_v15 }
 0x21e   :  { %v1029_v35 = vsub.f32 %v1028_v20, %v2273_v47  ;;  %v1024_v23 = vsel %vm101_vm12, %v1023_v17, %v1014_v59  ;;  %v1276_v20 = vperm.slane %v2298_v51, 0  ;;  %v1253_v47 = vsel %vm65_vm7, %v1252_v37, 0.0 }
 0x21f   :  { %v1280_v19 = vsub.f32 %v1279_v63, %v2298_v51  ;;  %v1261_v24 = vsel %vm74_vm9, %v1260_v42, %v1253_v47 }
 0x220   :  { %vm1030_vm3 = vcmp.gt.f32.partialorder %v1029_v35, 1.0  ;;  %v1035_v46 = vmul.f32 0.95, %v1029_v35  ;;  %v1269_v53 = vsel %vm83_vm10, %v1268_v33, %v1261_v24 }
 0x221   :  { %v2274_v57 = vsel %vm1030_vm3, 1.0, %v2392_v18  ;;  %vm1281_vm8 = vcmp.gt.f32.partialorder %v1280_v19, 1.0  ;;  %v1286_v22 = vmul.f32 0.95, %v1280_v19  ;;  %v1277_v30 = vsel %vm92_vm11, %v1276_v20, %v1269_v53 }
 0x222   :  { %v1038_v54 = vadd.f32 %v1036_v52, %v1035_v46  ;;  %v1033_v2 = vperm.slane %v2274_v57, 0  ;;  %v2299_v14 = vsel %vm1281_vm8, 1.0, %v2392_v18 }
 0x223   :  { %v1287_v28 = vadd.f32 %v1286_v22, %v2543_v15  ;;  %v1284_v46 = vperm.slane %v2299_v14, 0 }
 0x224   :  { %v1039_v58 = vsub.f32 %v1038_v54, %v2274_v57  ;;  %v1034_v7 = vsel %vm110_vm13, %v1033_v2, %v1024_v23 }
 0x225   :  { %v1288_v6 = vsub.f32 %v1287_v28, %v2299_v14  ;;  %v1285_v60 = vsel %vm101_vm12, %v1284_v46, %v1277_v30 }
 0x226   :  { %v1045_v25 = vmul.f32 0.95, %v1039_v58  ;;  %vm1040_vm6 = vcmp.gt.f32.partialorder %v1039_v58, 1.0 }
 0x227   :  { %v2275_v3 = vsel %vm1040_vm6, 1.0, %v2392_v18  ;;  %v1294_v32 = vmul.f32 0.95, %v1288_v6  ;;  %vm1289_vm2 = vcmp.gt.f32.partialorder %v1288_v6, 1.0 }
 0x228   :  { %v1048_v1 = vadd.f32 %v1046_v61, %v1045_v25  ;;  %v1043_v5 = vperm.slane %v2275_v3, 0  ;;  %v2300_v34 = vsel %vm1289_vm2, 1.0, %v2392_v18 }
 0x229   :  { %v1295_v26 = vadd.f32 %v1294_v32, %v2543_v15  ;;  %v1292_v54 = vperm.slane %v2300_v34, 0 }
 0x22a   :  { %v1049_v38 = vsub.f32 %v1048_v1, %v2275_v3  ;;  %v1044_v31 = vsel %vm119_vm14, %v1043_v5, %v1034_v7 }
 0x22b   :  { %v909_v8 = vpop.f32.mrf.mxu2  ;;  %v1296_v41 = vsub.f32 %v1295_v26, %v2300_v34  ;;  %v1293_v62 = vsel %vm110_vm13, %v1292_v54, %v1285_v60 }
 0x22c   :  { %vm1050_vm15 = vcmp.gt.f32.partialorder %v1049_v38, 1.0  ;;  %v1143_v50 = vmul.f32 0.95, %v1049_v38  ;;  %v3193_v36 = vadd.f32 %v3190_v9, %v909_v8 }
 0x22d   :  { %v2276_v4 = vsel %vm1050_vm15, 1.0, %v2392_v18  ;;  %vm1297_vm5 = vcmp.gt.f32.partialorder %v1296_v41, 1.0  ;;  %v1302_v45 = vmul.f32 0.95, %v1296_v41 }
 0x22e   :  { %v1053_v29 = vperm.slane %v2276_v4, 0  ;;  %v1144_v10 = vadd.f32 %v1143_v50, %v3193_v36  ;;  %v1153_v43 = vrot.slane %v3193_v36, 1  ;;  %v2301_v35 = vsel %vm1297_vm5, 1.0, %v2392_v18 }
 0x22f   :  { %v1303_v40 = vadd.f32 %v1302_v45, %v2543_v15  ;;  %v1163_v57 = vrot.slane %v3193_v36, 2  ;;  %v1300_v58 = vperm.slane %v2301_v35, 0  ;;  %v1173_v19 = vrot.slane %v3193_v36, 3 }
 0x230   :  { %v1054_v16 = vsel %vm128_vm0, %v1053_v29, %v1044_v31  ;;  %v1145_v11 = vsub.f32 %v1144_v10, %v2276_v4  ;;  %v1183_v4 = vrot.slane %v3193_v36, 4  ;;  %v1193_v8 = vrot.slane %v3193_v36, 5 }
 0x231   :  { %1055 = vst.msk [vmem:[%s3686_s5 + $0x20] sm:$0xff] %vm386_vm4, %v1054_v16  ;;  %v1304_v56 = vsub.f32 %v1303_v40, %v2301_v35  ;;  %v1301_v3 = vsel %vm119_vm14, %v1300_v58, %v1293_v62  ;;  %v1213_v53 = vrot.slane %v3193_v36, 7 }
 0x232   :  { %vm1146_vm3 = vcmp.gt.f32.partialorder %v1145_v11, 1.0  ;;  %v1151_v12 = vmul.f32 0.95, %v1145_v11 }
 0x233   :  { %v3207_v48 = vsel %vm1146_vm3, 1.0, %v2392_v18  ;;  %vm1305_vm8 = vcmp.gt.f32.partialorder %v1304_v56, 1.0  ;;  %v1413_v44 = vmul.f32 0.95, %v1304_v56 }
 0x234   :  { %v1155_v0 = vadd.f32 %v1153_v43, %v1151_v12  ;;  %v2302_v25 = vsel %vm1305_vm8, 1.0, %v2392_v18  ;;  %v1203_v43 = vrot.slane %v3193_v36, 6  ;;  %v1149_v47 = vperm.slane %v3207_v48, 0 }
 0x235   :  { %v1308_v63 = vperm.slane %v2302_v25, 0  ;;  %v1414_v49 = vadd.f32 %v1413_v44, %v2543_v15 }
 0x236   :  { %v1156_v52 = vsub.f32 %v1155_v0, %v3207_v48  ;;  %v1150_v48 = vsel %vm65_vm7, %v1149_v47, 0.0 }
 0x237   :  { %v1309_v55 = vsel %vm128_vm0, %v1308_v63, %v1301_v3  ;;  %v1415_v17 = vsub.f32 %v1414_v49, %v2302_v25 }
 0x238   :  { %vm1157_vm6 = vcmp.gt.f32.partialorder %v1156_v52, 1.0  ;;  %v1162_v27 = vmul.f32 0.95, %v1156_v52  ;;  %2311 = vmatmul.msk.f32.vlgmr.msra.gmra.mxu1 %vm134_vm1, %v1309_v55 }
 0x239   :  { %v3224_v1 = vsel %vm1157_vm6, 1.0, %v2392_v18  ;;  %vm1416_vm2 = vcmp.gt.f32.partialorder %v1415_v17, 1.0  ;;  %v1421_v2 = vmul.f32 0.95, %v1415_v17 }
 0x23a   :  { %v1165_v61 = vadd.f32 %v1163_v57, %v1162_v27  ;;  %v3236_v22 = vsel %vm1416_vm2, 1.0, %v2392_v18  ;;  %v1160_v46 = vperm.slane %v3224_v1, 0 }
 0x23b   :  { %v1422_v21 = vadd.f32 %v1421_v2, %v2543_v15 }
 0x23c   :  { %v1166_v51 = vsub.f32 %v1165_v61, %v3224_v1  ;;  %v1161_v60 = vsel %vm74_vm9, %v1160_v46, %v1150_v48 }
 0x23d   :  { %v1423_v23 = vsub.f32 %v1422_v21, %v3236_v22 }
 0x23e   :  { %vm1167_vm15 = vcmp.gt.f32.partialorder %v1166_v51, 1.0  ;;  %v1172_v13 = vmul.f32 0.95, %v1166_v51 }
 0x23f   :  { %v2288_v5 = vsel %vm1167_vm15, 1.0, %v2392_v18  ;;  %vm1424_vm5 = vcmp.gt.f32.partialorder %v1423_v23, 1.0  ;;  %v1429_v7 = vmul.f32 0.95, %v1423_v23 }
 0x240   :  { %v1175_v38 = vadd.f32 %v1173_v19, %v1172_v13  ;;  %v3243_v6 = vsel %vm1424_vm5, 1.0, %v2392_v18  ;;  %v1170_v52 = vperm.slane %v2288_v5, 0 }
 0x241   :  { %v1430_v14 = vadd.f32 %v1429_v7, %v2543_v15 }
 0x242   :  { %v1176_v59 = vsub.f32 %v1175_v38, %v2288_v5  ;;  %v1171_v61 = vsel %vm83_vm10, %v1170_v52, %v1161_v60 }
 0x243   :  { %v1431_v50 = vsub.f32 %v1430_v14, %v3243_v6  ;;  %v1427_v14 = vperm.slane %v3243_v6, 0 }
 0x244   :  { %vm1177_vm3 = vcmp.gt.f32.partialorder %v1176_v59, 1.0  ;;  %v1182_v28 = vmul.f32 0.95, %v1176_v59 }
 0x245   :  { %v2289_v31 = vsel %vm1177_vm3, 1.0, %v2392_v18  ;;  %vm1432_vm8 = vcmp.gt.f32.partialorder %v1431_v50, 1.0  ;;  %v1437_v26 = vmul.f32 0.95, %v1431_v50 }
 0x246   :  { %v1185_v29 = vadd.f32 %v1183_v4, %v1182_v28  ;;  %v3250_v11 = vsel %vm1432_vm8, 1.0, %v2392_v18  ;;  %v1180_v57 = vperm.slane %v2289_v31, 0  ;;  %v1419_v28 = vperm.slane %v3236_v22, 0 }
 0x247   :  { %v1438_v34 = vadd.f32 %v1437_v26, %v2543_v15 }
 0x248   :  { %v1186_v16 = vsub.f32 %v1185_v29, %v2289_v31  ;;  %v1181_v49 = vsel %vm92_vm11, %v1180_v57, %v1171_v61  ;;  %v1420_v26 = vsel %vm65_vm7, %v1419_v28, 0.0 }
 0x249   :  { %v1439_v42 = vsub.f32 %v1438_v34, %v3250_v11 }
 0x24a   :  { %vm1187_vm6 = vcmp.gt.f32.partialorder %v1186_v16, 1.0  ;;  %v1192_v32 = vmul.f32 0.95, %v1186_v16  ;;  %v1435_v16 = vperm.slane %v3250_v11, 0 }
 0x24b   :  { %v2290_v37 = vsel %vm1187_vm6, 1.0, %v2392_v18  ;;  %vm1440_vm2 = vcmp.gt.f32.partialorder %v1439_v42, 1.0  ;;  %v1445_v12 = vmul.f32 0.95, %v1439_v42 }
 0x24c   :  { %v1195_v10 = vadd.f32 %v1193_v8, %v1192_v32  ;;  %v3258_v35 = vsel %vm1440_vm2, 1.0, %v2392_v18  ;;  %v1190_v30 = vperm.slane %v2290_v37, 0 }
 0x24d   :  { %v1446_v20 = vadd.f32 %v1445_v12, %v2543_v15  ;;  %v1443_v32 = vperm.slane %v3258_v35, 0 }
 0x24e   :  { %v1196_v41 = vsub.f32 %v1195_v10, %v2290_v37  ;;  %v1191_v3 = vsel %vm101_vm12, %v1190_v30, %v1181_v49  ;;  %v1428_v37 = vsel %vm74_vm9, %v1427_v14, %v1420_v26 }
 0x24f   :  { %v1447_v24 = vsub.f32 %v1446_v20, %v3258_v35  ;;  %v1436_v42 = vsel %vm83_vm10, %v1435_v16, %v1428_v37 }
 0x250   :  { %vm1197_vm15 = vcmp.gt.f32.partialorder %v1196_v41, 1.0  ;;  %v1202_v33 = vmul.f32 0.95, %v1196_v41 }
 0x251   :  { %v2291_v0 = vsel %vm1197_vm15, 1.0, %v2392_v18  ;;  %vm1448_vm5 = vcmp.gt.f32.partialorder %v1447_v24, 1.0  ;;  %v1453_v56 = vmul.f32 0.95, %v1447_v24 }
 0x252   :  { %v1205_v45 = vadd.f32 %v1203_v43, %v1202_v33  ;;  %v1200_v25 = vperm.slane %v2291_v0, 0  ;;  %v2316_v36 = vsel %vm1448_vm5, 1.0, %v2392_v18 }
 0x253   :  { %v1454_v44 = vadd.f32 %v1453_v56, %v2543_v15  ;;  %v1451_v11 = vperm.slane %v2316_v36, 0 }
 0x254   :  { %v1206_v40 = vsub.f32 %v1205_v45, %v2291_v0  ;;  %v1201_v17 = vsel %vm110_vm13, %v1200_v25, %v1191_v3  ;;  %v1444_v45 = vsel %vm92_vm11, %v1443_v32, %v1436_v42 }
 0x255   :  { %v1455_v63 = vsub.f32 %v1454_v44, %v2316_v36  ;;  %v1452_v35 = vsel %vm101_vm12, %v1451_v11, %v1444_v45 }
 0x256   :  { %v1212_v54 = vmul.f32 0.95, %v1206_v40  ;;  %vm1207_vm3 = vcmp.gt.f32.partialorder %v1206_v40, 1.0 }
 0x257   :  { %v2292_v27 = vsel %vm1207_vm3, 1.0, %v2392_v18  ;;  %v1461_v55 = vmul.f32 0.95, %v1455_v63  ;;  %vm1456_vm8 = vcmp.gt.f32.partialorder %v1455_v63, 1.0 }
 0x258   :  { %v1215_v58 = vadd.f32 %v1213_v53, %v1212_v54  ;;  %v1210_v1 = vperm.slane %v2292_v27, 0  ;;  %v2317_v4 = vsel %vm1456_vm8, 1.0, %v2392_v18 }
 0x259   :  { %v1462_v21 = vadd.f32 %v1461_v55, %v2543_v15  ;;  %v1459_v43 = vperm.slane %v2317_v4, 0 }
 0x25a   :  { %v1216_v62 = vsub.f32 %v1215_v58, %v2292_v27  ;;  %v1211_v5 = vsel %vm119_vm14, %v1210_v1, %v1201_v17 }
 0x25b   :  { %v1076_v19 = vpop.f32.mrf.mxu3  ;;  %v1463_v29 = vsub.f32 %v1462_v21, %v2317_v4  ;;  %v1460_v46 = vsel %vm110_vm13, %v1459_v43, %v1452_v35 }
 0x25c   :  { %vm1217_vm6 = vcmp.gt.f32.partialorder %v1216_v62, 1.0  ;;  %v1310_v51 = vmul.f32 0.95, %v1216_v62  ;;  %v3280_v2 = vadd.f32 %v3190_v9, %v1076_v19 }
 0x25d   :  { %v2293_v13 = vsel %vm1217_vm6, 1.0, %v2392_v18  ;;  %vm1464_vm2 = vcmp.gt.f32.partialorder %v1463_v29, 1.0  ;;  %v1469_v8 = vmul.f32 0.95, %v1463_v29 }
 0x25e   :  { %v1220_v38 = vperm.slane %v2293_v13, 0  ;;  %v1311_v23 = vadd.f32 %v1310_v51, %v3280_v2  ;;  %v1320_v31 = vrot.slane %v3280_v2, 1  ;;  %v2318_v22 = vsel %vm1464_vm2, 1.0, %v2392_v18 }
 0x25f   :  { %v1470_v34 = vadd.f32 %v1469_v8, %v2543_v15  ;;  %v1330_v12 = vrot.slane %v3280_v2, 2  ;;  %v1467_v20 = vperm.slane %v2318_v22, 0  ;;  %v1340_v58 = vrot.slane %v3280_v2, 3 }
 0x260   :  { %v1221_v59 = vsel %vm128_vm0, %v1220_v38, %v1211_v5  ;;  %v1312_v7 = vsub.f32 %v1311_v23, %v2293_v13  ;;  %v1350_v49 = vrot.slane %v3280_v2, 4  ;;  %v1360_v21 = vrot.slane %v3280_v2, 5 }
 0x261   :  { %1222 = vst.msk [vmem:[%s3686_s5 + $0x28] sm:$0xff] %vm386_vm4, %v1221_v59  ;;  %v1471_v33 = vsub.f32 %v1470_v34, %v2318_v22  ;;  %v1468_v56 = vsel %vm119_vm14, %v1467_v20, %v1460_v46 }
 0x262   :  { %vm1313_vm15 = vcmp.gt.f32.partialorder %v1312_v7, 1.0  ;;  %v1318_v50 = vmul.f32 0.95, %v1312_v7 }
 0x263   :  { %v3303_v6 = vsel %vm1313_vm15, 1.0, %v2392_v18  ;;  %vm1472_vm5 = vcmp.gt.f32.partialorder %v1471_v33, 1.0  ;;  %v1580_v0 = vmul.f32 0.95, %v1471_v33 }
 0x264   :  { %v1322_v10 = vadd.f32 %v1320_v31, %v1318_v50  ;;  %v2319_v40 = vsel %vm1472_vm5, 1.0, %v2392_v18  ;;  %v1370_v31 = vrot.slane %v3280_v2, 6  ;;  %v1316_v22 = vperm.slane %v3303_v6, 0 }
 0x265   :  { %v1475_v52 = vperm.slane %v2319_v40, 0  ;;  %v1581_v53 = vadd.f32 %v1580_v0, %v2543_v15 }
 0x266   :  { %v1323_v41 = vsub.f32 %v1322_v10, %v3303_v6  ;;  %v1317_v45 = vsel %vm65_vm7, %v1316_v22, 0.0 }
 0x267   :  { %v1476_v57 = vsel %vm128_vm0, %v1475_v52, %v1468_v56  ;;  %v1582_v30 = vsub.f32 %v1581_v53, %v2319_v40 }
 0x268   :  { %vm1324_vm3 = vcmp.gt.f32.partialorder %v1323_v41, 1.0  ;;  %v1329_v47 = vmul.f32 0.95, %v1323_v41  ;;  %2328 = vmatmul.msk.f32.vlgmr.msra.gmra.mxu2 %vm134_vm1, %v1476_v57  ;;  %v1380_v41 = vrot.slane %v3280_v2, 7 }
 0x269   :  { %v3320_v54 = vsel %vm1324_vm3, 1.0, %v2392_v18  ;;  %vm1583_vm8 = vcmp.gt.f32.partialorder %v1582_v30, 1.0  ;;  %v1588_v44 = vmul.f32 0.95, %v1582_v30 }
 0x26a   :  { %v1332_v24 = vadd.f32 %v1330_v12, %v1329_v47  ;;  %v3332_v61 = vsel %vm1583_vm8, 1.0, %v2392_v18  ;;  %v1327_v11 = vperm.slane %v3320_v54, 0 }
 0x26b   :  { %v1589_v25 = vadd.f32 %v1588_v44, %v2543_v15 }
 0x26c   :  { %v1333_v48 = vsub.f32 %v1332_v24, %v3320_v54  ;;  %v1328_v6 = vsel %vm74_vm9, %v1327_v11, %v1317_v45 }
 0x26d   :  { %v1590_v63 = vsub.f32 %v1589_v25, %v3332_v61 }
 0x26e   :  { %vm1334_vm6 = vcmp.gt.f32.partialorder %v1333_v48, 1.0  ;;  %v1339_v27 = vmul.f32 0.95, %v1333_v48 }
 0x26f   :  { %v2305_v36 = vsel %vm1334_vm6, 1.0, %v2392_v18  ;;  %vm1591_vm2 = vcmp.gt.f32.partialorder %v1590_v63, 1.0  ;;  %v1596_v3 = vmul.f32 0.95, %v1590_v63 }
 0x270   :  { %v1342_v60 = vadd.f32 %v1340_v58, %v1339_v27  ;;  %v3339_v19 = vsel %vm1591_vm2, 1.0, %v2392_v18  ;;  %v1337_v42 = vperm.slane %v2305_v36, 0 }
 0x271   :  { %v1597_v55 = vadd.f32 %v1596_v3, %v2543_v15 }
 0x272   :  { %v1343_v62 = vsub.f32 %v1342_v60, %v2305_v36  ;;  %v1338_v2 = vsel %vm83_vm10, %v1337_v42, %v1328_v6 }
 0x273   :  { %v1598_v38 = vsub.f32 %v1597_v55, %v3339_v19  ;;  %v1586_v55 = vperm.slane %v3332_v61, 0 }
 0x274   :  { %vm1344_vm15 = vcmp.gt.f32.partialorder %v1343_v62, 1.0  ;;  %v1349_v1 = vmul.f32 0.95, %v1343_v62 }
 0x275   :  { %v2306_v17 = vsel %vm1344_vm15, 1.0, %v2392_v18  ;;  %vm1599_vm5 = vcmp.gt.f32.partialorder %v1598_v38, 1.0  ;;  %v1604_v59 = vmul.f32 0.95, %v1598_v38  ;;  %v1594_v38 = vperm.slane %v3339_v19, 0 }
 0x276   :  { %v1352_v51 = vadd.f32 %v1350_v49, %v1349_v1  ;;  %v3346_v7 = vsel %vm1599_vm5, 1.0, %v2392_v18  ;;  %v1347_v12 = vperm.slane %v2306_v17, 0 }
 0x277   :  { %v1605_v4 = vadd.f32 %v1604_v59, %v2543_v15 }
 0x278   :  { %v1353_v13 = vsub.f32 %v1352_v51, %v2306_v17  ;;  %v1348_v52 = vsel %vm92_vm11, %v1347_v12, %v1338_v2 }
 0x279   :  { %v1606_v14 = vsub.f32 %v1605_v4, %v3346_v7  ;;  %v1587_v4 = vsel %vm65_vm7, %v1586_v55, 0.0 }
 0x27a   :  { %vm1354_vm3 = vcmp.gt.f32.partialorder %v1353_v13, 1.0  ;;  %v1359_v5 = vmul.f32 0.95, %v1353_v13 }
 0x27b   :  { %v2307_v28 = vsel %vm1354_vm3, 1.0, %v2392_v18  ;;  %vm1607_vm8 = vcmp.gt.f32.partialorder %v1606_v14, 1.0  ;;  %v1612_v50 = vmul.f32 0.95, %v1606_v14 }
 0x27c   :  { %v1362_v23 = vadd.f32 %v1360_v21, %v1359_v5  ;;  %v3353_v10 = vsel %vm1607_vm8, 1.0, %v2392_v18  ;;  %v1357_v0 = vperm.slane %v2307_v28, 0 }
 0x27d   :  { %v1613_v32 = vadd.f32 %v1612_v50, %v2543_v15 }
 0x27e   :  { %v1363_v29 = vsub.f32 %v1362_v23, %v2307_v28  ;;  %v1358_v57 = vsel %vm101_vm12, %v1357_v0, %v1348_v52  ;;  %v1602_v23 = vperm.slane %v3346_v7, 0  ;;  %v1610_v28 = vperm.slane %v3353_v10, 0 }
 0x27f   :  { %v1614_v37 = vsub.f32 %v1613_v32, %v3353_v10 }
 0x280   :  { %vm1364_vm6 = vcmp.gt.f32.partialorder %v1363_v29, 1.0  ;;  %v1369_v16 = vmul.f32 0.95, %v1363_v29 }
 0x281   :  { %v2308_v26 = vsel %vm1364_vm6, 1.0, %v2392_v18  ;;  %v1620_v33 = vmul.f32 0.95, %v1614_v37  ;;  %vm1615_vm2 = vcmp.gt.f32.partialorder %v1614_v37, 1.0 }
 0x282   :  { %v1372_v8 = vadd.f32 %v1370_v31, %v1369_v16  ;;  %v1367_v24 = vperm.slane %v2308_v26, 0  ;;  %v2333_v48 = vsel %vm1615_vm2, 1.0, %v2392_v18  ;;  %v1595_v16 = vsel %vm74_vm9, %v1594_v38, %v1587_v4 }
 0x283   :  { %v1621_v40 = vadd.f32 %v1620_v33, %v2543_v15  ;;  %v1618_v31 = vperm.slane %v2333_v48, 0  ;;  %v1603_v32 = vsel %vm83_vm10, %v1602_v23, %v1595_v16 }
 0x284   :  { %v1373_v34 = vsub.f32 %v1372_v8, %v2308_v26  ;;  %v1368_v27 = vsel %vm110_vm13, %v1367_v24, %v1358_v57  ;;  %v1611_v22 = vsel %vm92_vm11, %v1610_v28, %v1603_v32 }
 0x285   :  { %v1243_v35 = vpop.f32.mrf.mxu0  ;;  %v1622_v58 = vsub.f32 %v1621_v40, %v2333_v48  ;;  %v1619_v11 = vsel %vm101_vm12, %v1618_v31, %v1611_v22 }
 0x286   :  { %v1379_v43 = vmul.f32 0.95, %v1373_v34  ;;  %vm1374_vm15 = vcmp.gt.f32.partialorder %v1373_v34, 1.0  ;;  %v3370_v54 = vadd.f32 %v3190_v9, %v1243_v35 }
 0x287   :  { %v2309_v47 = vsel %vm1374_vm15, 1.0, %v2392_v18  ;;  %vm1623_vm5 = vcmp.gt.f32.partialorder %v1622_v58, 1.0  ;;  %v1628_v36 = vmul.f32 0.95, %v1622_v58 }
 0x288   :  { %v1382_v20 = vadd.f32 %v1380_v41, %v1379_v43  ;;  %v1377_v53 = vperm.slane %v2309_v47, 0  ;;  %v1487_v3 = vrot.slane %v3370_v54, 1  ;;  %v2334_v51 = vsel %vm1623_vm5, 1.0, %v2392_v18 }
 0x289   :  { %v1629_v49 = vadd.f32 %v1628_v36, %v2543_v15  ;;  %v1497_v14 = vrot.slane %v3370_v54, 2  ;;  %v1626_v50 = vperm.slane %v2334_v51, 0  ;;  %v1507_v45 = vrot.slane %v3370_v54, 3 }
 0x28a   :  { %v1383_v46 = vsub.f32 %v1382_v20, %v2309_v47  ;;  %v1378_v25 = vsel %vm119_vm14, %v1377_v53, %v1368_v27  ;;  %v1517_v52 = vrot.slane %v3370_v54, 4  ;;  %v1537_v55 = vrot.slane %v3370_v54, 6 }
 0x28b   :  { %v1630_v17 = vsub.f32 %v1629_v49, %v2334_v51  ;;  %v1627_v42 = vsel %vm110_vm13, %v1626_v50, %v1619_v11  ;;  %v1547_v28 = vrot.slane %v3370_v54, 7 }
 0x28c   :  { %vm1384_vm3 = vcmp.gt.f32.partialorder %v1383_v46, 1.0  ;;  %v1477_v56 = vmul.f32 0.95, %v1383_v46 }
 0x28d   :  { %v2310_v30 = vsel %vm1384_vm3, 1.0, %v2392_v18  ;;  %vm1631_vm8 = vcmp.gt.f32.partialorder %v1630_v17, 1.0  ;;  %v1636_v5 = vmul.f32 0.95, %v1630_v17 }
 0x28e   :  { %v1387_v44 = vperm.slane %v2310_v30, 0  ;;  %v1478_v60 = vadd.f32 %v1477_v56, %v3370_v54  ;;  %v2335_v61 = vsel %vm1631_vm8, 1.0, %v2392_v18 }
 0x28f   :  { %v1637_v29 = vadd.f32 %v1636_v5, %v2543_v15  ;;  %v1634_v26 = vperm.slane %v2335_v61, 0 }
 0x290   :  { %v1388_v62 = vsel %vm128_vm0, %v1387_v44, %v1378_v25  ;;  %v1479_v63 = vsub.f32 %v1478_v60, %v2310_v30  ;;  %v1527_v60 = vrot.slane %v3370_v54, 5 }
 0x291   :  { %1389 = vst.msk [vmem:[%s3686_s5 + $0x30] sm:$0xff] %vm386_vm4, %v1388_v62  ;;  %v1638_v8 = vsub.f32 %v1637_v29, %v2335_v61  ;;  %v1635_v20 = vsel %vm119_vm14, %v1634_v26, %v1627_v42 }
 0x292   :  { %vm1480_vm6 = vcmp.gt.f32.partialorder %v1479_v63, 1.0  ;;  %v1485_v1 = vmul.f32 0.95, %v1479_v63 }
 0x293   :  { %v3393_v21 = vsel %vm1480_vm6, 1.0, %v2392_v18  ;;  %vm1639_vm2 = vcmp.gt.f32.partialorder %v1638_v8, 1.0  ;;  %v1747_v34 = vmul.f32 0.95, %v1638_v8 }
 0x294   :  { %v1489_v13 = vadd.f32 %v1487_v3, %v1485_v1  ;;  %v2336_v41 = vsel %vm1639_vm2, 1.0, %v2392_v18  ;;  %v1483_v4 = vperm.slane %v3393_v21, 0 }
 0x295   :  { %v1642_v43 = vperm.slane %v2336_v41, 0  ;;  %v1748_v33 = vadd.f32 %v1747_v34, %v2543_v15 }
 0x296   :  { %v1490_v59 = vsub.f32 %v1489_v13, %v3393_v21  ;;  %v1484_v21 = vsel %vm65_vm7, %v1483_v4, 0.0 }
 0x297   :  { %v1643_v47 = vsel %vm128_vm0, %v1642_v43, %v1635_v20  ;;  %v1749_v6 = vsub.f32 %v1748_v33, %v2336_v41 }
 0x298   :  { %vm1491_vm15 = vcmp.gt.f32.partialorder %v1490_v59, 1.0  ;;  %v1496_v19 = vmul.f32 0.95, %v1490_v59  ;;  %2345 = vmatmul.msk.f32.vlgmr.msra.gmra.mxu3 %vm134_vm1, %v1643_v47 }
 0x299   :  { %v3408_v10 = vsel %vm1491_vm15, 1.0, %v2392_v18  ;;  %vm1750_vm5 = vcmp.gt.f32.partialorder %v1749_v6, 1.0  ;;  %v1755_v40 = vmul.f32 0.95, %v1749_v6 }
 0x29a   :  { %v1499_v7 = vadd.f32 %v1497_v14, %v1496_v19  ;;  %v3429_v53 = vsel %vm1750_vm5, 1.0, %v2392_v18  ;;  %v1494_v29 = vperm.slane %v3408_v10, 0 }
 0x29b   :  { %v1756_v24 = vadd.f32 %v1755_v40, %v2543_v15 }
 0x29c   :  { %v1500_v37 = vsub.f32 %v1499_v7, %v3408_v10  ;;  %v1495_v10 = vsel %vm74_vm9, %v1494_v29, %v1484_v21 }
 0x29d   :  { %v1757_v56 = vsub.f32 %v1756_v24, %v3429_v53 }
 0x29e   :  { %vm1501_vm3 = vcmp.gt.f32.partialorder %v1500_v37, 1.0  ;;  %v1506_v12 = vmul.f32 0.95, %v1500_v37 }
 0x29f   :  { %v2322_v35 = vsel %vm1501_vm3, 1.0, %v2392_v18  ;;  %vm1758_vm8 = vcmp.gt.f32.partialorder %v1757_v56, 1.0  ;;  %v1763_v30 = vmul.f32 0.95, %v1757_v56 }
 0x2a0   :  { %v1509_v0 = vadd.f32 %v1507_v45, %v1506_v12  ;;  %v3436_v25 = vsel %vm1758_vm8, 1.0, %v2392_v18  ;;  %v1504_v31 = vperm.slane %v2322_v35, 0 }
 0x2a1   :  { %v1764_v27 = vadd.f32 %v1763_v30, %v2543_v15 }
 0x2a2   :  { %v1510_v2 = vsub.f32 %v1509_v0, %v2322_v35  ;;  %v1505_v37 = vsel %vm83_vm10, %v1504_v31, %v1495_v10 }
 0x2a3   :  { %v1765_v36 = vsub.f32 %v1764_v27, %v3436_v25 }
 0x2a4   :  { %vm1511_vm6 = vcmp.gt.f32.partialorder %v1510_v2, 1.0  ;;  %v1516_v46 = vmul.f32 0.95, %v1510_v2 }
 0x2a5   :  { %v2323_v57 = vsel %vm1511_vm6, 1.0, %v2392_v18  ;;  %vm1766_vm2 = vcmp.gt.f32.partialorder %v1765_v36, 1.0  ;;  %v1771_v49 = vmul.f32 0.95, %v1765_v36  ;;  %v1761_v36 = vperm.slane %v3436_v25, 0 }
 0x2a6   :  { %v1519_v48 = vadd.f32 %v1517_v52, %v1516_v46  ;;  %v3443_v17 = vsel %vm1766_vm2, 1.0, %v2392_v18  ;;  %v1514_v50 = vperm.slane %v2323_v57, 0 }
 0x2a7   :  { %v1772_v3 = vadd.f32 %v1771_v49, %v2543_v15 }
 0x2a8   :  { %v1520_v58 = vsub.f32 %v1519_v48, %v2323_v57  ;;  %v1515_v41 = vsel %vm92_vm11, %v1514_v50, %v1505_v37 }
 0x2a9   :  { %v1773_v13 = vsub.f32 %v1772_v3, %v3443_v17 }
 0x2aa   :  { %vm1521_vm15 = vcmp.gt.f32.partialorder %v1520_v58, 1.0  ;;  %v1526_v44 = vmul.f32 0.95, %v1520_v58 }
 0x2ab   :  { %v2324_v63 = vsel %vm1521_vm15, 1.0, %v2392_v18  ;;  %vm1774_vm5 = vcmp.gt.f32.partialorder %v1773_v13, 1.0  ;;  %v1779_v59 = vmul.f32 0.95, %v1773_v13 }
 0x2ac   :  { %v1529_v62 = vadd.f32 %v1527_v60, %v1526_v44  ;;  %v3452_v14 = vsel %vm1774_vm5, 1.0, %v2392_v18  ;;  %v1524_v54 = vperm.slane %v2324_v63, 0  ;;  %v1753_v44 = vperm.slane %v3429_v53, 0 }
 0x2ad   :  { %v1780_v61 = vadd.f32 %v1779_v59, %v2543_v15  ;;  %v1777_v3 = vperm.slane %v3452_v14, 0 }
 0x2ae   :  { %v1530_v1 = vsub.f32 %v1529_v62, %v2324_v63  ;;  %v1525_v33 = vsel %vm101_vm12, %v1524_v54, %v1515_v41  ;;  %v1754_v53 = vsel %vm65_vm7, %v1753_v44, 0.0 }
 0x2af   :  { %v1781_v16 = vsub.f32 %v1780_v61, %v3452_v14 }
 0x2b0   :  { %vm1531_vm3 = vcmp.gt.f32.partialorder %v1530_v1, 1.0  ;;  %v1536_v51 = vmul.f32 0.95, %v1530_v1  ;;  %v1769_v1 = vperm.slane %v3443_v17, 0 }
 0x2b1   :  { %v2325_v5 = vsel %vm1531_vm3, 1.0, %v2392_v18  ;;  %v1787_v26 = vmul.f32 0.95, %v1781_v16  ;;  %vm1782_vm8 = vcmp.gt.f32.partialorder %v1781_v16, 1.0 }
 0x2b2   :  { %v1539_v38 = vadd.f32 %v1537_v55, %v1536_v51  ;;  %v1534_v22 = vperm.slane %v2325_v5, 0  ;;  %v2350_v0 = vsel %vm1782_vm8, 1.0, %v2392_v18 }
 0x2b3   :  { %v1788_v45 = vadd.f32 %v1787_v26, %v2543_v15 }
 0x2b4   :  { %v1540_v23 = vsub.f32 %v1539_v38, %v2325_v5  ;;  %v1535_v20 = vsel %vm110_vm13, %v1534_v22, %v1525_v33  ;;  %v1785_v38 = vperm.slane %v2350_v0, 0  ;;  %v1762_v5 = vsel %vm74_vm9, %v1761_v36, %v1754_v53 }
 0x2b5   :  { %v1410_v32 = vpop.f32.mrf.mxu1  ;;  %v1789_v40 = vsub.f32 %v1788_v45, %v2350_v0  ;;  %v1770_v4 = vsel %vm83_vm10, %v1769_v1, %v1762_v5 }
 0x2b6   :  { %v1546_v19 = vmul.f32 0.95, %v1540_v23  ;;  %vm1541_vm6 = vcmp.gt.f32.partialorder %v1540_v23, 1.0  ;;  %v3465_v42 = vadd.f32 %v3190_v9, %v1410_v32  ;;  %v1778_v29 = vsel %vm92_vm11, %v1777_v3, %v1770_v4 }
 0x2b7   :  { %v2326_v7 = vsel %vm1541_vm6, 1.0, %v2392_v18  ;;  %vm1790_vm2 = vcmp.gt.f32.partialorder %v1789_v40, 1.0  ;;  %v1795_v46 = vmul.f32 0.95, %v1789_v40  ;;  %v1786_v31 = vsel %vm101_vm12, %v1785_v38, %v1778_v29 }
 0x2b8   :  { %v1549_v8 = vadd.f32 %v1547_v28, %v1546_v19  ;;  %v1544_v11 = vperm.slane %v2326_v7, 0  ;;  %v1654_v56 = vrot.slane %v3465_v42, 1  ;;  %v2351_v30 = vsel %vm1790_vm2, 1.0, %v2392_v18 }
 0x2b9   :  { %v1796_v48 = vadd.f32 %v1795_v46, %v2543_v15  ;;  %v1664_v49 = vrot.slane %v3465_v42, 2  ;;  %v1793_v59 = vperm.slane %v2351_v30, 0  ;;  %v1674_v61 = vrot.slane %v3465_v42, 3 }
 0x2ba   :  { %v1550_v34 = vsub.f32 %v1549_v8, %v2326_v7  ;;  %v1545_v35 = vsel %vm119_vm14, %v1544_v11, %v1535_v20  ;;  %v1684_v11 = vrot.slane %v3465_v42, 4  ;;  %v1694_v0 = vrot.slane %v3465_v42, 5 }
 0x2bb   :  { %v1797_v27 = vsub.f32 %v1796_v48, %v2351_v30  ;;  %v1794_v50 = vsel %vm110_vm13, %v1793_v59, %v1786_v31 }
 0x2bc   :  { %vm1551_vm15 = vcmp.gt.f32.partialorder %v1550_v34, 1.0  ;;  %v1644_v43 = vmul.f32 0.95, %v1550_v34 }
 0x2bd   :  { %v2327_v12 = vsel %vm1551_vm15, 1.0, %v2392_v18  ;;  %vm1798_vm5 = vcmp.gt.f32.partialorder %v1797_v27, 1.0  ;;  %v1803_v62 = vmul.f32 0.95, %v1797_v27 }
 0x2be   :  { %v1554_v47 = vperm.slane %v2327_v12, 0  ;;  %v1645_v6 = vadd.f32 %v1644_v43, %v3465_v42  ;;  %v2352_v51 = vsel %vm1798_vm5, 1.0, %v2392_v18 }
 0x2bf   :  { %v1804_v55 = vadd.f32 %v1803_v62, %v2543_v15  ;;  %v1801_v28 = vperm.slane %v2352_v51, 0 }
 0x2c0   :  { %v1555_v2 = vsel %vm128_vm0, %v1554_v47, %v1545_v35  ;;  %v1646_v24 = vsub.f32 %v1645_v6, %v2327_v12 }
 0x2c1   :  { %1556 = vst.msk [vmem:[%s3686_s5 + $0x38] sm:$0xff] %vm386_vm4, %v1555_v2  ;;  %v1805_v23 = vsub.f32 %v1804_v55, %v2352_v51  ;;  %v1802_v54 = vsel %vm119_vm14, %v1801_v28, %v1794_v50  ;;  %v1714_v55 = vrot.slane %v3465_v42, 7 }
 0x2c2   :  { %vm1647_vm3 = vcmp.gt.f32.partialorder %v1646_v24, 1.0  ;;  %v1652_v52 = vmul.f32 0.95, %v1646_v24 }
 0x2c3   :  { %v3487_v58 = vsel %vm1647_vm3, 1.0, %v2392_v18  ;;  %vm1806_vm8 = vcmp.gt.f32.partialorder %v1805_v23, 1.0  ;;  %v1914_v19 = vmul.f32 0.95, %v1805_v23 }
 0x2c4   :  { %v1656_v57 = vadd.f32 %v1654_v56, %v1652_v52  ;;  %v2353_v16 = vsel %vm1806_vm8, 1.0, %v2392_v18  ;;  %v1650_v3 = vperm.slane %v3487_v58, 0 }
 0x2c5   :  { %v1809_v8 = vperm.slane %v2353_v16, 0  ;;  %v1915_v7 = vadd.f32 %v1914_v19, %v2543_v15 }
 0x2c6   :  { %v1657_v60 = vsub.f32 %v1656_v57, %v3487_v58  ;;  %v1704_v57 = vrot.slane %v3465_v42, 6 }
 0x2c7   :  { %v1810_v26 = vsel %vm128_vm0, %v1809_v8, %v1802_v54  ;;  %v1916_v10 = vsub.f32 %v1915_v7, %v2353_v16 }
 0x2c8   :  { %vm1658_vm6 = vcmp.gt.f32.partialorder %v1657_v60, 1.0  ;;  %v1663_v63 = vmul.f32 0.95, %v1657_v60  ;;  %2362 = vmatmul.msk.f32.vlgmr.msrb.gmra.mxu0 %vm134_vm1, %v1810_v26 }
 0x2c9   :  { %v3500_v25 = vsel %vm1658_vm6, 1.0, %v2392_v18  ;;  %vm1917_vm2 = vcmp.gt.f32.partialorder %v1916_v10, 1.0  ;;  %v1922_v34 = vmul.f32 0.95, %v1916_v10 }
 0x2ca   :  { %v1666_v13 = vadd.f32 %v1664_v49, %v1663_v63  ;;  %v2363_v33 = vsel %vm1917_vm2, 1.0, %v2392_v18  ;;  %v1661_v51 = vperm.slane %v3500_v25, 0 }
 0x2cb   :  { %v1923_v41 = vadd.f32 %v1922_v34, %v2543_v15  ;;  %v1920_v60 = vperm.slane %v2363_v33, 0 }
 0x2cc   :  { %v1667_v17 = vsub.f32 %v1666_v13, %v3500_v25 }
 0x2cd   :  { %v1924_v45 = vsub.f32 %v1923_v41, %v2363_v33  ;;  %v1921_v13 = vsel %vm65_vm7, %v1920_v60, 0.0 }
 0x2ce   :  { %vm1668_vm15 = vcmp.gt.f32.partialorder %v1667_v17, 1.0  ;;  %v1673_v14 = vmul.f32 0.95, %v1667_v17  ;;  %v1651_v17 = vsel %vm65_vm7, %v1650_v3, 0.0 }
 0x2cf   :  { %v3519_v32 = vsel %vm1668_vm15, 1.0, %v2392_v18  ;;  %v1930_v47 = vmul.f32 0.95, %v1924_v45  ;;  %vm1925_vm5 = vcmp.gt.f32.partialorder %v1924_v45, 1.0 }
 0x2d0   :  { %v1676_v21 = vadd.f32 %v1674_v61, %v1673_v14  ;;  %v2364_v2 = vsel %vm1925_vm5, 1.0, %v2392_v18  ;;  %v1671_v38 = vperm.slane %v3519_v32, 0  ;;  %v1662_v61 = vsel %vm74_vm9, %v1661_v51, %v1651_v17 }
 0x2d1   :  { %v1931_v35 = vadd.f32 %v1930_v47, %v2543_v15  ;;  %v1928_v62 = vperm.slane %v2364_v2, 0 }
 0x2d2   :  { %v1677_v22 = vsub.f32 %v1676_v21, %v3519_v32  ;;  %v1672_v14 = vsel %vm83_vm10, %v1671_v38, %v1662_v61 }
 0x2d3   :  { %v1932_v46 = vsub.f32 %v1931_v35, %v2364_v2  ;;  %v1929_v5 = vsel %vm74_vm9, %v1928_v62, %v1921_v13 }
 0x2d4   :  { %vm1678_vm3 = vcmp.gt.f32.partialorder %v1677_v22, 1.0  ;;  %v1683_v37 = vmul.f32 0.95, %v1677_v22 }
 0x2d5   :  { %v2340_v12 = vsel %vm1678_vm3, 1.0, %v2392_v18  ;;  %vm1933_vm8 = vcmp.gt.f32.partialorder %v1932_v46, 1.0  ;;  %v1938_v56 = vmul.f32 0.95, %v1932_v46 }
 0x2d6   :  { %v1686_v43 = vadd.f32 %v1684_v11, %v1683_v37  ;;  %v2365_v30 = vsel %vm1933_vm8, 1.0, %v2392_v18  ;;  %v1681_v23 = vperm.slane %v2340_v12, 0 }
 0x2d7   :  { %v1939_v27 = vadd.f32 %v1938_v56, %v2543_v15  ;;  %v1936_v1 = vperm.slane %v2365_v30, 0 }
 0x2d8   :  { %v1687_v20 = vsub.f32 %v1686_v43, %v2340_v12  ;;  %v1682_v16 = vsel %vm92_vm11, %v1681_v23, %v1672_v14 }
 0x2d9   :  { %v1940_v63 = vsub.f32 %v1939_v27, %v2365_v30  ;;  %v1937_v25 = vsel %vm83_vm10, %v1936_v1, %v1929_v5 }
 0x2da   :  { %vm1688_vm6 = vcmp.gt.f32.partialorder %v1687_v20, 1.0  ;;  %v1693_v6 = vmul.f32 0.95, %v1687_v20 }
 0x2db   :  { %v2341_v24 = vsel %vm1688_vm6, 1.0, %v2392_v18  ;;  %vm1941_vm2 = vcmp.gt.f32.partialorder %v1940_v63, 1.0 }
 0x2dc   :  { %v1696_v40 = vadd.f32 %v1694_v0, %v1693_v6  ;;  %v2366_v15 = vsel %vm1941_vm2, 1.0, %v2392_v18  ;;  %v1691_v4 = vperm.slane %v2341_v24, 0 }
 0x2dd   :  { %v1944_v59 = vperm.slane %v2366_v15, 0 }
 0x2de   :  { %v1697_v52 = vsub.f32 %v1696_v40, %v2341_v24  ;;  %v1692_v50 = vsel %vm101_vm12, %v1691_v4, %v1682_v16 }
 0x2df   :  { %v1945_v28 = vsel %vm92_vm11, %v1944_v59, %v1937_v25 }
 0x2e0   :  { %vm1698_vm15 = vcmp.gt.f32.partialorder %v1697_v52, 1.0  ;;  %v1703_v48 = vmul.f32 0.95, %v1697_v52  ;;  %2375 = vmatmul.msk.f32.vlgmr.msrb.gmra.mxu1 %vm134_vm1, %v1945_v28 }
 0x2e1   :  { %v2342_v36 = vsel %vm1698_vm15, 1.0, %v2392_v18 }
 0x2e2   :  { %v1706_v44 = vadd.f32 %v1704_v57, %v1703_v48  ;;  %v1701_v29 = vperm.slane %v2342_v36, 0 }
 0x2e4   :  { %v1707_v49 = vsub.f32 %v1706_v44, %v2342_v36  ;;  %v1702_v7 = vsel %vm110_vm13, %v1701_v29, %v1692_v50 }
 0x2e6   :  { %v1713_v53 = vmul.f32 0.95, %v1707_v49  ;;  %vm1708_vm3 = vcmp.gt.f32.partialorder %v1707_v49, 1.0 }
 0x2e7   :  { %v2343_v42 = vsel %vm1708_vm3, 1.0, %v2392_v18 }
 0x2e8   :  { %v1716_v58 = vadd.f32 %v1714_v55, %v1713_v53  ;;  %v1711_v31 = vperm.slane %v2343_v42, 0 }
 0x2ea   :  { %v1717_v19 = vsub.f32 %v1716_v58, %v2343_v42  ;;  %v1712_v54 = vsel %vm119_vm14, %v1711_v31, %v1702_v7 }
 0x2eb   :  { %v1577_v26 = vpop.f32.mrf.mxu2 }
 0x2ec   :  { %vm1718_vm5 = vcmp.gt.f32.partialorder %v1717_v19, 1.0  ;;  %v1811_v32 = vmul.f32 0.95, %v1717_v19  ;;  %v1578_v22 = vadd.f32 %v3190_v9, %v1577_v26 }
 0x2ed   :  { %v2344_v8 = vsel %vm1718_vm5, 1.0, %v2392_v18 }
 0x2ee   :  { %v1721_v21 = vperm.slane %v2344_v8, 0  ;;  %v1812_v34 = vadd.f32 %v1811_v32, %v1578_v22  ;;  %v1821_v41 = vrot.slane %v1578_v22, 1  ;;  %v1831_v20 = vrot.slane %v1578_v22, 2 }
 0x2ef   :  { %v1841_v35 = vrot.slane %v1578_v22, 3  ;;  %v1851_v52 = vrot.slane %v1578_v22, 4  ;;  %v1861_v27 = vrot.slane %v1578_v22, 5  ;;  %v1871_v63 = vrot.slane %v1578_v22, 6 }
 0x2f0   :  { %v1722_v10 = vsel %vm128_vm0, %v1721_v21, %v1712_v54  ;;  %v1813_v37 = vsub.f32 %v1812_v34, %v2344_v8  ;;  %v1881_v13 = vrot.slane %v1578_v22, 7  ;;  %v3597_v8 = vld [vmem:[%s3685_s4] ss:$0 sm:$0xff] }
 0x2f1   :  { %1723 = vst.msk [vmem:[%s3686_s5 + $0x40] sm:$0xff] %vm386_vm4, %v1722_v10 }
 0x2f2   :  { %vm1814_vm1 = vcmp.gt.f32.partialorder %v1813_v37, 1.0  ;;  %v1819_v11 = vmul.f32 0.95, %v1813_v37 }
 0x2f3   :  { %v2354_v33 = vsel %vm1814_vm1, 1.0, %v2392_v18 }
 0x2f4   :  { %v1823_v43 = vadd.f32 %v1821_v41, %v1819_v11  ;;  %v1817_v51 = vperm.slane %v2354_v33, 0 }
 0x2f6   :  { %v1824_v12 = vsub.f32 %v1823_v43, %v2354_v33  ;;  %v1818_v23 = vsel %vm65_vm7, %v1817_v51, 0.0 }
 0x2f8   :  { %vm1825_vm6 = vcmp.gt.f32.partialorder %v1824_v12, 1.0  ;;  %v1830_v45 = vmul.f32 0.95, %v1824_v12 }
 0x2f9   :  { %v2355_v9 = vsel %vm1825_vm6, 1.0, %v2392_v18 }
 0x2fa   :  { %v1833_v47 = vadd.f32 %v1831_v20, %v1830_v45  ;;  %v1828_v55 = vperm.slane %v2355_v9, 0 }
 0x2fc   :  { %v1834_v6 = vsub.f32 %v1833_v47, %v2355_v9  ;;  %v1829_v25 = vsel %vm74_vm9, %v1828_v55, %v1818_v23 }
 0x2fe   :  { %vm1835_vm8 = vcmp.gt.f32.partialorder %v1834_v6, 1.0  ;;  %v1840_v0 = vmul.f32 0.95, %v1834_v6 }
 0x2ff   :  { %v2356_v2 = vsel %vm1835_vm8, 1.0, %v2392_v18 }
 0x300   :  { %v1843_v40 = vadd.f32 %v1841_v35, %v1840_v0  ;;  %v1838_v15 = vperm.slane %v2356_v2, 0 }
 0x302   :  { %v1844_v24 = vsub.f32 %v1843_v40, %v2356_v2  ;;  %v1839_v4 = vsel %vm83_vm10, %v1838_v15, %v1829_v25 }
 0x304   :  { %vm1845_vm15 = vcmp.gt.f32.partialorder %v1844_v24, 1.0  ;;  %v1850_v46 = vmul.f32 0.95, %v1844_v24 }
 0x305   :  { %v2357_v48 = vsel %vm1845_vm15, 1.0, %v2392_v18 }
 0x306   :  { %v1853_v56 = vadd.f32 %v1851_v52, %v1850_v46  ;;  %v1848_v38 = vperm.slane %v2357_v48, 0 }
 0x308   :  { %v1854_v57 = vsub.f32 %v1853_v56, %v2357_v48  ;;  %v1849_v61 = vsel %vm92_vm11, %v1848_v38, %v1839_v4 }
 0x30a   :  { %vm1855_vm2 = vcmp.gt.f32.partialorder %v1854_v57, 1.0  ;;  %v1860_v30 = vmul.f32 0.95, %v1854_v57 }
 0x30b   :  { %v2358_v60 = vsel %vm1855_vm2, 1.0, %v2392_v18 }
 0x30c   :  { %v1863_v44 = vadd.f32 %v1861_v27, %v1860_v30  ;;  %v1858_v58 = vperm.slane %v2358_v60, 0 }
 0x30e   :  { %v1864_v36 = vsub.f32 %v1863_v44, %v2358_v60  ;;  %v1859_v29 = vsel %vm101_vm12, %v1858_v58, %v1849_v61 }
 0x310   :  { %vm1865_vm3 = vcmp.gt.f32.partialorder %v1864_v36, 1.0  ;;  %v1870_v62 = vmul.f32 0.95, %v1864_v36 }
 0x311   :  { %v2359_v1 = vsel %vm1865_vm3, 1.0, %v2392_v18 }
 0x312   :  { %v1873_v49 = vadd.f32 %v1871_v63, %v1870_v62  ;;  %v1868_v42 = vperm.slane %v2359_v1, 0 }
 0x314   :  { %v1874_v3 = vsub.f32 %v1873_v49, %v2359_v1  ;;  %v1869_v31 = vsel %vm110_vm13, %v1868_v42, %v1859_v29 }
 0x316   :  { %v1880_v53 = vmul.f32 0.95, %v1874_v3  ;;  %vm1875_vm5 = vcmp.gt.f32.partialorder %v1874_v3, 1.0 }
 0x317   :  { %v2360_v59 = vsel %vm1875_vm5, 1.0, %v2392_v18 }
 0x318   :  { %v1883_v5 = vadd.f32 %v1881_v13, %v1880_v53  ;;  %v1878_v28 = vperm.slane %v2360_v59, 0 }
 0x31a   :  { %v1884_v17 = vsub.f32 %v1883_v5, %v2360_v59  ;;  %v1879_v21 = vsel %vm119_vm14, %v1878_v28, %v1869_v31 }
 0x31b   :  { %v1744_v16 = vpop.f32.mrf.mxu3 }
 0x31c   :  { %vm1885_vm1 = vcmp.gt.f32.partialorder %v1884_v17, 1.0  ;;  %v1946_v14 = vmul.f32 0.95, %v1884_v17  ;;  %v1745_v7 = vadd.f32 %v3597_v8, %v1744_v16 }
 0x31d   :  { %v2361_v19 = vsel %vm1885_vm1, 1.0, %v2392_v18 }
 0x31e   :  { %v1888_v50 = vperm.slane %v2361_v19, 0  ;;  %v1947_v32 = vadd.f32 %v1946_v14, %v1745_v7  ;;  %v1956_v22 = vrot.slane %v1745_v7, 1  ;;  %v1966_v43 = vrot.slane %v1745_v7, 2 }
 0x31f   :  { %v1976_v47 = vrot.slane %v1745_v7, 3  ;;  %v1986_v40 = vrot.slane %v1745_v7, 4  ;;  %v1996_v56 = vrot.slane %v1745_v7, 5  ;;  %v2006_v44 = vrot.slane %v1745_v7, 6 }
 0x320   :  { %v1889_v54 = vsel %vm128_vm0, %v1888_v50, %v1879_v21  ;;  %v1948_v26 = vsub.f32 %v1947_v32, %v2361_v19  ;;  %v2016_v3 = vrot.slane %v1745_v7, 7 }
 0x321   :  { %1890 = vst.msk [vmem:[%s3686_s5 + $0x48] sm:$0xff] %vm386_vm4, %v1889_v54 }
 0x322   :  { %vm1949_vm6 = vcmp.gt.f32.partialorder %v1948_v26, 1.0  ;;  %v1954_v10 = vmul.f32 0.95, %v1948_v26 }
 0x323   :  { %v2367_v37 = vsel %vm1949_vm6, 1.0, %v2392_v18 }
 0x324   :  { %v1958_v34 = vadd.f32 %v1956_v22, %v1954_v10  ;;  %v1952_v63 = vperm.slane %v2367_v37, 0 }
 0x326   :  { %v1959_v11 = vsub.f32 %v1958_v34, %v2367_v37  ;;  %v1953_v15 = vsel %vm65_vm7, %v1952_v63, 0.0 }
 0x328   :  { %vm1960_vm8 = vcmp.gt.f32.partialorder %v1959_v11, 1.0  ;;  %v1965_v41 = vmul.f32 0.95, %v1959_v11 }
 0x329   :  { %v2368_v12 = vsel %vm1960_vm8, 1.0, %v2392_v18 }
 0x32a   :  { %v1968_v33 = vadd.f32 %v1966_v43, %v1965_v41  ;;  %v1963_v49 = vperm.slane %v2368_v12, 0 }
 0x32c   :  { %v1969_v45 = vsub.f32 %v1968_v33, %v2368_v12  ;;  %v1964_v59 = vsel %vm74_vm9, %v1963_v49, %v1953_v15 }
 0x32e   :  { %vm1970_vm15 = vcmp.gt.f32.partialorder %v1969_v45, 1.0  ;;  %v1975_v20 = vmul.f32 0.95, %v1969_v45 }
 0x32f   :  { %v2369_v6 = vsel %vm1970_vm15, 1.0, %v2392_v18 }
 0x330   :  { %v1978_v9 = vadd.f32 %v1976_v47, %v1975_v20  ;;  %v1973_v51 = vperm.slane %v2369_v6, 0 }
 0x332   :  { %v1979_v0 = vsub.f32 %v1978_v9, %v2369_v6  ;;  %v1974_v25 = vsel %vm83_vm10, %v1973_v51, %v1964_v59 }
 0x334   :  { %vm1980_vm2 = vcmp.gt.f32.partialorder %v1979_v0, 1.0  ;;  %v1985_v35 = vmul.f32 0.95, %v1979_v0 }
 0x335   :  { %v2370_v24 = vsel %vm1980_vm2, 1.0, %v2392_v18 }
 0x336   :  { %v1988_v2 = vadd.f32 %v1986_v40, %v1985_v35  ;;  %v1983_v55 = vperm.slane %v2370_v24, 0 }
 0x338   :  { %v1989_v46 = vsub.f32 %v1988_v2, %v2370_v24  ;;  %v1984_v17 = vsel %vm92_vm11, %v1983_v55, %v1974_v25 }
 0x33a   :  { %vm1990_vm3 = vcmp.gt.f32.partialorder %v1989_v46, 1.0  ;;  %v1995_v52 = vmul.f32 0.95, %v1989_v46 }
 0x33b   :  { %v2371_v57 = vsel %vm1990_vm3, 1.0, %v2392_v18 }
 0x33c   :  { %v1998_v48 = vadd.f32 %v1996_v56, %v1995_v52  ;;  %v1993_v38 = vperm.slane %v2371_v57, 0 }
 0x33e   :  { %v1999_v30 = vsub.f32 %v1998_v48, %v2371_v57  ;;  %v1994_v61 = vsel %vm101_vm12, %v1993_v38, %v1984_v17 }
 0x340   :  { %vm2000_vm5 = vcmp.gt.f32.partialorder %v1999_v30, 1.0  ;;  %v2005_v27 = vmul.f32 0.95, %v1999_v30 }
 0x341   :  { %v2372_v36 = vsel %vm2000_vm5, 1.0, %v2392_v18 }
 0x342   :  { %v2008_v60 = vadd.f32 %v2006_v44, %v2005_v27  ;;  %v2003_v23 = vperm.slane %v2372_v36, 0 }
 0x344   :  { %v2009_v62 = vsub.f32 %v2008_v60, %v2372_v36  ;;  %v2004_v19 = vsel %vm110_vm13, %v2003_v23, %v1994_v61 }
 0x345   :  { %v1911_v5 = vpop.f32.mrf.mxu0 }
 0x346   :  { %v2015_v1 = vmul.f32 0.95, %v2009_v62  ;;  %vm2010_vm1 = vcmp.gt.f32.partialorder %v2009_v62, 1.0  ;;  %v1912_v4 = vadd.f32 %v3597_v8, %v1911_v5 }
 0x347   :  { %v2373_v13 = vsel %vm2010_vm1, 1.0, %v2392_v18 }
 0x348   :  { %v2018_v53 = vadd.f32 %v2016_v3, %v2015_v1  ;;  %v2013_v42 = vperm.slane %v2373_v13, 0  ;;  %v2059_v54 = vrot.slane %v1912_v4, 1  ;;  %v2069_v22 = vrot.slane %v1912_v4, 2 }
 0x349   :  { %v2079_v33 = vrot.slane %v1912_v4, 3  ;;  %v2089_v9 = vrot.slane %v1912_v4, 4  ;;  %v2099_v2 = vrot.slane %v1912_v4, 5  ;;  %v2109_v48 = vrot.slane %v1912_v4, 6 }
 0x34a   :  { %v2019_v58 = vsub.f32 %v2018_v53, %v2373_v13  ;;  %v2014_v16 = vsel %vm119_vm14, %v2013_v42, %v2004_v19  ;;  %v2119_v62 = vrot.slane %v1912_v4, 7 }
 0x34c   :  { %vm2020_vm6 = vcmp.gt.f32.partialorder %v2019_v58, 1.0  ;;  %v2049_v28 = vmul.f32 0.95, %v2019_v58 }
 0x34d   :  { %v2374_v29 = vsel %vm2020_vm6, 1.0, %v2392_v18 }
 0x34e   :  { %v2023_v14 = vperm.slane %v2374_v29, 0  ;;  %v2050_v31 = vadd.f32 %v2049_v28, %v1912_v4 }
 0x350   :  { %v2024_v50 = vsel %vm128_vm0, %v2023_v14, %v2014_v16  ;;  %v2051_v7 = vsub.f32 %v2050_v31, %v2374_v29 }
 0x351   :  { %2025 = vst.msk [vmem:[%s3686_s5 + $0x50] sm:$0xff] %vm386_vm4, %v2024_v50 }
 0x352   :  { %v2057_v21 = vmul.f32 0.95, %v2051_v7  ;;  %vm2052_vm8 = vcmp.gt.f32.partialorder %v2051_v7, 1.0 }
 0x353   :  { %v2376_v26 = vsel %vm2052_vm8, 1.0, %v2392_v18 }
 0x354   :  { %v2061_v32 = vadd.f32 %v2059_v54, %v2057_v21  ;;  %v2055_v44 = vperm.slane %v2376_v26, 0 }
 0x356   :  { %v2062_v10 = vsub.f32 %v2061_v32, %v2376_v26  ;;  %v2056_v55 = vsel %vm65_vm7, %v2055_v44, 0.0 }
 0x358   :  { %vm2063_vm15 = vcmp.gt.f32.partialorder %v2062_v10, 1.0  ;;  %v2068_v34 = vmul.f32 0.95, %v2062_v10 }
 0x359   :  { %v2377_v11 = vsel %vm2063_vm15, 1.0, %v2392_v18 }
 0x35a   :  { %v2071_v37 = vadd.f32 %v2069_v22, %v2068_v34  ;;  %v2066_v60 = vperm.slane %v2377_v11, 0 }
 0x35c   :  { %v2072_v41 = vsub.f32 %v2071_v37, %v2377_v11  ;;  %v2067_v13 = vsel %vm74_vm9, %v2066_v60, %v2056_v55 }
 0x35d   :  { %v2046_v51 = vpop.f32.mrf.mxu1 }
 0x35e   :  { %vm2073_vm2 = vcmp.gt.f32.partialorder %v2072_v41, 1.0  ;;  %v2078_v43 = vmul.f32 0.95, %v2072_v41  ;;  %v2047_v23 = vadd.f32 %v3597_v8, %v2046_v51 }
 0x35f   :  { %v2378_v45 = vsel %vm2073_vm2, 1.0, %v2392_v18 }
 0x360   :  { %v2081_v12 = vadd.f32 %v2079_v33, %v2078_v43  ;;  %v2076_v63 = vperm.slane %v2378_v45, 0  ;;  %v2139_v31 = vrot.slane %v2047_v23, 1  ;;  %v2149_v54 = vrot.slane %v2047_v23, 2 }
 0x361   :  { %v2159_v34 = vrot.slane %v2047_v23, 3 }
 0x362   :  { %v2082_v20 = vsub.f32 %v2081_v12, %v2378_v45  ;;  %v2077_v5 = vsel %vm83_vm10, %v2076_v63, %v2067_v13 }
 0x364   :  { %vm2083_vm3 = vcmp.gt.f32.partialorder %v2082_v20, 1.0  ;;  %v2088_v47 = vmul.f32 0.95, %v2082_v20 }
 0x365   :  { %v2379_v0 = vsel %vm2083_vm3, 1.0, %v2392_v18 }
 0x366   :  { %v2091_v6 = vadd.f32 %v2089_v9, %v2088_v47  ;;  %v2086_v49 = vperm.slane %v2379_v0, 0 }
 0x368   :  { %v2092_v35 = vsub.f32 %v2091_v6, %v2379_v0  ;;  %v2087_v58 = vsel %vm92_vm11, %v2086_v49, %v2077_v5 }
 0x36a   :  { %vm2093_vm5 = vcmp.gt.f32.partialorder %v2092_v35, 1.0  ;;  %v2098_v40 = vmul.f32 0.95, %v2092_v35 }
 0x36b   :  { %v2380_v46 = vsel %vm2093_vm5, 1.0, %v2392_v18 }
 0x36c   :  { %v2101_v24 = vadd.f32 %v2099_v2, %v2098_v40  ;;  %v2096_v53 = vperm.slane %v2380_v46, 0 }
 0x36e   :  { %v2102_v52 = vsub.f32 %v2101_v24, %v2380_v46  ;;  %v2097_v42 = vsel %vm101_vm12, %v2096_v53, %v2087_v58 }
 0x370   :  { %vm2103_vm1 = vcmp.gt.f32.partialorder %v2102_v52, 1.0  ;;  %v2108_v56 = vmul.f32 0.95, %v2102_v52 }
 0x371   :  { %v2381_v30 = vsel %vm2103_vm1, 1.0, %v2392_v18 }
 0x372   :  { %v2111_v57 = vadd.f32 %v2109_v48, %v2108_v56  ;;  %v2106_v15 = vperm.slane %v2381_v30, 0 }
 0x374   :  { %v2112_v27 = vsub.f32 %v2111_v57, %v2381_v30  ;;  %v2107_v4 = vsel %vm110_vm13, %v2106_v15, %v2097_v42 }
 0x376   :  { %vm2113_vm6 = vcmp.gt.f32.partialorder %v2112_v27, 1.0  ;;  %v2118_v36 = vmul.f32 0.95, %v2112_v27 }
 0x377   :  { %v2382_v1 = vsel %vm2113_vm6, 1.0, %v2392_v18 }
 0x378   :  { %v2121_v3 = vadd.f32 %v2119_v62, %v2118_v36  ;;  %v2116_v59 = vperm.slane %v2382_v1, 0 }
 0x37a   :  { %v2122_v38 = vsub.f32 %v2121_v3, %v2382_v1  ;;  %v2117_v29 = vsel %vm119_vm14, %v2116_v59, %v2107_v4 }
 0x37c   :  { %vm2123_vm8 = vcmp.gt.f32.partialorder %v2122_v38, 1.0  ;;  %v2129_v25 = vmul.f32 0.95, %v2122_v38 }
 0x37d   :  { %v2383_v17 = vsel %vm2123_vm8, 1.0, %v2392_v18 }
 0x37e   :  { %v2126_v28 = vperm.slane %v2383_v17, 0  ;;  %v2130_v61 = vadd.f32 %v2129_v25, %v2047_v23 }
 0x380   :  { %v2127_v8 = vsel %vm128_vm0, %v2126_v28, %v2117_v29  ;;  %v2131_v19 = vsub.f32 %v2130_v61, %v2383_v17 }
 0x381   :  { %2128 = vst.msk [vmem:[%s3686_s5 + $0x58] sm:$0xff] %vm386_vm4, %v2127_v8  ;;  %vm2168_vm4 = vcmask 125952  }
 0x382   :  { %vm2132_vm12 = vcmp.gt.f32.partialorder %v2131_v19, 1.0  ;;  %v2137_v14 = vmul.f32 0.95, %v2131_v19 }
 0x383   :  { %v2384_v50 = vsel %vm2132_vm12, 1.0, %v2392_v18 }
 0x384   :  { %v2141_v16 = vadd.f32 %v2139_v31, %v2137_v14  ;;  %v2135_v41 = vperm.slane %v2384_v50, 0 }
 0x386   :  { %v2142_v7 = vsub.f32 %v2141_v16, %v2384_v50  ;;  %v2136_v45 = vsel %vm65_vm7, %v2135_v41, 0.0 }
 0x388   :  { %vm2143_vm13 = vcmp.gt.f32.partialorder %v2142_v7, 1.0  ;;  %v2148_v21 = vmul.f32 0.95, %v2142_v7 }
 0x389   :  { %v2385_v26 = vsel %vm2143_vm13, 1.0, %v2392_v18 }
 0x38a   :  { %v2151_v32 = vadd.f32 %v2149_v54, %v2148_v21  ;;  %v2146_v43 = vperm.slane %v2385_v26, 0 }
 0x38c   :  { %v2152_v10 = vsub.f32 %v2151_v32, %v2385_v26  ;;  %v2147_v47 = vsel %vm74_vm9, %v2146_v43, %v2136_v45 }
 0x38e   :  { %vm2153_vm14 = vcmp.gt.f32.partialorder %v2152_v10, 1.0  ;;  %v2158_v22 = vmul.f32 0.95, %v2152_v10 }
 0x38f   :  { %v2386_v37 = vsel %vm2153_vm14, 1.0, %v2392_v18 }
 0x390   :  { %v2161_v11 = vadd.f32 %v2159_v34, %v2158_v22  ;;  %v2156_v12 = vperm.slane %v2386_v37, 0 }
 0x392   :  { %v2162_v33 = vsub.f32 %v2161_v11, %v2386_v37  ;;  %v2157_v6 = vsel %vm83_vm10, %v2156_v12, %v2147_v47 }
 0x394   :  { %vm2163_vm0 = vcmp.gt.f32.partialorder %v2162_v33, 1.0 }
 0x395   :  { %v2387_v20 = vsel %vm2163_vm0, 1.0, %v2392_v18 }
 0x396   :  { %v2166_v9 = vperm.slane %v2387_v20, 0 }
 0x398   :  { %v2167_v0 = vsel %vm92_vm11, %v2166_v9, %v2157_v6 }
 0x399   :  { %2169 = vst.msk [vmem:[%s3686_s5 + $0x60] sm:$0xf] %vm2168_vm4, %v2167_v0 }

</bundles_post_ra>
